<compile_context>
chip_gen: v5e
topology: v5e:2x2
jax: 0.10.0
libtpu: 0.0.40
codegen_flags: <defaults>
</compile_context>

<pallas_src>
import math
import numpy as np
import jax
import jax.numpy as jnp
from jax.experimental import pallas as pl
from jax.experimental.pallas import tpu as pltpu


_LAYER_ARG_ORDER = ['ln1g', 'ln1b', 'wqkv', 'bqkv', 'wo', 'bo',
                    'ln2g', 'ln2b', 'w1', 'b1', 'w2', 'b2']


# ----------------------------------------------------------------------------- #
# Single fused kernel: embeddings + all transformer layers, no grid              #
# ----------------------------------------------------------------------------- #
def _make_fused_kernel(nhead, eps=1e-5):
    f32 = jnp.float32
    bf16 = jnp.bfloat16

    def kernel(xfeat_ref, coef_ref, wc_ref, ws_ref, bias_ref, rmask_ref, hm_ref,
               ln1g, ln1b, wqkv, bqkv, wo, bo, ln2g, ln2b, w1, b1, w2, b2,
               o_ref):
        B, S = xfeat_ref.shape
        D = hm_ref.shape[-1]
        H = nhead
        L = wqkv.shape[0]

        def layer_norm(t, g, b):
            mu = jnp.mean(t, axis=-1, keepdims=True)
            var = jnp.mean(jnp.square(t - mu), axis=-1, keepdims=True)
            return (t - mu) * jax.lax.rsqrt(var + eps) * g + b

        # ---------------- unified token embedding (all S tokens at once) ------ #
        ang = coef_ref[...][None] * xfeat_ref[...][..., None]            # (B,S,P2)
        z = (jnp.sum(jnp.cos(ang)[..., None] * wc_ref[...][None], axis=-2)
             + jnp.sum(jnp.sin(ang)[..., None] * ws_ref[...][None], axis=-2)
             + bias_ref[...][None])                                      # (B,S,D)
        # per-token ReLU mask:  relu(z) = z - min(z, 0)
        x = z - rmask_ref[...][None] * jnp.minimum(z, 0.0)               # (B,S,D)
        x2 = x.reshape(B * S, D)

        hm = hm_ref[...]                            # (H, D) head-channel mask, loaded once

        def layer_body(x2, li, use_norm):
            # -------------------- self-attention sub-block -------------------- #
            xin = layer_norm(x2, ln1g[li], ln1b[li]) if use_norm else x2
            # fused QKV projection; 1/sqrt(hd) is pre-folded into the Q columns
            qkv = jnp.dot(xin.astype(bf16), wqkv[li],
                          preferred_element_type=f32) + bqkv[li]         # (B*S, 3D)
            q = qkv[:, 0 * D:1 * D].reshape(B, S, D)
            k = qkv[:, 1 * D:2 * D].reshape(B, S, D)
            v = qkv[:, 2 * D:3 * D].reshape(B, S, D)

            # head-batched attention: heads on a leading (B*H) batch axis.
            # k/v are masked to their own head channels, so per-head scores use
            # only head-h channels and per-head contexts are channel-disjoint.
            qh = jnp.broadcast_to(q[:, None], (B, H, S, D)) \
                    .reshape(B * H, S, D).astype(bf16)
            kh = (k[:, None, :, :] * hm[None, :, None, :]) \
                    .reshape(B * H, S, D).astype(bf16)
            vh = (v[:, None, :, :] * hm[None, :, None, :]) \
                    .reshape(B * H, S, D).astype(bf16)

            s = jnp.einsum('xqd,xkd->xqk', qh, kh,
                           preferred_element_type=f32)                   # (B*H,S,S)
            s = s - jnp.max(s, axis=-1, keepdims=True)                   # exact per-head max
            e = jnp.exp(s)
            p = e * pl.reciprocal(jnp.sum(e, axis=-1, keepdims=True), approx=True)
            ctxh = jnp.einsum('xqk,xkd->xqd', p.astype(bf16), vh,
                              preferred_element_type=f32)                # (B*H,S,D)

            # per-head outputs are channel-disjoint -> sum over heads == concat
            ctxh4 = ctxh.reshape(B, H, S, D)
            ctx = ctxh4[:, 0]
            for h in range(1, H):
                ctx = ctx + ctxh4[:, h]
            ctx = ctx.reshape(B * S, D)

            attn = jnp.dot(ctx.astype(bf16), wo[li],
                           preferred_element_type=f32) + bo[li]
            x2 = x2 + attn

            # ---------------------- feed-forward sub-block -------------------- #
            xin = layer_norm(x2, ln2g[li], ln2b[li]) if use_norm else x2
            h1 = jnp.maximum(jnp.dot(xin.astype(bf16), w1[li],
                                     preferred_element_type=f32) + b1[li], 0.0)
            x2 = x2 + jnp.dot(h1.astype(bf16), w2[li],
                              preferred_element_type=f32) + b2[li]
            return x2

        # layer 0: CustomTransformerEncoderLayer (post-add residuals, NO LayerNorm)
        x2 = layer_body(x2, 0, use_norm=False)
        # layers 1..L-1: nn.TransformerEncoderLayer (norm_first=True), fully unrolled
        for li in range(1, L):
            x2 = layer_body(x2, li, use_norm=True)

        o_ref[...] = x2.reshape(B, S, D).astype(o_ref.dtype)

    return kernel


# ----------------------------------------------------------------------------- #
# Wrapper: one pallas_call (no grid) for the whole HalfBlock forward              #
# ----------------------------------------------------------------------------- #
def half_block_forward(params, x_cat, x_cont, cfg, nhead=8):
    B, n_cat = x_cat.shape
    _, n_cont = x_cont.shape
    D = cfg['embed_dim']
    S = 1 + n_cat + n_cont
    H = nhead
    assert D % H == 0
    hd = D // H
    P2 = params['coef'].shape[1]
    assert P2 >= 1

    f32 = jnp.float32
    bf16 = jnp.bfloat16

    # ----------------- host-side prep (plain XLA, free vs. the kernel) -------- #
    # feature value per token: 0 for CLS, x_cat for cat tokens, x_cont for cont
    xfeat = jnp.concatenate(
        [jnp.zeros((B, 1), f32), x_cat.astype(f32), x_cont.astype(f32)], axis=1)

    # unified periodic-linear embedding parameters over ALL S tokens
    coef_u = jnp.zeros((S, P2), f32)
    wc_u = jnp.zeros((S, P2, D), f32)
    ws_u = jnp.zeros((S, P2, D), f32)
    bias_u = jnp.zeros((S, D), f32)
    relu_u = jnp.zeros((S, 1), f32)

    # CLS token (row 0): constant embedding, no ReLU
    bias_u = bias_u.at[0].set(params['cls'][0])

    # categorical tokens (rows 1..n_cat): nn.Embedding(2,D) == w0 + x*(w1-w0), x in {0,1}
    #   encoded as  b = w0,  sin((pi/2)*x) * (w1-w0)   (sin term == x on {0,1})
    # NOTE: valid only under the module's vocab-2 guarantee (x_cat in {0,1}).
    cat_w0 = params['cat_w'][:, 0, :]
    cat_w1 = params['cat_w'][:, 1, :]
    coef_u = coef_u.at[1:1 + n_cat, 0].set(math.pi / 2.0)
    ws_u = ws_u.at[1:1 + n_cat, 0, :].set(cat_w1 - cat_w0)
    bias_u = bias_u.at[1:1 + n_cat, :].set(cat_w0)

    # continuous tokens: PeriodicEmbeddings -> NLinear -> ReLU, 2*pi folded into coef
    coef_u = coef_u.at[1 + n_cat:, :].set((2.0 * math.pi) * params['coef'])
    wc_u = wc_u.at[1 + n_cat:, :, :].set(params['nl_w'][:, :P2, :])
    ws_u = ws_u.at[1 + n_cat:, :, :].set(params['nl_w'][:, P2:, :])
    bias_u = bias_u.at[1 + n_cat:, :].set(params['nl_b'])
    relu_u = relu_u.at[1 + n_cat:, :].set(1.0)

    # per-head channel mask (H, D): hm[h, d] = 1 iff channel d belongs to head h
    hm = jnp.asarray((np.arange(D)[None, :] // hd
                      == np.arange(H)[:, None]).astype(np.float32))

    # stack layers on a leading axis; fold 1/sqrt(hd) into the Q projection and
    # cast the matmul weights to bf16 (biases / LN params stay f32).
    scale = 1.0 / math.sqrt(hd)

    def prep_layer(lp):
        wqkv = jnp.concatenate([lp['wqkv'][:, :D] * scale, lp['wqkv'][:, D:]], axis=1)
        bqkv = jnp.concatenate([lp['bqkv'][:, :D] * scale, lp['bqkv'][:, D:]], axis=1)
        return {'ln1g': lp['ln1g'], 'ln1b': lp['ln1b'],
                'wqkv': wqkv.astype(bf16), 'bqkv': bqkv,
                'wo': lp['wo'].astype(bf16), 'bo': lp['bo'],
                'ln2g': lp['ln2g'], 'ln2b': lp['ln2b'],
                'w1': lp['w1'].astype(bf16), 'b1': lp['b1'],
                'w2': lp['w2'].astype(bf16), 'b2': lp['b2']}

    layers = [prep_layer(params['custom_layer'])] \
             + [prep_layer(lp) for lp in params['encoder_layers']]
    stacked = {k: jnp.stack([lp[k] for lp in layers]) for k in _LAYER_ARG_ORDER}

    # TODO(synk): at realistic sizes (large B / D / FF), switch back to a layer
    #             grid with per-layer weight streaming (stacked BlockSpecs), add a
    #             leading "parallel" batch grid axis (2 TensorCores on v7x), and
    #             re-derive vmem_limit_bytes against 64 MiB per v7x TensorCore.
    out = pl.pallas_call(
        _make_fused_kernel(H),
        out_shape=jax.ShapeDtypeStruct((B, S, D), f32),
        compiler_params=pltpu.CompilerParams(
            vmem_limit_bytes=32 * 1024 * 1024),
    )(xfeat, coef_u, wc_u, ws_u, bias_u, relu_u, hm,
      *[stacked[k] for k in _LAYER_ARG_ORDER])
    return out


# ----------------------------------------------------------------------------- #
# Parameter construction (deterministic, synthetic)                              #
# ----------------------------------------------------------------------------- #
def init_half_block_params(key, n_cont, n_cat, cfg, mode):
    D = cfg['embed_dim']
    P = cfg['embed_dim_periodic_' + mode]
    sigma = cfg['embed_sigma_' + mode]
    Fdim = cfg['enc_FF_dim_half']
    nlayers = cfg['att_layers_half']

    keys = iter(jax.random.split(key, 128))

    def u(shape, bound):
        return jax.random.uniform(next(keys), shape, jnp.float32, -bound, bound)

    params = {}
    params['cat_w'] = jax.random.normal(next(keys), (n_cat, 2, D), jnp.float32)   # nn.Embedding(2, D)
    params['coef'] = sigma * jax.random.normal(next(keys), (n_cont, P // 2), jnp.float32)
    nl_bound = 1.0 / math.sqrt(P)
    params['nl_w'] = u((n_cont, P, D), nl_bound)                                  # NLinear weight
    params['nl_b'] = u((n_cont, D), nl_bound)                                     # NLinear bias
    params['cls'] = u((1, D), 1.0 / math.sqrt(D))                                 # CLSEmbedding

    def layer_params():
        lp = {}
        lp['wqkv'] = u((D, 3 * D), 1.0 / math.sqrt(D))        # in_proj (stored d_in x d_out)
        lp['bqkv'] = jnp.zeros((1, 3 * D), jnp.float32)
        lp['wo'] = u((D, D), 1.0 / math.sqrt(D))              # out_proj
        lp['bo'] = jnp.zeros((1, D), jnp.float32)
        lp['w1'] = u((D, Fdim), math.sqrt(6.0 / D))           # linear1 (kaiming-ish)
        lp['b1'] = u((1, Fdim), 1.0 / math.sqrt(D))
        lp['w2'] = u((Fdim, D), math.sqrt(6.0 / Fdim))        # linear2
        lp['b2'] = u((1, D), 1.0 / math.sqrt(Fdim))
        lp['ln1g'] = jnp.ones((1, D), jnp.float32)
        lp['ln1b'] = jnp.zeros((1, D), jnp.float32)
        lp['ln2g'] = jnp.ones((1, D), jnp.float32)
        lp['ln2b'] = jnp.zeros((1, D), jnp.float32)
        return lp

    params['custom_layer'] = layer_params()                  # CustomTransformerEncoderLayer (no LN)
    params['encoder_layers'] = [layer_params() for _ in range(nlayers)]
    return params


# ----------------------------------------------------------------------------- #
# Plain-JAX reference (f32 everywhere, for numerical sanity check)               #
# ----------------------------------------------------------------------------- #
def half_block_reference(params, x_cat, x_cont, cfg):
    D = cfg['embed_dim']
    B, n_cat = x_cat.shape
    cat_emb = jnp.stack([params['cat_w'][i][x_cat[:, i]] for i in range(n_cat)], axis=1)
    v = 2.0 * math.pi * params['coef'][None] * x_cont[..., None]
    pe = jnp.concatenate([jnp.cos(v), jnp.sin(v)], axis=-1)
    y = jnp.sum(pe[..., None] * params['nl_w'][None], axis=-2) + params['nl_b'][None]
    cont_emb = jax.nn.relu(y)
    cls_tok = jnp.broadcast_to(params['cls'][None], (B, 1, D))
    x = jnp.concatenate([cls_tok, cat_emb, cont_emb], axis=1)

    def layer(x, lp, use_norm):
        H, hd = 8, D // 8

        def ln(t, g, b):
            mu = jnp.mean(t, -1, keepdims=True)
            var = jnp.mean((t - mu) ** 2, -1, keepdims=True)
            return (t - mu) / jnp.sqrt(var + 1e-5) * g + b

        Bq, S, _ = x.shape
        xin = ln(x, lp['ln1g'], lp['ln1b']) if use_norm else x
        qkv = xin @ lp['wqkv'] + lp['bqkv']
        q, k, v_ = qkv[..., :D], qkv[..., D:2 * D], qkv[..., 2 * D:]

        def split(t):
            return t.reshape(Bq, S, H, hd).transpose(0, 2, 1, 3)

        qh, kh, vh = split(q), split(k), split(v_)
        s = jnp.einsum('bhqc,bhkc->bhqk', qh, kh) / math.sqrt(hd)
        p = jax.nn.softmax(s, axis=-1)
        ctx = jnp.einsum('bhqk,bhkc->bhqc', p, vh).transpose(0, 2, 1, 3).reshape(Bq, S, D)
        x = x + ctx @ lp['wo'] + lp['bo']

        xin = ln(x, lp['ln2g'], lp['ln2b']) if use_norm else x
        h1 = jax.nn.relu(xin @ lp['w1'] + lp['b1'])
        x = x + h1 @ lp['w2'] + lp['b2']
        return x

    x = layer(x, params['custom_layer'], False)
    for lp in params['encoder_layers']:
        x = layer(x, lp, True)
    return x


# ----------------------------------------------------------------------------- #
if __name__ == "__main__":
    cfg = {
        'embed_dim': 32,
        'att_dropout_half': 0.0,          # dropout == identity at inference
        'enc_FF_dim_half': 64,
        'att_layers_half': 2,
        'embed_sigma_demo': 0.1,
        'embed_dim_periodic_demo': 8,
    }
    mode = 'demo'
    B, n_cat, n_cont = 2, 3, 4

    key = jax.random.PRNGKey(0)
    kp, kcat, kcont = jax.random.split(key, 3)
    params = init_half_block_params(kp, n_cont, n_cat, cfg, mode)
    x_cat = jax.random.bernoulli(kcat, 0.5, (B, n_cat)).astype(jnp.int32)   # vocab size 2
    x_cont = jax.random.normal(kcont, (B, n_cont), jnp.float32)

    out = half_block_forward(params, x_cat, x_cont, cfg)
    out = jax.block_until_ready(out)

    assert out.shape == (B, 1 + n_cat + n_cont, cfg['embed_dim'])
    ref = half_block_reference(params, x_cat, x_cont, cfg)
    # tolerance dominated by bf16 MXU operands (weights + activations at matmul
    # boundaries) and the approximate softmax reciprocal.
    np.testing.assert_allclose(np.asarray(out), np.asarray(ref), rtol=5e-2, atol=5e-2)

    print("KERNEL_OK")
</pallas_src>

<mosaic_0001>
module attributes {stable_mosaic.version = 11 : i64} {
  func.func @kernel(%arg0: memref<2x8xf32, #tpu.memory_space<vmem>>, %arg1: memref<8x4xf32, #tpu.memory_space<vmem>>, %arg2: memref<8x4x32xf32, #tpu.memory_space<vmem>>, %arg3: memref<8x4x32xf32, #tpu.memory_space<vmem>>, %arg4: memref<8x32xf32, #tpu.memory_space<vmem>>, %arg5: memref<8x1xf32, #tpu.memory_space<vmem>>, %arg6: memref<8x32xf32, #tpu.memory_space<vmem>>, %arg7: memref<3x1x32xf32, #tpu.memory_space<vmem>>, %arg8: memref<3x1x32xf32, #tpu.memory_space<vmem>>, %arg9: memref<3x32x96xbf16, #tpu.memory_space<vmem>>, %arg10: memref<3x1x96xf32, #tpu.memory_space<vmem>>, %arg11: memref<3x32x32xbf16, #tpu.memory_space<vmem>>, %arg12: memref<3x1x32xf32, #tpu.memory_space<vmem>>, %arg13: memref<3x1x32xf32, #tpu.memory_space<vmem>>, %arg14: memref<3x1x32xf32, #tpu.memory_space<vmem>>, %arg15: memref<3x32x64xbf16, #tpu.memory_space<vmem>>, %arg16: memref<3x1x64xf32, #tpu.memory_space<vmem>>, %arg17: memref<3x64x32xbf16, #tpu.memory_space<vmem>>, %arg18: memref<3x1x32xf32, #tpu.memory_space<vmem>>, %arg19: memref<2x8x32xf32, #tpu.memory_space<vmem>>) attributes {dimension_semantics = [], scalar_prefetch = 0 : i64, scratch_operands = 0 : i64, tpu.core_type = #tpu.core_type<tc>} {
    %c0 = arith.constant 0 : index
    %c0_0 = arith.constant 0 : index
    %0 = vector.load %arg1[%c0, %c0_0] : memref<8x4xf32, #tpu.memory_space<vmem>>, vector<8x4xf32>
    %1 = vector.shape_cast %0 : vector<8x4xf32> to vector<1x8x4xf32>
    %c0_1 = arith.constant 0 : index
    %c0_2 = arith.constant 0 : index
    %2 = vector.load %arg0[%c0_1, %c0_2] : memref<2x8xf32, #tpu.memory_space<vmem>>, vector<2x8xf32>
    %3 = vector.shape_cast %2 : vector<2x8xf32> to vector<2x8x1xf32>
    %4 = vector.broadcast %1 : vector<1x8x4xf32> to vector<2x8x4xf32>
    %5 = vector.broadcast %3 : vector<2x8x1xf32> to vector<2x8x4xf32>
    %6 = arith.mulf %4, %5 : vector<2x8x4xf32>
    %7 = math.cos %6 : vector<2x8x4xf32>
    %8 = vector.shape_cast %7 : vector<2x8x4xf32> to vector<2x8x4x1xf32>
    %c0_3 = arith.constant 0 : index
    %c0_4 = arith.constant 0 : index
    %c0_5 = arith.constant 0 : index
    %9 = vector.load %arg2[%c0_3, %c0_4, %c0_5] : memref<8x4x32xf32, #tpu.memory_space<vmem>>, vector<8x4x32xf32>
    %10 = vector.shape_cast %9 : vector<8x4x32xf32> to vector<1x8x4x32xf32>
    %11 = vector.broadcast %8 : vector<2x8x4x1xf32> to vector<2x8x4x32xf32>
    %12 = vector.broadcast %10 : vector<1x8x4x32xf32> to vector<2x8x4x32xf32>
    %13 = arith.mulf %11, %12 : vector<2x8x4x32xf32>
    %cst = arith.constant dense<0.000000e+00> : vector<2x8x32xf32>
    %14 = vector.multi_reduction <add>, %13, %cst [2] : vector<2x8x4x32xf32> to vector<2x8x32xf32>
    %15 = math.sin %6 : vector<2x8x4xf32>
    %16 = vector.shape_cast %15 : vector<2x8x4xf32> to vector<2x8x4x1xf32>
    %c0_6 = arith.constant 0 : index
    %c0_7 = arith.constant 0 : index
    %c0_8 = arith.constant 0 : index
    %17 = vector.load %arg3[%c0_6, %c0_7, %c0_8] : memref<8x4x32xf32, #tpu.memory_space<vmem>>, vector<8x4x32xf32>
    %18 = vector.shape_cast %17 : vector<8x4x32xf32> to vector<1x8x4x32xf32>
    %19 = vector.broadcast %16 : vector<2x8x4x1xf32> to vector<2x8x4x32xf32>
    %20 = vector.broadcast %18 : vector<1x8x4x32xf32> to vector<2x8x4x32xf32>
    %21 = arith.mulf %19, %20 : vector<2x8x4x32xf32>
    %cst_9 = arith.constant dense<0.000000e+00> : vector<2x8x32xf32>
    %22 = vector.multi_reduction <add>, %21, %cst_9 [2] : vector<2x8x4x32xf32> to vector<2x8x32xf32>
    %23 = arith.addf %14, %22 : vector<2x8x32xf32>
    %c0_10 = arith.constant 0 : index
    %c0_11 = arith.constant 0 : index
    %24 = vector.load %arg4[%c0_10, %c0_11] : memref<8x32xf32, #tpu.memory_space<vmem>>, vector<8x32xf32>
    %25 = vector.shape_cast %24 : vector<8x32xf32> to vector<1x8x32xf32>
    %26 = vector.broadcast %25 : vector<1x8x32xf32> to vector<2x8x32xf32>
    %27 = arith.addf %23, %26 : vector<2x8x32xf32>
    %c0_12 = arith.constant 0 : index
    %c0_13 = arith.constant 0 : index
    %28 = vector.load %arg5[%c0_12, %c0_13] : memref<8x1xf32, #tpu.memory_space<vmem>>, vector<8x1xf32>
    %29 = vector.shape_cast %28 : vector<8x1xf32> to vector<1x8x1xf32>
    %cst_14 = arith.constant 0.000000e+00 : f32
    %30 = vector.broadcast %cst_14 : f32 to vector<2x8x32xf32>
    %31 = arith.minimumf %27, %30 : vector<2x8x32xf32>
    %32 = vector.broadcast %29 : vector<1x8x1xf32> to vector<2x8x32xf32>
    %33 = arith.mulf %32, %31 : vector<2x8x32xf32>
    %34 = arith.subf %27, %33 : vector<2x8x32xf32>
    %35 = vector.shape_cast %34 : vector<2x8x32xf32> to vector<16x32xf32>
    %c0_15 = arith.constant 0 : index
    %c0_16 = arith.constant 0 : index
    %36 = vector.load %arg6[%c0_15, %c0_16] : memref<8x32xf32, #tpu.memory_space<vmem>>, vector<8x32xf32>
    %37 = arith.truncf %35 : vector<16x32xf32> to vector<16x32xbf16>
    %c0_17 = arith.constant 0 : index
    %c0_18 = arith.constant 0 : index
    %c0_19 = arith.constant 0 : index
    %38 = vector.load %arg9[%c0_17, %c0_18, %c0_19] : memref<3x32x96xbf16, #tpu.memory_space<vmem>>, vector<1x32x96xbf16>
    %39 = vector.shape_cast %38 : vector<1x32x96xbf16> to vector<32x96xbf16>
    %cst_20 = arith.constant dense<0.000000e+00> : vector<16x96xf32>
    %40 = tpu.matmul %37, %39, %cst_20 {dimension_numbers = #tpu.dot_dimension_numbers<[1], [0], [0], [1], [0, 0, 1, 1], [], []>} : vector<16x32xbf16>, vector<32x96xbf16>, vector<16x96xf32> -> vector<16x96xf32>
    %c0_21 = arith.constant 0 : index
    %c0_22 = arith.constant 0 : index
    %c0_23 = arith.constant 0 : index
    %41 = vector.load %arg10[%c0_21, %c0_22, %c0_23] : memref<3x1x96xf32, #tpu.memory_space<vmem>>, vector<1x1x96xf32>
    %42 = vector.shape_cast %41 : vector<1x1x96xf32> to vector<1x96xf32>
    %43 = vector.broadcast %42 : vector<1x96xf32> to vector<16x96xf32>
    %44 = arith.addf %40, %43 : vector<16x96xf32>
    %45 = vector.extract_strided_slice %44 {offsets = [0, 0], sizes = [16, 32], strides = [1, 1]} : vector<16x96xf32> to vector<16x32xf32>
    %46 = vector.shape_cast %45 : vector<16x32xf32> to vector<2x8x32xf32>
    %47 = vector.extract_strided_slice %44 {offsets = [0, 32], sizes = [16, 32], strides = [1, 1]} : vector<16x96xf32> to vector<16x32xf32>
    %48 = vector.shape_cast %47 : vector<16x32xf32> to vector<2x8x32xf32>
    %49 = vector.extract_strided_slice %44 {offsets = [0, 64], sizes = [16, 32], strides = [1, 1]} : vector<16x96xf32> to vector<16x32xf32>
    %50 = vector.shape_cast %49 : vector<16x32xf32> to vector<2x8x32xf32>
    %51 = vector.shape_cast %46 : vector<2x8x32xf32> to vector<2x1x8x32xf32>
    %52 = vector.shape_cast %51 : vector<2x1x8x32xf32> to vector<2x1x8x32xf32>
    %53 = vector.broadcast %52 : vector<2x1x8x32xf32> to vector<2x8x8x32xf32>
    %54 = vector.shape_cast %53 : vector<2x8x8x32xf32> to vector<16x8x32xf32>
    %55 = arith.truncf %54 : vector<16x8x32xf32> to vector<16x8x32xbf16>
    %56 = vector.shape_cast %48 : vector<2x8x32xf32> to vector<2x1x8x32xf32>
    %57 = vector.shape_cast %36 : vector<8x32xf32> to vector<1x8x1x32xf32>
    %58 = vector.broadcast %56 : vector<2x1x8x32xf32> to vector<2x8x8x32xf32>
    %59 = vector.broadcast %57 : vector<1x8x1x32xf32> to vector<2x8x8x32xf32>
    %60 = arith.mulf %58, %59 : vector<2x8x8x32xf32>
    %61 = vector.shape_cast %60 : vector<2x8x8x32xf32> to vector<16x8x32xf32>
    %62 = arith.truncf %61 : vector<16x8x32xf32> to vector<16x8x32xbf16>
    %63 = vector.shape_cast %50 : vector<2x8x32xf32> to vector<2x1x8x32xf32>
    %64 = vector.shape_cast %36 : vector<8x32xf32> to vector<1x8x1x32xf32>
    %65 = vector.broadcast %63 : vector<2x1x8x32xf32> to vector<2x8x8x32xf32>
    %66 = vector.broadcast %64 : vector<1x8x1x32xf32> to vector<2x8x8x32xf32>
    %67 = arith.mulf %65, %66 : vector<2x8x8x32xf32>
    %68 = vector.shape_cast %67 : vector<2x8x8x32xf32> to vector<16x8x32xf32>
    %69 = arith.truncf %68 : vector<16x8x32xf32> to vector<16x8x32xbf16>
    "tpu.trace_start"() <{level = 10 : i32, message = "xqd,xkd->xqk"}> : () -> ()
    %cst_24 = arith.constant dense<0.000000e+00> : vector<16x8x8xf32>
    %70 = tpu.matmul %55, %62, %cst_24 {dimension_numbers = #tpu.dot_dimension_numbers<[2], [2], [1], [1], [0, 0, 0, 1, 1, 1], [0], [0]>} : vector<16x8x32xbf16>, vector<16x8x32xbf16>, vector<16x8x8xf32> -> vector<16x8x8xf32>
    "tpu.trace_stop"() : () -> ()
    %cst_25 = arith.constant dense<0xFF800000> : vector<16x8xf32>
    %71 = vector.multi_reduction <maximumf>, %70, %cst_25 [2] : vector<16x8x8xf32> to vector<16x8xf32>
    %72 = vector.shape_cast %71 : vector<16x8xf32> to vector<16x8x1xf32>
    %73 = vector.broadcast %72 : vector<16x8x1xf32> to vector<16x8x8xf32>
    %74 = arith.subf %70, %73 : vector<16x8x8xf32>
    %75 = math.exp %74 : vector<16x8x8xf32>
    %cst_26 = arith.constant dense<0.000000e+00> : vector<16x8xf32>
    %76 = vector.multi_reduction <add>, %75, %cst_26 [2] : vector<16x8x8xf32> to vector<16x8xf32>
    %77 = vector.shape_cast %76 : vector<16x8xf32> to vector<16x8x1xf32>
    %78 = tpu.reciprocal %77 {approx = true} : vector<16x8x1xf32> -> vector<16x8x1xf32>
    %79 = vector.broadcast %78 : vector<16x8x1xf32> to vector<16x8x8xf32>
    %80 = arith.mulf %75, %79 : vector<16x8x8xf32>
    %81 = arith.truncf %80 : vector<16x8x8xf32> to vector<16x8x8xbf16>
    "tpu.trace_start"() <{level = 10 : i32, message = "xqk,xkd->xqd"}> : () -> ()
    %cst_27 = arith.constant dense<0.000000e+00> : vector<16x8x32xf32>
    %82 = tpu.matmul %81, %69, %cst_27 {dimension_numbers = #tpu.dot_dimension_numbers<[2], [1], [1], [2], [0, 0, 0, 1, 1, 2], [0], [0]>} : vector<16x8x8xbf16>, vector<16x8x32xbf16>, vector<16x8x32xf32> -> vector<16x8x32xf32>
    "tpu.trace_stop"() : () -> ()
    %83 = vector.shape_cast %82 : vector<16x8x32xf32> to vector<2x8x8x32xf32>
    %84 = vector.extract_strided_slice %83 {offsets = [0, 0, 0, 0], sizes = [2, 1, 8, 32], strides = [1, 1, 1, 1]} : vector<2x8x8x32xf32> to vector<2x1x8x32xf32>
    %85 = vector.shape_cast %84 : vector<2x1x8x32xf32> to vector<2x8x32xf32>
    %86 = vector.extract_strided_slice %83 {offsets = [0, 1, 0, 0], sizes = [2, 1, 8, 32], strides = [1, 1, 1, 1]} : vector<2x8x8x32xf32> to vector<2x1x8x32xf32>
    %87 = vector.shape_cast %86 : vector<2x1x8x32xf32> to vector<2x8x32xf32>
    %88 = arith.addf %85, %87 : vector<2x8x32xf32>
    %89 = vector.extract_strided_slice %83 {offsets = [0, 2, 0, 0], sizes = [2, 1, 8, 32], strides = [1, 1, 1, 1]} : vector<2x8x8x32xf32> to vector<2x1x8x32xf32>
    %90 = vector.shape_cast %89 : vector<2x1x8x32xf32> to vector<2x8x32xf32>
    %91 = arith.addf %88, %90 : vector<2x8x32xf32>
    %92 = vector.extract_strided_slice %83 {offsets = [0, 3, 0, 0], sizes = [2, 1, 8, 32], strides = [1, 1, 1, 1]} : vector<2x8x8x32xf32> to vector<2x1x8x32xf32>
    %93 = vector.shape_cast %92 : vector<2x1x8x32xf32> to vector<2x8x32xf32>
    %94 = arith.addf %91, %93 : vector<2x8x32xf32>
    %95 = vector.extract_strided_slice %83 {offsets = [0, 4, 0, 0], sizes = [2, 1, 8, 32], strides = [1, 1, 1, 1]} : vector<2x8x8x32xf32> to vector<2x1x8x32xf32>
    %96 = vector.shape_cast %95 : vector<2x1x8x32xf32> to vector<2x8x32xf32>
    %97 = arith.addf %94, %96 : vector<2x8x32xf32>
    %98 = vector.extract_strided_slice %83 {offsets = [0, 5, 0, 0], sizes = [2, 1, 8, 32], strides = [1, 1, 1, 1]} : vector<2x8x8x32xf32> to vector<2x1x8x32xf32>
    %99 = vector.shape_cast %98 : vector<2x1x8x32xf32> to vector<2x8x32xf32>
    %100 = arith.addf %97, %99 : vector<2x8x32xf32>
    %101 = vector.extract_strided_slice %83 {offsets = [0, 6, 0, 0], sizes = [2, 1, 8, 32], strides = [1, 1, 1, 1]} : vector<2x8x8x32xf32> to vector<2x1x8x32xf32>
    %102 = vector.shape_cast %101 : vector<2x1x8x32xf32> to vector<2x8x32xf32>
    %103 = arith.addf %100, %102 : vector<2x8x32xf32>
    %104 = vector.extract_strided_slice %83 {offsets = [0, 7, 0, 0], sizes = [2, 1, 8, 32], strides = [1, 1, 1, 1]} : vector<2x8x8x32xf32> to vector<2x1x8x32xf32>
    %105 = vector.shape_cast %104 : vector<2x1x8x32xf32> to vector<2x8x32xf32>
    %106 = arith.addf %103, %105 : vector<2x8x32xf32>
    %107 = vector.shape_cast %106 : vector<2x8x32xf32> to vector<16x32xf32>
    %108 = arith.truncf %107 : vector<16x32xf32> to vector<16x32xbf16>
    %c0_28 = arith.constant 0 : index
    %c0_29 = arith.constant 0 : index
    %c0_30 = arith.constant 0 : index
    %109 = vector.load %arg11[%c0_28, %c0_29, %c0_30] : memref<3x32x32xbf16, #tpu.memory_space<vmem>>, vector<1x32x32xbf16>
    %110 = vector.shape_cast %109 : vector<1x32x32xbf16> to vector<32x32xbf16>
    %cst_31 = arith.constant dense<0.000000e+00> : vector<16x32xf32>
    %111 = tpu.matmul %108, %110, %cst_31 {dimension_numbers = #tpu.dot_dimension_numbers<[1], [0], [0], [1], [0, 0, 1, 1], [], []>} : vector<16x32xbf16>, vector<32x32xbf16>, vector<16x32xf32> -> vector<16x32xf32>
    %c0_32 = arith.constant 0 : index
    %c0_33 = arith.constant 0 : index
    %c0_34 = arith.constant 0 : index
    %112 = vector.load %arg12[%c0_32, %c0_33, %c0_34] : memref<3x1x32xf32, #tpu.memory_space<vmem>>, vector<1x1x32xf32>
    %113 = vector.shape_cast %112 : vector<1x1x32xf32> to vector<1x32xf32>
    %114 = vector.broadcast %113 : vector<1x32xf32> to vector<16x32xf32>
    %115 = arith.addf %111, %114 : vector<16x32xf32>
    %116 = arith.addf %35, %115 : vector<16x32xf32>
    %117 = arith.truncf %116 : vector<16x32xf32> to vector<16x32xbf16>
    %c0_35 = arith.constant 0 : index
    %c0_36 = arith.constant 0 : index
    %c0_37 = arith.constant 0 : index
    %118 = vector.load %arg15[%c0_35, %c0_36, %c0_37] : memref<3x32x64xbf16, #tpu.memory_space<vmem>>, vector<1x32x64xbf16>
    %119 = vector.shape_cast %118 : vector<1x32x64xbf16> to vector<32x64xbf16>
    %cst_38 = arith.constant dense<0.000000e+00> : vector<16x64xf32>
    %120 = tpu.matmul %117, %119, %cst_38 {dimension_numbers = #tpu.dot_dimension_numbers<[1], [0], [0], [1], [0, 0, 1, 1], [], []>} : vector<16x32xbf16>, vector<32x64xbf16>, vector<16x64xf32> -> vector<16x64xf32>
    %c0_39 = arith.constant 0 : index
    %c0_40 = arith.constant 0 : index
    %c0_41 = arith.constant 0 : index
    %121 = vector.load %arg16[%c0_39, %c0_40, %c0_41] : memref<3x1x64xf32, #tpu.memory_space<vmem>>, vector<1x1x64xf32>
    %122 = vector.shape_cast %121 : vector<1x1x64xf32> to vector<1x64xf32>
    %123 = vector.broadcast %122 : vector<1x64xf32> to vector<16x64xf32>
    %124 = arith.addf %120, %123 : vector<16x64xf32>
    %cst_42 = arith.constant 0.000000e+00 : f32
    %125 = vector.broadcast %cst_42 : f32 to vector<16x64xf32>
    %126 = arith.maximumf %124, %125 : vector<16x64xf32>
    %127 = arith.truncf %126 : vector<16x64xf32> to vector<16x64xbf16>
    %c0_43 = arith.constant 0 : index
    %c0_44 = arith.constant 0 : index
    %c0_45 = arith.constant 0 : index
    %128 = vector.load %arg17[%c0_43, %c0_44, %c0_45] : memref<3x64x32xbf16, #tpu.memory_space<vmem>>, vector<1x64x32xbf16>
    %129 = vector.shape_cast %128 : vector<1x64x32xbf16> to vector<64x32xbf16>
    %cst_46 = arith.constant dense<0.000000e+00> : vector<16x32xf32>
    %130 = tpu.matmul %127, %129, %cst_46 {dimension_numbers = #tpu.dot_dimension_numbers<[1], [0], [0], [1], [0, 0, 1, 1], [], []>} : vector<16x64xbf16>, vector<64x32xbf16>, vector<16x32xf32> -> vector<16x32xf32>
    %131 = arith.addf %116, %130 : vector<16x32xf32>
    %c0_47 = arith.constant 0 : index
    %c0_48 = arith.constant 0 : index
    %c0_49 = arith.constant 0 : index
    %132 = vector.load %arg18[%c0_47, %c0_48, %c0_49] : memref<3x1x32xf32, #tpu.memory_space<vmem>>, vector<1x1x32xf32>
    %133 = vector.shape_cast %132 : vector<1x1x32xf32> to vector<1x32xf32>
    %134 = vector.broadcast %133 : vector<1x32xf32> to vector<16x32xf32>
    %135 = arith.addf %131, %134 : vector<16x32xf32>
    %c1 = arith.constant 1 : index
    %c0_50 = arith.constant 0 : index
    %c0_51 = arith.constant 0 : index
    %136 = vector.load %arg7[%c1, %c0_50, %c0_51] : memref<3x1x32xf32, #tpu.memory_space<vmem>>, vector<1x1x32xf32>
    %137 = vector.shape_cast %136 : vector<1x1x32xf32> to vector<1x32xf32>
    %c1_52 = arith.constant 1 : index
    %c0_53 = arith.constant 0 : index
    %c0_54 = arith.constant 0 : index
    %138 = vector.load %arg8[%c1_52, %c0_53, %c0_54] : memref<3x1x32xf32, #tpu.memory_space<vmem>>, vector<1x1x32xf32>
    %139 = vector.shape_cast %138 : vector<1x1x32xf32> to vector<1x32xf32>
    %cst_55 = arith.constant dense<0.000000e+00> : vector<16xf32>
    %140 = vector.multi_reduction <add>, %135, %cst_55 [1] : vector<16x32xf32> to vector<16xf32>
    %141 = vector.shape_cast %140 : vector<16xf32> to vector<16x1xf32>
    %cst_56 = arith.constant 3.200000e+01 : f32
    %142 = vector.broadcast %cst_56 : f32 to vector<16x1xf32>
    %143 = arith.divf %141, %142 : vector<16x1xf32>
    %144 = vector.broadcast %143 : vector<16x1xf32> to vector<16x32xf32>
    %145 = arith.subf %135, %144 : vector<16x32xf32>
    %146 = arith.mulf %145, %145 : vector<16x32xf32>
    %cst_57 = arith.constant dense<0.000000e+00> : vector<16xf32>
    %147 = vector.multi_reduction <add>, %146, %cst_57 [1] : vector<16x32xf32> to vector<16xf32>
    %148 = vector.shape_cast %147 : vector<16xf32> to vector<16x1xf32>
    %cst_58 = arith.constant 3.200000e+01 : f32
    %149 = vector.broadcast %cst_58 : f32 to vector<16x1xf32>
    %150 = arith.divf %148, %149 : vector<16x1xf32>
    %151 = vector.broadcast %143 : vector<16x1xf32> to vector<16x32xf32>
    %152 = arith.subf %135, %151 : vector<16x32xf32>
    %cst_59 = arith.constant 9.99999974E-6 : f32
    %153 = vector.broadcast %cst_59 : f32 to vector<16x1xf32>
    %154 = arith.addf %150, %153 : vector<16x1xf32>
    %155 = math.rsqrt %154 : vector<16x1xf32>
    %156 = vector.broadcast %155 : vector<16x1xf32> to vector<16x32xf32>
    %157 = arith.mulf %152, %156 : vector<16x32xf32>
    %158 = vector.broadcast %137 : vector<1x32xf32> to vector<16x32xf32>
    %159 = arith.mulf %157, %158 : vector<16x32xf32>
    %160 = vector.broadcast %139 : vector<1x32xf32> to vector<16x32xf32>
    %161 = arith.addf %159, %160 : vector<16x32xf32>
    %162 = arith.truncf %161 : vector<16x32xf32> to vector<16x32xbf16>
    %c1_60 = arith.constant 1 : index
    %c0_61 = arith.constant 0 : index
    %c0_62 = arith.constant 0 : index
    %163 = vector.load %arg9[%c1_60, %c0_61, %c0_62] : memref<3x32x96xbf16, #tpu.memory_space<vmem>>, vector<1x32x96xbf16>
    %164 = vector.shape_cast %163 : vector<1x32x96xbf16> to vector<32x96xbf16>
    %cst_63 = arith.constant dense<0.000000e+00> : vector<16x96xf32>
    %165 = tpu.matmul %162, %164, %cst_63 {dimension_numbers = #tpu.dot_dimension_numbers<[1], [0], [0], [1], [0, 0, 1, 1], [], []>} : vector<16x32xbf16>, vector<32x96xbf16>, vector<16x96xf32> -> vector<16x96xf32>
    %c1_64 = arith.constant 1 : index
    %c0_65 = arith.constant 0 : index
    %c0_66 = arith.constant 0 : index
    %166 = vector.load %arg10[%c1_64, %c0_65, %c0_66] : memref<3x1x96xf32, #tpu.memory_space<vmem>>, vector<1x1x96xf32>
    %167 = vector.shape_cast %166 : vector<1x1x96xf32> to vector<1x96xf32>
    %168 = vector.broadcast %167 : vector<1x96xf32> to vector<16x96xf32>
    %169 = arith.addf %165, %168 : vector<16x96xf32>
    %170 = vector.extract_strided_slice %169 {offsets = [0, 0], sizes = [16, 32], strides = [1, 1]} : vector<16x96xf32> to vector<16x32xf32>
    %171 = vector.shape_cast %170 : vector<16x32xf32> to vector<2x8x32xf32>
    %172 = vector.extract_strided_slice %169 {offsets = [0, 32], sizes = [16, 32], strides = [1, 1]} : vector<16x96xf32> to vector<16x32xf32>
    %173 = vector.shape_cast %172 : vector<16x32xf32> to vector<2x8x32xf32>
    %174 = vector.extract_strided_slice %169 {offsets = [0, 64], sizes = [16, 32], strides = [1, 1]} : vector<16x96xf32> to vector<16x32xf32>
    %175 = vector.shape_cast %174 : vector<16x32xf32> to vector<2x8x32xf32>
    %176 = vector.shape_cast %171 : vector<2x8x32xf32> to vector<2x1x8x32xf32>
    %177 = vector.shape_cast %176 : vector<2x1x8x32xf32> to vector<2x1x8x32xf32>
    %178 = vector.broadcast %177 : vector<2x1x8x32xf32> to vector<2x8x8x32xf32>
    %179 = vector.shape_cast %178 : vector<2x8x8x32xf32> to vector<16x8x32xf32>
    %180 = arith.truncf %179 : vector<16x8x32xf32> to vector<16x8x32xbf16>
    %181 = vector.shape_cast %173 : vector<2x8x32xf32> to vector<2x1x8x32xf32>
    %182 = vector.shape_cast %36 : vector<8x32xf32> to vector<1x8x1x32xf32>
    %183 = vector.broadcast %181 : vector<2x1x8x32xf32> to vector<2x8x8x32xf32>
    %184 = vector.broadcast %182 : vector<1x8x1x32xf32> to vector<2x8x8x32xf32>
    %185 = arith.mulf %183, %184 : vector<2x8x8x32xf32>
    %186 = vector.shape_cast %185 : vector<2x8x8x32xf32> to vector<16x8x32xf32>
    %187 = arith.truncf %186 : vector<16x8x32xf32> to vector<16x8x32xbf16>
    %188 = vector.shape_cast %175 : vector<2x8x32xf32> to vector<2x1x8x32xf32>
    %189 = vector.shape_cast %36 : vector<8x32xf32> to vector<1x8x1x32xf32>
    %190 = vector.broadcast %188 : vector<2x1x8x32xf32> to vector<2x8x8x32xf32>
    %191 = vector.broadcast %189 : vector<1x8x1x32xf32> to vector<2x8x8x32xf32>
    %192 = arith.mulf %190, %191 : vector<2x8x8x32xf32>
    %193 = vector.shape_cast %192 : vector<2x8x8x32xf32> to vector<16x8x32xf32>
    %194 = arith.truncf %193 : vector<16x8x32xf32> to vector<16x8x32xbf16>
    "tpu.trace_start"() <{level = 10 : i32, message = "xqd,xkd->xqk"}> : () -> ()
    %cst_67 = arith.constant dense<0.000000e+00> : vector<16x8x8xf32>
    %195 = tpu.matmul %180, %187, %cst_67 {dimension_numbers = #tpu.dot_dimension_numbers<[2], [2], [1], [1], [0, 0, 0, 1, 1, 1], [0], [0]>} : vector<16x8x32xbf16>, vector<16x8x32xbf16>, vector<16x8x8xf32> -> vector<16x8x8xf32>
    "tpu.trace_stop"() : () -> ()
    %cst_68 = arith.constant dense<0xFF800000> : vector<16x8xf32>
    %196 = vector.multi_reduction <maximumf>, %195, %cst_68 [2] : vector<16x8x8xf32> to vector<16x8xf32>
    %197 = vector.shape_cast %196 : vector<16x8xf32> to vector<16x8x1xf32>
    %198 = vector.broadcast %197 : vector<16x8x1xf32> to vector<16x8x8xf32>
    %199 = arith.subf %195, %198 : vector<16x8x8xf32>
    %200 = math.exp %199 : vector<16x8x8xf32>
    %cst_69 = arith.constant dense<0.000000e+00> : vector<16x8xf32>
    %201 = vector.multi_reduction <add>, %200, %cst_69 [2] : vector<16x8x8xf32> to vector<16x8xf32>
    %202 = vector.shape_cast %201 : vector<16x8xf32> to vector<16x8x1xf32>
    %203 = tpu.reciprocal %202 {approx = true} : vector<16x8x1xf32> -> vector<16x8x1xf32>
    %204 = vector.broadcast %203 : vector<16x8x1xf32> to vector<16x8x8xf32>
    %205 = arith.mulf %200, %204 : vector<16x8x8xf32>
    %206 = arith.truncf %205 : vector<16x8x8xf32> to vector<16x8x8xbf16>
    "tpu.trace_start"() <{level = 10 : i32, message = "xqk,xkd->xqd"}> : () -> ()
    %cst_70 = arith.constant dense<0.000000e+00> : vector<16x8x32xf32>
    %207 = tpu.matmul %206, %194, %cst_70 {dimension_numbers = #tpu.dot_dimension_numbers<[2], [1], [1], [2], [0, 0, 0, 1, 1, 2], [0], [0]>} : vector<16x8x8xbf16>, vector<16x8x32xbf16>, vector<16x8x32xf32> -> vector<16x8x32xf32>
    "tpu.trace_stop"() : () -> ()
    %208 = vector.shape_cast %207 : vector<16x8x32xf32> to vector<2x8x8x32xf32>
    %209 = vector.extract_strided_slice %208 {offsets = [0, 0, 0, 0], sizes = [2, 1, 8, 32], strides = [1, 1, 1, 1]} : vector<2x8x8x32xf32> to vector<2x1x8x32xf32>
    %210 = vector.shape_cast %209 : vector<2x1x8x32xf32> to vector<2x8x32xf32>
    %211 = vector.extract_strided_slice %208 {offsets = [0, 1, 0, 0], sizes = [2, 1, 8, 32], strides = [1, 1, 1, 1]} : vector<2x8x8x32xf32> to vector<2x1x8x32xf32>
    %212 = vector.shape_cast %211 : vector<2x1x8x32xf32> to vector<2x8x32xf32>
    %213 = arith.addf %210, %212 : vector<2x8x32xf32>
    %214 = vector.extract_strided_slice %208 {offsets = [0, 2, 0, 0], sizes = [2, 1, 8, 32], strides = [1, 1, 1, 1]} : vector<2x8x8x32xf32> to vector<2x1x8x32xf32>
    %215 = vector.shape_cast %214 : vector<2x1x8x32xf32> to vector<2x8x32xf32>
    %216 = arith.addf %213, %215 : vector<2x8x32xf32>
    %217 = vector.extract_strided_slice %208 {offsets = [0, 3, 0, 0], sizes = [2, 1, 8, 32], strides = [1, 1, 1, 1]} : vector<2x8x8x32xf32> to vector<2x1x8x32xf32>
    %218 = vector.shape_cast %217 : vector<2x1x8x32xf32> to vector<2x8x32xf32>
    %219 = arith.addf %216, %218 : vector<2x8x32xf32>
    %220 = vector.extract_strided_slice %208 {offsets = [0, 4, 0, 0], sizes = [2, 1, 8, 32], strides = [1, 1, 1, 1]} : vector<2x8x8x32xf32> to vector<2x1x8x32xf32>
    %221 = vector.shape_cast %220 : vector<2x1x8x32xf32> to vector<2x8x32xf32>
    %222 = arith.addf %219, %221 : vector<2x8x32xf32>
    %223 = vector.extract_strided_slice %208 {offsets = [0, 5, 0, 0], sizes = [2, 1, 8, 32], strides = [1, 1, 1, 1]} : vector<2x8x8x32xf32> to vector<2x1x8x32xf32>
    %224 = vector.shape_cast %223 : vector<2x1x8x32xf32> to vector<2x8x32xf32>
    %225 = arith.addf %222, %224 : vector<2x8x32xf32>
    %226 = vector.extract_strided_slice %208 {offsets = [0, 6, 0, 0], sizes = [2, 1, 8, 32], strides = [1, 1, 1, 1]} : vector<2x8x8x32xf32> to vector<2x1x8x32xf32>
    %227 = vector.shape_cast %226 : vector<2x1x8x32xf32> to vector<2x8x32xf32>
    %228 = arith.addf %225, %227 : vector<2x8x32xf32>
    %229 = vector.extract_strided_slice %208 {offsets = [0, 7, 0, 0], sizes = [2, 1, 8, 32], strides = [1, 1, 1, 1]} : vector<2x8x8x32xf32> to vector<2x1x8x32xf32>
    %230 = vector.shape_cast %229 : vector<2x1x8x32xf32> to vector<2x8x32xf32>
    %231 = arith.addf %228, %230 : vector<2x8x32xf32>
    %232 = vector.shape_cast %231 : vector<2x8x32xf32> to vector<16x32xf32>
    %233 = arith.truncf %232 : vector<16x32xf32> to vector<16x32xbf16>
    %c1_71 = arith.constant 1 : index
    %c0_72 = arith.constant 0 : index
    %c0_73 = arith.constant 0 : index
    %234 = vector.load %arg11[%c1_71, %c0_72, %c0_73] : memref<3x32x32xbf16, #tpu.memory_space<vmem>>, vector<1x32x32xbf16>
    %235 = vector.shape_cast %234 : vector<1x32x32xbf16> to vector<32x32xbf16>
    %cst_74 = arith.constant dense<0.000000e+00> : vector<16x32xf32>
    %236 = tpu.matmul %233, %235, %cst_74 {dimension_numbers = #tpu.dot_dimension_numbers<[1], [0], [0], [1], [0, 0, 1, 1], [], []>} : vector<16x32xbf16>, vector<32x32xbf16>, vector<16x32xf32> -> vector<16x32xf32>
    %c1_75 = arith.constant 1 : index
    %c0_76 = arith.constant 0 : index
    %c0_77 = arith.constant 0 : index
    %237 = vector.load %arg12[%c1_75, %c0_76, %c0_77] : memref<3x1x32xf32, #tpu.memory_space<vmem>>, vector<1x1x32xf32>
    %238 = vector.shape_cast %237 : vector<1x1x32xf32> to vector<1x32xf32>
    %239 = vector.broadcast %238 : vector<1x32xf32> to vector<16x32xf32>
    %240 = arith.addf %236, %239 : vector<16x32xf32>
    %241 = arith.addf %135, %240 : vector<16x32xf32>
    %c1_78 = arith.constant 1 : index
    %c0_79 = arith.constant 0 : index
    %c0_80 = arith.constant 0 : index
    %242 = vector.load %arg13[%c1_78, %c0_79, %c0_80] : memref<3x1x32xf32, #tpu.memory_space<vmem>>, vector<1x1x32xf32>
    %243 = vector.shape_cast %242 : vector<1x1x32xf32> to vector<1x32xf32>
    %c1_81 = arith.constant 1 : index
    %c0_82 = arith.constant 0 : index
    %c0_83 = arith.constant 0 : index
    %244 = vector.load %arg14[%c1_81, %c0_82, %c0_83] : memref<3x1x32xf32, #tpu.memory_space<vmem>>, vector<1x1x32xf32>
    %245 = vector.shape_cast %244 : vector<1x1x32xf32> to vector<1x32xf32>
    %cst_84 = arith.constant dense<0.000000e+00> : vector<16xf32>
    %246 = vector.multi_reduction <add>, %241, %cst_84 [1] : vector<16x32xf32> to vector<16xf32>
    %247 = vector.shape_cast %246 : vector<16xf32> to vector<16x1xf32>
    %cst_85 = arith.constant 3.200000e+01 : f32
    %248 = vector.broadcast %cst_85 : f32 to vector<16x1xf32>
    %249 = arith.divf %247, %248 : vector<16x1xf32>
    %250 = vector.broadcast %249 : vector<16x1xf32> to vector<16x32xf32>
    %251 = arith.subf %241, %250 : vector<16x32xf32>
    %252 = arith.mulf %251, %251 : vector<16x32xf32>
    %cst_86 = arith.constant dense<0.000000e+00> : vector<16xf32>
    %253 = vector.multi_reduction <add>, %252, %cst_86 [1] : vector<16x32xf32> to vector<16xf32>
    %254 = vector.shape_cast %253 : vector<16xf32> to vector<16x1xf32>
    %cst_87 = arith.constant 3.200000e+01 : f32
    %255 = vector.broadcast %cst_87 : f32 to vector<16x1xf32>
    %256 = arith.divf %254, %255 : vector<16x1xf32>
    %257 = vector.broadcast %249 : vector<16x1xf32> to vector<16x32xf32>
    %258 = arith.subf %241, %257 : vector<16x32xf32>
    %cst_88 = arith.constant 9.99999974E-6 : f32
    %259 = vector.broadcast %cst_88 : f32 to vector<16x1xf32>
    %260 = arith.addf %256, %259 : vector<16x1xf32>
    %261 = math.rsqrt %260 : vector<16x1xf32>
    %262 = vector.broadcast %261 : vector<16x1xf32> to vector<16x32xf32>
    %263 = arith.mulf %258, %262 : vector<16x32xf32>
    %264 = vector.broadcast %243 : vector<1x32xf32> to vector<16x32xf32>
    %265 = arith.mulf %263, %264 : vector<16x32xf32>
    %266 = vector.broadcast %245 : vector<1x32xf32> to vector<16x32xf32>
    %267 = arith.addf %265, %266 : vector<16x32xf32>
    %268 = arith.truncf %267 : vector<16x32xf32> to vector<16x32xbf16>
    %c1_89 = arith.constant 1 : index
    %c0_90 = arith.constant 0 : index
    %c0_91 = arith.constant 0 : index
    %269 = vector.load %arg15[%c1_89, %c0_90, %c0_91] : memref<3x32x64xbf16, #tpu.memory_space<vmem>>, vector<1x32x64xbf16>
    %270 = vector.shape_cast %269 : vector<1x32x64xbf16> to vector<32x64xbf16>
    %cst_92 = arith.constant dense<0.000000e+00> : vector<16x64xf32>
    %271 = tpu.matmul %268, %270, %cst_92 {dimension_numbers = #tpu.dot_dimension_numbers<[1], [0], [0], [1], [0, 0, 1, 1], [], []>} : vector<16x32xbf16>, vector<32x64xbf16>, vector<16x64xf32> -> vector<16x64xf32>
    %c1_93 = arith.constant 1 : index
    %c0_94 = arith.constant 0 : index
    %c0_95 = arith.constant 0 : index
    %272 = vector.load %arg16[%c1_93, %c0_94, %c0_95] : memref<3x1x64xf32, #tpu.memory_space<vmem>>, vector<1x1x64xf32>
    %273 = vector.shape_cast %272 : vector<1x1x64xf32> to vector<1x64xf32>
    %274 = vector.broadcast %273 : vector<1x64xf32> to vector<16x64xf32>
    %275 = arith.addf %271, %274 : vector<16x64xf32>
    %cst_96 = arith.constant 0.000000e+00 : f32
    %276 = vector.broadcast %cst_96 : f32 to vector<16x64xf32>
    %277 = arith.maximumf %275, %276 : vector<16x64xf32>
    %278 = arith.truncf %277 : vector<16x64xf32> to vector<16x64xbf16>
    %c1_97 = arith.constant 1 : index
    %c0_98 = arith.constant 0 : index
    %c0_99 = arith.constant 0 : index
    %279 = vector.load %arg17[%c1_97, %c0_98, %c0_99] : memref<3x64x32xbf16, #tpu.memory_space<vmem>>, vector<1x64x32xbf16>
    %280 = vector.shape_cast %279 : vector<1x64x32xbf16> to vector<64x32xbf16>
    %cst_100 = arith.constant dense<0.000000e+00> : vector<16x32xf32>
    %281 = tpu.matmul %278, %280, %cst_100 {dimension_numbers = #tpu.dot_dimension_numbers<[1], [0], [0], [1], [0, 0, 1, 1], [], []>} : vector<16x64xbf16>, vector<64x32xbf16>, vector<16x32xf32> -> vector<16x32xf32>
    %282 = arith.addf %241, %281 : vector<16x32xf32>
    %c1_101 = arith.constant 1 : index
    %c0_102 = arith.constant 0 : index
    %c0_103 = arith.constant 0 : index
    %283 = vector.load %arg18[%c1_101, %c0_102, %c0_103] : memref<3x1x32xf32, #tpu.memory_space<vmem>>, vector<1x1x32xf32>
    %284 = vector.shape_cast %283 : vector<1x1x32xf32> to vector<1x32xf32>
    %285 = vector.broadcast %284 : vector<1x32xf32> to vector<16x32xf32>
    %286 = arith.addf %282, %285 : vector<16x32xf32>
    %c2 = arith.constant 2 : index
    %c0_104 = arith.constant 0 : index
    %c0_105 = arith.constant 0 : index
    %287 = vector.load %arg7[%c2, %c0_104, %c0_105] : memref<3x1x32xf32, #tpu.memory_space<vmem>>, vector<1x1x32xf32>
    %288 = vector.shape_cast %287 : vector<1x1x32xf32> to vector<1x32xf32>
    %c2_106 = arith.constant 2 : index
    %c0_107 = arith.constant 0 : index
    %c0_108 = arith.constant 0 : index
    %289 = vector.load %arg8[%c2_106, %c0_107, %c0_108] : memref<3x1x32xf32, #tpu.memory_space<vmem>>, vector<1x1x32xf32>
    %290 = vector.shape_cast %289 : vector<1x1x32xf32> to vector<1x32xf32>
    %cst_109 = arith.constant dense<0.000000e+00> : vector<16xf32>
    %291 = vector.multi_reduction <add>, %286, %cst_109 [1] : vector<16x32xf32> to vector<16xf32>
    %292 = vector.shape_cast %291 : vector<16xf32> to vector<16x1xf32>
    %cst_110 = arith.constant 3.200000e+01 : f32
    %293 = vector.broadcast %cst_110 : f32 to vector<16x1xf32>
    %294 = arith.divf %292, %293 : vector<16x1xf32>
    %295 = vector.broadcast %294 : vector<16x1xf32> to vector<16x32xf32>
    %296 = arith.subf %286, %295 : vector<16x32xf32>
    %297 = arith.mulf %296, %296 : vector<16x32xf32>
    %cst_111 = arith.constant dense<0.000000e+00> : vector<16xf32>
    %298 = vector.multi_reduction <add>, %297, %cst_111 [1] : vector<16x32xf32> to vector<16xf32>
    %299 = vector.shape_cast %298 : vector<16xf32> to vector<16x1xf32>
    %cst_112 = arith.constant 3.200000e+01 : f32
    %300 = vector.broadcast %cst_112 : f32 to vector<16x1xf32>
    %301 = arith.divf %299, %300 : vector<16x1xf32>
    %302 = vector.broadcast %294 : vector<16x1xf32> to vector<16x32xf32>
    %303 = arith.subf %286, %302 : vector<16x32xf32>
    %cst_113 = arith.constant 9.99999974E-6 : f32
    %304 = vector.broadcast %cst_113 : f32 to vector<16x1xf32>
    %305 = arith.addf %301, %304 : vector<16x1xf32>
    %306 = math.rsqrt %305 : vector<16x1xf32>
    %307 = vector.broadcast %306 : vector<16x1xf32> to vector<16x32xf32>
    %308 = arith.mulf %303, %307 : vector<16x32xf32>
    %309 = vector.broadcast %288 : vector<1x32xf32> to vector<16x32xf32>
    %310 = arith.mulf %308, %309 : vector<16x32xf32>
    %311 = vector.broadcast %290 : vector<1x32xf32> to vector<16x32xf32>
    %312 = arith.addf %310, %311 : vector<16x32xf32>
    %313 = arith.truncf %312 : vector<16x32xf32> to vector<16x32xbf16>
    %c2_114 = arith.constant 2 : index
    %c0_115 = arith.constant 0 : index
    %c0_116 = arith.constant 0 : index
    %314 = vector.load %arg9[%c2_114, %c0_115, %c0_116] : memref<3x32x96xbf16, #tpu.memory_space<vmem>>, vector<1x32x96xbf16>
    %315 = vector.shape_cast %314 : vector<1x32x96xbf16> to vector<32x96xbf16>
    %cst_117 = arith.constant dense<0.000000e+00> : vector<16x96xf32>
    %316 = tpu.matmul %313, %315, %cst_117 {dimension_numbers = #tpu.dot_dimension_numbers<[1], [0], [0], [1], [0, 0, 1, 1], [], []>} : vector<16x32xbf16>, vector<32x96xbf16>, vector<16x96xf32> -> vector<16x96xf32>
    %c2_118 = arith.constant 2 : index
    %c0_119 = arith.constant 0 : index
    %c0_120 = arith.constant 0 : index
    %317 = vector.load %arg10[%c2_118, %c0_119, %c0_120] : memref<3x1x96xf32, #tpu.memory_space<vmem>>, vector<1x1x96xf32>
    %318 = vector.shape_cast %317 : vector<1x1x96xf32> to vector<1x96xf32>
    %319 = vector.broadcast %318 : vector<1x96xf32> to vector<16x96xf32>
    %320 = arith.addf %316, %319 : vector<16x96xf32>
    %321 = vector.extract_strided_slice %320 {offsets = [0, 0], sizes = [16, 32], strides = [1, 1]} : vector<16x96xf32> to vector<16x32xf32>
    %322 = vector.shape_cast %321 : vector<16x32xf32> to vector<2x8x32xf32>
    %323 = vector.extract_strided_slice %320 {offsets = [0, 32], sizes = [16, 32], strides = [1, 1]} : vector<16x96xf32> to vector<16x32xf32>
    %324 = vector.shape_cast %323 : vector<16x32xf32> to vector<2x8x32xf32>
    %325 = vector.extract_strided_slice %320 {offsets = [0, 64], sizes = [16, 32], strides = [1, 1]} : vector<16x96xf32> to vector<16x32xf32>
    %326 = vector.shape_cast %325 : vector<16x32xf32> to vector<2x8x32xf32>
    %327 = vector.shape_cast %322 : vector<2x8x32xf32> to vector<2x1x8x32xf32>
    %328 = vector.shape_cast %327 : vector<2x1x8x32xf32> to vector<2x1x8x32xf32>
    %329 = vector.broadcast %328 : vector<2x1x8x32xf32> to vector<2x8x8x32xf32>
    %330 = vector.shape_cast %329 : vector<2x8x8x32xf32> to vector<16x8x32xf32>
    %331 = arith.truncf %330 : vector<16x8x32xf32> to vector<16x8x32xbf16>
    %332 = vector.shape_cast %324 : vector<2x8x32xf32> to vector<2x1x8x32xf32>
    %333 = vector.shape_cast %36 : vector<8x32xf32> to vector<1x8x1x32xf32>
    %334 = vector.broadcast %332 : vector<2x1x8x32xf32> to vector<2x8x8x32xf32>
    %335 = vector.broadcast %333 : vector<1x8x1x32xf32> to vector<2x8x8x32xf32>
    %336 = arith.mulf %334, %335 : vector<2x8x8x32xf32>
    %337 = vector.shape_cast %336 : vector<2x8x8x32xf32> to vector<16x8x32xf32>
    %338 = arith.truncf %337 : vector<16x8x32xf32> to vector<16x8x32xbf16>
    %339 = vector.shape_cast %326 : vector<2x8x32xf32> to vector<2x1x8x32xf32>
    %340 = vector.shape_cast %36 : vector<8x32xf32> to vector<1x8x1x32xf32>
    %341 = vector.broadcast %339 : vector<2x1x8x32xf32> to vector<2x8x8x32xf32>
    %342 = vector.broadcast %340 : vector<1x8x1x32xf32> to vector<2x8x8x32xf32>
    %343 = arith.mulf %341, %342 : vector<2x8x8x32xf32>
    %344 = vector.shape_cast %343 : vector<2x8x8x32xf32> to vector<16x8x32xf32>
    %345 = arith.truncf %344 : vector<16x8x32xf32> to vector<16x8x32xbf16>
    "tpu.trace_start"() <{level = 10 : i32, message = "xqd,xkd->xqk"}> : () -> ()
    %cst_121 = arith.constant dense<0.000000e+00> : vector<16x8x8xf32>
    %346 = tpu.matmul %331, %338, %cst_121 {dimension_numbers = #tpu.dot_dimension_numbers<[2], [2], [1], [1], [0, 0, 0, 1, 1, 1], [0], [0]>} : vector<16x8x32xbf16>, vector<16x8x32xbf16>, vector<16x8x8xf32> -> vector<16x8x8xf32>
    "tpu.trace_stop"() : () -> ()
    %cst_122 = arith.constant dense<0xFF800000> : vector<16x8xf32>
    %347 = vector.multi_reduction <maximumf>, %346, %cst_122 [2] : vector<16x8x8xf32> to vector<16x8xf32>
    %348 = vector.shape_cast %347 : vector<16x8xf32> to vector<16x8x1xf32>
    %349 = vector.broadcast %348 : vector<16x8x1xf32> to vector<16x8x8xf32>
    %350 = arith.subf %346, %349 : vector<16x8x8xf32>
    %351 = math.exp %350 : vector<16x8x8xf32>
    %cst_123 = arith.constant dense<0.000000e+00> : vector<16x8xf32>
    %352 = vector.multi_reduction <add>, %351, %cst_123 [2] : vector<16x8x8xf32> to vector<16x8xf32>
    %353 = vector.shape_cast %352 : vector<16x8xf32> to vector<16x8x1xf32>
    %354 = tpu.reciprocal %353 {approx = true} : vector<16x8x1xf32> -> vector<16x8x1xf32>
    %355 = vector.broadcast %354 : vector<16x8x1xf32> to vector<16x8x8xf32>
    %356 = arith.mulf %351, %355 : vector<16x8x8xf32>
    %357 = arith.truncf %356 : vector<16x8x8xf32> to vector<16x8x8xbf16>
    "tpu.trace_start"() <{level = 10 : i32, message = "xqk,xkd->xqd"}> : () -> ()
    %cst_124 = arith.constant dense<0.000000e+00> : vector<16x8x32xf32>
    %358 = tpu.matmul %357, %345, %cst_124 {dimension_numbers = #tpu.dot_dimension_numbers<[2], [1], [1], [2], [0, 0, 0, 1, 1, 2], [0], [0]>} : vector<16x8x8xbf16>, vector<16x8x32xbf16>, vector<16x8x32xf32> -> vector<16x8x32xf32>
    "tpu.trace_stop"() : () -> ()
    %359 = vector.shape_cast %358 : vector<16x8x32xf32> to vector<2x8x8x32xf32>
    %360 = vector.extract_strided_slice %359 {offsets = [0, 0, 0, 0], sizes = [2, 1, 8, 32], strides = [1, 1, 1, 1]} : vector<2x8x8x32xf32> to vector<2x1x8x32xf32>
    %361 = vector.shape_cast %360 : vector<2x1x8x32xf32> to vector<2x8x32xf32>
    %362 = vector.extract_strided_slice %359 {offsets = [0, 1, 0, 0], sizes = [2, 1, 8, 32], strides = [1, 1, 1, 1]} : vector<2x8x8x32xf32> to vector<2x1x8x32xf32>
    %363 = vector.shape_cast %362 : vector<2x1x8x32xf32> to vector<2x8x32xf32>
    %364 = arith.addf %361, %363 : vector<2x8x32xf32>
    %365 = vector.extract_strided_slice %359 {offsets = [0, 2, 0, 0], sizes = [2, 1, 8, 32], strides = [1, 1, 1, 1]} : vector<2x8x8x32xf32> to vector<2x1x8x32xf32>
    %366 = vector.shape_cast %365 : vector<2x1x8x32xf32> to vector<2x8x32xf32>
    %367 = arith.addf %364, %366 : vector<2x8x32xf32>
    %368 = vector.extract_strided_slice %359 {offsets = [0, 3, 0, 0], sizes = [2, 1, 8, 32], strides = [1, 1, 1, 1]} : vector<2x8x8x32xf32> to vector<2x1x8x32xf32>
    %369 = vector.shape_cast %368 : vector<2x1x8x32xf32> to vector<2x8x32xf32>
    %370 = arith.addf %367, %369 : vector<2x8x32xf32>
    %371 = vector.extract_strided_slice %359 {offsets = [0, 4, 0, 0], sizes = [2, 1, 8, 32], strides = [1, 1, 1, 1]} : vector<2x8x8x32xf32> to vector<2x1x8x32xf32>
    %372 = vector.shape_cast %371 : vector<2x1x8x32xf32> to vector<2x8x32xf32>
    %373 = arith.addf %370, %372 : vector<2x8x32xf32>
    %374 = vector.extract_strided_slice %359 {offsets = [0, 5, 0, 0], sizes = [2, 1, 8, 32], strides = [1, 1, 1, 1]} : vector<2x8x8x32xf32> to vector<2x1x8x32xf32>
    %375 = vector.shape_cast %374 : vector<2x1x8x32xf32> to vector<2x8x32xf32>
    %376 = arith.addf %373, %375 : vector<2x8x32xf32>
    %377 = vector.extract_strided_slice %359 {offsets = [0, 6, 0, 0], sizes = [2, 1, 8, 32], strides = [1, 1, 1, 1]} : vector<2x8x8x32xf32> to vector<2x1x8x32xf32>
    %378 = vector.shape_cast %377 : vector<2x1x8x32xf32> to vector<2x8x32xf32>
    %379 = arith.addf %376, %378 : vector<2x8x32xf32>
    %380 = vector.extract_strided_slice %359 {offsets = [0, 7, 0, 0], sizes = [2, 1, 8, 32], strides = [1, 1, 1, 1]} : vector<2x8x8x32xf32> to vector<2x1x8x32xf32>
    %381 = vector.shape_cast %380 : vector<2x1x8x32xf32> to vector<2x8x32xf32>
    %382 = arith.addf %379, %381 : vector<2x8x32xf32>
    %383 = vector.shape_cast %382 : vector<2x8x32xf32> to vector<16x32xf32>
    %384 = arith.truncf %383 : vector<16x32xf32> to vector<16x32xbf16>
    %c2_125 = arith.constant 2 : index
    %c0_126 = arith.constant 0 : index
    %c0_127 = arith.constant 0 : index
    %385 = vector.load %arg11[%c2_125, %c0_126, %c0_127] : memref<3x32x32xbf16, #tpu.memory_space<vmem>>, vector<1x32x32xbf16>
    %386 = vector.shape_cast %385 : vector<1x32x32xbf16> to vector<32x32xbf16>
    %cst_128 = arith.constant dense<0.000000e+00> : vector<16x32xf32>
    %387 = tpu.matmul %384, %386, %cst_128 {dimension_numbers = #tpu.dot_dimension_numbers<[1], [0], [0], [1], [0, 0, 1, 1], [], []>} : vector<16x32xbf16>, vector<32x32xbf16>, vector<16x32xf32> -> vector<16x32xf32>
    %c2_129 = arith.constant 2 : index
    %c0_130 = arith.constant 0 : index
    %c0_131 = arith.constant 0 : index
    %388 = vector.load %arg12[%c2_129, %c0_130, %c0_131] : memref<3x1x32xf32, #tpu.memory_space<vmem>>, vector<1x1x32xf32>
    %389 = vector.shape_cast %388 : vector<1x1x32xf32> to vector<1x32xf32>
    %390 = vector.broadcast %389 : vector<1x32xf32> to vector<16x32xf32>
    %391 = arith.addf %387, %390 : vector<16x32xf32>
    %392 = arith.addf %286, %391 : vector<16x32xf32>
    %c2_132 = arith.constant 2 : index
    %c0_133 = arith.constant 0 : index
    %c0_134 = arith.constant 0 : index
    %393 = vector.load %arg13[%c2_132, %c0_133, %c0_134] : memref<3x1x32xf32, #tpu.memory_space<vmem>>, vector<1x1x32xf32>
    %394 = vector.shape_cast %393 : vector<1x1x32xf32> to vector<1x32xf32>
    %c2_135 = arith.constant 2 : index
    %c0_136 = arith.constant 0 : index
    %c0_137 = arith.constant 0 : index
    %395 = vector.load %arg14[%c2_135, %c0_136, %c0_137] : memref<3x1x32xf32, #tpu.memory_space<vmem>>, vector<1x1x32xf32>
    %396 = vector.shape_cast %395 : vector<1x1x32xf32> to vector<1x32xf32>
    %cst_138 = arith.constant dense<0.000000e+00> : vector<16xf32>
    %397 = vector.multi_reduction <add>, %392, %cst_138 [1] : vector<16x32xf32> to vector<16xf32>
    %398 = vector.shape_cast %397 : vector<16xf32> to vector<16x1xf32>
    %cst_139 = arith.constant 3.200000e+01 : f32
    %399 = vector.broadcast %cst_139 : f32 to vector<16x1xf32>
    %400 = arith.divf %398, %399 : vector<16x1xf32>
    %401 = vector.broadcast %400 : vector<16x1xf32> to vector<16x32xf32>
    %402 = arith.subf %392, %401 : vector<16x32xf32>
    %403 = arith.mulf %402, %402 : vector<16x32xf32>
    %cst_140 = arith.constant dense<0.000000e+00> : vector<16xf32>
    %404 = vector.multi_reduction <add>, %403, %cst_140 [1] : vector<16x32xf32> to vector<16xf32>
    %405 = vector.shape_cast %404 : vector<16xf32> to vector<16x1xf32>
    %cst_141 = arith.constant 3.200000e+01 : f32
    %406 = vector.broadcast %cst_141 : f32 to vector<16x1xf32>
    %407 = arith.divf %405, %406 : vector<16x1xf32>
    %408 = vector.broadcast %400 : vector<16x1xf32> to vector<16x32xf32>
    %409 = arith.subf %392, %408 : vector<16x32xf32>
    %cst_142 = arith.constant 9.99999974E-6 : f32
    %410 = vector.broadcast %cst_142 : f32 to vector<16x1xf32>
    %411 = arith.addf %407, %410 : vector<16x1xf32>
    %412 = math.rsqrt %411 : vector<16x1xf32>
    %413 = vector.broadcast %412 : vector<16x1xf32> to vector<16x32xf32>
    %414 = arith.mulf %409, %413 : vector<16x32xf32>
    %415 = vector.broadcast %394 : vector<1x32xf32> to vector<16x32xf32>
    %416 = arith.mulf %414, %415 : vector<16x32xf32>
    %417 = vector.broadcast %396 : vector<1x32xf32> to vector<16x32xf32>
    %418 = arith.addf %416, %417 : vector<16x32xf32>
    %419 = arith.truncf %418 : vector<16x32xf32> to vector<16x32xbf16>
    %c2_143 = arith.constant 2 : index
    %c0_144 = arith.constant 0 : index
    %c0_145 = arith.constant 0 : index
    %420 = vector.load %arg15[%c2_143, %c0_144, %c0_145] : memref<3x32x64xbf16, #tpu.memory_space<vmem>>, vector<1x32x64xbf16>
    %421 = vector.shape_cast %420 : vector<1x32x64xbf16> to vector<32x64xbf16>
    %cst_146 = arith.constant dense<0.000000e+00> : vector<16x64xf32>
    %422 = tpu.matmul %419, %421, %cst_146 {dimension_numbers = #tpu.dot_dimension_numbers<[1], [0], [0], [1], [0, 0, 1, 1], [], []>} : vector<16x32xbf16>, vector<32x64xbf16>, vector<16x64xf32> -> vector<16x64xf32>
    %c2_147 = arith.constant 2 : index
    %c0_148 = arith.constant 0 : index
    %c0_149 = arith.constant 0 : index
    %423 = vector.load %arg16[%c2_147, %c0_148, %c0_149] : memref<3x1x64xf32, #tpu.memory_space<vmem>>, vector<1x1x64xf32>
    %424 = vector.shape_cast %423 : vector<1x1x64xf32> to vector<1x64xf32>
    %425 = vector.broadcast %424 : vector<1x64xf32> to vector<16x64xf32>
    %426 = arith.addf %422, %425 : vector<16x64xf32>
    %cst_150 = arith.constant 0.000000e+00 : f32
    %427 = vector.broadcast %cst_150 : f32 to vector<16x64xf32>
    %428 = arith.maximumf %426, %427 : vector<16x64xf32>
    %429 = arith.truncf %428 : vector<16x64xf32> to vector<16x64xbf16>
    %c2_151 = arith.constant 2 : index
    %c0_152 = arith.constant 0 : index
    %c0_153 = arith.constant 0 : index
    %430 = vector.load %arg17[%c2_151, %c0_152, %c0_153] : memref<3x64x32xbf16, #tpu.memory_space<vmem>>, vector<1x64x32xbf16>
    %431 = vector.shape_cast %430 : vector<1x64x32xbf16> to vector<64x32xbf16>
    %cst_154 = arith.constant dense<0.000000e+00> : vector<16x32xf32>
    %432 = tpu.matmul %429, %431, %cst_154 {dimension_numbers = #tpu.dot_dimension_numbers<[1], [0], [0], [1], [0, 0, 1, 1], [], []>} : vector<16x64xbf16>, vector<64x32xbf16>, vector<16x32xf32> -> vector<16x32xf32>
    %433 = arith.addf %392, %432 : vector<16x32xf32>
    %c2_155 = arith.constant 2 : index
    %c0_156 = arith.constant 0 : index
    %c0_157 = arith.constant 0 : index
    %434 = vector.load %arg18[%c2_155, %c0_156, %c0_157] : memref<3x1x32xf32, #tpu.memory_space<vmem>>, vector<1x1x32xf32>
    %435 = vector.shape_cast %434 : vector<1x1x32xf32> to vector<1x32xf32>
    %436 = vector.broadcast %435 : vector<1x32xf32> to vector<16x32xf32>
    %437 = arith.addf %433, %436 : vector<16x32xf32>
    %438 = vector.shape_cast %437 : vector<16x32xf32> to vector<2x8x32xf32>
    %c0_158 = arith.constant 0 : index
    %c0_159 = arith.constant 0 : index
    %c0_160 = arith.constant 0 : index
    %439 = vector.load %arg19[%c0_158, %c0_159, %c0_160] : memref<2x8x32xf32, #tpu.memory_space<vmem>>, vector<2x8x32xf32>
    tpu.vector_store %arg19[%c0_158, %c0_159, %c0_160], %438 {strides = array<i32>} : memref<2x8x32xf32, #tpu.memory_space<vmem>>, vector<2x8x32xf32>,
    return
  }
}

</mosaic_0001>

<bundles_post_ra>
// kernel: tpu_custom_call.1
= control target key start
LH: loop header
LB: loop body
LE: loop exit
PB: predicated region body
PF: predicated region fallthrough
CT: control target
= control target key end

     0   :  { %s10796_s0 = inlined_call_operand.hbm [shape: f32[2,8], index: 0, kind: input, shape index: {}]   ;;  %s10797_s1 = inlined_call_operand.vmem [shape: f32[8,4], index: 1, kind: input, shape index: {}]   ;;  %s10798_s2 = inlined_call_operand.hbm [shape: f32[8,4,32], index: 2, kind: input, shape index: {}]   ;;  %s10799_s3 = inlined_call_operand.hbm [shape: f32[8,4,32], index: 3, kind: input, shape index: {}]   ;;  %s10800_s4 = inlined_call_operand.vmem [shape: f32[8,32], index: 4, kind: input, shape index: {}]   ;;  %s10801_s5 = inlined_call_operand.vmem [shape: f32[8,1], index: 5, kind: input, shape index: {}]   ;;  %s10802_s6 = inlined_call_operand.vmem [shape: f32[8,32], index: 6, kind: input, shape index: {}]   ;;  %s10803_s7 = inlined_call_operand.vmem [shape: f32[3,1,32], index: 7, kind: input, shape index: {}]   ;;  %s10804_s8 = inlined_call_operand.vmem [shape: f32[3,1,32], index: 8, kind: input, shape index: {}]   ;;  %s10805_s9 = inlined_call_operand.vmem [shape: bf16[3,32,96], index: 9, kind: input, shape index: {}]   ;;  %s10806_s10 = inlined_call_operand.vmem [shape: f32[3,1,96], index: 10, kind: input, shape index: {}]   ;;  %s10807_s11 = inlined_call_operand.vmem [shape: bf16[3,32,32], index: 11, kind: input, shape index: {}]   ;;  %s10808_s12 = inlined_call_operand.vmem [shape: f32[3,1,32], index: 12, kind: input, shape index: {}]   ;;  %s10809_s13 = inlined_call_operand.vmem [shape: f32[3,1,32], index: 13, kind: input, shape index: {}]   ;;  %s10810_s14 = inlined_call_operand.hbm [shape: f32[3,1,32], index: 14, kind: input, shape index: {}]   ;;  %s10811_s15 = inlined_call_operand.vmem [shape: bf16[3,32,64], index: 15, kind: input, shape index: {}]   ;;  %s10812_s16 = inlined_call_operand.vmem [shape: f32[3,1,64], index: 16, kind: input, shape index: {}]   ;;  %s10813_s17 = inlined_call_operand.vmem [shape: bf16[3,64,32], index: 17, kind: input, shape index: {}]   ;;  %s10814_s18 = inlined_call_operand.vmem [shape: f32[3,1,32], index: 18, kind: input, shape index: {}]   ;;  %s10815_s19 = inlined_call_operand.hbm [shape: f32[2,8,32], index: 19, kind: output, shape index: {}]  }
   0x1   :  { %10842 = sst [smem:[#allocation29_spill]] %s10796_s0 }
   0x2   :  { %10843 = sst [smem:[#allocation30_spill]] %s10797_s1 }
   0x3   :  { %10844 = sst [smem:[#allocation31_spill]] %s10798_s2 }
   0x4   :  { %10845 = sst [smem:[#allocation32_spill]] %s10799_s3 }
   0x5   :  { %10846 = sst [smem:[#allocation33_spill]] %s10815_s19 }
   0x6   :  { %24 = vsyncpa [#allocation3], 0 }
   0x7   :  { %25 = vsyncpa [#allocation6], 0 }
   0x8   :  { %26 = vsyncpa [#allocation9], 0  ;;  %s10847_s20 = sld [smem:[#allocation31_spill]] }
   0xe   :  { %s45_s21 = sshll.u32 %s10847_s20, 4  ;;  %s46_s21 = int_to_ptr.hbm [resolvable:$true] %s45_s21 }
   0xf   :  { %27 = vsyncpa [#allocation4], 0  ;;  %s7733_s1 = smov [#allocation5]   ;;  %s10848_s24 = sld [smem:[#allocation29_spill]] }
  0x10   :  { %s47_s22 = sshll.u32 %s7733_s1, 4  ;;  %s7734_s3 = smov 64   ;;  %s48_s22 = int_to_ptr.vmem [resolvable:$true] %s47_s22 }
  0x11   :  { %s7735_s26 = smov 4   ;;  %s7736_s27 = smov [#allocation2]  }
  0x12   :  { %53 = dma.hbm_to_vmem [thread:$0]  %s46_s21, 512, %s48_s22, [#allocation6], %s7734_s3, %s7734_s3, %s7735_s26  }
  0x13   :  { %s35_s28 = sshll.u32 %s7736_s27, 4  ;;  %s10849_s30 = sld [smem:[#allocation32_spill]]  ;;  %s36_s28 = int_to_ptr.vmem [resolvable:$true] %s35_s28 }
  0x14   :  { %s91_s2 = sshll.u32 %s10810_s14, 4  ;;  %s7737_s23 = smov [#allocation7]   ;;  %s92_s2 = int_to_ptr.hbm [resolvable:$true] %s91_s2 }
  0x15   :  { %s33_s25 = sshll.u32 %s10848_s24, 4  ;;  %s60_s24 = sshll.u32 %s7737_s23, 4  ;;  %s34_s25 = int_to_ptr.hbm [resolvable:$true] %s33_s25  ;;  %s61_s24 = int_to_ptr.vmem [resolvable:$true] %s60_s24 }
  0x16   :  { %38 = dma.hbm_to_vmem [thread:$0]  %s34_s25, 32, %s36_s28, [#allocation3]  }
  0x17   :  { %s7738_s21 = smov [#allocation8]   ;;  %s7739_s27 = smov 16  }
  0x18   :  { %s93_s22 = sshll.u32 %s7738_s21, 4  ;;  %s7740_s29 = smov 1   ;;  %s94_s22 = int_to_ptr.vmem [resolvable:$true] %s93_s22 }
  0x19   :  { %s58_s20 = sshll.u32 %s10849_s30, 4  ;;  %s59_s20 = int_to_ptr.hbm [resolvable:$true] %s58_s20 }
  0x1a   :  { %66 = dma.hbm_to_vmem [thread:$0]  %s59_s20, 512, %s61_s24, [#allocation6], %s7734_s3, %s7734_s3, %s7735_s26  }
  0x1b   :  { %99 = dma.hbm_to_vmem [thread:$0]  %s92_s2, 48, %s94_s22, [#allocation9], %s7739_s27, %s7739_s27, %s7740_s29  }
  0x1c   :  { %7725 = dma.done.wait [#allocation3], 32  }
  0x1d   :  { %7726 = vsyncadd [#allocation3], 4294967264 }
  0x1e   :  { %7727 = dma.done.wait [#allocation6], 1024  }
  0x1f   :  { %7728 = vsyncadd [#allocation6], 4294966272 }
  0x20   :  { %7729 = dma.done.wait [#allocation9], 48  }
  0x21   :  { %7730 = vsyncadd [#allocation9], 4294967248  ;;  %v128_v0 = vlaneseq  ;;  %v126_v2 = vld [vmem:[#allocation2] sm:$0x3]  ;;  %s10850_s25 = sld [smem:[#allocation30_spill]]  ;;  %s7749_s22 = smov 96  }
  0x22   :  { %v127_v3 = vperm.slane %v126_v2, 0  ;;  %v134_v4 = vperm.slane %v126_v2, 1  ;;  %v7741_v27 = vmov 683565275   ;;  %v7742_v29 = vmov 2475754826  }
  0x23   :  { %v129_v1 = vshrl.u32 %v128_v0, 7  ;;  %v7743_v33 = vmov 2131351028   ;;  %v7744_v36 = vmov 2102212464   ;;  %s10882_s0 = sld [smem:[#allocation33_spill]] }
  0x24   :  { %v7745_v39 = vmov 920167782   ;;  %v7746_v42 = vmov 1326507024  }
  0x25   :  { %7370 = vset.pattern.permute.xlu0 %v129_v1  ;;  %7372 = vset.pattern.permute.xlu2 %v129_v1 }
  0x26   :  { %7371 = vset.pattern.permute.xlu1 %v129_v1 }
  0x27   :  { %v125_v5 = vld [vmem:[%s10850_s25] sm:$0xff] }
  0x2d   :  { %132 = vperm.xlu0 %7370, %v127_v3  }
  0x35   :  { %139 = vperm.xlu0 %7370, %v134_v4  }
  0x9f   :  { %v133_v6 = vpop.permute.xlu0 %132 }
  0xa0   :  { %v7873_v7 = vmul.f32 %v133_v6, %v125_v5 }
  0xa2   :  { %v143_v8 = vand.u32 2147483647, %v7873_v7  ;;  %v146_v9 = vand.u32 2139095040, %v7873_v7 }
  0xa4   :  { %v147_v10 = vshrl.u32 %v146_v9, 23  ;;  %v150_v11 = vand.u32 8388607, %v143_v8 }
  0xa6   :  { %v7025_v12 = vadd.s32 4294967169, %v147_v10  ;;  %v151_v13 = vor.u32 8388608, %v150_v11 }
  0xa7   :  { %v140_v14 = vpop.permute.xlu0 %139 }
  0xa8   :  { %v153_v15 = vadd.s32 1, %v7025_v12  ;;  %v7879_v16 = vmul.f32 %v140_v14, %v125_v5  ;;  %v7881_v17 = vshll.u32 %v151_v13, 8 }
  0xaa   :  { %vm154_vm0 = vcmp.gt.s32.totalorder %v153_v15, 0  ;;  %v297_v19 = vand.u32 2147483647, %v7879_v16  ;;  %v300_v20 = vand.u32 2139095040, %v7879_v16  ;;  %v192_v23 = vand.u32 65535, %v7881_v17 }
  0xab   :  { %v155_v18 = vsel %vm154_vm0, %v153_v15, 0  ;;  %v193_v24 = vshrl.u32 %v7881_v17, 16 }
  0xac   :  { %v157_v21 = vand.u32 31, %v155_v18  ;;  %v301_v25 = vshrl.u32 %v300_v20, 23  ;;  %v156_v26 = vshrl.u32 %v155_v18, 5  ;;  %v7891_v31 = vand.u32 8388607, %v297_v19 }
  0xae   :  { %v158_v22 = vsub.s32 32, %v157_v21  ;;  %v160_v28 = vshll.u32 %v7741_v27, %v157_v21  ;;  %v163_v30 = vshll.u32 %v7742_v29, %v157_v21  ;;  %v166_v35 = vshll.u32 %v7743_v33, %v157_v21 }
  0xaf   :  { %v169_v38 = vshll.u32 %v7744_v36, %v157_v21  ;;  %v172_v41 = vshll.u32 %v7745_v39, %v157_v21  ;;  %v7028_v47 = vadd.s32 4294967169, %v301_v25  ;;  %vm175_vm1 = vcmp.lt.s32.totalorder %v156_v26, 1 }
  0xb0   :  { %v161_v32 = vshrl.u32 %v7742_v29, %v158_v22  ;;  %v164_v34 = vshrl.u32 %v7743_v33, %v158_v22  ;;  %v167_v37 = vshrl.u32 %v7744_v36, %v158_v22  ;;  %v170_v40 = vshrl.u32 %v7745_v39, %v158_v22 }
  0xb1   :  { %v173_v43 = vshrl.u32 %v7746_v42, %v158_v22  ;;  %vm178_vm2 = vcmp.lt.s32.totalorder %v156_v26, 4  ;;  %v159_v50 = vshrl.u32 %v7741_v27, %v158_v22  ;;  %vm177_vm3 = vcmp.lt.s32.totalorder %v156_v26, 3 }
  0xb2   :  { %v162_v44 = vor.u32 %v161_v32, %v160_v28  ;;  %v165_v45 = vor.u32 %v164_v34, %v163_v30  ;;  %v168_v46 = vor.u32 %v167_v37, %v166_v35  ;;  %v171_v48 = vor.u32 %v170_v40, %v169_v38 }
  0xb3   :  { %v174_v49 = vor.u32 %v173_v43, %v172_v41  ;;  %v307_v56 = vadd.s32 1, %v7028_v47  ;;  %vm176_vm4 = vcmp.lt.s32.totalorder %v156_v26, 2  ;;  %v305_v3 = vor.u32 8388608, %v7891_v31 }
  0xb4   :  { %v180_v51 = vsel %vm178_vm2, %v168_v46, 2102212464  ;;  %v183_v52 = vsel %vm175_vm1, %v162_v44, %v165_v45  ;;  %v187_v53 = vsel %vm175_vm1, %v165_v45, %v168_v46  ;;  %v184_v54 = vsel %vm178_vm2, %v171_v48, 920167782 }
  0xb5   :  { %v188_v55 = vsel %vm178_vm2, %v174_v49, 1326507024  ;;  %v179_v57 = vsel %vm175_vm1, %v159_v50, %v162_v44  ;;  %v185_v58 = vsel %vm177_vm3, %v168_v46, %v184_v54  ;;  %v181_v60 = vsel %vm177_vm3, %v165_v45, %v180_v51 }
  0xb6   :  { %v189_v59 = vsel %vm177_vm3, %v171_v48, %v188_v55  ;;  %v186_v61 = vsel %vm176_vm4, %v183_v52, %v185_v58  ;;  %vm308_vm5 = vcmp.gt.s32.totalorder %v307_v56, 0  ;;  %v7903_v4 = vsel %vm176_vm4, %v179_v57, %v181_v60 }
  0xb7   :  { %v190_v62 = vsel %vm176_vm4, %v187_v53, %v189_v59  ;;  %v216_v1 = vand.u32 65535, %v186_v61  ;;  %v217_v2 = vshrl.u32 %v186_v61, 16  ;;  %v309_v9 = vsel %vm308_vm5, %v307_v56, 0 }
  0xb8   :  { %v194_v63 = vand.u32 65535, %v190_v62  ;;  %v195_v0 = vshrl.u32 %v190_v62, 16  ;;  %v311_v31 = vand.u32 31, %v309_v9  ;;  %v7747_v32 = vmov 0  }
  0xb9   :  { %v219_v12 = vmul.u32 %v217_v2, %v192_v23  ;;  %v220_v13 = vmul.u32 %v216_v1, %v193_v24  ;;  %v218_v18 = vmul.u32 %v216_v1, %v192_v23  ;;  %v221_v20 = vmul.u32 %v217_v2, %v193_v24 }
  0xba   :  { %v197_v5 = vmul.u32 %v195_v0, %v192_v23  ;;  %v198_v6 = vmul.u32 %v194_v63, %v193_v24  ;;  %v196_v10 = vmul.u32 %v194_v63, %v192_v23  ;;  %v199_v11 = vmul.u32 %v195_v0, %v193_v24 }
  0xbb   :  { %v222_v25 = vshll.u32 %v219_v12, 16  ;;  %v223_v26 = vshrl.u32 %v219_v12, 16  ;;  %v224_v30 = vshll.u32 %v220_v13, 16  ;;  %v225_v35 = vshrl.u32 %v220_v13, 16 }
  0xbc   :  { %v200_v14 = vshll.u32 %v197_v5, 16  ;;  %v201_v15 = vshrl.u32 %v197_v5, 16  ;;  %v202_v21 = vshll.u32 %v198_v6, 16  ;;  %v203_v22 = vshrl.u32 %v198_v6, 16 }
  0xbd   :  { %vm226_vm7 = vc.u32 %v218_v18, %v222_v25  ;;  %v228_v37 = vadd.s32 %v222_v25, %v218_v18  ;;  %v7907_v23 = vsub.s32 32, %v311_v31  ;;  %v7910_v43 = vshrl.u32 %v309_v9, 5 }
  0xbe   :  { %vm204_vm6 = vc.u32 %v196_v10, %v200_v14  ;;  %v206_v28 = vadd.s32 %v200_v14, %v196_v10  ;;  %v227_v40 = vsel %vm226_vm7, 1, %v7747_v32  ;;  %v314_v47 = vshll.u32 %v7741_v27, %v311_v31 }
  0xbf   :  { %v205_v34 = vsel %vm204_vm6, 1, %v7747_v32  ;;  %v229_v41 = vadd.s32 %v227_v40, %v221_v20  ;;  %vm230_vm9 = vc.u32 %v228_v37, %v224_v30  ;;  %v7913_v46 = vadd.s32 %v228_v37, %v224_v30 }
  0xc0   :  { %v207_v38 = vadd.s32 %v205_v34, %v199_v11  ;;  %vm208_vm8 = vc.u32 %v206_v28, %v202_v21  ;;  %v231_v45 = vsel %vm230_vm9, 1, %v7747_v32  ;;  %v315_v49 = vshrl.u32 %v7742_v29, %v7907_v23 }
  0xc1   :  { %v209_v24 = vsel %vm208_vm8, 1, %v7747_v32  ;;  %v233_v48 = vadd.s32 %v231_v45, %v229_v41  ;;  %v317_v50 = vshll.u32 %v7742_v29, %v311_v31  ;;  %v318_v51 = vshrl.u32 %v7743_v33, %v7907_v23 }
  0xc2   :  { %v211_v44 = vadd.s32 %v209_v24, %v207_v38  ;;  %v320_v53 = vshll.u32 %v7743_v33, %v311_v31  ;;  %v321_v54 = vshrl.u32 %v7744_v36, %v7907_v23  ;;  %v323_v55 = vshll.u32 %v7744_v36, %v311_v31 }
  0xc3   :  { %v234_v56 = vadd.s32 %v233_v48, %v223_v26  ;;  %v7925_v57 = vor.u32 %v315_v49, %v314_v47  ;;  %v7927_v58 = vor.u32 %v318_v51, %v317_v50  ;;  %v324_v59 = vshrl.u32 %v7745_v39, %v7907_v23 }
  0xc4   :  { %v212_v52 = vadd.s32 %v211_v44, %v201_v15  ;;  %v322_v60 = vor.u32 %v321_v54, %v320_v53  ;;  %v326_v61 = vshll.u32 %v7745_v39, %v311_v31  ;;  %v327_v33 = vshrl.u32 %v7746_v42, %v7907_v23 }
  0xc5   :  { %v235_v62 = vadd.s32 %v234_v56, %v225_v35  ;;  %v325_v63 = vor.u32 %v324_v59, %v323_v55  ;;  %vm329_vm11 = vcmp.lt.s32.totalorder %v7910_v43, 1  ;;  %v7939_v0 = vshll.u32 %v305_v3, 8 }
  0xc6   :  { %v7931_v29 = vadd.s32 %v212_v52, %v203_v22  ;;  %v328_v36 = vor.u32 %v327_v33, %v326_v61  ;;  %v236_v1 = vmul.u32 %v7881_v17, %v7903_v4  ;;  %vm332_vm12 = vcmp.lt.s32.totalorder %v7910_v43, 4 }
  0xc7   :  { %v239_v2 = vadd.s32 1, %v235_v62  ;;  %v337_v39 = vsel %vm329_vm11, %v7925_v57, %v7927_v58  ;;  %vm331_vm13 = vcmp.lt.s32.totalorder %v7910_v43, 3  ;;  %v338_v42 = vsel %vm332_vm12, %v325_v63, 920167782 }
  0xc8   :  { %vm238_vm10 = vc.u32 %v7931_v29, %v7913_v46  ;;  %v341_v3 = vsel %vm329_vm11, %v7927_v58, %v322_v60  ;;  %v342_v17 = vsel %vm332_vm12, %v328_v36, 1326507024  ;;  %vm330_vm14 = vcmp.lt.s32.totalorder %v7910_v43, 2 }
  0xc9   :  { %v240_v4 = vsel %vm238_vm10, %v239_v2, %v235_v62  ;;  %v339_v5 = vsel %vm331_vm13, %v322_v60, %v338_v42  ;;  %v343_v6 = vsel %vm331_vm13, %v325_v63, %v342_v17  ;;  %v346_v12 = vand.u32 65535, %v7939_v0 }
  0xca   :  { %v241_v9 = vadd.s32 %v240_v4, %v236_v1  ;;  %v340_v10 = vsel %vm330_vm14, %v337_v39, %v339_v5  ;;  %v344_v11 = vsel %vm330_vm14, %v341_v3, %v343_v6  ;;  %v347_v13 = vshrl.u32 %v7939_v0, 16 }
  0xcb   :  { %v348_v14 = vand.u32 65535, %v344_v11  ;;  %v349_v15 = vshrl.u32 %v344_v11, 16  ;;  %v371_v18 = vshrl.u32 %v340_v10, 16  ;;  %v370_v25 = vand.u32 65535, %v340_v10 }
  0xcc   :  { %v242_v20 = vadd.s32 536870912, %v241_v9  ;;  %v313_v61 = vshrl.u32 %v7741_v27, %v7907_v23  ;;  %v334_v33 = vsel %vm332_vm12, %v322_v60, 2102212464  ;;  %v237_v60 = vadd.s32 %v7913_v46, %v7931_v29 }
  0xcd   :  { %v351_v21 = vmul.u32 %v349_v15, %v346_v12  ;;  %v352_v22 = vmul.u32 %v348_v14, %v347_v13  ;;  %v373_v28 = vmul.u32 %v371_v18, %v346_v12  ;;  %v350_v30 = vmul.u32 %v348_v14, %v346_v12 }
  0xce   :  { %v7967_v26 = vshrl.u32 %v242_v20, 30  ;;  %v353_v35 = vmul.u32 %v349_v15, %v347_v13  ;;  %v372_v24 = vmul.u32 %v370_v25, %v346_v12  ;;  %v374_v45 = vmul.u32 %v370_v25, %v347_v13 }
  0xcf   :  { %v354_v31 = vshll.u32 %v351_v21, 16  ;;  %v376_v37 = vshll.u32 %v373_v28, 16  ;;  %v356_v38 = vshll.u32 %v352_v22, 16  ;;  %v375_v50 = vmul.u32 %v371_v18, %v347_v13 }
  0xd0   :  { %v244_v34 = vshll.u32 %v7967_v26, 30  ;;  %v378_v54 = vshll.u32 %v374_v45, 16  ;;  %v355_v62 = vshrl.u32 %v351_v21, 16  ;;  %v333_v36 = vsel %vm329_vm11, %v313_v61, %v7925_v57 }
  0xd1   :  { %vm358_vm15 = vc.u32 %v350_v30, %v354_v31  ;;  %v360_v40 = vadd.s32 %v354_v31, %v350_v30  ;;  %vm380_vm1 = vc.u32 %v372_v24, %v376_v37  ;;  %v382_v52 = vadd.s32 %v376_v37, %v372_v24 }
  0xd2   :  { %v245_v41 = vsub.s32 %v241_v9, %v244_v34  ;;  %v359_v44 = vsel %vm358_vm15, 1, %v7747_v32  ;;  %v381_v51 = vsel %vm380_vm1, 1, %v7747_v32  ;;  %v357_v1 = vshrl.u32 %v352_v22, 16 }
  0xd3   :  { %v361_v47 = vadd.s32 %v359_v44, %v353_v35  ;;  %vm362_vm0 = vc.u32 %v360_v40, %v356_v38  ;;  %v383_v59 = vadd.s32 %v381_v51, %v375_v50  ;;  %vm384_vm3 = vc.u32 %v382_v52, %v378_v54 }
  0xd4   :  { %vm246_vm2 = vcmp.lt.s32.totalorder %v245_v41, 0  ;;  %v247_v48 = vsub.s32 0, %v245_v41  ;;  %v363_v49 = vsel %vm362_vm0, 1, %v7747_v32  ;;  %v385_v39 = vsel %vm384_vm3, 1, %v7747_v32 }
  0xd5   :  { %v365_v56 = vadd.s32 %v363_v49, %v361_v47  ;;  %v335_v42 = vsel %vm331_vm13, %v7927_v58, %v334_v33  ;;  %v377_v27 = vshrl.u32 %v373_v28, 16  ;;  %v387_v23 = vadd.s32 %v385_v39, %v383_v59 }
  0xd6   :  { %v248_v53 = vsel %vm246_vm2, %v247_v48, %v245_v41  ;;  %v379_v6 = vshrl.u32 %v374_v45, 16  ;;  %v336_v9 = vsel %vm330_vm14, %v333_v36, %v335_v42  ;;  %v386_v10 = vadd.s32 %v382_v52, %v378_v54 }
  0xd7   :  { %v249_v55 = vclz %v248_v53  ;;  %v366_v2 = vadd.s32 %v365_v56, %v355_v62  ;;  %v388_v57 = vadd.s32 %v387_v23, %v377_v27  ;;  %v390_v46 = vmul.u32 %v7939_v0, %v336_v9 }
  0xd8   :  { %vm145_vm6 = vcmp.lt.s32.totalorder %v7873_v7, 0  ;;  %vm144_vm7 = vcmp.le.f32.partialorder %v143_v8, 0.7853982  ;;  %v267_v0 = vsub.s32 4, %v7967_v26  ;;  %vm286_vm10 = vweird.f32 %v7873_v7 }
  0xd9   :  { %v7026_v63 = vadd.s32 4294967294, %v249_v55  ;;  %v367_v17 = vadd.s32 %v366_v2, %v357_v1  ;;  %v389_v14 = vadd.s32 %v388_v57, %v379_v6  ;;  %vm299_vm1 = vcmp.lt.s32.totalorder %v7879_v16, 0 }
  0xda   :  { %v268_v45 = vsel %vm145_vm6, %v267_v0, %v7967_v26  ;;  %vm298_vm2 = vcmp.le.f32.partialorder %v297_v19, 0.7853982 }
  0xdb   :  { %vm7027_vm4 = vcmp.lt.s32.totalorder %v7026_v63, 0  ;;  %vm392_vm5 = vc.u32 %v367_v17, %v386_v10  ;;  %v393_v18 = vadd.s32 1, %v389_v14  ;;  %v270_v51 = vsel %vm144_vm7, 0, %v268_v45 }
  0xdc   :  { %v252_v3 = vsel %vm7027_vm4, 0, %v7026_v63  ;;  %v844_v56 = vadd.s32 3, %v270_v51  ;;  %v391_v62 = vadd.s32 %v386_v10, %v367_v17  ;;  %v287_v2 = vand.u32 3, %v270_v51 }
  0xdd   :  { %v253_v4 = vsub.s32 32, %v252_v3  ;;  %v257_v5 = vsub.s32 4294967266, %v252_v3  ;;  %v254_v11 = vshll.u32 %v245_v41, %v252_v3  ;;  %v394_v20 = vsel %vm392_vm5, %v393_v18, %v389_v14 }
  0xde   :  { %v395_v21 = vadd.s32 %v394_v20, %v390_v46  ;;  %v845_v42 = vand.u32 3, %v844_v56  ;;  %vm288_vm11 = vcmp.lt.s32.totalorder %v287_v2, 2  ;;  %vm289_vm12 = vcmp.eq.s32.totalorder %v287_v2, 0 }
  0xdf   :  { %v255_v12 = vshrl.u32 %v237_v60, %v253_v4  ;;  %v258_v13 = vadd.s32 127, %v257_v5  ;;  %vm292_vm13 = vcmp.eq.s32.totalorder %v287_v2, 2 }
  0xe0   :  { %v396_v28 = vadd.s32 536870912, %v395_v21  ;;  %vm846_vm14 = vcmp.lt.s32.totalorder %v845_v42, 2  ;;  %vm847_vm15 = vcmp.eq.s32.totalorder %v845_v42, 0  ;;  %vm850_vm0 = vcmp.eq.s32.totalorder %v845_v42, 2 }
  0xe1   :  { %v256_v58 = vor.u32 %v255_v12, %v254_v11  ;;  %v259_v15 = vshll.u32 %v258_v13, 23 }
  0xe2   :  { %v7989_v43 = vshrl.u32 %v396_v28, 30 }
  0xe3   :  { %v260_v29 = vor.u32 4788187, %v259_v15  ;;  %v263_v25 = vcvt.s32.f32 %v256_v58 }
  0xe4   :  { %v398_v34 = vshll.u32 %v7989_v43, 30 }
  0xe5   :  { %v261_v22 = vand.u32 2147483647, %v260_v29 }
  0xe6   :  { %v399_v38 = vsub.s32 %v395_v21, %v398_v34 }
  0xe7   :  { %v264_v30 = vmul.f32 %v263_v25, %v261_v22 }
  0xe8   :  { %vm400_vm8 = vcmp.lt.s32.totalorder %v399_v38, 0  ;;  %v401_v24 = vsub.s32 0, %v399_v38 }
  0xe9   :  { %v265_v31 = vxor.u32 2147483648, %v264_v30 }
  0xea   :  { %v402_v47 = vsel %vm400_vm8, %v401_v24, %v399_v38 }
  0xeb   :  { %v266_v35 = vsel %vm145_vm6, %v265_v31, %v264_v30  ;;  %v403_v50 = vclz %v402_v47 }
  0xec   :  { %v269_v37 = vsel %vm144_vm7, %v7873_v7, %v266_v35  ;;  %v421_v7 = vsub.s32 4, %v7989_v43 }
  0xed   :  { %v271_v40 = vmul.f32 %v269_v37, %v269_v37  ;;  %v7029_v53 = vadd.s32 4294967294, %v403_v50 }
  0xee   :  { %v422_v35 = vsel %vm299_vm1, %v421_v7, %v7989_v43 }
  0xef   :  { %v272_v41 = vmul.f32 -0.001358992, %v271_v40  ;;  %v279_v44 = vmul.f32 -0.00019511016, %v271_v40  ;;  %vm7030_vm9 = vcmp.lt.s32.totalorder %v7029_v53, 0 }
  0xf0   :  { %v406_v59 = vsel %vm7030_vm9, 0, %v7029_v53  ;;  %vm440_vm9 = vweird.f32 %v7879_v16 }
  0xf1   :  { %v273_v48 = vadd.f32 0.041655596, %v272_v41  ;;  %v280_v49 = vadd.f32 0.008332121, %v279_v44  ;;  %v407_v63 = vsub.s32 32, %v406_v59  ;;  %v411_v36 = vsub.s32 4294967266, %v406_v59 }
  0xf2   :  { %v408_v27 = vshll.u32 %v399_v38, %v406_v59  ;;  %v424_v38 = vsel %vm298_vm2, 0, %v422_v35 }
  0xf3   :  { %v274_v52 = vmul.f32 %v273_v48, %v271_v40  ;;  %v281_v8 = vmul.f32 %v280_v49, %v271_v40  ;;  %v409_v39 = vshrl.u32 %v391_v62, %v407_v63  ;;  %v412_v23 = vadd.s32 127, %v411_v36 }
  0xf4   :  { %v999_v45 = vadd.s32 3, %v424_v38  ;;  %v441_v50 = vand.u32 3, %v424_v38 }
  0xf5   :  { %v275_v54 = vadd.f32 -0.4999988, %v274_v52  ;;  %v282_v55 = vadd.f32 -0.16666654, %v281_v8  ;;  %v410_v4 = vor.u32 %v409_v39, %v408_v27  ;;  %v413_v5 = vshll.u32 %v412_v23, 23 }
  0xf6   :  { %v1000_v51 = vand.u32 3, %v999_v45  ;;  %vm442_vm3 = vcmp.lt.s32.totalorder %v441_v50, 2  ;;  %vm443_vm4 = vcmp.eq.s32.totalorder %v441_v50, 0  ;;  %vm446_vm5 = vcmp.eq.s32.totalorder %v441_v50, 2 }
  0xf7   :  { %v276_v61 = vmul.f32 %v275_v54, %v271_v40  ;;  %v283_v33 = vmul.f32 %v282_v55, %v271_v40  ;;  %v414_v17 = vor.u32 4788187, %v413_v5  ;;  %v417_v58 = vcvt.s32.f32 %v410_v4 }
  0xf8   :  { %vm1001_vm6 = vcmp.lt.s32.totalorder %v1000_v51, 2  ;;  %vm1002_vm7 = vcmp.eq.s32.totalorder %v1000_v51, 0  ;;  %vm1005_vm8 = vcmp.eq.s32.totalorder %v1000_v51, 2 }
  0xf9   :  { %v277_v1 = vadd.f32 1.0, %v276_v61  ;;  %v284_v26 = vadd.f32 1.0, %v283_v33  ;;  %v415_v14 = vand.u32 2147483647, %v414_v17 }
  0xfb   :  { %v285_v60 = vmul.f32 %v284_v26, %v269_v37  ;;  %v293_v3 = vxor.u32 2147483648, %v277_v1  ;;  %v418_v46 = vmul.f32 %v417_v58, %v415_v14 }
  0xfd   :  { %v290_v6 = vxor.u32 2147483648, %v285_v60  ;;  %v294_v9 = vsel %vm292_vm13, %v293_v3, %v285_v60  ;;  %v852_v11 = vsel %vm850_vm0, %v293_v3, %v285_v60  ;;  %v419_v22 = vxor.u32 2147483648, %v418_v46 }
  0xfe   :  { %vm1352_vm13 = vcmask 1043459   ;;  %vm1361_vm0 = vcmask 1046534  }
  0xff   :  { %v291_v57 = vsel %vm289_vm12, %v277_v1, %v290_v6  ;;  %v849_v10 = vsel %vm847_vm15, %v277_v1, %v290_v6  ;;  %v420_v25 = vsel %vm299_vm1, %v419_v22, %v418_v46  ;;  %vm1349_vm12 = vcmask 1042434  }
 0x100   :  { %v295_v12 = vsel %vm288_vm11, %v291_v57, %v294_v9  ;;  %v853_v13 = vsel %vm846_vm14, %v849_v10, %v852_v11  ;;  %v423_v28 = vsel %vm298_vm2, %v7879_v16, %v420_v25  ;;  %vm1346_vm11 = vcmask 1041409  }
 0x101   :  { %v8001_v15 = vsel %vm286_vm10, nan, %v295_v12  ;;  %v8005_v18 = vsel %vm286_vm10, nan, %v853_v13  ;;  %v425_v30 = vmul.f32 %v423_v28, %v423_v28  ;;  %vm587_vm10 = vcmask 257024  }
 0x102   :  { %v1017_v29 = vperm.slane %v8005_v18, 1  ;;  %v465_v20 = vperm.slane %v8001_v15, 2  ;;  %v458_v21 = vperm.slane %v8001_v15, 1  ;;  %v1024_v26 = vperm.slane %v8005_v18, 2 }
 0x103   :  { %v426_v31 = vmul.f32 -0.001358992, %v425_v30  ;;  %v433_v34 = vmul.f32 -0.00019511016, %v425_v30  ;;  %v472_v42 = vperm.slane %v8001_v15, 3  ;;  %v1031_v16 = vperm.slane %v8005_v18, 3 }
 0x104   :  { %1022 = vperm.xlu2 %7372, %v1017_v29   ;;  %470 = vperm.xlu0 %7370, %v465_v20   ;;  %v451_v27 = vperm.slane %v8001_v15, 0  ;;  %v1010_v23 = vperm.slane %v8005_v18, 0  ;;  %v479_v60 = vperm.slane %v8001_v15, 4  ;;  %v1038_v17 = vperm.slane %v8005_v18, 4 }
 0x105   :  { %463 = vperm.xlu1 %7371, %v458_v21   ;;  %v427_v0 = vadd.f32 0.041655596, %v426_v31  ;;  %v434_v37 = vadd.f32 0.008332121, %v433_v34  ;;  %v1045_v57 = vperm.slane %v8005_v18, 5  ;;  %v486_v12 = vperm.slane %v8001_v15, 5 }
 0x106   :  { %v493_v13 = vperm.slane %v8001_v15, 6  ;;  %v500_v14 = vperm.slane %v8001_v15, 7  ;;  %v1052_v20 = vperm.slane %v8005_v18, 6  ;;  %v1059_v21 = vperm.slane %v8005_v18, 7  ;;  %v1307_v15 = vld [vmem:[%s10801_s5] sm:$0xff] }
 0x107   :  { %v428_v40 = vmul.f32 %v427_v0, %v425_v30  ;;  %v435_v24 = vmul.f32 %v434_v37, %v425_v30  ;;  %v564_v31 = vld [vmem:[#allocation5 + $0x4] sm:$0xf]  ;;  %v565_v18 = vld [vmem:[#allocation5 + $0x8] sm:$0xf]  ;;  %vm1355_vm14 = vcmask 1044484   ;;  %vm1358_vm15 = vcmask 1045509  }
 0x108   :  { %vm1364_vm1 = vcmask 1047559   ;;  %vm1530_vm2 = vcmask 261120  }
 0x109   :  { %v429_v41 = vadd.f32 -0.4999988, %v428_v40  ;;  %v436_v44 = vadd.f32 -0.16666654, %v435_v24  ;;  %v1124_v40 = vld [vmem:[#allocation7 + $0x8] sm:$0xf] }
 0x10b   :  { %v430_v47 = vmul.f32 %v429_v41, %v425_v30  ;;  %v437_v19 = vmul.f32 %v436_v44, %v425_v30  ;;  %v1123_v30 = vld [vmem:[#allocation7 + $0x4] sm:$0xf] }
 0x10d   :  { %v431_v48 = vadd.f32 1.0, %v430_v47  ;;  %v438_v49 = vadd.f32 1.0, %v437_v19 }
 0x10f   :  { %v439_v52 = vmul.f32 %v438_v49, %v423_v28  ;;  %v447_v8 = vxor.u32 2147483648, %v431_v48 }
 0x111   :  { %v444_v53 = vxor.u32 2147483648, %v439_v52  ;;  %v448_v54 = vsel %vm446_vm5, %v447_v8, %v439_v52  ;;  %v1007_v56 = vsel %vm1005_vm8, %v447_v8, %v439_v52  ;;  %vm2847_vm5 = vcmask 523264  }
 0x113   :  { %v445_v43 = vsel %vm443_vm4, %v431_v48, %v444_v53  ;;  %v1004_v55 = vsel %vm1002_vm7, %v431_v48, %v444_v53  ;;  %vm2221_vm4 = vcmask 1043456  }
 0x114   :  { %v449_v59 = vsel %vm442_vm3, %v445_v43, %v448_v54  ;;  %v1008_v61 = vsel %vm1001_vm6, %v1004_v55, %v1007_v56  ;;  %vm2020_vm3 = vcmask 64512  }
 0x115   :  { %v450_v33 = vsel %vm440_vm9, nan, %v449_v59  ;;  %v1009_v62 = vsel %vm440_vm9, nan, %v1008_v61 }
 0x116   :  { %v1073_v63 = vperm.slane %v1009_v62, 1  ;;  %v1080_v36 = vperm.slane %v1009_v62, 2  ;;  %v514_v1 = vperm.slane %v450_v33, 1  ;;  %v507_v2 = vperm.slane %v450_v33, 0 }
 0x117   :  { %v521_v39 = vperm.slane %v450_v33, 2  ;;  %v528_v3 = vperm.slane %v450_v33, 3  ;;  %v1087_v4 = vperm.slane %v1009_v62, 3  ;;  %v1094_v5 = vperm.slane %v1009_v62, 4 }
 0x118   :  { %1078 = vperm.xlu2 %7372, %v1073_v63   ;;  %1085 = vperm.xlu0 %7370, %v1080_v36   ;;  %v1066_v6 = vperm.slane %v1009_v62, 0  ;;  %v535_v9 = vperm.slane %v450_v33, 4  ;;  %v542_v10 = vperm.slane %v450_v33, 5  ;;  %v549_v11 = vperm.slane %v450_v33, 6 }
 0x119   :  { %519 = vperm.xlu1 %7371, %v514_v1   ;;  %v1101_v58 = vperm.slane %v1009_v62, 5  ;;  %v1108_v46 = vperm.slane %v1009_v62, 6  ;;  %v1115_v29 = vperm.slane %v1009_v62, 7  ;;  %v556_v22 = vperm.slane %v450_v33, 7  ;;  %v8040_v33 = vld [vmem:[#allocation5 + $0xc] sm:$0xf] }
 0x120   :  { %1029 = vperm.xlu2 %7372, %v1024_v26   ;;  %512 = vperm.xlu0 %7370, %v507_v2  }
 0x121   :  { %526 = vperm.xlu1 %7371, %v521_v39  }
 0x128   :  { %477 = vperm.xlu2 %7372, %v472_v42   ;;  %1036 = vperm.xlu0 %7370, %v1031_v16  }
 0x129   :  { %456 = vperm.xlu1 %7371, %v451_v27  }
 0x130   :  { %1015 = vperm.xlu2 %7372, %v1010_v23   ;;  %484 = vperm.xlu0 %7370, %v479_v60  }
 0x131   :  { %533 = vperm.xlu1 %7371, %v528_v3  }
 0x138   :  { %1092 = vperm.xlu2 %7372, %v1087_v4   ;;  %1099 = vperm.xlu0 %7370, %v1094_v5  }
 0x139   :  { %1071 = vperm.xlu1 %7371, %v1066_v6  }
 0x140   :  { %1043 = vperm.xlu2 %7372, %v1038_v17   ;;  %1050 = vperm.xlu0 %7370, %v1045_v57  }
 0x141   :  { %540 = vperm.xlu1 %7371, %v535_v9  }
 0x148   :  { %547 = vperm.xlu2 %7372, %v542_v10   ;;  %554 = vperm.xlu0 %7370, %v549_v11   ;;  %v8045_v11 = vld [vmem:[#allocation7] sm:$0xf] }
 0x149   :  { %491 = vperm.xlu1 %7371, %v486_v12  }
 0x150   :  { %498 = vperm.xlu2 %7372, %v493_v13   ;;  %505 = vperm.xlu0 %7370, %v500_v14  }
 0x151   :  { %1106 = vperm.xlu1 %7371, %v1101_v58   ;;  %v1125_v58 = vld [vmem:[#allocation7 + $0xc] sm:$0xf] }
 0x158   :  { %1113 = vperm.xlu2 %7372, %v1108_v46   ;;  %1120 = vperm.xlu0 %7370, %v1115_v29  }
 0x159   :  { %1057 = vperm.xlu1 %7371, %v1052_v20  }
 0x15e   :  { %v1023_v25 = vpop.permute.xlu2 %1022 }
 0x15f   :  { %v1131_v35 = vmul.f32 %v1123_v30, %v1023_v25 }
 0x160   :  { %1064 = vperm.xlu2 %7372, %v1059_v21   ;;  %7374 = vset.pattern.permute.xlu0 %v7747_v32  ;;  %v563_v21 = vld [vmem:[#allocation5] sm:$0xf] }
 0x161   :  { %561 = vperm.xlu1 %7371, %v556_v22   ;;  %v1153_v38 = vsel %vm587_vm10, %v1131_v35, 0.0 }
 0x162   :  { %v1154_v45 = vrot.slane %v1153_v38, 4 }
 0x164   :  { %v1155_v48 = vadd.f32 %v1154_v45, %v1153_v38 }
 0x166   :  { %v1156_v56 = vrot.slane %v1155_v48, 2 }
 0x168   :  { %v1157_v1 = vadd.f32 %v1156_v56, %v1155_v48 }
 0x169   :  { %7373 = vset.pattern.permute.xlu1 %v7747_v32 }
 0x16a   :  { %1326 = vperm.xlu1 %7373, %v1307_v15   ;;  %v1158_v5 = vrot.slane %v1157_v1, 1  ;;  %v8052_v15 = vld [vmem:[%s10800_s4] sm:$0xff] }
 0x16c   :  { %v1159_v46 = vadd.f32 %v1158_v5, %v1157_v1  ;;  %v1277_v1 = vrot.slane %v8052_v15, 2 }
 0x172   :  { %v1079_v7 = vpop.permute.xlu2 %1078 }
 0x173   :  { %v1139_v8 = vmul.f32 %v1123_v30, %v1079_v7  ;;  %v8055_v30 = vld [vmem:[#allocation7 + $0x10] sm:$0xf] }
 0x175   :  { %v1209_v61 = vsel %vm587_vm10, %v1139_v8, 0.0 }
 0x176   :  { %v471_v0 = vpop.permute.xlu0 %470  ;;  %v1210_v26 = vrot.slane %v1209_v61, 4 }
 0x177   :  { %v464_v34 = vpop.permute.xlu1 %463  ;;  %v573_v41 = vmul.f32 %v565_v18, %v471_v0 }
 0x178   :  { %v572_v37 = vmul.f32 %v564_v31, %v464_v34  ;;  %v1211_v17 = vadd.f32 %v1210_v26, %v1209_v61 }
 0x179   :  { %v602_v47 = vsel %vm587_vm10, %v573_v41, 0.0 }
 0x17a   :  { %v1030_v28 = vpop.permute.xlu2 %1029  ;;  %v595_v44 = vsel %vm587_vm10, %v572_v37, 0.0  ;;  %v603_v50 = vrot.slane %v602_v47, 4  ;;  %v1212_v22 = vrot.slane %v1211_v17, 2 }
 0x17b   :  { %v1132_v32 = vmul.f32 %v1124_v40, %v1030_v28  ;;  %v596_v19 = vrot.slane %v595_v44, 4 }
 0x17c   :  { %v604_v59 = vadd.f32 %v603_v50, %v602_v47  ;;  %v1213_v48 = vadd.f32 %v1212_v22, %v1211_v17 }
 0x17d   :  { %v1160_v49 = vsel %vm587_vm10, %v1132_v32, 0.0  ;;  %v597_v53 = vadd.f32 %v596_v19, %v595_v44  ;;  %v1276_v32 = vrot.slane %v8052_v15, 1 }
 0x17e   :  { %v1161_v54 = vrot.slane %v1160_v49, 4  ;;  %v605_v39 = vrot.slane %v604_v59, 2 }
 0x17f   :  { %v598_v62 = vrot.slane %v597_v53, 2 }
 0x180   :  { %v1162_v63 = vadd.f32 %v1161_v54, %v1160_v49  ;;  %v606_v9 = vadd.f32 %v605_v39, %v604_v59 }
 0x181   :  { %v599_v27 = vadd.f32 %v598_v62, %v597_v53 }
 0x182   :  { %v478_v24 = vpop.permute.xlu2 %477  ;;  %v1163_v3 = vrot.slane %v1162_v63, 2  ;;  %v607_v25 = vrot.slane %v606_v9, 1 }
 0x183   :  { %v574_v2 = vmul.f32 %v8040_v33, %v478_v24  ;;  %v600_v10 = vrot.slane %v599_v27, 1 }
 0x184   :  { %v1164_v14 = vadd.f32 %v1163_v3, %v1162_v63  ;;  %v608_v49 = vadd.f32 %v607_v25, %v606_v9  ;;  %v8068_v3 = vld [vmem:[#allocation5 + $0x10] sm:$0xf]  ;;  %v1214_v9 = vrot.slane %v1213_v48, 1 }
 0x185   :  { %v609_v57 = vsel %vm587_vm10, %v574_v2, 0.0  ;;  %v601_v35 = vadd.f32 %v600_v10, %v599_v27 }
 0x186   :  { %v610_v29 = vrot.slane %v609_v57, 4 }
 0x188   :  { %v611_v45 = vadd.f32 %v610_v29, %v609_v57 }
 0x18a   :  { %v1016_v51 = vpop.permute.xlu2 %1015  ;;  %v1086_v52 = vpop.permute.xlu0 %1085  ;;  %v612_v61 = vrot.slane %v611_v45, 2 }
 0x18b   :  { %v520_v43 = vpop.permute.xlu1 %519  ;;  %v1140_v6 = vmul.f32 %v1124_v40, %v1086_v52  ;;  %v1130_v7 = vmul.f32 %v8045_v11, %v1016_v51  ;;  %v1165_v40 = vrot.slane %v1164_v14, 1  ;;  %v1259_v52 = vadd.f32 %v1159_v46, %v601_v35 }
 0x18c   :  { %v580_v55 = vmul.f32 %v564_v31, %v520_v43  ;;  %v613_v10 = vadd.f32 %v612_v61, %v611_v45  ;;  %v1215_v35 = vadd.f32 %v1214_v9, %v1213_v48  ;;  %v8097_v9 = vld [vmem:[#allocation7 + $0x14] sm:$0xf] }
 0x18d   :  { %v1216_v20 = vsel %vm587_vm10, %v1140_v6, 0.0  ;;  %v1146_v50 = vsel %vm587_vm10, %v1130_v7, 0.0  ;;  %v1166_v54 = vadd.f32 %v1165_v40, %v1164_v14  ;;  %v8072_v5 = vadd.f32 %v1276_v32, %v1259_v52 }
 0x18e   :  { %v651_v36 = vsel %vm587_vm10, %v580_v55, 0.0  ;;  %v1217_v24 = vrot.slane %v1216_v20, 4  ;;  %v1147_v62 = vrot.slane %v1146_v50, 4 }
 0x18f   :  { %v652_v23 = vrot.slane %v651_v36, 4  ;;  %v1309_v7 = vmin.f32 %v8072_v5, 0.0 }
 0x190   :  { %v1218_v55 = vadd.f32 %v1217_v24, %v1216_v20 }
 0x191   :  { %v653_v12 = vadd.f32 %v652_v23, %v651_v36 }
 0x192   :  { %v1093_v42 = vpop.permute.xlu2 %1092  ;;  %v513_v16 = vpop.permute.xlu0 %512  ;;  %v1219_v6 = vrot.slane %v1218_v55, 2 }
 0x193   :  { %v527_v60 = vpop.permute.xlu1 %526  ;;  %v1141_v0 = vmul.f32 %v1125_v58, %v1093_v42  ;;  %v579_v41 = vmul.f32 %v563_v21, %v513_v16  ;;  %v1260_v16 = vadd.f32 %v1166_v54, %v608_v49 }
 0x194   :  { %v581_v4 = vmul.f32 %v565_v18, %v527_v60  ;;  %v654_v18 = vrot.slane %v653_v12, 2  ;;  %v8066_v60 = vld [vmem:[#allocation5 + $0x14] sm:$0xf] }
 0x195   :  { %v1223_v53 = vsel %vm587_vm10, %v1141_v0, 0.0  ;;  %v644_v56 = vsel %vm587_vm10, %v579_v41, 0.0  ;;  %v8078_v20 = vadd.f32 %v1277_v1, %v1260_v16 }
 0x196   :  { %v658_v13 = vsel %vm587_vm10, %v581_v4, 0.0  ;;  %v655_v8 = vadd.f32 %v654_v18, %v653_v12  ;;  %v1224_v26 = vrot.slane %v1223_v53, 4  ;;  %v645_v23 = vrot.slane %v644_v56, 4 }
 0x197   :  { %v659_v28 = vrot.slane %v658_v13, 4  ;;  %v1148_v12 = vadd.f32 %v1147_v62, %v1146_v50  ;;  %v614_v18 = vrot.slane %v613_v10, 1 }
 0x198   :  { %v656_v27 = vrot.slane %v655_v8, 1  ;;  %v1225_v14 = vadd.f32 %v1224_v26, %v1223_v53  ;;  %v646_v22 = vadd.f32 %v645_v23, %v644_v56  ;;  %v1278_v53 = vrot.slane %v8052_v15, 3 }
 0x199   :  { %v660_v51 = vadd.f32 %v659_v28, %v658_v13  ;;  %v1220_v28 = vadd.f32 %v1219_v6, %v1218_v55  ;;  %v1149_v0 = vrot.slane %v1148_v12, 2 }
 0x19a   :  { %v1044_v31 = vpop.permute.xlu2 %1043  ;;  %v1037_v34 = vpop.permute.xlu0 %1036 }
 0x19b   :  { %v1133_v37 = vmul.f32 %v1125_v58, %v1037_v34  ;;  %v457_v38 = vpop.permute.xlu1 %456  ;;  %v1134_v47 = vmul.f32 %v8055_v30, %v1044_v31  ;;  %v661_v2 = vrot.slane %v660_v51, 2  ;;  %v1221_v48 = vrot.slane %v1220_v28, 1 }
 0x19c   :  { %v571_v44 = vmul.f32 %v563_v21, %v457_v38  ;;  %v657_v21 = vadd.f32 %v656_v27, %v655_v8  ;;  %v1226_v38 = vrot.slane %v1225_v14, 2  ;;  %v1150_v56 = vadd.f32 %v1149_v0, %v1148_v12  ;;  %v569_v27 = vld [vmem:[#allocation5 + $0x18] sm:$0xf] }
 0x19d   :  { %v1167_v19 = vsel %vm587_vm10, %v1133_v37, 0.0  ;;  %v1174_v63 = vsel %vm587_vm10, %v1134_v47, 0.0  ;;  %v662_v58 = vadd.f32 %v661_v2, %v660_v51  ;;  %v1310_v47 = vmin.f32 %v8078_v20, 0.0 }
 0x19e   :  { %v588_v43 = vsel %vm587_vm10, %v571_v44, 0.0  ;;  %v1168_v59 = vrot.slane %v1167_v19, 4  ;;  %v1175_v17 = vrot.slane %v1174_v63, 4  ;;  %v8086_v51 = vrot.slane %v1309_v7, 7 }
 0x19f   :  { %v589_v36 = vrot.slane %v588_v43, 4  ;;  %v663_v40 = vrot.slane %v662_v58, 1 }
 0x1a0   :  { %v1169_v57 = vadd.f32 %v1168_v59, %v1167_v19  ;;  %v1176_v31 = vadd.f32 %v1175_v17, %v1174_v63  ;;  %v647_v19 = vrot.slane %v646_v22, 2  ;;  %v1227_v59 = vadd.f32 %v1226_v38, %v1225_v14 }
 0x1a1   :  { %v590_v13 = vadd.f32 %v589_v36, %v588_v43  ;;  %v664_v61 = vadd.f32 %v663_v40, %v662_v58  ;;  %v615_v63 = vadd.f32 %v614_v18, %v613_v10  ;;  %v8089_v36 = vrot.slane %v1310_v47, 6 }
 0x1a2   :  { %v548_v39 = vpop.permute.xlu2 %547  ;;  %v485_v42 = vpop.permute.xlu0 %484  ;;  %v1170_v34 = vrot.slane %v1169_v57, 2  ;;  %v1177_v52 = vrot.slane %v1176_v31, 2  ;;  %v648_v2 = vadd.f32 %v647_v19, %v646_v22  ;;  %v1279_v17 = vrot.slane %v8052_v15, 4 }
 0x1a3   :  { %v534_v4 = vpop.permute.xlu1 %533  ;;  %v584_v46 = vmul.f32 %v8066_v60, %v548_v39  ;;  %v575_v29 = vmul.f32 %v8068_v3, %v485_v42  ;;  %v591_v37 = vrot.slane %v590_v13, 2  ;;  %v1222_v39 = vadd.f32 %v1221_v48, %v1220_v28 }
 0x1a4   :  { %v582_v25 = vmul.f32 %v8040_v33, %v534_v4  ;;  %v1267_v33 = vadd.f32 %v1215_v35, %v657_v21  ;;  %v1171_v8 = vadd.f32 %v1170_v34, %v1169_v57  ;;  %v1178_v42 = vadd.f32 %v1177_v52, %v1176_v31 }
 0x1a5   :  { %v679_v24 = vsel %vm587_vm10, %v584_v46, 0.0  ;;  %v616_v41 = vsel %vm587_vm10, %v575_v29, 0.0  ;;  %v592_v43 = vadd.f32 %v591_v37, %v590_v13  ;;  %v1151_v10 = vrot.slane %v1150_v56, 1 }
 0x1a6   :  { %v665_v49 = vsel %vm587_vm10, %v582_v25, 0.0  ;;  %v680_v54 = vrot.slane %v679_v24, 4  ;;  %v617_v55 = vrot.slane %v616_v41, 4  ;;  %v8093_v26 = vadd.f32 %v1276_v32, %v1267_v33 }
 0x1a7   :  { %v666_v62 = vrot.slane %v665_v49, 4  ;;  %v1172_v16 = vrot.slane %v1171_v8, 1  ;;  %v593_v4 = vrot.slane %v592_v43, 1  ;;  %v1228_v12 = vrot.slane %v1227_v59, 1 }
 0x1a8   :  { %v681_v6 = vadd.f32 %v680_v54, %v679_v24  ;;  %v618_v57 = vadd.f32 %v617_v55, %v616_v41  ;;  %v1268_v13 = vadd.f32 %v1222_v39, %v664_v61  ;;  %v1317_v46 = vmin.f32 %v8093_v26, 0.0 }
 0x1a9   :  { %v667_v14 = vadd.f32 %v666_v62, %v665_v49  ;;  %v649_v29 = vrot.slane %v648_v2, 1  ;;  %v1179_v25 = vrot.slane %v1178_v42, 1  ;;  %v1173_v7 = vadd.f32 %v1172_v16, %v1171_v8 }
 0x1aa   :  { %v499_v44 = vpop.permute.xlu2 %498  ;;  %v1100_v45 = vpop.permute.xlu0 %1099  ;;  %v594_v34 = vadd.f32 %v593_v4, %v592_v43  ;;  %v682_v35 = vrot.slane %v681_v6, 2  ;;  %v619_v18 = vrot.slane %v618_v57, 2  ;;  %v1152_v37 = vadd.f32 %v1151_v10, %v1150_v56 }
 0x1ab   :  { %v1072_v50 = vpop.permute.xlu1 %1071  ;;  %v577_v21 = vmul.f32 %v569_v27, %v499_v44  ;;  %v1142_v22 = vmul.f32 %v8055_v30, %v1100_v45  ;;  %v8104_v38 = vadd.f32 %v1228_v12, %v1227_v59  ;;  %v8108_v40 = vadd.f32 %v1277_v1, %v1268_v13 }
 0x1ac   :  { %v1138_v23 = vmul.f32 %v8045_v11, %v1072_v50  ;;  %v668_v30 = vrot.slane %v667_v14, 2  ;;  %v8110_v24 = vadd.f32 %v649_v29, %v648_v2  ;;  %v8114_v47 = vrot.slane %v1317_v46, 7  ;;  %v8119_v50 = vld [vmem:[#allocation7 + $0x1c] sm:$0xf] }
 0x1ad   :  { %v630_v41 = vsel %vm587_vm10, %v577_v21, 0.0  ;;  %v1230_v44 = vsel %vm587_vm10, %v1142_v22, 0.0  ;;  %v1180_v33 = vadd.f32 %v1179_v25, %v1178_v42  ;;  %v1261_v19 = vadd.f32 %v1173_v7, %v615_v63 }
 0x1ae   :  { %v1202_v28 = vsel %vm587_vm10, %v1138_v23, 0.0  ;;  %v1258_v1 = vadd.f32 %v1152_v37, %v594_v34  ;;  %v683_v48 = vadd.f32 %v682_v35, %v681_v6  ;;  %v620_v52 = vadd.f32 %v619_v18, %v618_v57 }
 0x1af   :  { %v1203_v45 = vrot.slane %v1202_v28, 4  ;;  %v1318_v43 = vmin.f32 %v8108_v40, 0.0  ;;  %v669_v54 = vadd.f32 %v668_v30, %v667_v14  ;;  %v631_v55 = vrot.slane %v630_v41, 4 }
 0x1b0   :  { %v1231_v56 = vrot.slane %v1230_v44, 4  ;;  %v8127_v16 = vadd.f32 %v1278_v53, %v1261_v19  ;;  %v8131_v57 = vadd.f32 %v8052_v15, %v1258_v1  ;;  %v684_v10 = vrot.slane %v683_v48, 1 }
 0x1b1   :  { %v1204_v62 = vadd.f32 %v1203_v45, %v1202_v28  ;;  %v621_v12 = vrot.slane %v620_v52, 1  ;;  %v670_v14 = vrot.slane %v669_v54, 1  ;;  %v8138_v28 = vld [vmem:[#allocation5 + $0x1c] sm:$0xf] }
 0x1b2   :  { %v1114_v32 = vpop.permute.xlu2 %1113  ;;  %v1051_v58 = vpop.permute.xlu0 %1050  ;;  %v8141_v34 = vadd.f32 %v684_v10, %v683_v48 }
 0x1b3   :  { %v541_v11 = vpop.permute.xlu1 %540  ;;  %v1135_v31 = vmul.f32 %v8097_v9, %v1051_v58  ;;  %v1232_v58 = vadd.f32 %v1231_v56, %v1230_v44  ;;  %v1205_v29 = vrot.slane %v1204_v62, 2  ;;  %v622_v35 = vadd.f32 %v621_v12, %v620_v52 }
 0x1b4   :  { %v583_v0 = vmul.f32 %v8068_v3, %v541_v11  ;;  %v8116_v3 = vld [vmem:[#allocation7 + $0x18] sm:$0xf]  ;;  %v1281_v52 = vrot.slane %v8052_v15, 6 }
 0x1b5   :  { %v1181_v49 = vsel %vm587_vm10, %v1135_v31, 0.0  ;;  %v1144_v63 = vmul.f32 %v8116_v3, %v1114_v32  ;;  %v632_v32 = vadd.f32 %v631_v55, %v630_v41  ;;  %v1308_v31 = vmin.f32 %v8131_v57, 0.0 }
 0x1b6   :  { %v672_v8 = vsel %vm587_vm10, %v583_v0, 0.0  ;;  %v1182_v2 = vrot.slane %v1181_v49, 4  ;;  %v671_v0 = vadd.f32 %v670_v14, %v669_v54  ;;  %v1233_v37 = vrot.slane %v1232_v58, 2 }
 0x1b7   :  { %v673_v23 = vrot.slane %v672_v8, 4  ;;  %v1244_v21 = vsel %vm587_vm10, %v1144_v63, 0.0  ;;  %v633_v45 = vrot.slane %v632_v32, 2  ;;  %v1206_v19 = vadd.f32 %v1205_v29, %v1204_v62 }
 0x1b8   :  { %v1183_v22 = vadd.f32 %v1182_v2, %v1181_v49  ;;  %v1245_v30 = vrot.slane %v1244_v21, 4  ;;  %v1262_v48 = vadd.f32 %v1180_v33, %v622_v35  ;;  %v8147_v2 = vadd.f32 %v1233_v37, %v1232_v58 }
 0x1b9   :  { %v674_v11 = vadd.f32 %v673_v23, %v672_v8  ;;  %v1207_v23 = vrot.slane %v1206_v19, 1  ;;  %v1269_v12 = vadd.f32 %v8104_v38, %v671_v0  ;;  %v8156_v58 = vadd.f32 %v633_v45, %v632_v32  ;;  %v8167_v45 = vld [vmem:[%s10802_s6] sm:$0xff]  ;;  %s7748_s6 = smov 32  }
 0x1ba   :  { %v1065_v59 = vpop.permute.xlu2 %1064  ;;  %v555_v61 = vpop.permute.xlu0 %554  ;;  %v1184_v49 = vrot.slane %v1183_v22, 2  ;;  %v8154_v14 = vadd.f32 %v1279_v17, %v1262_v48 }
 0x1bb   :  { %v1137_v39 = vmul.f32 %v8119_v50, %v1065_v59  ;;  %v492_v42 = vpop.permute.xlu1 %491  ;;  %v585_v4 = vmul.f32 %v569_v27, %v555_v61  ;;  %v675_v55 = vrot.slane %v674_v11, 2  ;;  %v1208_v35 = vadd.f32 %v1207_v23, %v1206_v19 }
 0x1bc   :  { %v576_v6 = vmul.f32 %v8066_v60, %v492_v42  ;;  %v1311_v60 = vmin.f32 %v8127_v16, 0.0 }
 0x1bd   :  { %v1195_v13 = vsel %vm587_vm10, %v1137_v39, 0.0  ;;  %v686_v46 = vsel %vm587_vm10, %v585_v4, 0.0  ;;  %v1246_v39 = vadd.f32 %v1245_v30, %v1244_v21  ;;  %v1185_v4 = vadd.f32 %v1184_v49, %v1183_v22 }
 0x1be   :  { %v623_v27 = vsel %vm587_vm10, %v576_v6, 0.0  ;;  %v1196_v25 = vrot.slane %v1195_v13, 4  ;;  %v687_v18 = vrot.slane %v686_v46, 4  ;;  %v1280_v6 = vrot.slane %v8052_v15, 5 }
 0x1bf   :  { %v624_v7 = vrot.slane %v623_v27, 4  ;;  %v1235_v21 = vrot.slane %v8147_v2, 1  ;;  %v1247_v22 = vrot.slane %v1246_v39, 2 }
 0x1c0   :  { %v1197_v56 = vadd.f32 %v1196_v25, %v1195_v13  ;;  %v688_v63 = vadd.f32 %v687_v18, %v686_v46  ;;  %v1186_v18 = vrot.slane %v1185_v4, 1 }
 0x1c1   :  { %v625_v41 = vadd.f32 %v624_v7, %v623_v27  ;;  %v1248_v48 = vadd.f32 %v1247_v22, %v1246_v39 }
 0x1c2   :  { %v506_v44 = vpop.permute.xlu0 %505  ;;  %v1198_v33 = vrot.slane %v1197_v56, 2  ;;  %v689_v46 = vrot.slane %v688_v63, 2 }
 0x1c3   :  { %v578_v1 = vmul.f32 %v8138_v28, %v506_v44  ;;  %v1107_v8 = vpop.permute.xlu1 %1106  ;;  %v626_v59 = vrot.slane %v625_v41, 2  ;;  %v7320_v44 = vld [vmem:[%s10805_s9 + $0x8] sm:$0xff] }
 0x1c4   :  { %v1143_v61 = vmul.f32 %v8097_v9, %v1107_v8  ;;  %v676_v9 = vadd.f32 %v675_v55, %v674_v11  ;;  %v1199_v30 = vadd.f32 %v1198_v33, %v1197_v56  ;;  %v690_v19 = vadd.f32 %v689_v46, %v688_v63  ;;  %1540 = vmatpush.bf16.msra.mxu0 %v7320_v44 }
 0x1c5   :  { %v637_v54 = vsel %vm587_vm10, %v578_v1, 0.0  ;;  %v627_v42 = vadd.f32 %v626_v59, %v625_v41  ;;  %v7319_v59 = vld [vmem:[%s10805_s9] sm:$0xff] }
 0x1c6   :  { %v638_v62 = vrot.slane %v637_v54, 4  ;;  %v1237_v10 = vsel %vm587_vm10, %v1143_v61, 0.0  ;;  %v677_v37 = vrot.slane %v676_v9, 1  ;;  %v1266_v61 = vadd.f32 %v1208_v35, %v8110_v24 }
 0x1c7   :  { %v1238_v29 = vrot.slane %v1237_v10, 4  ;;  %v628_v27 = vrot.slane %v627_v42, 1  ;;  %v1282_v35 = vrot.slane %v8052_v15, 7 }
 0x1c8   :  { %v639_v13 = vadd.f32 %v638_v62, %v637_v54  ;;  %v1187_v62 = vadd.f32 %v1186_v18, %v1185_v4  ;;  %v678_v23 = vadd.f32 %v677_v37, %v676_v9  ;;  %1541 = vmatpush.bf16.msra.mxu0 %v7319_v59  ;;  %v1236_v4 = vadd.f32 %v1235_v21, %v8147_v2 }
 0x1c9   :  { %v1239_v38 = vadd.f32 %v1238_v29, %v1237_v10  ;;  %v629_v8 = vadd.f32 %v628_v27, %v627_v42  ;;  %v1200_v10 = vrot.slane %v1199_v30, 1  ;;  %v691_v42 = vrot.slane %v690_v19, 1 }
 0x1ca   :  { %v640_v25 = vrot.slane %v639_v13, 2  ;;  %v1121_v7 = vpop.permute.xlu0 %1120  ;;  %v8180_v27 = vadd.f32 %v1278_v53, %v1269_v12  ;;  %v8188_v18 = vadd.f32 %v8052_v15, %v1266_v61  ;;  %v1249_v53 = vrot.slane %v1248_v48, 1 }
 0x1cb   :  { %v1145_v11 = vmul.f32 %v8119_v50, %v1121_v7  ;;  %v1058_v0 = vpop.permute.xlu1 %1057  ;;  %v1240_v49 = vrot.slane %v1239_v38, 2  ;;  %v1552_v50 = vrot.slane %v8167_v45, 2  ;;  %v1263_v24 = vadd.f32 %v1187_v62, %v629_v8 }
 0x1cc   :  { %v641_v41 = vadd.f32 %v640_v25, %v639_v13  ;;  %v1136_v32 = vmul.f32 %v8116_v3, %v1058_v0  ;;  %v635_v25 = vrot.slane %v8156_v58, 1  ;;  %v1201_v12 = vadd.f32 %v1200_v10, %v1199_v30 }
 0x1cd   :  { %v1251_v1 = vsel %vm587_vm10, %v1145_v11, 0.0  ;;  %v1241_v63 = vadd.f32 %v1240_v49, %v1239_v38  ;;  %v8176_v33 = vperm.slane %v1552_v50, 0  ;;  %v1270_v11 = vadd.f32 %v1236_v4, %v678_v23 }
 0x1ce   :  { %v642_v55 = vrot.slane %v641_v41, 1  ;;  %v1252_v56 = vrot.slane %v1251_v1, 4  ;;  %v1188_v3 = vsel %vm587_vm10, %v1136_v32, 0.0  ;;  %v692_v0 = vadd.f32 %v691_v42, %v690_v19 }
 0x1cf   :  { %v1189_v54 = vrot.slane %v1188_v3, 4  ;;  %v1242_v13 = vrot.slane %v1241_v63, 1  ;;  %1570 = vrot.lane.b32.xlu0 %v8176_v33, %s7748_s6  ;;  %v8193_v2 = vadd.f32 %v1280_v6, %v1263_v24  ;;  %v1312_v49 = vmin.f32 %v8154_v14, 0.0 }
 0x1d0   :  { %v1253_v46 = vadd.f32 %v1252_v56, %v1251_v1  ;;  %v643_v39 = vadd.f32 %v642_v55, %v641_v41  ;;  %v1319_v30 = vmin.f32 %v8180_v27, 0.0  ;;  %v636_v19 = vadd.f32 %v635_v25, %v8156_v58 }
 0x1d1   :  { %v1190_v29 = vadd.f32 %v1189_v54, %v1188_v3  ;;  %v1243_v9 = vadd.f32 %v1242_v13, %v1241_v63  ;;  %v1316_v50 = vmin.f32 %v8188_v18, 0.0  ;;  %v1250_v8 = vadd.f32 %v1249_v53, %v1248_v48 }
 0x1d2   :  { %v1254_v37 = vrot.slane %v1253_v46, 2  ;;  %v1265_v21 = vadd.f32 %v1201_v12, %v643_v39  ;;  %v1347_v55 = vsel %vm1346_vm11, %v8086_v51, %v1308_v31  ;;  %v1313_v48 = vmin.f32 %v8193_v2, 0.0 }
 0x1d3   :  { %v1191_v22 = vrot.slane %v1190_v29, 2  ;;  %v562_v7 = vpop.permute.xlu1 %561  ;;  %v1271_v32 = vadd.f32 %v1243_v9, %v8141_v34  ;;  %v8207_v34 = vadd.f32 %v1279_v17, %v1270_v11  ;;  %v1272_v61 = vadd.f32 %v1250_v8, %v692_v0 }
 0x1d4   :  { %v586_v38 = vmul.f32 %v8138_v28, %v562_v7  ;;  %v1255_v56 = vadd.f32 %v1254_v37, %v1253_v46  ;;  %v8215_v58 = vadd.f32 %v1282_v35, %v1265_v21  ;;  %v1368_v51 = vrot.slane %v1318_v43, 6 }
 0x1d5   :  { %v1192_v41 = vadd.f32 %v1191_v22, %v1190_v29  ;;  %v8211_v63 = vadd.f32 %v1280_v6, %v1271_v32  ;;  %v1351_v17 = vrot.slane %v1311_v60, 5  ;;  %v1354_v62 = vrot.slane %v1312_v49, 4 }
 0x1d6   :  { %v693_v44 = vsel %vm587_vm10, %v586_v38, 0.0  ;;  %v1370_v23 = vrot.slane %v1319_v30, 5  ;;  %v1350_v6 = vsel %vm1349_vm12, %v8089_v36, %v1347_v55  ;;  %v1367_v10 = vsel %vm1346_vm11, %v8114_v47, %v1316_v50 }
 0x1d7   :  { %v1193_v28 = vrot.slane %v1192_v41, 1  ;;  %v694_v1 = vrot.slane %v693_v44, 4  ;;  %v1320_v42 = vmin.f32 %v8207_v34, 0.0  ;;  %v1256_v13 = vrot.slane %v1255_v56, 1 }
 0x1d8   :  { %v8231_v60 = vadd.f32 %v1281_v52, %v1272_v61  ;;  %v1315_v29 = vmin.f32 %v8215_v58, 0.0  ;;  %v1321_v25 = vmin.f32 %v8211_v63, 0.0  ;;  %v1357_v24 = vrot.slane %v1313_v48, 3 }
 0x1d9   :  { %v1194_v3 = vadd.f32 %v1193_v28, %v1192_v41  ;;  %v695_v59 = vadd.f32 %v694_v1, %v693_v44  ;;  %v1353_v47 = vsel %vm1352_vm13, %v1351_v17, %v1350_v6  ;;  %v1369_v9 = vsel %vm1349_vm12, %v1368_v51, %v1367_v10 }
 0x1da   :  { %v1356_v4 = vsel %vm1355_vm14, %v1354_v62, %v1353_v47  ;;  %v1372_v22 = vrot.slane %v1320_v42, 4  ;;  %v1257_v7 = vadd.f32 %v1256_v13, %v1255_v56  ;;  %v1322_v12 = vmin.f32 %v8231_v60, 0.0 }
 0x1db   :  { %v1264_v31 = vadd.f32 %v1194_v3, %v636_v19  ;;  %v696_v54 = vrot.slane %v695_v59, 2  ;;  %v1359_v38 = vsel %vm1358_vm15, %v1357_v24, %v1356_v4  ;;  %v1363_v11 = vrot.slane %v1315_v29, 1 }
 0x1dc   :  { %v1374_v0 = vrot.slane %v1321_v25, 3  ;;  %v1327_v37 = vpop.permute.xlu1 %1326  ;;  %v1371_v44 = vsel %vm1352_vm13, %v1370_v23, %v1369_v9  ;;  %v1555_v49 = vrot.slane %v8167_v45, 5  ;;  %v1558_v30 = vperm.slane %v8167_v45, 0 }
 0x1dd   :  { %v1297_v46 = vadd.f32 %v1281_v52, %v1264_v31  ;;  %v697_v43 = vadd.f32 %v696_v54, %v695_v59  ;;  %v1373_v1 = vsel %vm1355_vm14, %v1372_v22, %v1371_v44  ;;  %v1376_v8 = vrot.slane %v1322_v12, 2 }
 0x1de   :  { %v1375_v50 = vsel %vm1358_vm15, %v1374_v0, %v1373_v1  ;;  %v8249_v55 = vperm.slane %v1555_v49, 0  ;;  %1566 = vrot.lane.b32.xlu1 %v1558_v30, %s7748_s6  ;;  %v1557_v56 = vrot.slane %v8167_v45, 7  ;;  %v1556_v13 = vrot.slane %v8167_v45, 6 }
 0x1df   :  { %v698_v36 = vrot.slane %v697_v43, 1  ;;  %v1314_v39 = vmin.f32 %v1297_v46, 0.0  ;;  %v1377_v6 = vsel %vm1361_vm0, %v1376_v8, %v1375_v50 }
 0x1e0   :  { %1576 = vrot.lane.b32.xlu0 %v8249_v55, %s7748_s6 }
 0x1e1   :  { %v699_v52 = vadd.f32 %v698_v36, %v697_v43  ;;  %v1360_v53 = vrot.slane %v1314_v39, 2 }
 0x1e3   :  { %v1273_v41 = vadd.f32 %v1257_v7, %v699_v52  ;;  %v1362_v21 = vsel %vm1361_vm0, %v1360_v53, %v1359_v38 }
 0x1e4   :  { %v1365_v32 = vsel %vm1364_vm1, %v1363_v11, %v1362_v21 }
 0x1e5   :  { %v1306_v28 = vadd.f32 %v1282_v35, %v1273_v41  ;;  %v1382_v19 = vmul.f32 %v1365_v32, %v1327_v37 }
 0x1e7   :  { %v1323_v3 = vmin.f32 %v1306_v28, 0.0  ;;  %v1386_v59 = vrot.slane %v1382_v19, 1  ;;  %v1387_v61 = vrot.slane %v1382_v19, 2  ;;  %v1388_v48 = vrot.slane %v1382_v19, 3 }
 0x1e8   :  { %v1389_v15 = vrot.slane %v1382_v19, 4  ;;  %v1390_v35 = vrot.slane %v1382_v19, 5  ;;  %v1391_v51 = vrot.slane %v1382_v19, 6  ;;  %v1392_v17 = vrot.slane %v1382_v19, 7 }
 0x1e9   :  { %v1378_v31 = vrot.slane %v1323_v3, 1  ;;  %v8258_v54 = vsub.f32 %v8131_v57, %v1382_v19  ;;  %v8261_v62 = vsub.f32 %v8072_v5, %v1386_v59  ;;  %v8264_v23 = vsub.f32 %v8078_v20, %v1387_v61 }
 0x1ea   :  { %v8268_v10 = vsub.f32 %v8127_v16, %v1388_v48  ;;  %v8271_v42 = vsub.f32 %v8154_v14, %v1389_v15  ;;  %v8276_v57 = vsub.f32 %v8193_v2, %v1390_v35  ;;  %v8278_v5 = vperm.slane %v1557_v56, 0 }
 0x1eb   :  { %v1379_v43 = vsel %vm1364_vm1, %v1378_v31, %v1377_v6  ;;  %v1551_v20 = vrot.slane %v8167_v45, 1  ;;  %v8281_v25 = vsub.f32 %v1297_v46, %v1391_v51  ;;  %v8284_v16 = vsub.f32 %v8215_v58, %v1392_v17 }
 0x1ec   :  { %v1383_v29 = vmul.f32 %v1379_v43, %v1327_v37  ;;  %v1433_v14 = vpack.c.bf16 %v8258_v54, %v8258_v54  ;;  %v1434_v24 = vpack.c.bf16 %v8261_v62, %v8261_v62  ;;  %v1435_v2 = vpack.c.bf16 %v8264_v23, %v8264_v23  ;;  %1580 = vrot.lane.b32.xlu0 %v8278_v5, %s7748_s6 }
 0x1ed   :  { %v1436_v36 = vpack.c.bf16 %v8268_v10, %v8268_v10  ;;  %v1437_v39 = vpack.c.bf16 %v8271_v42, %v8271_v42 }
 0x1ee   :  { %v1393_v46 = vrot.slane %v1383_v29, 1  ;;  %v1394_v47 = vrot.slane %v1383_v29, 2  ;;  %v1395_v4 = vrot.slane %v1383_v29, 3  ;;  %v1396_v58 = vrot.slane %v1383_v29, 4 }
 0x1ef   :  { %v1397_v9 = vrot.slane %v1383_v29, 5  ;;  %v1398_v22 = vrot.slane %v1383_v29, 6  ;;  %v1399_v7 = vrot.slane %v1383_v29, 7  ;;  %v8297_v52 = vsub.f32 %v8188_v18, %v1383_v29 }
 0x1f0   :  { %v8300_v53 = vsub.f32 %v8093_v26, %v1393_v46  ;;  %v8303_v12 = vsub.f32 %v8108_v40, %v1394_v47  ;;  %v8306_v38 = vsub.f32 %v8180_v27, %v1395_v4  ;;  %v8309_v11 = vsub.f32 %v8207_v34, %v1396_v58 }
 0x1f1   :  { %v8314_v0 = vsub.f32 %v8211_v63, %v1397_v9  ;;  %v8317_v18 = vsub.f32 %v8231_v60, %v1398_v22  ;;  %v8319_v26 = vsub.f32 %v1306_v28, %v1399_v7  ;;  %v1438_v40 = vpack.c.bf16 %v8276_v57, %v8276_v57 }
 0x1f2   :  { %v1439_v27 = vpack.c.bf16 %v8281_v25, %v8281_v25  ;;  %v1440_v34 = vpack.c.bf16 %v8284_v16, %v8284_v16  ;;  %v1442_v37 = vpack.c.bf16 %v8300_v53, %v8300_v53  ;;  %v1443_v63 = vpack.c.bf16 %v8303_v12, %v8303_v12 }
 0x1f3   :  { %v1441_v60 = vpack.c.bf16 %v8297_v52, %v8297_v52  ;;  %v1444_v41 = vpack.c.bf16 %v8306_v38, %v8306_v38  ;;  %v1445_v21 = vpack.c.bf16 %v8309_v11, %v8309_v11  ;;  %v1474_v32 = vunpack.c.l.b16 %v1434_v24 }
 0x1f4   :  { %v1446_v44 = vpack.c.bf16 %v8314_v0, %v8314_v0  ;;  %v1447_v49 = vpack.c.bf16 %v8317_v18, %v8317_v18  ;;  %v1448_v28 = vpack.c.bf16 %v8319_v26, %v8319_v26  ;;  %v1475_v1 = vunpack.c.l.b16 %v1435_v2 }
 0x1f5   :  { %v1473_v19 = vunpack.c.l.b16 %v1433_v14  ;;  %v1476_v50 = vunpack.c.l.b16 %v1436_v36  ;;  %v1477_v8 = vunpack.c.l.b16 %v1437_v39  ;;  %v1482_v56 = vunpack.c.l.b16 %v1442_v37 }
 0x1f6   :  { %v1478_v3 = vunpack.c.l.b16 %v1438_v40  ;;  %v1479_v59 = vunpack.c.l.b16 %v1439_v27  ;;  %v1480_v61 = vunpack.c.l.b16 %v1440_v34  ;;  %v1483_v48 = vunpack.c.l.b16 %v1443_v63 }
 0x1f7   :  { %v1484_v15 = vunpack.c.l.b16 %v1444_v41  ;;  %v1485_v35 = vunpack.c.l.b16 %v1445_v21  ;;  %v1489_v51 = vrot.slane %v1474_v32, 7  ;;  %v1491_v17 = vrot.slane %v1475_v1, 6 }
 0x1f8   :  { %v1481_v31 = vunpack.c.l.b16 %v1441_v60  ;;  %v1486_v6 = vunpack.c.l.b16 %v1446_v44  ;;  %v1487_v43 = vunpack.c.l.b16 %v1447_v49  ;;  %v1488_v29 = vunpack.c.l.b16 %v1448_v28 }
 0x1f9   :  { %v1490_v24 = vsel %vm1346_vm11, %v1489_v51, %v1473_v19  ;;  %v1493_v46 = vrot.slane %v1476_v50, 5  ;;  %v1503_v2 = vrot.slane %v1482_v56, 7  ;;  %v1505_v14 = vrot.slane %v1483_v48, 6 }
 0x1fa   :  { %v1492_v36 = vsel %vm1349_vm12, %v1491_v17, %v1490_v24  ;;  %v1495_v39 = vrot.slane %v1477_v8, 4  ;;  %v1497_v47 = vrot.slane %v1478_v3, 3  ;;  %v1499_v4 = vrot.slane %v1479_v59, 2 }
 0x1fb   :  { %v1494_v58 = vsel %vm1352_vm13, %v1493_v46, %v1492_v36  ;;  %v1504_v9 = vsel %vm1346_vm11, %v1503_v2, %v1481_v31  ;;  %v1507_v22 = vrot.slane %v1484_v15, 5  ;;  %v1509_v7 = vrot.slane %v1485_v35, 4  ;;  %v7375_v35 = vld [vmem:[%s10806_s10] ss:$0 sm:$0xff] }
 0x1fc   :  { %v1496_v40 = vsel %vm1355_vm14, %v1495_v39, %v1494_v58  ;;  %v1506_v27 = vsel %vm1349_vm12, %v1505_v14, %v1504_v9  ;;  %v8351_v34 = vperm.slane %v1556_v13, 0  ;;  %v8355_v37 = vperm.slane %v1551_v20, 0 }
 0x1fd   :  { %v1498_v63 = vsel %vm1358_vm15, %v1497_v47, %v1496_v40  ;;  %v1508_v60 = vsel %vm1352_vm13, %v1507_v22, %v1506_v27  ;;  %v1511_v41 = vrot.slane %v1486_v6, 3  ;;  %v1513_v44 = vrot.slane %v1487_v43, 2 }
 0x1fe   :  { %v1500_v21 = vsel %vm1361_vm0, %v1499_v4, %v1498_v63  ;;  %v1510_v32 = vsel %vm1355_vm14, %v1509_v7, %v1508_v60  ;;  %1578 = vrot.lane.b32.xlu1 %v8351_v34, %s7748_s6  ;;  %1568 = vrot.lane.b32.xlu2 %v8355_v37, %s7748_s6  ;;  %v1553_v13 = vrot.slane %v8167_v45, 3  ;;  %v1501_v20 = vrot.slane %v1480_v61, 1 }
 0x1ff   :  { %v1512_v49 = vsel %vm1358_vm15, %v1511_v41, %v1510_v32  ;;  %v1515_v28 = vrot.slane %v1488_v29, 1  ;;  %v1554_v3 = vrot.slane %v8167_v45, 4 }
 0x200   :  { %v1514_v1 = vsel %vm1361_vm0, %v1513_v44, %v1512_v49  ;;  %v1502_v19 = vsel %vm1364_vm1, %v1501_v20, %v1500_v21  ;;  %v8370_v56 = vperm.slane %v1553_v13, 0 }
 0x201   :  { %v1516_v50 = vsel %vm1364_vm1, %v1515_v28, %v1514_v1  ;;  %v8376_v59 = vperm.slane %v1554_v3, 0 }
 0x202   :  { %v1517_v8 = vpack.c.b16 %v1516_v50, %v1502_v19 }
 0x204   :  { %7045 = vmatmul.msk.bf16.vlgmr.msra.gmra.mxu0 %vm1530_vm2, %v1517_v8 }
 0x206   :  { %1572 = vrot.lane.b32.xlu2 %v8370_v56, %s7748_s6 }
 0x20e   :  { %1574 = vrot.lane.b32.xlu2 %v8376_v59, %s7748_s6 }
 0x241   :  { %v8380_v61 = vpop.permute.xlu0 %1570 }
 0x250   :  { %v8384_v15 = vpop.permute.xlu1 %1566 }
 0x252   :  { %v8389_v51 = vpop.permute.xlu0 %1576 }
 0x258   :  { %v8382_v48 = vpop.permute.xlu2 %1568 }
 0x25e   :  { %v8411_v32 = vpop.permute.xlu0 %1580 }
 0x260   :  { %v8391_v17 = vpop.permute.xlu2 %1572 }
 0x268   :  { %v8409_v21 = vpop.permute.xlu2 %1574 }
 0x270   :  { %v8395_v43 = vpop.permute.xlu1 %1578 }
 0x281   :  { %v1543_v31 = vpop.f32.mrf.mxu0 }
 0x282   :  { %v8393_v6 = vadd.f32 %v7375_v35, %v1543_v31 }
 0x284   :  { %v1592_v29 = vmul.f32 %v8380_v61, %v8393_v6  ;;  %v1591_v24 = vmul.f32 %v8382_v48, %v8393_v6  ;;  %v1590_v46 = vmul.f32 %v8384_v15, %v8393_v6  ;;  %v1595_v2 = vmul.f32 %v8389_v51, %v8393_v6 }
 0x285   :  { %v1593_v47 = vmul.f32 %v8391_v17, %v8393_v6  ;;  %v1596_v4 = vmul.f32 %v8395_v43, %v8393_v6  ;;  %v1597_v28 = vmul.f32 %v8411_v32, %v8393_v6  ;;  %v1594_v1 = vmul.f32 %v8409_v21, %v8393_v6 }
 0x286   :  { %v1608_v14 = vpack.c.bf16 %v1592_v29, %v1592_v29  ;;  %v1607_v36 = vpack.c.bf16 %v1591_v24, %v1591_v24  ;;  %v1606_v39 = vpack.c.bf16 %v1590_v46, %v1590_v46  ;;  %v1611_v40 = vpack.c.bf16 %v1595_v2, %v1595_v2 }
 0x287   :  { %v1609_v41 = vpack.c.bf16 %v1593_v47, %v1593_v47  ;;  %v1612_v13 = vpack.c.bf16 %v1596_v4, %v1596_v4  ;;  %v1610_v31 = vpack.c.bf16 %v1594_v1, %v1594_v1 }
 0x288   :  { %v1724_v58 = vunpack.c.l.b16 %v1608_v14  ;;  %v1703_v9 = vunpack.c.l.b16 %v1607_v36  ;;  %v1679_v22 = vunpack.c.l.b16 %v1606_v39  ;;  %v1787_v20 = vunpack.c.l.b16 %v1611_v40 }
 0x289   :  { %v1545_v7 = vpop.f32.mrf.mxu0  ;;  %v1745_v49 = vunpack.c.l.b16 %v1609_v41  ;;  %v1808_v19 = vunpack.c.l.b16 %v1612_v13  ;;  %v1766_v2 = vunpack.c.l.b16 %v1610_v31 }
 0x28a   :  { %v1725_v27 = vpack.c.b16 %v1724_v58, %v1724_v58  ;;  %v1704_v63 = vpack.c.b16 %v1703_v9, %v1703_v9  ;;  %v1680_v60 = vpack.c.b16 %v1679_v22, %v1679_v22  ;;  %v8413_v44 = vadd.f32 %v7375_v35, %v1545_v7 }
 0x28b   :  { %v1788_v8 = vpack.c.b16 %v1787_v20, %v1787_v20  ;;  %v1746_v3 = vpack.c.b16 %v1745_v49, %v1745_v49  ;;  %v1613_v35 = vpack.c.bf16 %v1597_v28, %v1597_v28  ;;  %v1809_v29 = vpack.c.b16 %v1808_v19, %v1808_v19 }
 0x28c   :  { %1726 = vrot.lane.b32.xlu2 %v1725_v27, %s7749_s22  ;;  %1705 = vrot.lane.b32.xlu1 %v1704_v63, %s7749_s22  ;;  %v1599_v50 = vmul.f32 %v8382_v48, %v8413_v44  ;;  %v1600_v14 = vmul.f32 %v8380_v61, %v8413_v44  ;;  %v1598_v36 = vmul.f32 %v8384_v15, %v8413_v44 }
 0x28d   :  { %1681 = vrot.lane.b32.xlu0 %v1680_v60, %s7749_s22  ;;  %v1829_v46 = vunpack.c.l.b16 %v1613_v35  ;;  %v1601_v47 = vmul.f32 %v8391_v17, %v8413_v44  ;;  %v1767_v58 = vpack.c.b16 %v1766_v2, %v1766_v2  ;;  %v1603_v60 = vmul.f32 %v8389_v51, %v8413_v44 }
 0x28e   :  { %v1615_v24 = vpack.c.bf16 %v1599_v50, %v1599_v50  ;;  %v1616_v9 = vpack.c.bf16 %v1600_v14, %v1600_v14  ;;  %v1614_v22 = vpack.c.bf16 %v1598_v36, %v1598_v36  ;;  %v1604_v41 = vmul.f32 %v8395_v43, %v8413_v44 }
 0x28f   :  { %v1830_v4 = vpack.c.b16 %v1829_v46, %v1829_v46  ;;  %v1617_v40 = vpack.c.bf16 %v1601_v47, %v1601_v47  ;;  %v1602_v20 = vmul.f32 %v8409_v21, %v8413_v44  ;;  %v1619_v1 = vpack.c.bf16 %v1603_v60, %v1603_v60 }
 0x290   :  { %v1874_v39 = vunpack.c.l.b16 %v1615_v24  ;;  %v1895_v27 = vunpack.c.l.b16 %v1616_v9  ;;  %v1850_v63 = vunpack.c.l.b16 %v1614_v22  ;;  %v1620_v19 = vpack.c.bf16 %v1604_v41, %v1604_v41 }
 0x291   :  { %v1916_v13 = vunpack.c.l.b16 %v1617_v40  ;;  %v1605_v2 = vmul.f32 %v8411_v32, %v8413_v44 }
 0x292   :  { %v1875_v7 = vpack.c.b16 %v1874_v39, %v1874_v39  ;;  %v1896_v49 = vpack.c.b16 %v1895_v27, %v1895_v27  ;;  %v1851_v28 = vpack.c.b16 %v1850_v63, %v1850_v63  ;;  %v1979_v35 = vunpack.c.l.b16 %v1620_v19 }
 0x293   :  { %v1917_v50 = vpack.c.b16 %v1916_v13, %v1916_v13  ;;  %v1621_v14 = vpack.c.bf16 %v1605_v2, %v1605_v2 }
 0x294   :  { %1789 = vrot.lane.b32.xlu2 %v1788_v8, %s7749_s22  ;;  %1747 = vrot.lane.b32.xlu1 %v1746_v3, %s7749_s22  ;;  %v1618_v8 = vpack.c.bf16 %v1602_v20, %v1602_v20  ;;  %v1958_v3 = vunpack.c.l.b16 %v1619_v1  ;;  %v1980_v24 = vpack.c.b16 %v1979_v35, %v1979_v35 }
 0x295   :  { %1810 = vrot.lane.b32.xlu0 %v1809_v29, %s7749_s22  ;;  %v2000_v36 = vunpack.c.l.b16 %v1621_v14 }
 0x296   :  { %v1937_v31 = vunpack.c.l.b16 %v1618_v8  ;;  %v1959_v29 = vpack.c.b16 %v1958_v3, %v1958_v3 }
 0x297   :  { %v2001_v39 = vpack.c.b16 %v2000_v36, %v2000_v36 }
 0x298   :  { %v1938_v46 = vpack.c.b16 %v1937_v31, %v1937_v31 }
 0x29c   :  { %1831 = vrot.lane.b32.xlu2 %v1830_v4, %s7749_s22  ;;  %1768 = vrot.lane.b32.xlu1 %v1767_v58, %s7749_s22 }
 0x29d   :  { %1876 = vrot.lane.b32.xlu0 %v1875_v7, %s7749_s22 }
 0x2a4   :  { %1897 = vrot.lane.b32.xlu1 %v1896_v49, %s7749_s22  ;;  %1852 = vrot.lane.b32.xlu2 %v1851_v28, %s7749_s22 }
 0x2a5   :  { %1918 = vrot.lane.b32.xlu0 %v1917_v50, %s7749_s22 }
 0x2ac   :  { %1960 = vrot.lane.b32.xlu1 %v1959_v29, %s7749_s22  ;;  %1981 = vrot.lane.b32.xlu2 %v1980_v24, %s7749_s22 }
 0x2ad   :  { %1939 = vrot.lane.b32.xlu0 %v1938_v46, %s7749_s22  ;;  %v1549_v46 = vpack.c.bf16 %v8413_v44, %v8413_v44 }
 0x2b4   :  { %1622 = vrot.lane.b32.xlu1 %v1558_v30, %s7734_s3  ;;  %1624 = vrot.lane.b32.xlu2 %v8355_v37, %s7734_s3  ;;  %v1548_v30 = vpack.c.bf16 %v8393_v6, %v8393_v6 }
 0x2b5   :  { %1626 = vrot.lane.b32.xlu0 %v8176_v33, %s7734_s3 }
 0x2bc   :  { %2002 = vrot.lane.b32.xlu1 %v2001_v39, %s7749_s22  ;;  %1634 = vrot.lane.b32.xlu2 %v8351_v34, %s7734_s3 }
 0x2bd   :  { %1632 = vrot.lane.b32.xlu0 %v8249_v55, %s7734_s3 }
 0x2c4   :  { %1628 = vrot.lane.b32.xlu1 %v8370_v56, %s7734_s3 }
 0x2c5   :  { %1636 = vrot.lane.b32.xlu0 %v8278_v5, %s7734_s3 }
 0x2cc   :  { %1630 = vrot.lane.b32.xlu1 %v8376_v59, %s7734_s3 }
 0x2e6   :  { %v1727_v45 = vpop.permute.xlu2 %1726 }
 0x2e7   :  { %v1729_v33 = vsel %vm1530_vm2, %v1727_v45, 0 }
 0x2e8   :  { %1738 = vmatpush.bf16.xpose.msra.mxu3 %v1729_v33 }
 0x2ee   :  { %v1790_v34 = vpop.permute.xlu2 %1789 }
 0x2ef   :  { %7048 = vmatmul.msk.bf16.vlgmr.msra.gmra.mxu3 %vm1530_vm2, %v1548_v30  ;;  %v1792_v59 = vsel %vm1530_vm2, %v1790_v34, 0 }
 0x2f6   :  { %v1832_v55 = vpop.permute.xlu2 %1831 }
 0x2f7   :  { %v1834_v40 = vsel %vm1530_vm2, %v1832_v55, 0 }
 0x2fe   :  { %v1853_v37 = vpop.permute.xlu2 %1852  ;;  %v1706_v47 = vpop.permute.xlu1 %1705 }
 0x2ff   :  { %v1682_v56 = vpop.permute.xlu0 %1681  ;;  %v1708_v4 = vsel %vm1530_vm2, %v1706_v47, 0  ;;  %v1858_v49 = vsel %vm1530_vm2, %v1853_v37, 0 }
 0x300   :  { %v1687_v5 = vsel %vm1530_vm2, %v1682_v56, 0  ;;  %1717 = vmatpush.bf16.xpose.msra.mxu2 %v1708_v4 }
 0x301   :  { %1696 = vmatpush.bf16.xpose.msra.mxu1 %v1687_v5 }
 0x306   :  { %v1982_v58 = vpop.permute.xlu2 %1981  ;;  %v1748_v9 = vpop.permute.xlu1 %1747 }
 0x307   :  { %v1811_v22 = vpop.permute.xlu0 %1810  ;;  %7047 = vmatmul.msk.bf16.vlgmr.msra.gmra.mxu2 %vm1530_vm2, %v1548_v30  ;;  %v1750_v7 = vsel %vm1530_vm2, %v1748_v9, 0  ;;  %v1984_v31 = vsel %vm1530_vm2, %v1982_v58, 0 }
 0x308   :  { %1801 = vmatpush.bf16.xpose.msrb.mxu2 %v1792_v59  ;;  %7046 = vmatmul.msk.bf16.vlgmr.msra.gmra.mxu1 %vm1530_vm2, %v1548_v30  ;;  %v1813_v27 = vsel %vm1530_vm2, %v1811_v22, 0 }
 0x309   :  { %1759 = vmatpush.bf16.xpose.msrb.mxu0 %v1750_v7  ;;  %1822 = vmatpush.bf16.xpose.msrb.mxu3 %v1813_v27 }
 0x30e   :  { %v8480_v63 = vpop.permute.xlu2 %1624  ;;  %v1769_v60 = vpop.permute.xlu1 %1768 }
 0x30f   :  { %10851 = vst [vmem:[#allocation15_spill] sm:$0xff] %v8480_v63  ;;  %v1877_v41 = vpop.permute.xlu0 %1876  ;;  %v1771_v13 = vsel %vm1530_vm2, %v1769_v60, 0  ;;  %v1647_v20 = vmul.f32 %v8480_v63, %v8393_v6 }
 0x310   :  { %7049 = vmatmul.msk.bf16.vlgmr.msrb.gmra.mxu0 %vm1530_vm2, %v1548_v30  ;;  %v1879_v28 = vsel %vm1530_vm2, %v1877_v41, 0  ;;  %7052 = vmatmul.msk.bf16.vlgmr.msrb.gmra.mxu3 %vm1530_vm2, %v1548_v30 }
 0x311   :  { %1843 = vmatpush.bf16.xpose.msra.mxu0 %v1834_v40  ;;  %1780 = vmatpush.bf16.xpose.msrb.mxu1 %v1771_v13  ;;  %v1663_v1 = vpack.c.bf16 %v1647_v20, %v1647_v20  ;;  %v1655_v13 = vmul.f32 %v8480_v63, %v8413_v44 }
 0x312   :  { %1888 = vmatpush.bf16.xpose.msra.mxu2 %v1879_v28 }
 0x313   :  { %v2239_v19 = vunpack.c.l.b16 %v1663_v1 }
 0x315   :  { %v2240_v50 = vpack.c.b16 %v2239_v19, %v2239_v19 }
 0x316   :  { %v1898_v8 = vpop.permute.xlu1 %1897  ;;  %v8503_v45 = vpop.permute.xlu2 %1634 }
 0x317   :  { %v1919_v3 = vpop.permute.xlu0 %1918  ;;  %v1900_v35 = vsel %vm1530_vm2, %v1898_v8, 0  ;;  %2241 = vrot.lane.b32.xlu1 %v2240_v50, %s7734_s3  ;;  %7051 = vmatmul.msk.bf16.vlgmr.msrb.gmra.mxu2 %vm1530_vm2, %v1548_v30  ;;  %10853 = vst [vmem:[#allocation17_spill] sm:$0xff] %v8503_v45  ;;  %v1652_v47 = vmul.f32 %v8503_v45, %v8393_v6  ;;  %v1671_v50 = vpack.c.bf16 %v1655_v13, %v1655_v13 }
 0x318   :  { %v1921_v29 = vsel %vm1530_vm2, %v1919_v3, 0  ;;  %7050 = vmatmul.msk.bf16.vlgmr.msrb.gmra.mxu1 %vm1530_vm2, %v1548_v30  ;;  %1909 = vmatpush.bf16.xpose.msra.mxu3 %v1900_v35 }
 0x319   :  { %1867 = vmatpush.bf16.xpose.msra.mxu1 %v1858_v49  ;;  %1930 = vmatpush.bf16.xpose.msrb.mxu0 %v1921_v29  ;;  %v1668_v9 = vpack.c.bf16 %v1652_v47, %v1652_v47 }
 0x31b   :  { %v2359_v27 = vunpack.c.l.b16 %v1668_v9 }
 0x31d   :  { %v2360_v28 = vpack.c.b16 %v2359_v27, %v2359_v27 }
 0x31e   :  { %v1961_v24 = vpop.permute.xlu1 %1960 }
 0x31f   :  { %v1940_v2 = vpop.permute.xlu0 %1939  ;;  %v1963_v14 = vsel %vm1530_vm2, %v1961_v24, 0 }
 0x320   :  { %1993 = vmatpush.bf16.xpose.msrb.mxu3 %v1984_v31  ;;  %7053 = vmatmul.msk.bf16.vlgmr.msra.gmra.mxu0 %vm1530_vm2, %v1548_v30  ;;  %v1942_v36 = vsel %vm1530_vm2, %v1940_v2, 0  ;;  %v2431_v31 = vunpack.c.l.b16 %v1671_v50 }
 0x321   :  { %7056 = vmatmul.msk.bf16.vlgmr.msra.gmra.mxu3 %vm1530_vm2, %v1549_v46  ;;  %1972 = vmatpush.bf16.xpose.msrb.mxu2 %v1963_v14 }
 0x322   :  { %1951 = vmatpush.bf16.xpose.msrb.mxu1 %v1942_v36 }
 0x326   :  { %v8501_v39 = vpop.permute.xlu1 %1622 }
 0x327   :  { %10852 = vst [vmem:[#allocation16_spill] sm:$0xff] %v8501_v39  ;;  %v8505_v33 = vpop.permute.xlu0 %1626  ;;  %7055 = vmatmul.msk.bf16.vlgmr.msra.gmra.mxu2 %vm1530_vm2, %v1549_v46  ;;  %v1646_v34 = vmul.f32 %v8501_v39, %v8393_v6  ;;  %v1654_v29 = vmul.f32 %v8501_v39, %v8413_v44 }
 0x328   :  { %10854 = vst [vmem:[#allocation18_spill] sm:$0xff] %v8505_v33  ;;  %7054 = vmatmul.msk.bf16.vlgmr.msra.gmra.mxu1 %vm1530_vm2, %v1549_v46  ;;  %v1648_v30 = vmul.f32 %v8505_v33, %v8393_v6  ;;  %v1656_v41 = vmul.f32 %v8505_v33, %v8413_v44 }
 0x329   :  { %v1662_v55 = vpack.c.bf16 %v1646_v34, %v1646_v34 }
 0x32a   :  { %v1664_v37 = vpack.c.bf16 %v1648_v30, %v1648_v30  ;;  %v1672_v19 = vpack.c.bf16 %v1656_v41, %v1656_v41  ;;  %v2432_v30 = vpack.c.b16 %v2431_v31, %v2431_v31 }
 0x32b   :  { %v2214_v56 = vunpack.c.l.b16 %v1662_v55  ;;  %v1670_v55 = vpack.c.bf16 %v1654_v29, %v1654_v29 }
 0x32c   :  { %v2263_v4 = vunpack.c.l.b16 %v1664_v37  ;;  %v2455_v35 = vunpack.c.l.b16 %v1672_v19 }
 0x32d   :  { %v2215_v5 = vpack.c.b16 %v2214_v56, %v2214_v56 }
 0x32e   :  { %v2003_v59 = vpop.permute.xlu1 %2002  ;;  %v2264_v58 = vpack.c.b16 %v2263_v4, %v2263_v4  ;;  %v2456_v34 = vpack.c.b16 %v2455_v35, %v2455_v35  ;;  %v2407_v4 = vunpack.c.l.b16 %v1670_v55 }
 0x32f   :  { %v8515_v22 = vpop.permute.xlu0 %1632  ;;  %v2005_v7 = vsel %vm1530_vm2, %v2003_v59, 0  ;;  %2216 = vrot.lane.b32.xlu0 %v2215_v5, %s7734_s3 }
 0x330   :  { %10855 = vst [vmem:[#allocation19_spill] sm:$0xff] %v8515_v22  ;;  %7057 = vmatmul.msk.bf16.vlgmr.msrb.gmra.mxu0 %vm1530_vm2, %v1549_v46  ;;  %2265 = vrot.lane.b32.xlu2 %v2264_v58, %s7734_s3  ;;  %v1651_v40 = vmul.f32 %v8515_v22, %v8393_v6  ;;  %v2408_v9 = vpack.c.b16 %v2407_v4, %v2407_v4 }
 0x331   :  { %7060 = vmatmul.msk.bf16.vlgmr.msrb.gmra.mxu3 %vm1530_vm2, %v1549_v46  ;;  %2014 = vmatpush.bf16.xpose.msra.mxu0 %v2005_v7 }
 0x332   :  { %v1667_v60 = vpack.c.bf16 %v1651_v40, %v1651_v40 }
 0x334   :  { %v2335_v20 = vunpack.c.l.b16 %v1667_v60 }
 0x336   :  { %v8528_v49 = vpop.permute.xlu1 %1628  ;;  %v2336_v1 = vpack.c.b16 %v2335_v20, %v2335_v20 }
 0x337   :  { %10856 = vst [vmem:[#allocation20_spill] sm:$0xff] %v8528_v49  ;;  %7059 = vmatmul.msk.bf16.vlgmr.msrb.gmra.mxu2 %vm1530_vm2, %v1549_v46  ;;  %v1649_v8 = vmul.f32 %v8528_v49, %v8393_v6  ;;  %v8538_v14 = vpop.permute.xlu0 %1636  ;;  %v1657_v7 = vmul.f32 %v8528_v49, %v8413_v44 }
 0x338   :  { %2361 = vrot.lane.b32.xlu2 %v2360_v28, %s7734_s3  ;;  %2337 = vrot.lane.b32.xlu1 %v2336_v1, %s7734_s3  ;;  %10857 = vst [vmem:[#allocation21_spill] sm:$0xff] %v8538_v14  ;;  %v1653_v56 = vmul.f32 %v8538_v14, %v8393_v6 }
 0x339   :  { %7058 = vmatmul.msk.bf16.vlgmr.msrb.gmra.mxu1 %vm1530_vm2, %v1549_v46  ;;  %v1665_v3 = vpack.c.bf16 %v1649_v8, %v1649_v8  ;;  %v1673_v27 = vpack.c.bf16 %v1657_v7, %v1657_v7 }
 0x33a   :  { %v1669_v58 = vpack.c.bf16 %v1653_v56, %v1653_v56 }
 0x33b   :  { %v2287_v24 = vunpack.c.l.b16 %v1665_v3  ;;  %v2479_v60 = vunpack.c.l.b16 %v1673_v27 }
 0x33d   :  { %v2288_v2 = vpack.c.b16 %v2287_v24, %v2287_v24  ;;  %v2480_v41 = vpack.c.b16 %v2479_v60, %v2479_v60 }
 0x33e   :  { %v8540_v36 = vpop.permute.xlu1 %1630 }
 0x33f   :  { %10858 = vst [vmem:[#allocation22_spill] sm:$0xff] %v8540_v36  ;;  %2289 = vrot.lane.b32.xlu0 %v2288_v2, %s7734_s3  ;;  %v1650_v37 = vmul.f32 %v8540_v36, %v8393_v6 }
 0x340   :  { %7061 = vmatmul.msk.bf16.vlgmr.msra.gmra.mxu0 %vm1530_vm2, %v1549_v46  ;;  %2457 = vrot.lane.b32.xlu2 %v2456_v34, %s7734_s3  ;;  %v2383_v46 = vunpack.c.l.b16 %v1669_v58 }
 0x341   :  { %2433 = vrot.lane.b32.xlu1 %v2432_v30, %s7734_s3  ;;  %v1666_v47 = vpack.c.bf16 %v1650_v37, %v1650_v37 }
 0x342   :  { %v2384_v40 = vpack.c.b16 %v2383_v46, %v2383_v46 }
 0x343   :  { %v2311_v5 = vunpack.c.l.b16 %v1666_v47 }
 0x345   :  { %v2312_v59 = vpack.c.b16 %v2311_v5, %v2311_v5 }
 0x347   :  { %2313 = vrot.lane.b32.xlu0 %v2312_v59, %s7734_s3 }
 0x349   :  { %2409 = vrot.lane.b32.xlu1 %v2408_v9, %s7734_s3 }
 0x34f   :  { %2385 = vrot.lane.b32.xlu0 %v2384_v40, %s7734_s3 }
 0x357   :  { %2481 = vrot.lane.b32.xlu0 %v2480_v41, %s7734_s3 }
 0x372   :  { %v8556_v6 = vpop.f32.mrf.mxu3 }
 0x373   :  { %v2027_v20 = vsel %vm2020_vm3, %v8556_v6, -inf }
 0x37a   :  { %v1742_v13 = vpop.f32.mrf.mxu3 }
 0x381   :  { %2028 = vmax.xlane.f32.xlu0 %v2027_v20 }
 0x385   :  { %v8560_v28 = vpop.f32.mrf.mxu1 }
 0x386   :  { %v2021_v1 = vsel %vm2020_vm3, %v8560_v28, -inf }
 0x387   :  { %2022 = vmax.xlane.f32.xlu1 %v2021_v1 }
 0x389   :  { %v2242_v19 = vpop.permute.xlu1 %2241 }
 0x38a   :  { %v2266_v50 = vpop.permute.xlu2 %2265  ;;  %v2247_v8 = vsel %vm2221_vm4, %v2242_v19, 0  ;;  %v8565_v3 = vpop.f32.mrf.mxu2 }
 0x38b   :  { %v2271_v35 = vsel %vm2221_vm4, %v2266_v50, 0  ;;  %2256 = vmatpush.bf16.msra.mxu2 %v2247_v8  ;;  %v2024_v4 = vsel %vm2020_vm3, %v8565_v3, -inf }
 0x38c   :  { %2280 = vmatpush.bf16.msra.mxu3 %v2271_v35 }
 0x38d   :  { %v8568_v31 = vpop.f32.mrf.mxu0  ;;  %v1700_v29 = vpop.f32.mrf.mxu1 }
 0x38e   :  { %v2030_v24 = vsel %vm2020_vm3, %v8568_v31, -inf }
 0x38f   :  { %2031 = vmax.xlane.f32.xlu2 %v2030_v24 }
 0x392   :  { %v2362_v2 = vpop.permute.xlu2 %2361  ;;  %v1721_v34 = vpop.f32.mrf.mxu2 }
 0x393   :  { %v2367_v30 = vsel %vm2221_vm4, %v2362_v2, 0  ;;  %v8573_v55 = vpop.f32.mrf.mxu3 }
 0x394   :  { %2376 = vmatpush.bf16.msrb.mxu3 %v2367_v30  ;;  %v2039_v47 = vsel %vm2020_vm3, %v8573_v55, -inf }
 0x395   :  { %v1763_v37 = vpop.f32.mrf.mxu0  ;;  %v8577_v56 = vpop.f32.mrf.mxu1  ;;  %2040 = vmax.xlane.f32.xlu0 %v2039_v47 }
 0x396   :  { %v2033_v46 = vsel %vm2020_vm3, %v8577_v56, -inf }
 0x397   :  { %2025 = vmax.xlane.f32.xlu2 %v2024_v4 }
 0x39a   :  { %v8581_v5 = vpop.f32.mrf.mxu2 }
 0x39b   :  { %v1826_v59 = vpop.f32.mrf.mxu3  ;;  %v2036_v1 = vsel %vm2020_vm3, %v8581_v5, -inf }
 0x39d   :  { %v8583_v58 = vpop.f32.mrf.mxu0  ;;  %v1784_v9 = vpop.f32.mrf.mxu1 }
 0x39e   :  { %v2042_v7 = vsel %vm2020_vm3, %v8583_v58, -inf }
 0x39f   :  { %2034 = vmax.xlane.f32.xlu2 %v2033_v46  ;;  %2043 = vmax.xlane.f32.xlu1 %v2042_v7 }
 0x3a1   :  { %v2217_v40 = vpop.permute.xlu0 %2216 }
 0x3a2   :  { %v2223_v27 = vsel %vm2221_vm4, %v2217_v40, 0  ;;  %v1805_v60 = vpop.f32.mrf.mxu2 }
 0x3a3   :  { %2232 = vmatpush.bf16.msra.mxu1 %v2223_v27 }
 0x3a4   :  { %v8590_v41 = vpop.f32.mrf.mxu3 }
 0x3a5   :  { %v1847_v13 = vpop.f32.mrf.mxu0  ;;  %v8592_v20 = vpop.f32.mrf.mxu1  ;;  %v2051_v7 = vsel %vm2020_vm3, %v8590_v41, -inf }
 0x3a6   :  { %v2045_v30 = vsel %vm2020_vm3, %v8592_v20, -inf }
 0x3a7   :  { %2037 = vmax.xlane.f32.xlu1 %v2036_v1 }
 0x3aa   :  { %v2338_v19 = vpop.permute.xlu1 %2337  ;;  %v8596_v50 = vpop.f32.mrf.mxu2 }
 0x3ab   :  { %v2343_v8 = vsel %vm2221_vm4, %v2338_v19, 0  ;;  %v2048_v29 = vsel %vm2020_vm3, %v8596_v50, -inf }
 0x3ac   :  { %v1913_v35 = vpop.f32.mrf.mxu3  ;;  %2352 = vmatpush.bf16.msrb.mxu2 %v2343_v8  ;;  %2049 = vmax.xlane.f32.xlu0 %v2048_v29 }
 0x3ad   :  { %v8601_v24 = vpop.f32.mrf.mxu0  ;;  %v1871_v2 = vpop.f32.mrf.mxu1 }
 0x3ae   :  { %v2054_v34 = vsel %vm2020_vm3, %v8601_v24, -inf }
 0x3af   :  { %2055 = vmax.xlane.f32.xlu2 %v2054_v34  ;;  %2046 = vmax.xlane.f32.xlu1 %v2045_v30 }
 0x3b1   :  { %v2290_v37 = vpop.permute.xlu0 %2289 }
 0x3b2   :  { %v2295_v47 = vsel %vm2221_vm4, %v2290_v37, 0  ;;  %v1892_v4 = vpop.f32.mrf.mxu2 }
 0x3b3   :  { %2304 = vmatpush.bf16.msrb.mxu0 %v2295_v47  ;;  %v8628_v4 = vpop.permute.xlu1 %2433 }
 0x3b4   :  { %v8608_v59 = vpop.f32.mrf.mxu3 }
 0x3b5   :  { %v1934_v9 = vpop.f32.mrf.mxu0  ;;  %v2063_v46 = vsel %vm2020_vm3, %v8608_v59, -inf }
 0x3b6   :  { %2064 = vmax.xlane.f32.xlu0 %v2063_v46  ;;  %v8614_v40 = vpop.f32.mrf.mxu1  ;;  %v8632_v46 = vpop.permute.xlu2 %2457 }
 0x3b7   :  { %2052 = vmax.xlane.f32.xlu2 %v2051_v7  ;;  %v2057_v8 = vsel %vm2020_vm3, %v8614_v40, -inf }
 0x3b9   :  { %v2314_v27 = vpop.permute.xlu0 %2313 }
 0x3ba   :  { %v2319_v60 = vsel %vm2221_vm4, %v2314_v27, 0  ;;  %v8617_v13 = vpop.f32.mrf.mxu2 }
 0x3bb   :  { %2328 = vmatpush.bf16.msrb.mxu1 %v2319_v60  ;;  %v2060_v47 = vsel %vm2020_vm3, %v8617_v13, -inf  ;;  %v8630_v9 = vpop.permute.xlu1 %2409 }
 0x3bc   :  { %v1997_v1 = vpop.f32.mrf.mxu3 }
 0x3bd   :  { %v8619_v19 = vpop.f32.mrf.mxu0 }
 0x3be   :  { %v1955_v35 = vpop.f32.mrf.mxu1  ;;  %v2066_v37 = vsel %vm2020_vm3, %v8619_v19, -inf }
 0x3bf   :  { %2058 = vmax.xlane.f32.xlu2 %v2057_v8 }
 0x3c1   :  { %v2386_v29 = vpop.permute.xlu0 %2385 }
 0x3c2   :  { %v2391_v2 = vsel %vm2221_vm4, %v2386_v29, 0  ;;  %v1976_v34 = vpop.f32.mrf.mxu2 }
 0x3c3   :  { %2400 = vmatpush.bf16.msra.mxu0 %v2391_v2 }
 0x3c5   :  { %v2018_v30 = vpop.f32.mrf.mxu0 }
 0x3c7   :  { %2067 = vmax.xlane.f32.xlu2 %v2066_v37 }
 0x3c9   :  { %v8634_v7 = vpop.permute.xlu0 %2481 }
 0x3cf   :  { %2061 = vmax.xlane.f32.xlu2 %v2060_v47 }
 0x3f4   :  { %v2029_v8 = vpop.xlane.xlu0 %2028 }
 0x3f5   :  { %v2071_v2 = vsub.f32 %v8556_v6, %v2029_v8 }
 0x3f7   :  { %v2089_v47 = vmul.f32 1.442695, %v2071_v2 }
 0x3fa   :  { %v2023_v27 = vpop.xlane.xlu1 %2022 }
 0x3fb   :  { %v2069_v60 = vsub.f32 %v8560_v28, %v2023_v27 }
 0x3fd   :  { %v2085_v1 = vmul.f32 1.442695, %v2069_v60 }
 0x3ff   :  { %7395 = vpow2.f32 %v2085_v1 }
 0x402   :  { %v2032_v35 = vpop.xlane.xlu2 %2031 }
 0x403   :  { %v2072_v29 = vsub.f32 %v8568_v31, %v2032_v35 }
 0x405   :  { %v2091_v34 = vmul.f32 1.442695, %v2072_v29  ;;  %v8639_v30 = vpop.eup %7395 }
 0x406   :  { %v2117_v37 = vsel %vm2020_vm3, %v8639_v30, 0.0 }
 0x407   :  { %7397 = vpow2.f32 %v2091_v34  ;;  %2118 = vadd.xlane.f32.xlu1 %v2117_v37 }
 0x408   :  { %7399 = vpow2.f32 %v2089_v47  ;;  %v2041_v35 = vpop.xlane.xlu0 %2040 }
 0x409   :  { %v2075_v37 = vsub.f32 %v8573_v55, %v2041_v35 }
 0x40a   :  { %v2026_v33 = vpop.xlane.xlu2 %2025 }
 0x40b   :  { %v2070_v28 = vsub.f32 %v8565_v3, %v2026_v33 }
 0x40d   :  { %v8644_v27 = vpop.eup %7397  ;;  %v2087_v60 = vmul.f32 1.442695, %v2070_v28 }
 0x40e   :  { %v2126_v31 = vsel %vm2020_vm3, %v8644_v27, 0.0  ;;  %v8648_v8 = vpop.eup %7399 }
 0x40f   :  { %7401 = vpow2.f32 %v2087_v60  ;;  %2127 = vadd.xlane.f32.xlu2 %v2126_v31  ;;  %v2123_v47 = vsel %vm2020_vm3, %v8648_v8, 0.0  ;;  %v2097_v60 = vmul.f32 1.442695, %v2075_v37 }
 0x412   :  { %v2035_v6 = vpop.xlane.xlu2 %2034  ;;  %v2044_v1 = vpop.xlane.xlu1 %2043 }
 0x413   :  { %v2073_v29 = vsub.f32 %v8577_v56, %v2035_v6  ;;  %v2076_v2 = vsub.f32 %v8583_v58, %v2044_v1 }
 0x415   :  { %v8652_v34 = vpop.eup %7401  ;;  %v2093_v33 = vmul.f32 1.442695, %v2073_v29  ;;  %v2099_v3 = vmul.f32 1.442695, %v2076_v2 }
 0x416   :  { %v2120_v28 = vsel %vm2020_vm3, %v8652_v34, 0.0 }
 0x417   :  { %7403 = vpow2.f32 %v2093_v33  ;;  %2124 = vadd.xlane.f32.xlu2 %v2123_v47  ;;  %2121 = vadd.xlane.f32.xlu1 %v2120_v28 }
 0x418   :  { %7405 = vpow2.f32 %v2099_v3 }
 0x419   :  { %7407 = vpow2.f32 %v2097_v60 }
 0x41a   :  { %v2038_v56 = vpop.xlane.xlu1 %2037 }
 0x41b   :  { %v2074_v58 = vsub.f32 %v8581_v5, %v2038_v56 }
 0x41d   :  { %v8660_v31 = vpop.eup %7403  ;;  %v2095_v6 = vmul.f32 1.442695, %v2074_v58 }
 0x41e   :  { %v8662_v1 = vpop.eup %7405  ;;  %v2129_v55 = vsel %vm2020_vm3, %v8660_v31, 0.0 }
 0x41f   :  { %7409 = vpow2.f32 %v2095_v6  ;;  %2130 = vadd.xlane.f32.xlu0 %v2129_v55  ;;  %v2138_v35 = vsel %vm2020_vm3, %v8662_v1, 0.0  ;;  %v2050_v29 = vpop.xlane.xlu0 %2049  ;;  %v8671_v28 = vpop.eup %7407 }
 0x420   :  { %2139 = vadd.xlane.f32.xlu2 %v2138_v35  ;;  %v2078_v2 = vsub.f32 %v8596_v50, %v2050_v29  ;;  %v2135_v50 = vsel %vm2020_vm3, %v8671_v28, 0.0 }
 0x422   :  { %v2056_v33 = vpop.xlane.xlu2 %2055  ;;  %v2047_v5 = vpop.xlane.xlu1 %2046  ;;  %v2103_v3 = vmul.f32 1.442695, %v2078_v2 }
 0x423   :  { %v2080_v37 = vsub.f32 %v8601_v24, %v2056_v33  ;;  %v2077_v47 = vsub.f32 %v8592_v20, %v2047_v5 }
 0x424   :  { %7411 = vpow2.f32 %v2103_v3 }
 0x425   :  { %v8673_v60 = vpop.eup %7409  ;;  %v2107_v56 = vmul.f32 1.442695, %v2080_v37  ;;  %v2101_v58 = vmul.f32 1.442695, %v2077_v47 }
 0x426   :  { %v2132_v6 = vsel %vm2020_vm3, %v8673_v60, 0.0 }
 0x427   :  { %7413 = vpow2.f32 %v2107_v56  ;;  %2133 = vadd.xlane.f32.xlu1 %v2132_v6 }
 0x428   :  { %7415 = vpow2.f32 %v2101_v58  ;;  %2136 = vadd.xlane.f32.xlu2 %v2135_v50  ;;  %v1660_v50 = vmul.f32 %v8503_v45, %v8413_v44 }
 0x42a   :  { %v2053_v24 = vpop.xlane.xlu2 %2052  ;;  %v8679_v55 = vpop.eup %7411 }
 0x42b   :  { %v2079_v20 = vsub.f32 %v8590_v41, %v2053_v24  ;;  %v2144_v5 = vsel %vm2020_vm3, %v8679_v55, 0.0 }
 0x42d   :  { %v8682_v35 = vpop.eup %7413  ;;  %v2105_v29 = vmul.f32 1.442695, %v2079_v20 }
 0x42e   :  { %v8684_v2 = vpop.eup %7415  ;;  %v2150_v33 = vsel %vm2020_vm3, %v8682_v35, 0.0 }
 0x42f   :  { %7417 = vpow2.f32 %v2105_v29  ;;  %2145 = vadd.xlane.f32.xlu1 %v2144_v5  ;;  %v2141_v3 = vsel %vm2020_vm3, %v8684_v2, 0.0  ;;  %v1676_v29 = vpack.c.bf16 %v1660_v50, %v1660_v50 }
 0x430   :  { %2151 = vadd.xlane.f32.xlu2 %v2150_v33  ;;  %2142 = vadd.xlane.f32.xlu0 %v2141_v3 }
 0x431   :  { %v2551_v33 = vunpack.c.l.b16 %v1676_v29 }
 0x432   :  { %v2059_v37 = vpop.xlane.xlu2 %2058 }
 0x433   :  { %v2081_v41 = vsub.f32 %v8614_v40, %v2059_v37  ;;  %v2552_v37 = vpack.c.b16 %v2551_v33, %v2551_v33 }
 0x435   :  { %v8693_v47 = vpop.eup %7417  ;;  %v2109_v56 = vmul.f32 1.442695, %v2081_v41  ;;  %v1658_v41 = vmul.f32 %v8540_v36, %v8413_v44 }
 0x436   :  { %v2147_v58 = vsel %vm2020_vm3, %v8693_v47, 0.0 }
 0x437   :  { %7419 = vpow2.f32 %v2109_v56  ;;  %v1674_v45 = vpack.c.bf16 %v1658_v41, %v1658_v41 }
 0x438   :  { %2148 = vadd.xlane.f32.xlu2 %v2147_v58 }
 0x439   :  { %v2503_v50 = vunpack.c.l.b16 %v1674_v45 }
 0x43a   :  { %v2068_v6 = vpop.xlane.xlu2 %2067 }
 0x43b   :  { %v2084_v41 = vsub.f32 %v8619_v19, %v2068_v6 }
 0x43d   :  { %v8699_v24 = vpop.eup %7419 }
 0x43e   :  { %v2153_v20 = vsel %vm2020_vm3, %v8699_v24, 0.0 }
 0x440   :  { %2154 = vadd.xlane.f32.xlu2 %v2153_v20  ;;  %v1659_v20 = vmul.f32 %v8515_v22, %v8413_v44 }
 0x442   :  { %v2062_v40 = vpop.xlane.xlu2 %2061  ;;  %v1675_v29 = vpack.c.bf16 %v1659_v20, %v1659_v20  ;;  %v2115_v20 = vmul.f32 1.442695, %v2084_v41 }
 0x443   :  { %v2082_v5 = vsub.f32 %v8617_v13, %v2062_v40  ;;  %v2504_v13 = vpack.c.b16 %v2503_v50, %v2503_v50  ;;  %v2065_v40 = vpop.xlane.xlu0 %2064  ;;  %v1661_v50 = vmul.f32 %v8538_v14, %v8413_v44 }
 0x444   :  { %v2527_v33 = vunpack.c.l.b16 %v1675_v29 }
 0x445   :  { %v2111_v3 = vmul.f32 1.442695, %v2082_v5  ;;  %v2083_v5 = vsub.f32 %v8608_v59, %v2065_v40  ;;  %v1677_v59 = vpack.c.bf16 %v1661_v50, %v1661_v50 }
 0x447   :  { %7421 = vpow2.f32 %v2111_v3  ;;  %v2528_v3 = vpack.c.b16 %v2527_v33, %v2527_v33 }
 0x448   :  { %2553 = vrot.lane.b32.xlu1 %v2552_v37, %s7734_s3  ;;  %v2113_v37 = vmul.f32 1.442695, %v2083_v5  ;;  %v2575_v5 = vunpack.c.l.b16 %v1677_v59 }
 0x44a   :  { %7423 = vpow2.f32 %v2113_v37  ;;  %v2576_v44 = vpack.c.b16 %v2575_v5, %v2575_v5  ;;  %v2463_v5 = vsel %vm2221_vm4, %v8632_v46, 0 }
 0x44d   :  { %v8707_v56 = vpop.eup %7421 }
 0x44e   :  { %v2156_v58 = vsel %vm2020_vm3, %v8707_v56, 0.0 }
 0x44f   :  { %2157 = vadd.xlane.f32.xlu0 %v2156_v58 }
 0x450   :  { %v8716_v36 = vpop.eup %7423 }
 0x451   :  { %v2159_v45 = vsel %vm2020_vm3, %v8716_v36, 0.0 }
 0x458   :  { %2505 = vrot.lane.b32.xlu2 %v2504_v13, %s7734_s3 }
 0x463   :  { %2529 = vrot.lane.b32.xlu0 %v2528_v3, %s7734_s3  ;;  %v2415_v3 = vsel %vm2221_vm4, %v8630_v9, 0  ;;  %v2487_v9 = vsel %vm2221_vm4, %v8634_v7, 0  ;;  %v2439_v7 = vsel %vm2221_vm4, %v8628_v4, 0 }
 0x472   :  { %2160 = vadd.xlane.f32.xlu1 %v2159_v45 }
 0x47a   :  { %v2119_v58 = vpop.xlane.xlu1 %2118 }
 0x47b   :  { %7425 = vrcp.f32 %v2119_v58 }
 0x47c   :  { %7427 = vpow2.f32 %v2115_v20 }
 0x481   :  { %v7426_v13 = vpop.eup %7425 }
 0x482   :  { %v2128_v29 = vpop.xlane.xlu2 %2127  ;;  %v2181_v40 = vmul.f32 %v7426_v13, %v8639_v30  ;;  %v8727_v19 = vpop.eup %7427 }
 0x483   :  { %7429 = vrcp.f32 %v2128_v29  ;;  %v2162_v58 = vsel %vm2020_vm3, %v8727_v19, 0.0 }
 0x484   :  { %v2197_v33 = vpack.c.bf16 %v2181_v40, %v2181_v40 }
 0x486   :  { %7062 = vmatmul.msk.bf16.vlgmr.msra.gmra.mxu1 %vm2020_vm3, %v2197_v33 }
 0x487   :  { %2424 = vmatpush.bf16.msra.mxu1 %v2415_v3 }
 0x489   :  { %v7430_v6 = vpop.eup %7429 }
 0x48a   :  { %v2184_v37 = vmul.f32 %v7430_v6, %v8644_v27  ;;  %v2125_v45 = vpop.xlane.xlu2 %2124  ;;  %v2122_v41 = vpop.xlane.xlu1 %2121 }
 0x48b   :  { %7431 = vrcp.f32 %v2125_v45  ;;  %2577 = vrot.lane.b32.xlu1 %v2576_v44, %s7734_s3 }
 0x48c   :  { %v2200_v30 = vpack.c.bf16 %v2184_v37, %v2184_v37  ;;  %7433 = vrcp.f32 %v2122_v41 }
 0x48d   :  { %2163 = vadd.xlane.f32.xlu0 %v2162_v58 }
 0x48e   :  { %7065 = vmatmul.msk.bf16.vlgmr.msrb.gmra.mxu0 %vm2020_vm3, %v2200_v30 }
 0x48f   :  { %2496 = vmatpush.bf16.msrb.mxu0 %v2487_v9 }
 0x491   :  { %v7432_v50 = vpop.eup %7431 }
 0x492   :  { %v7434_v20 = vpop.eup %7433  ;;  %v2183_v27 = vmul.f32 %v7432_v50, %v8648_v8  ;;  %v2131_v59 = vpop.xlane.xlu0 %2130 }
 0x493   :  { %v2182_v13 = vmul.f32 %v7434_v20, %v8652_v34  ;;  %7435 = vrcp.f32 %v2131_v59  ;;  %v2140_v29 = vpop.xlane.xlu2 %2139 }
 0x494   :  { %v2199_v40 = vpack.c.bf16 %v2183_v27, %v2183_v27  ;;  %7437 = vrcp.f32 %v2140_v29 }
 0x495   :  { %v2198_v33 = vpack.c.bf16 %v2182_v13, %v2182_v13 }
 0x496   :  { %7064 = vmatmul.msk.bf16.vlgmr.msra.gmra.mxu3 %vm2020_vm3, %v2199_v40 }
 0x497   :  { %7063 = vmatmul.msk.bf16.vlgmr.msra.gmra.mxu2 %vm2020_vm3, %v2198_v33  ;;  %2472 = vmatpush.bf16.msra.mxu3 %v2463_v5 }
 0x498   :  { %2448 = vmatpush.bf16.msra.mxu2 %v2439_v7 }
 0x499   :  { %v7436_v8 = vpop.eup %7435 }
 0x49a   :  { %v7438_v3 = vpop.eup %7437  ;;  %v2185_v34 = vmul.f32 %v7436_v8, %v8660_v31  ;;  %v2134_v6 = vpop.xlane.xlu1 %2133 }
 0x49b   :  { %v2188_v44 = vmul.f32 %v7438_v3, %v8662_v1  ;;  %v2137_v37 = vpop.xlane.xlu2 %2136  ;;  %7439 = vrcp.f32 %v2134_v6 }
 0x49c   :  { %v2201_v45 = vpack.c.bf16 %v2185_v34, %v2185_v34  ;;  %7441 = vrcp.f32 %v2137_v37 }
 0x49d   :  { %v2204_v46 = vpack.c.bf16 %v2188_v44, %v2188_v44 }
 0x49e   :  { %7066 = vmatmul.msk.bf16.vlgmr.msrb.gmra.mxu1 %vm2020_vm3, %v2201_v45 }
 0x49f   :  { %7069 = vmatmul.msk.bf16.vlgmr.msra.gmra.mxu0 %vm2020_vm3, %v2204_v46 }
 0x4a1   :  { %v7440_v4 = vpop.eup %7439 }
 0x4a2   :  { %v7442_v41 = vpop.eup %7441  ;;  %v2186_v30 = vmul.f32 %v7440_v4, %v8673_v60  ;;  %v2146_v20 = vpop.xlane.xlu1 %2145 }
 0x4a3   :  { %v2187_v58 = vmul.f32 %v7442_v41, %v8671_v28  ;;  %v2152_v9 = vpop.xlane.xlu2 %2151  ;;  %v2143_v31 = vpop.xlane.xlu0 %2142 }
 0x4a4   :  { %v2202_v50 = vpack.c.bf16 %v2186_v30, %v2186_v30  ;;  %7443 = vrcp.f32 %v2152_v9 }
 0x4a5   :  { %v2203_v1 = vpack.c.bf16 %v2187_v58, %v2187_v58  ;;  %7445 = vrcp.f32 %v2143_v31 }
 0x4a6   :  { %7447 = vrcp.f32 %v2146_v20 }
 0x4a7   :  { %7067 = vmatmul.msk.bf16.vlgmr.msrb.gmra.mxu2 %vm2020_vm3, %v2202_v50  ;;  %7068 = vmatmul.msk.bf16.vlgmr.msrb.gmra.mxu3 %vm2020_vm3, %v2203_v1 }
 0x4aa   :  { %v7444_v27 = vpop.eup %7443 }
 0x4ab   :  { %v7446_v59 = vpop.eup %7445  ;;  %v2192_v13 = vmul.f32 %v7444_v27, %v8682_v35  ;;  %v2149_v29 = vpop.xlane.xlu2 %2148 }
 0x4ac   :  { %v2189_v60 = vmul.f32 %v7446_v59, %v8684_v2  ;;  %7449 = vrcp.f32 %v2149_v29  ;;  %v7448_v40 = vpop.eup %7447 }
 0x4ad   :  { %v2208_v28 = vpack.c.bf16 %v2192_v13, %v2192_v13  ;;  %v2190_v5 = vmul.f32 %v7448_v40, %v8679_v55 }
 0x4ae   :  { %v2205_v33 = vpack.c.bf16 %v2189_v60, %v2189_v60 }
 0x4af   :  { %7073 = vmatmul.msk.bf16.vlgmr.msrb.gmra.mxu0 %vm2020_vm3, %v2208_v28  ;;  %v2206_v34 = vpack.c.bf16 %v2190_v5, %v2190_v5 }
 0x4b0   :  { %7070 = vmatmul.msk.bf16.vlgmr.msra.gmra.mxu1 %vm2020_vm3, %v2205_v33 }
 0x4b2   :  { %v7450_v7 = vpop.eup %7449 }
 0x4b3   :  { %v2191_v8 = vmul.f32 %v7450_v7, %v8693_v47  ;;  %v2155_v3 = vpop.xlane.xlu2 %2154 }
 0x4b4   :  { %7451 = vrcp.f32 %v2155_v3 }
 0x4b5   :  { %v2207_v35 = vpack.c.bf16 %v2191_v8, %v2191_v8 }
 0x4b7   :  { %7071 = vmatmul.msk.bf16.vlgmr.msra.gmra.mxu2 %vm2020_vm3, %v2206_v34  ;;  %7072 = vmatmul.msk.bf16.vlgmr.msra.gmra.mxu3 %vm2020_vm3, %v2207_v35 }
 0x4ba   :  { %v7452_v2 = vpop.eup %7451  ;;  %v2554_v6 = vpop.permute.xlu1 %2553 }
 0x4bb   :  { %v2193_v44 = vmul.f32 %v7452_v2, %v8699_v24  ;;  %v2506_v37 = vpop.permute.xlu2 %2505  ;;  %v2559_v45 = vsel %vm2221_vm4, %v2554_v6, 0 }
 0x4bc   :  { %v2511_v55 = vsel %vm2221_vm4, %v2506_v37, 0  ;;  %2568 = vmatpush.bf16.msrb.mxu3 %v2559_v45 }
 0x4bd   :  { %v2209_v46 = vpack.c.bf16 %v2193_v44, %v2193_v44  ;;  %2520 = vmatpush.bf16.msrb.mxu1 %v2511_v55 }
 0x4c0   :  { %7074 = vmatmul.msk.bf16.vlgmr.msrb.gmra.mxu1 %vm2020_vm3, %v2209_v46 }
 0x4c2   :  { %v2158_v47 = vpop.xlane.xlu0 %2157 }
 0x4c3   :  { %7453 = vrcp.f32 %v2158_v47 }
 0x4c9   :  { %v7454_v4 = vpop.eup %7453 }
 0x4ca   :  { %v2194_v41 = vmul.f32 %v7454_v4, %v8707_v56 }
 0x4cc   :  { %v2210_v24 = vpack.c.bf16 %v2194_v41, %v2194_v41 }
 0x4d5   :  { %v2530_v30 = vpop.permute.xlu0 %2529 }
 0x4d6   :  { %v2535_v58 = vsel %vm2221_vm4, %v2530_v30, 0 }
 0x4d7   :  { %2544 = vmatpush.bf16.msrb.mxu2 %v2535_v58 }
 0x4da   :  { %7075 = vmatmul.msk.bf16.vlgmr.msrb.gmra.mxu2 %vm2020_vm3, %v2210_v24 }
 0x4e5   :  { %v2161_v9 = vpop.xlane.xlu1 %2160 }
 0x4e6   :  { %7455 = vrcp.f32 %v2161_v9 }
 0x4ec   :  { %v7456_v31 = vpop.eup %7455 }
 0x4ed   :  { %v2195_v50 = vmul.f32 %v7456_v31, %v8716_v36 }
 0x4ef   :  { %v2211_v1 = vpack.c.bf16 %v2195_v50, %v2195_v50 }
 0x4f1   :  { %7076 = vmatmul.msk.bf16.vlgmr.msrb.gmra.mxu3 %vm2020_vm3, %v2211_v1 }
 0x4fd   :  { %v2578_v20 = vpop.permute.xlu1 %2577 }
 0x4fe   :  { %v2583_v27 = vsel %vm2221_vm4, %v2578_v20, 0 }
 0x4ff   :  { %2592 = vmatpush.bf16.msra.mxu0 %v2583_v27 }
 0x500   :  { %v2164_v56 = vpop.xlane.xlu0 %2163 }
 0x501   :  { %7457 = vrcp.f32 %v2164_v56 }
 0x503   :  { %v2234_v59 = vpop.f32.mrf.mxu1 }
 0x507   :  { %v7458_v13 = vpop.eup %7457 }
 0x508   :  { %v2196_v29 = vmul.f32 %v7458_v13, %v8727_v19 }
 0x50a   :  { %v2212_v60 = vpack.c.bf16 %v2196_v29, %v2196_v29 }
 0x50b   :  { %v2306_v28 = vpop.f32.mrf.mxu0  ;;  %v2236_v40 = vpop.f32.mrf.mxu1 }
 0x50c   :  { %7077 = vmatmul.msk.bf16.vlgmr.msra.gmra.mxu0 %vm2020_vm3, %v2212_v60  ;;  %v7322_v40 = vld [vmem:[%s10807_s11 + $0x8] sm:$0xff] }
 0x50d   :  { %2642 = vmatpush.bf16.msra.mxu1 %v7322_v40 }
 0x513   :  { %v2308_v33 = vpop.f32.mrf.mxu0 }
 0x519   :  { %v2282_v36 = vpop.f32.mrf.mxu3 }
 0x51a   :  { %v2258_v5 = vpop.f32.mrf.mxu2 }
 0x51b   :  { %v2598_v7 = vadd.f32 %v2258_v5, %v2234_v59  ;;  %v2330_v8 = vpop.f32.mrf.mxu1  ;;  %v7321_v5 = vld [vmem:[%s10807_s11] sm:$0xff] }
 0x51c   :  { %v2402_v3 = vpop.f32.mrf.mxu0  ;;  %2643 = vmatpush.bf16.msra.mxu1 %v7321_v5 }
 0x51d   :  { %v2600_v34 = vadd.f32 %v2598_v7, %v2282_v36 }
 0x51f   :  { %v2602_v35 = vadd.f32 %v2600_v34, %v2306_v28 }
 0x521   :  { %v2604_v2 = vadd.f32 %v2602_v35, %v2330_v8  ;;  %v2284_v6 = vpop.f32.mrf.mxu3 }
 0x522   :  { %v2260_v44 = vpop.f32.mrf.mxu2 }
 0x523   :  { %v2332_v37 = vpop.f32.mrf.mxu1 }
 0x524   :  { %v2404_v45 = vpop.f32.mrf.mxu0  ;;  %v7324_v37 = vld [vmem:[%s10811_s15 + $0x8] sm:$0xff] }
 0x525   :  { %2804 = vmatpush.bf16.msra.mxu2 %v7324_v37  ;;  %v7323_v45 = vld [vmem:[%s10811_s15] sm:$0xff] }
 0x529   :  { %2805 = vmatpush.bf16.msra.mxu2 %v7323_v45 }
 0x52a   :  { %v2354_v55 = vpop.f32.mrf.mxu2  ;;  %v2378_v19 = vpop.f32.mrf.mxu3 }
 0x52b   :  { %v2606_v46 = vadd.f32 %v2604_v2, %v2354_v55  ;;  %v7376_v55 = vld [vmem:[%s10808_s12] ss:$0 sm:$0xff] }
 0x52c   :  { %v2498_v47 = vpop.f32.mrf.mxu0 }
 0x52d   :  { %v2608_v4 = vadd.f32 %v2606_v46, %v2378_v19  ;;  %v2426_v41 = vpop.f32.mrf.mxu1 }
 0x52f   :  { %v2610_v30 = vadd.f32 %v2608_v4, %v2402_v3 }
 0x532   :  { %v2356_v58 = vpop.f32.mrf.mxu2  ;;  %v2380_v24 = vpop.f32.mrf.mxu3 }
 0x534   :  { %v2500_v9 = vpop.f32.mrf.mxu0 }
 0x535   :  { %v2428_v31 = vpop.f32.mrf.mxu1 }
 0x53a   :  { %v2450_v50 = vpop.f32.mrf.mxu2  ;;  %v2474_v1 = vpop.f32.mrf.mxu3 }
 0x53b   :  { %v2599_v20 = vadd.f32 %v2450_v50, %v2426_v41 }
 0x53d   :  { %v2601_v27 = vadd.f32 %v2599_v20, %v2474_v1  ;;  %v2522_v56 = vpop.f32.mrf.mxu1 }
 0x53f   :  { %v2603_v59 = vadd.f32 %v2601_v27, %v2498_v47 }
 0x541   :  { %v2605_v13 = vadd.f32 %v2603_v59, %v2522_v56 }
 0x542   :  { %v2452_v29 = vpop.f32.mrf.mxu2  ;;  %v2476_v60 = vpop.f32.mrf.mxu3 }
 0x545   :  { %v2524_v28 = vpop.f32.mrf.mxu1 }
 0x55d   :  { %v2546_v33 = vpop.f32.mrf.mxu2 }
 0x55e   :  { %v2607_v3 = vadd.f32 %v2605_v13, %v2546_v33 }
 0x565   :  { %v2548_v36 = vpop.f32.mrf.mxu2 }
 0x574   :  { %v2570_v7 = vpop.f32.mrf.mxu3 }
 0x575   :  { %v2609_v34 = vadd.f32 %v2607_v3, %v2570_v7 }
 0x57c   :  { %v2572_v8 = vpop.f32.mrf.mxu3 }
 0x589   :  { %v2594_v35 = vpop.f32.mrf.mxu0 }
 0x58a   :  { %v2611_v2 = vadd.f32 %v2609_v34, %v2594_v35 }
 0x58c   :  { %v2612_v6 = vpack.c.bf16 %v2611_v2, %v2610_v30 }
 0x58e   :  { %7086 = vmatmul.msk.bf16.vlgmr.msra.gmra.mxu1 %vm1530_vm2, %v2612_v6 }
 0x591   :  { %v2596_v44 = vpop.f32.mrf.mxu0 }
 0x60b   :  { %v2645_v19 = vpop.f32.mrf.mxu1 }
 0x60c   :  { %v2646_v46 = vadd.f32 %v7376_v55, %v2645_v19 }
 0x60e   :  { %v2652_v47 = vrot.slane %v2646_v46, 1  ;;  %v2653_v4 = vrot.slane %v2646_v46, 2  ;;  %v8789_v41 = vadd.f32 %v2646_v46, %v8258_v54  ;;  %v2654_v30 = vrot.slane %v2646_v46, 3 }
 0x60f   :  { %v2655_v58 = vrot.slane %v2646_v46, 4  ;;  %v2656_v24 = vrot.slane %v2646_v46, 5  ;;  %v2657_v9 = vrot.slane %v2646_v46, 6  ;;  %v2658_v31 = vrot.slane %v2646_v46, 7 }
 0x610   :  { %v8792_v50 = vadd.f32 %v2652_v47, %v8261_v62  ;;  %v8795_v1 = vadd.f32 %v2653_v4, %v8264_v23  ;;  %v8798_v20 = vadd.f32 %v2654_v30, %v8268_v10  ;;  %v2698_v27 = vpack.c.bf16 %v8789_v41, %v8789_v41 }
 0x611   :  { %v8803_v54 = vadd.f32 %v2655_v58, %v8271_v42  ;;  %v8806_v56 = vadd.f32 %v2656_v24, %v8276_v57  ;;  %v8809_v59 = vadd.f32 %v2657_v9, %v8281_v25  ;;  %v8812_v62 = vadd.f32 %v2658_v31, %v8284_v16 }
 0x612   :  { %v2699_v23 = vpack.c.bf16 %v8792_v50, %v8792_v50  ;;  %v2700_v10 = vpack.c.bf16 %v8795_v1, %v8795_v1  ;;  %v2701_v42 = vpack.c.bf16 %v8798_v20, %v8798_v20  ;;  %v2738_v60 = vunpack.c.l.b16 %v2698_v27 }
 0x613   :  { %v2647_v13 = vpop.f32.mrf.mxu1  ;;  %v2702_v57 = vpack.c.bf16 %v8803_v54, %v8803_v54  ;;  %v2703_v25 = vpack.c.bf16 %v8806_v56, %v8806_v56  ;;  %v2704_v16 = vpack.c.bf16 %v8809_v59, %v8809_v59  ;;  %v2705_v28 = vpack.c.bf16 %v8812_v62, %v8812_v62 }
 0x614   :  { %v2648_v29 = vadd.f32 %v7376_v55, %v2647_v13  ;;  %v2739_v40 = vunpack.c.l.b16 %v2699_v23  ;;  %v2740_v33 = vunpack.c.l.b16 %v2700_v10  ;;  %v2741_v46 = vunpack.c.l.b16 %v2701_v42 }
 0x615   :  { %v2742_v47 = vunpack.c.l.b16 %v2702_v57  ;;  %v2743_v30 = vunpack.c.l.b16 %v2703_v25  ;;  %v2744_v9 = vunpack.c.l.b16 %v2704_v16  ;;  %v2745_v31 = vunpack.c.l.b16 %v2705_v28 }
 0x616   :  { %v2659_v36 = vrot.slane %v2648_v29, 1  ;;  %v2660_v5 = vrot.slane %v2648_v29, 2  ;;  %v2661_v7 = vrot.slane %v2648_v29, 3  ;;  %v2662_v8 = vrot.slane %v2648_v29, 4 }
 0x617   :  { %v2663_v3 = vrot.slane %v2648_v29, 5  ;;  %v2664_v34 = vrot.slane %v2648_v29, 6  ;;  %v2665_v35 = vrot.slane %v2648_v29, 7  ;;  %v8829_v2 = vadd.f32 %v2648_v29, %v8297_v52 }
 0x618   :  { %v8832_v6 = vadd.f32 %v2659_v36, %v8300_v53  ;;  %v8835_v44 = vadd.f32 %v2660_v5, %v8303_v12  ;;  %v8838_v37 = vadd.f32 %v2661_v7, %v8306_v38  ;;  %v8841_v45 = vadd.f32 %v2662_v8, %v8309_v11 }
 0x619   :  { %v8844_v55 = vadd.f32 %v2663_v3, %v8314_v0  ;;  %v8847_v19 = vadd.f32 %v2664_v34, %v8317_v18  ;;  %v8850_v52 = vadd.f32 %v2665_v35, %v8319_v26  ;;  %v2706_v53 = vpack.c.bf16 %v8829_v2, %v8829_v2 }
 0x61a   :  { %v2707_v12 = vpack.c.bf16 %v8832_v6, %v8832_v6  ;;  %v2708_v38 = vpack.c.bf16 %v8835_v44, %v8835_v44  ;;  %v2709_v11 = vpack.c.bf16 %v8838_v37, %v8838_v37  ;;  %v2710_v0 = vpack.c.bf16 %v8841_v45, %v8841_v45 }
 0x61b   :  { %v2711_v18 = vpack.c.bf16 %v8844_v55, %v8844_v55  ;;  %v2712_v26 = vpack.c.bf16 %v8847_v19, %v8847_v19  ;;  %v2713_v4 = vpack.c.bf16 %v8850_v52, %v8850_v52  ;;  %v2754_v23 = vrot.slane %v2739_v40, 7 }
 0x61c   :  { %v2747_v58 = vunpack.c.l.b16 %v2707_v12  ;;  %v2748_v24 = vunpack.c.l.b16 %v2708_v38  ;;  %v2749_v27 = vunpack.c.l.b16 %v2709_v11  ;;  %v2746_v10 = vunpack.c.l.b16 %v2706_v53 }
 0x61d   :  { %v2750_v13 = vunpack.c.l.b16 %v2710_v0  ;;  %v2751_v29 = vunpack.c.l.b16 %v2711_v18  ;;  %v2756_v36 = vrot.slane %v2740_v33, 6  ;;  %v2752_v5 = vunpack.c.l.b16 %v2712_v26 }
 0x61e   :  { %v2755_v7 = vsel %vm1346_vm11, %v2754_v23, %v2738_v60  ;;  %v2758_v8 = vrot.slane %v2741_v46, 5  ;;  %v2768_v42 = vrot.slane %v2747_v58, 7  ;;  %v2753_v57 = vunpack.c.l.b16 %v2713_v4  ;;  %v7328_v23 = vld [vmem:[%s10813_s17 + $0x18] sm:$0xff] }
 0x61f   :  { %v2757_v3 = vsel %vm1349_vm12, %v2756_v36, %v2755_v7  ;;  %v2760_v34 = vrot.slane %v2742_v47, 4  ;;  %v2770_v25 = vrot.slane %v2748_v24, 6  ;;  %v2762_v16 = vrot.slane %v2743_v30, 3  ;;  %2855 = vmatpush.bf16.msra.mxu3 %v7328_v23  ;;  %v7377_v36 = vld [vmem:[%s10812_s16] ss:$0 sm:$0xff] }
 0x620   :  { %v2759_v35 = vsel %vm1352_vm13, %v2758_v8, %v2757_v3  ;;  %v2769_v28 = vsel %vm1346_vm11, %v2768_v42, %v2746_v10  ;;  %v2772_v40 = vrot.slane %v2749_v27, 5  ;;  %v2764_v12 = vrot.slane %v2744_v9, 2  ;;  %v7326_v10 = vld [vmem:[%s10813_s17 + $0x8] sm:$0xff] }
 0x621   :  { %v2761_v53 = vsel %vm1355_vm14, %v2760_v34, %v2759_v35  ;;  %v2771_v33 = vsel %vm1349_vm12, %v2770_v25, %v2769_v28  ;;  %v2774_v38 = vrot.slane %v2750_v13, 4  ;;  %v2776_v0 = vrot.slane %v2751_v29, 3  ;;  %v7325_v13 = vld [vmem:[%s10813_s17] sm:$0xff] }
 0x622   :  { %v2763_v60 = vsel %vm1358_vm15, %v2762_v16, %v2761_v53  ;;  %v2773_v11 = vsel %vm1352_vm13, %v2772_v40, %v2771_v33  ;;  %v2778_v46 = vrot.slane %v2752_v5, 2  ;;  %v2766_v47 = vrot.slane %v2745_v31, 1  ;;  %v7327_v31 = vld [vmem:[%s10813_s17 + $0x10] sm:$0xff] }
 0x623   :  { %v2765_v18 = vsel %vm1361_vm0, %v2764_v12, %v2763_v60  ;;  %v2775_v26 = vsel %vm1355_vm14, %v2774_v38, %v2773_v11  ;;  %v2780_v30 = vrot.slane %v2753_v57, 1  ;;  %2856 = vmatpush.bf16.msra.mxu3 %v7327_v31  ;;  %v7378_v11 = vld [vmem:[%s10814_s18] ss:$0 sm:$0xff] }
 0x624   :  { %v2777_v4 = vsel %vm1358_vm15, %v2776_v0, %v2775_v26  ;;  %v2767_v24 = vsel %vm1364_vm1, %v2766_v47, %v2765_v18 }
 0x625   :  { %v2779_v58 = vsel %vm1361_vm0, %v2778_v46, %v2777_v4 }
 0x626   :  { %v2781_v9 = vsel %vm1364_vm1, %v2780_v30, %v2779_v58 }
 0x627   :  { %v2782_v27 = vpack.c.b16 %v2781_v9, %v2767_v24  ;;  %2857 = vmatpush.bf16.msra.mxu3 %v7326_v10 }
 0x629   :  { %7095 = vmatmul.msk.bf16.vlgmr.msra.gmra.mxu2 %vm1530_vm2, %v2782_v27 }
 0x62b   :  { %2858 = vmatpush.bf16.msra.mxu3 %v7325_v13 }
 0x6ac   :  { %v2807_v29 = vpop.f32.mrf.mxu2 }
 0x6ad   :  { %v2808_v5 = vadd.f32 %v7377_v36, %v2807_v29 }
 0x6af   :  { %v2812_v42 = vmax.f32 %v2808_v5, 0.0 }
 0x6b4   :  { %v2809_v7 = vpop.f32.mrf.mxu2 }
 0x6b5   :  { %v2810_v8 = vadd.f32 %v7377_v36, %v2809_v7 }
 0x6b7   :  { %v2813_v57 = vmax.f32 %v2810_v8, 0.0 }
 0x6b9   :  { %v2814_v3 = vpack.c.bf16 %v2813_v57, %v2812_v42 }
 0x6bb   :  { %7112 = vmatmul.msk.bf16.vlgmr.msra.gmra.mxu3 %vm2847_vm5, %v2814_v3 }
 0x73e   :  { %v2860_v34 = vpop.f32.mrf.mxu3 }
 0x73f   :  { %v2867_v25 = vrot.slane %v2860_v34, 1  ;;  %v2868_v35 = vrot.slane %v2860_v34, 2  ;;  %v2869_v16 = vrot.slane %v2860_v34, 3  ;;  %v2870_v28 = vrot.slane %v2860_v34, 4 }
 0x740   :  { %v2897_v40 = vadd.f32 %v2860_v34, %v8789_v41  ;;  %v2871_v53 = vrot.slane %v2860_v34, 5  ;;  %v2872_v12 = vrot.slane %v2860_v34, 6  ;;  %v2873_v33 = vrot.slane %v2860_v34, 7 }
 0x741   :  { %v2898_v38 = vadd.f32 %v2867_v25, %v8792_v50  ;;  %v2899_v60 = vadd.f32 %v2868_v35, %v8795_v1  ;;  %v2900_v0 = vadd.f32 %v2869_v16, %v8798_v20  ;;  %v2901_v18 = vadd.f32 %v2870_v28, %v8803_v54 }
 0x742   :  { %v2902_v26 = vadd.f32 %v2871_v53, %v8806_v56  ;;  %v2903_v46 = vadd.f32 %v2872_v12, %v8809_v59  ;;  %v2904_v41 = vadd.f32 %v2873_v33, %v8812_v62  ;;  %v8922_v20 = vadd.f32 %v7378_v11, %v2897_v40 }
 0x743   :  { %v8910_v47 = vadd.f32 %v7378_v11, %v2898_v38  ;;  %v8912_v4 = vadd.f32 %v7378_v11, %v2899_v60  ;;  %v8914_v50 = vadd.f32 %v7378_v11, %v2900_v0  ;;  %v8916_v1 = vadd.f32 %v7378_v11, %v2901_v18 }
 0x744   :  { %v8918_v30 = vadd.f32 %v7378_v11, %v2902_v26  ;;  %v8920_v58 = vadd.f32 %v7378_v11, %v2903_v46  ;;  %v8924_v54 = vadd.f32 %v7378_v11, %v2904_v41 }
 0x745   :  { %v2953_v56 = vrot.slane %v8910_v47, 7  ;;  %v2955_v59 = vrot.slane %v8912_v4, 6  ;;  %v2957_v24 = vrot.slane %v8914_v50, 5  ;;  %v2959_v9 = vrot.slane %v8916_v1, 4 }
 0x746   :  { %v2862_v62 = vpop.f32.mrf.mxu3  ;;  %v2961_v27 = vrot.slane %v8918_v30, 3  ;;  %v2963_v23 = vrot.slane %v8920_v58, 2  ;;  %v2965_v53 = vrot.slane %v8924_v54, 1 }
 0x747   :  { %v2874_v31 = vrot.slane %v2862_v62, 1  ;;  %v2875_v10 = vrot.slane %v2862_v62, 2  ;;  %v2954_v13 = vsel %vm1346_vm11, %v2953_v56, %v8922_v20  ;;  %v2876_v29 = vrot.slane %v2862_v62, 3 }
 0x748   :  { %v2956_v36 = vsel %vm1349_vm12, %v2955_v59, %v2954_v13  ;;  %v2877_v5 = vrot.slane %v2862_v62, 4  ;;  %v2878_v7 = vrot.slane %v2862_v62, 5  ;;  %v2879_v8 = vrot.slane %v2862_v62, 6 }
 0x749   :  { %v2958_v42 = vsel %vm1352_vm13, %v2957_v24, %v2956_v36  ;;  %v2880_v57 = vrot.slane %v2862_v62, 7  ;;  %v2905_v3 = vadd.f32 %v2862_v62, %v8829_v2  ;;  %v2906_v34 = vadd.f32 %v2874_v31, %v8832_v6 }
 0x74a   :  { %v2960_v25 = vsel %vm1355_vm14, %v2959_v9, %v2958_v42  ;;  %v2907_v35 = vadd.f32 %v2875_v10, %v8835_v44  ;;  %v2908_v16 = vadd.f32 %v2876_v29, %v8838_v37  ;;  %v2909_v28 = vadd.f32 %v2877_v5, %v8841_v45 }
 0x74b   :  { %v2962_v40 = vsel %vm1358_vm15, %v2961_v27, %v2960_v25  ;;  %v2910_v12 = vadd.f32 %v2878_v7, %v8844_v55  ;;  %v2911_v33 = vadd.f32 %v2879_v8, %v8847_v19  ;;  %v2912_v6 = vadd.f32 %v2880_v57, %v8850_v52 }
 0x74c   :  { %v2964_v2 = vsel %vm1361_vm0, %v2963_v23, %v2962_v40  ;;  %v8948_v38 = vadd.f32 %v7378_v11, %v2906_v34  ;;  %v8950_v60 = vadd.f32 %v7378_v11, %v2907_v35  ;;  %v8953_v37 = vadd.f32 %v7378_v11, %v2908_v16 }
 0x74d   :  { %v2966_v44 = vsel %vm1364_vm1, %v2965_v53, %v2964_v2  ;;  %v8955_v45 = vadd.f32 %v7378_v11, %v2909_v28  ;;  %v8958_v18 = vadd.f32 %v7378_v11, %v2905_v3  ;;  %v8960_v55 = vadd.f32 %v7378_v11, %v2910_v12 }
 0x74e   :  { %v2983_v0 = vsel %vm1530_vm2, %v2966_v44, 0.0  ;;  %v2967_v19 = vrot.slane %v8948_v38, 7  ;;  %v8963_v52 = vadd.f32 %v7378_v11, %v2911_v33  ;;  %v2969_v26 = vrot.slane %v8950_v60, 6 }
 0x74f   :  { %10859 = vst [vmem:[#allocation23_spill] sm:$0xff] %v8955_v45  ;;  %2984 = vadd.xlane.f32.xlu0 %v2983_v0  ;;  %v8966_v46 = vadd.f32 %v7378_v11, %v2912_v6  ;;  %v2971_v56 = vrot.slane %v8953_v37, 5  ;;  %v2973_v62 = vrot.slane %v8955_v45, 4  ;;  %v2975_v9 = vrot.slane %v8960_v55, 3 }
 0x750   :  { %10860 = vst [vmem:[#allocation24_spill] sm:$0xff] %v8958_v18  ;;  %v2968_v41 = vsel %vm1346_vm11, %v2967_v19, %v8958_v18  ;;  %v2977_v23 = vrot.slane %v8963_v52, 2  ;;  %v7750_v36 = vmov 32.0  }
 0x751   :  { %10861 = vst [vmem:[#allocation25_spill] sm:$0xff] %v8960_v55  ;;  %v2970_v59 = vsel %vm1349_vm12, %v2969_v26, %v2968_v41  ;;  %v2979_v31 = vrot.slane %v8966_v46, 1  ;;  %7459 = vrcp.f32 %v7750_v36 }
 0x752   :  { %10862 = vst [vmem:[#allocation26_spill] sm:$0xff] %v8963_v52  ;;  %v2972_v24 = vsel %vm1352_vm13, %v2971_v56, %v2970_v59 }
 0x753   :  { %10863 = vst [vmem:[#allocation27_spill] sm:$0xff] %v8966_v46  ;;  %v2974_v27 = vsel %vm1355_vm14, %v2973_v62, %v2972_v24 }
 0x754   :  { %v2976_v11 = vsel %vm1358_vm15, %v2975_v9, %v2974_v27 }
 0x755   :  { %v2978_v10 = vsel %vm1361_vm0, %v2977_v23, %v2976_v11 }
 0x756   :  { %v2980_v13 = vsel %vm1364_vm1, %v2979_v31, %v2978_v10 }
 0x757   :  { %v2986_v29 = vsel %vm1530_vm2, %v2980_v13, 0.0  ;;  %v7460_v5 = vpop.eup %7459 }
 0x758   :  { %2987 = vadd.xlane.f32.xlu1 %v2986_v29  ;;  %v2990_v7 = vmul.f32 32.0, %v7460_v5  ;;  %vm2994_vm6 = vweird.f32 %v7460_v5 }
 0x75a   :  { %v2991_v8 = vsub.f32 1.0, %v2990_v7 }
 0x75c   :  { %v2992_v42 = vmul.f32 %v7460_v5, %v2991_v8 }
 0x75e   :  { %v2993_v57 = vadd.f32 %v7460_v5, %v2992_v42 }
 0x760   :  { %v8982_v3 = vsel %vm2994_vm6, %v7460_v5, %v2993_v57 }
 0x761   :  { %10864 = vst [vmem:[#allocation28_spill] sm:$0xff] %v8982_v3 }
 0x7c2   :  { %v2985_v34 = vpop.xlane.xlu0 %2984 }
 0x7c3   :  { %v2996_v25 = vmul.f32 %v8982_v3, %v2985_v34 }
 0x7c5   :  { %v3000_v35 = vrot.slane %v2996_v25, 1  ;;  %v3001_v16 = vrot.slane %v2996_v25, 2  ;;  %v3002_v28 = vrot.slane %v2996_v25, 3  ;;  %v3003_v40 = vrot.slane %v2996_v25, 4 }
 0x7c6   :  { %v3004_v53 = vrot.slane %v2996_v25, 5  ;;  %v3005_v12 = vrot.slane %v2996_v25, 6  ;;  %v3006_v33 = vrot.slane %v2996_v25, 7  ;;  %v8986_v2 = vsub.f32 %v8922_v20, %v2996_v25 }
 0x7c7   :  { %v8989_v6 = vsub.f32 %v8910_v47, %v3000_v35  ;;  %v8992_v44 = vsub.f32 %v8912_v4, %v3001_v16  ;;  %v8995_v0 = vsub.f32 %v8914_v50, %v3002_v28  ;;  %v8998_v19 = vsub.f32 %v8916_v1, %v3003_v40 }
 0x7c8   :  { %v9001_v26 = vsub.f32 %v8918_v30, %v3004_v53  ;;  %v9004_v41 = vsub.f32 %v8920_v58, %v3005_v12  ;;  %v9007_v56 = vsub.f32 %v8924_v54, %v3006_v33  ;;  %v3046_v10 = vmul.f32 %v8986_v2, %v8986_v2 }
 0x7c9   :  { %v3047_v59 = vmul.f32 %v8989_v6, %v8989_v6  ;;  %v3048_v62 = vmul.f32 %v8992_v44, %v8992_v44  ;;  %v3049_v24 = vmul.f32 %v8995_v0, %v8995_v0  ;;  %v3050_v9 = vmul.f32 %v8998_v19, %v8998_v19 }
 0x7ca   :  { %v3051_v27 = vmul.f32 %v9001_v26, %v9001_v26  ;;  %v3052_v23 = vmul.f32 %v9004_v41, %v9004_v41  ;;  %v3053_v11 = vmul.f32 %v9007_v56, %v9007_v56 }
 0x7cb   :  { %v2988_v31 = vpop.xlane.xlu1 %2987  ;;  %v3078_v13 = vrot.slane %v3047_v59, 7  ;;  %v3080_v29 = vrot.slane %v3048_v62, 6  ;;  %v3082_v5 = vrot.slane %v3049_v24, 5  ;;  %v3084_v7 = vrot.slane %v3050_v9, 4 }
 0x7cc   :  { %v2997_v36 = vmul.f32 %v8982_v3, %v2988_v31  ;;  %v3086_v42 = vrot.slane %v3051_v27, 3  ;;  %v3088_v57 = vrot.slane %v3052_v23, 2  ;;  %v3090_v34 = vrot.slane %v3053_v11, 1 }
 0x7cd   :  { %v3079_v8 = vsel %vm1346_vm11, %v3078_v13, %v3046_v10 }
 0x7ce   :  { %v3081_v25 = vsel %vm1349_vm12, %v3080_v29, %v3079_v8  ;;  %v3007_v35 = vrot.slane %v2997_v36, 1  ;;  %v3008_v16 = vrot.slane %v2997_v36, 2  ;;  %v3009_v28 = vrot.slane %v2997_v36, 3 }
 0x7cf   :  { %v3083_v40 = vsel %vm1352_vm13, %v3082_v5, %v3081_v25  ;;  %v3010_v53 = vrot.slane %v2997_v36, 4  ;;  %v3011_v12 = vrot.slane %v2997_v36, 5  ;;  %v3012_v33 = vrot.slane %v2997_v36, 6 }
 0x7d0   :  { %v3085_v59 = vsel %vm1355_vm14, %v3084_v7, %v3083_v40  ;;  %v3013_v62 = vrot.slane %v2997_v36, 7  ;;  %v9031_v24 = vsub.f32 %v8958_v18, %v2997_v36  ;;  %v9034_v9 = vsub.f32 %v8948_v38, %v3007_v35 }
 0x7d1   :  { %v3087_v27 = vsel %vm1358_vm15, %v3086_v42, %v3085_v59  ;;  %v9038_v23 = vsub.f32 %v8950_v60, %v3008_v16  ;;  %v9041_v11 = vsub.f32 %v8953_v37, %v3009_v28  ;;  %v9044_v31 = vsub.f32 %v8955_v45, %v3010_v53 }
 0x7d2   :  { %v3089_v10 = vsel %vm1361_vm0, %v3088_v57, %v3087_v27  ;;  %v9048_v13 = vsub.f32 %v8960_v55, %v3011_v12  ;;  %v9051_v29 = vsub.f32 %v8963_v52, %v3012_v33  ;;  %v9055_v5 = vsub.f32 %v8966_v46, %v3013_v62 }
 0x7d3   :  { %v3091_v36 = vsel %vm1364_vm1, %v3090_v34, %v3089_v10  ;;  %v3055_v7 = vmul.f32 %v9034_v9, %v9034_v9  ;;  %v3056_v8 = vmul.f32 %v9038_v23, %v9038_v23  ;;  %v3057_v57 = vmul.f32 %v9041_v11, %v9041_v11 }
 0x7d4   :  { %v3108_v42 = vsel %vm1530_vm2, %v3091_v36, 0.0  ;;  %v3058_v25 = vmul.f32 %v9044_v31, %v9044_v31  ;;  %v3054_v34 = vmul.f32 %v9031_v24, %v9031_v24  ;;  %v3059_v35 = vmul.f32 %v9048_v13, %v9048_v13 }
 0x7d5   :  { %3109 = vadd.xlane.f32.xlu0 %v3108_v42  ;;  %v3092_v16 = vrot.slane %v3055_v7, 7  ;;  %v3094_v28 = vrot.slane %v3056_v8, 6  ;;  %v3060_v40 = vmul.f32 %v9051_v29, %v9051_v29  ;;  %v3061_v53 = vmul.f32 %v9055_v5, %v9055_v5 }
 0x7d6   :  { %v3096_v33 = vrot.slane %v3057_v57, 5  ;;  %v3098_v62 = vrot.slane %v3058_v25, 4  ;;  %v3100_v10 = vrot.slane %v3059_v35, 3  ;;  %v7330_v35 = vld [vmem:[%s10805_s9 + $0x18] sm:$0xff] }
 0x7d7   :  { %v3093_v12 = vsel %vm1346_vm11, %v3092_v16, %v3054_v34  ;;  %v3102_v42 = vrot.slane %v3060_v40, 2  ;;  %v3104_v8 = vrot.slane %v3061_v53, 1  ;;  %3332 = vmatpush.bf16.msrb.mxu0 %v7330_v35 }
 0x7d8   :  { %v3095_v59 = vsel %vm1349_vm12, %v3094_v28, %v3093_v12 }
 0x7d9   :  { %v3097_v27 = vsel %vm1352_vm13, %v3096_v33, %v3095_v59 }
 0x7da   :  { %v3099_v36 = vsel %vm1355_vm14, %v3098_v62, %v3097_v27  ;;  %v9093_v27 = vld [vmem:[%s10803_s7 + $0x1] ss:$0 sm:$0xff] }
 0x7db   :  { %v3101_v7 = vsel %vm1358_vm15, %v3100_v10, %v3099_v36 }
 0x7dc   :  { %v3103_v46 = vsel %vm1361_vm0, %v3102_v42, %v3101_v7 }
 0x7dd   :  { %v3105_v52 = vsel %vm1364_vm1, %v3104_v8, %v3103_v46 }
 0x7de   :  { %v3111_v55 = vsel %vm1530_vm2, %v3105_v52, 0.0  ;;  %v7329_v52 = vld [vmem:[%s10805_s9 + $0x10] sm:$0xff] }
 0x7df   :  { %3112 = vadd.xlane.f32.xlu2 %v3111_v55  ;;  %3333 = vmatpush.bf16.msrb.mxu0 %v7329_v52 }
 0x848   :  { %v3110_v57 = vpop.xlane.xlu0 %3109 }
 0x849   :  { %v3114_v34 = vmul.f32 %v3110_v57, %v8982_v3 }
 0x84b   :  { %v3116_v25 = vadd.f32 1e-05, %v3114_v34  ;;  %v9098_v34 = vld [vmem:[%s10804_s8 + $0x1] ss:$0 sm:$0xff] }
 0x84d   :  { %7461 = vrsqrt.f32 %v3116_v25  ;;  %vm3124_vm8 = vweird.f32 %v3116_v25 }
 0x852   :  { %v3113_v16 = vpop.xlane.xlu2 %3112 }
 0x853   :  { %v7462_v28 = vpop.eup %7461  ;;  %v3115_v40 = vmul.f32 %v3113_v16, %v8982_v3 }
 0x854   :  { %v3119_v53 = vmul.f32 %v7462_v28, %v3116_v25  ;;  %vm3125_vm7 = vweird.f32 %v7462_v28 }
 0x855   :  { %v3117_v55 = vadd.f32 1e-05, %v3115_v40  ;;  %vm3126_vm9 = vmor %vm3124_vm8, %vm3125_vm7 }
 0x856   :  { %v3120_v46 = vmul.f32 %v7462_v28, %v3119_v53 }
 0x857   :  { %7463 = vrsqrt.f32 %v3117_v55  ;;  %vm3134_vm6 = vweird.f32 %v3117_v55 }
 0x858   :  { %v3121_v12 = vmul.f32 0.5, %v3120_v46 }
 0x85a   :  { %v3122_v33 = vsub.f32 1.5, %v3121_v12 }
 0x85c   :  { %v3123_v59 = vmul.f32 %v7462_v28, %v3122_v33 }
 0x85d   :  { %v7464_v62 = vpop.eup %7463 }
 0x85e   :  { %v3127_v10 = vsel %vm3126_vm9, %v7462_v28, %v3123_v59  ;;  %v3129_v36 = vmul.f32 %v7464_v62, %v3117_v55  ;;  %vm3135_vm10 = vweird.f32 %v7464_v62 }
 0x85f   :  { %v3140_v42 = vrot.slane %v3127_v10, 1  ;;  %v3141_v7 = vrot.slane %v3127_v10, 2  ;;  %v3142_v8 = vrot.slane %v3127_v10, 3  ;;  %v3143_v57 = vrot.slane %v3127_v10, 4  ;;  %vm3136_vm7 = vmor %vm3134_vm6, %vm3135_vm10 }
 0x860   :  { %v3144_v16 = vrot.slane %v3127_v10, 5  ;;  %v3145_v25 = vrot.slane %v3127_v10, 6  ;;  %v3146_v35 = vrot.slane %v3127_v10, 7  ;;  %v3170_v40 = vmul.f32 %v3127_v10, %v8986_v2 }
 0x861   :  { %v3171_v53 = vmul.f32 %v3140_v42, %v8989_v6  ;;  %v3172_v52 = vmul.f32 %v3141_v7, %v8992_v44  ;;  %v3173_v28 = vmul.f32 %v3142_v8, %v8995_v0  ;;  %v3174_v46 = vmul.f32 %v3143_v57, %v8998_v19 }
 0x862   :  { %v3175_v12 = vmul.f32 %v3144_v16, %v9001_v26  ;;  %v3189_v33 = vmul.f32 %v9093_v27, %v3170_v40  ;;  %v3130_v59 = vmul.f32 %v7464_v62, %v3129_v36  ;;  %v3176_v3 = vmul.f32 %v3145_v25, %v9004_v41 }
 0x863   :  { %v3190_v45 = vmul.f32 %v9093_v27, %v3171_v53  ;;  %v3191_v18 = vmul.f32 %v9093_v27, %v3172_v52  ;;  %v3192_v2 = vmul.f32 %v9093_v27, %v3173_v28  ;;  %v3177_v6 = vmul.f32 %v3146_v35, %v9007_v56 }
 0x864   :  { %v9113_v44 = vadd.f32 %v9098_v34, %v3189_v33  ;;  %v3131_v0 = vmul.f32 0.5, %v3130_v59  ;;  %v3193_v19 = vmul.f32 %v9093_v27, %v3174_v46  ;;  %v3194_v26 = vmul.f32 %v9093_v27, %v3175_v12 }
 0x865   :  { %v3209_v10 = vadd.f32 %v9098_v34, %v3190_v45  ;;  %v3195_v41 = vmul.f32 %v9093_v27, %v3176_v3  ;;  %v3196_v36 = vmul.f32 %v9093_v27, %v3177_v6  ;;  %v3210_v42 = vadd.f32 %v9098_v34, %v3191_v18 }
 0x866   :  { %v3132_v7 = vsub.f32 1.5, %v3131_v0  ;;  %v3211_v56 = vadd.f32 %v9098_v34, %v3192_v2  ;;  %v3212_v8 = vadd.f32 %v9098_v34, %v3193_v19  ;;  %v3213_v57 = vadd.f32 %v9098_v34, %v3194_v26 }
 0x867   :  { %v3214_v16 = vadd.f32 %v9098_v34, %v3195_v41  ;;  %v3224_v25 = vpack.c.bf16 %v9113_v44, %v9113_v44  ;;  %v3225_v3 = vpack.c.bf16 %v3209_v10, %v3209_v10  ;;  %v3215_v35 = vadd.f32 %v9098_v34, %v3196_v36 }
 0x868   :  { %v3133_v45 = vmul.f32 %v7464_v62, %v3132_v7  ;;  %v3226_v18 = vpack.c.bf16 %v3210_v42, %v3210_v42  ;;  %v3227_v40 = vpack.c.bf16 %v3211_v56, %v3211_v56  ;;  %v3228_v52 = vpack.c.bf16 %v3212_v8, %v3212_v8 }
 0x869   :  { %v3229_v28 = vpack.c.bf16 %v3213_v57, %v3213_v57  ;;  %v3230_v46 = vpack.c.bf16 %v3214_v16, %v3214_v16 }
 0x86a   :  { %v3137_v53 = vsel %vm3136_vm7, %v7464_v62, %v3133_v45 }
 0x86b   :  { %v3147_v12 = vrot.slane %v3137_v53, 1  ;;  %v3148_v33 = vrot.slane %v3137_v53, 2  ;;  %v3149_v59 = vrot.slane %v3137_v53, 3  ;;  %v3150_v2 = vrot.slane %v3137_v53, 4 }
 0x86c   :  { %v3151_v6 = vrot.slane %v3137_v53, 5  ;;  %v3152_v0 = vrot.slane %v3137_v53, 6  ;;  %v3178_v44 = vmul.f32 %v3137_v53, %v9031_v24  ;;  %v3153_v19 = vrot.slane %v3137_v53, 7 }
 0x86d   :  { %v3179_v55 = vmul.f32 %v3147_v12, %v9034_v9  ;;  %v3180_v26 = vmul.f32 %v3148_v33, %v9038_v23  ;;  %v3181_v10 = vmul.f32 %v3149_v59, %v9041_v11  ;;  %v3182_v62 = vmul.f32 %v3150_v2, %v9044_v31 }
 0x86e   :  { %v3197_v41 = vmul.f32 %v9093_v27, %v3178_v44  ;;  %v3183_v36 = vmul.f32 %v3151_v6, %v9048_v13  ;;  %v3184_v42 = vmul.f32 %v3152_v0, %v9051_v29  ;;  %v3185_v7 = vmul.f32 %v3153_v19, %v9055_v5 }
 0x86f   :  { %v3198_v56 = vmul.f32 %v9093_v27, %v3179_v55  ;;  %v3199_v24 = vmul.f32 %v9093_v27, %v3180_v26  ;;  %v3200_v9 = vmul.f32 %v9093_v27, %v3181_v10  ;;  %v3201_v23 = vmul.f32 %v9093_v27, %v3182_v62 }
 0x870   :  { %v3216_v11 = vadd.f32 %v9098_v34, %v3197_v41  ;;  %v3202_v31 = vmul.f32 %v9093_v27, %v3183_v36  ;;  %v3203_v8 = vmul.f32 %v9093_v27, %v3184_v42  ;;  %v3204_v13 = vmul.f32 %v9093_v27, %v3185_v7 }
 0x871   :  { %v3217_v29 = vadd.f32 %v9098_v34, %v3198_v56  ;;  %v3218_v5 = vadd.f32 %v9098_v34, %v3199_v24  ;;  %v3219_v57 = vadd.f32 %v9098_v34, %v3200_v9  ;;  %v3220_v16 = vadd.f32 %v9098_v34, %v3201_v23 }
 0x872   :  { %v3221_v45 = vadd.f32 %v9098_v34, %v3202_v31  ;;  %v3222_v53 = vadd.f32 %v9098_v34, %v3203_v8  ;;  %v3223_v12 = vadd.f32 %v9098_v34, %v3204_v13  ;;  %v3231_v33 = vpack.c.bf16 %v3215_v35, %v3215_v35 }
 0x873   :  { %v3233_v59 = vpack.c.bf16 %v3217_v29, %v3217_v29  ;;  %v3234_v2 = vpack.c.bf16 %v3218_v5, %v3218_v5  ;;  %v3235_v6 = vpack.c.bf16 %v3219_v57, %v3219_v57  ;;  %v3267_v0 = vunpack.c.l.b16 %v3225_v3 }
 0x874   :  { %v3232_v27 = vpack.c.bf16 %v3216_v11, %v3216_v11  ;;  %v3236_v44 = vpack.c.bf16 %v3220_v16, %v3220_v16  ;;  %v3237_v19 = vpack.c.bf16 %v3221_v45, %v3221_v45  ;;  %v3268_v55 = vunpack.c.l.b16 %v3226_v18 }
 0x875   :  { %v3266_v26 = vunpack.c.l.b16 %v3224_v25  ;;  %v3238_v10 = vpack.c.bf16 %v3222_v53, %v3222_v53  ;;  %v3239_v62 = vpack.c.bf16 %v3223_v12, %v3223_v12  ;;  %v3269_v41 = vunpack.c.l.b16 %v3227_v40 }
 0x876   :  { %v3270_v36 = vunpack.c.l.b16 %v3228_v52  ;;  %v3271_v42 = vunpack.c.l.b16 %v3229_v28  ;;  %v3275_v7 = vunpack.c.l.b16 %v3233_v59  ;;  %v3276_v56 = vunpack.c.l.b16 %v3234_v2 }
 0x877   :  { %v3272_v24 = vunpack.c.l.b16 %v3230_v46  ;;  %v3273_v9 = vunpack.c.l.b16 %v3231_v33  ;;  %v3277_v34 = vunpack.c.l.b16 %v3235_v6  ;;  %v3282_v35 = vrot.slane %v3267_v0, 7 }
 0x878   :  { %v3274_v23 = vunpack.c.l.b16 %v3232_v27  ;;  %v3278_v31 = vunpack.c.l.b16 %v3236_v44  ;;  %v3279_v8 = vunpack.c.l.b16 %v3237_v19  ;;  %v3284_v3 = vrot.slane %v3268_v55, 6 }
 0x879   :  { %v3280_v11 = vunpack.c.l.b16 %v3238_v10  ;;  %v3283_v13 = vsel %vm1346_vm11, %v3282_v35, %v3266_v26  ;;  %v3286_v18 = vrot.slane %v3269_v41, 5  ;;  %v3296_v25 = vrot.slane %v3275_v7, 7 }
 0x87a   :  { %v3281_v29 = vunpack.c.l.b16 %v3239_v62  ;;  %v3285_v40 = vsel %vm1349_vm12, %v3284_v3, %v3283_v13  ;;  %v3288_v52 = vrot.slane %v3270_v36, 4  ;;  %v3298_v28 = vrot.slane %v3276_v56, 6 }
 0x87b   :  { %v3287_v5 = vsel %vm1352_vm13, %v3286_v18, %v3285_v40  ;;  %v3290_v46 = vrot.slane %v3271_v42, 3  ;;  %v3297_v57 = vsel %vm1346_vm11, %v3296_v25, %v3274_v23  ;;  %v3300_v16 = vrot.slane %v3277_v34, 5  ;;  %v7381_v42 = vld [vmem:[%s10806_s10 + $0x1] ss:$0 sm:$0xff] }
 0x87c   :  { %v3289_v45 = vsel %vm1355_vm14, %v3288_v52, %v3287_v5  ;;  %v3292_v53 = vrot.slane %v3272_v24, 2  ;;  %v3299_v12 = vsel %vm1349_vm12, %v3298_v28, %v3297_v57  ;;  %v3302_v33 = vrot.slane %v3278_v31, 4 }
 0x87d   :  { %v3291_v59 = vsel %vm1358_vm15, %v3290_v46, %v3289_v45  ;;  %v3301_v2 = vsel %vm1352_vm13, %v3300_v16, %v3299_v12  ;;  %v3304_v6 = vrot.slane %v3279_v8, 3  ;;  %v3306_v44 = vrot.slane %v3280_v11, 2 }
 0x87e   :  { %v3293_v0 = vsel %vm1361_vm0, %v3292_v53, %v3291_v59  ;;  %v3303_v27 = vsel %vm1355_vm14, %v3302_v33, %v3301_v2  ;;  %v3294_v19 = vrot.slane %v3273_v9, 1  ;;  %v3308_v26 = vrot.slane %v3281_v29, 1 }
 0x87f   :  { %v3305_v55 = vsel %vm1358_vm15, %v3304_v6, %v3303_v27 }
 0x880   :  { %v3307_v10 = vsel %vm1361_vm0, %v3306_v44, %v3305_v55  ;;  %v3295_v62 = vsel %vm1364_vm1, %v3294_v19, %v3293_v0 }
 0x881   :  { %v3309_v41 = vsel %vm1364_vm1, %v3308_v26, %v3307_v10 }
 0x882   :  { %v3310_v36 = vpack.c.b16 %v3309_v41, %v3295_v62 }
 0x884   :  { %7128 = vmatmul.msk.bf16.vlgmr.msrb.gmra.mxu0 %vm1530_vm2, %v3310_v36 }
 0x901   :  { %v3335_v7 = vpop.f32.mrf.mxu0 }
 0x902   :  { %v9170_v56 = vadd.f32 %v7381_v42, %v3335_v7 }
 0x904   :  { %v3347_v24 = vmul.f32 %v9170_v56, %v8389_v51  ;;  %v3345_v9 = vmul.f32 %v9170_v56, %v8391_v17  ;;  %v3343_v34 = vmul.f32 %v9170_v56, %v8382_v48  ;;  %v3344_v8 = vmul.f32 %v9170_v56, %v8380_v61 }
 0x905   :  { %v3342_v33 = vmul.f32 %v9170_v56, %v8384_v15 }
 0x906   :  { %v3363_v35 = vpack.c.bf16 %v3347_v24, %v3347_v24  ;;  %v3361_v23 = vpack.c.bf16 %v3345_v9, %v3345_v9  ;;  %v3359_v31 = vpack.c.bf16 %v3343_v34, %v3343_v34  ;;  %v3360_v28 = vpack.c.bf16 %v3344_v8, %v3344_v8 }
 0x907   :  { %v3358_v55 = vpack.c.bf16 %v3342_v33, %v3342_v33 }
 0x908   :  { %v3515_v3 = vunpack.c.l.b16 %v3363_v35  ;;  %v3473_v11 = vunpack.c.l.b16 %v3361_v23  ;;  %v3431_v13 = vunpack.c.l.b16 %v3359_v31  ;;  %v3452_v12 = vunpack.c.l.b16 %v3360_v28 }
 0x909   :  { %v3337_v18 = vpop.f32.mrf.mxu0  ;;  %v3407_v36 = vunpack.c.l.b16 %v3358_v55 }
 0x90a   :  { %v9180_v25 = vadd.f32 %v7381_v42, %v3337_v18  ;;  %v3516_v29 = vpack.c.b16 %v3515_v3, %v3515_v3  ;;  %v3474_v40 = vpack.c.b16 %v3473_v11, %v3473_v11  ;;  %v3432_v52 = vpack.c.b16 %v3431_v13, %v3431_v13 }
 0x90b   :  { %v3453_v19 = vpack.c.b16 %v3452_v12, %v3452_v12  ;;  %v3348_v42 = vmul.f32 %v9170_v56, %v8395_v43  ;;  %v3408_v35 = vpack.c.b16 %v3407_v36, %v3407_v36  ;;  %v3374_v3 = vmul.f32 %v9170_v56, %v8501_v39 }
 0x90c   :  { %3517 = vrot.lane.b32.xlu2 %v3516_v29, %s7749_s22  ;;  %3475 = vrot.lane.b32.xlu1 %v3474_v40, %s7749_s22  ;;  %v3352_v5 = vmul.f32 %v9180_v25, %v8380_v61  ;;  %v3351_v46 = vmul.f32 %v9180_v25, %v8382_v48  ;;  %v3355_v45 = vmul.f32 %v9180_v25, %v8389_v51 }
 0x90d   :  { %3433 = vrot.lane.b32.xlu0 %v3432_v52, %s7749_s22  ;;  %v3353_v53 = vmul.f32 %v9180_v25, %v8391_v17  ;;  %v3357_v62 = vmul.f32 %v9180_v25, %v8411_v32  ;;  %v3354_v41 = vmul.f32 %v9180_v25, %v8409_v21  ;;  %v3364_v23 = vpack.c.bf16 %v3348_v42, %v3348_v42 }
 0x90e   :  { %v3368_v57 = vpack.c.bf16 %v3352_v5, %v3352_v5  ;;  %v3367_v16 = vpack.c.bf16 %v3351_v46, %v3351_v46  ;;  %v3371_v27 = vpack.c.bf16 %v3355_v45, %v3355_v45  ;;  %v3375_v11 = vmul.f32 %v9170_v56, %v8480_v63 }
 0x90f   :  { %v3369_v44 = vpack.c.bf16 %v3353_v53, %v3353_v53  ;;  %v3373_v9 = vpack.c.bf16 %v3357_v62, %v3357_v62  ;;  %v3370_v34 = vpack.c.bf16 %v3354_v41, %v3354_v41  ;;  %v3536_v13 = vunpack.c.l.b16 %v3364_v23  ;;  %v10865_v53 = vld [vmem:[#allocation17_spill] sm:$0xff] }
 0x910   :  { %v3623_v59 = vunpack.c.l.b16 %v3368_v57  ;;  %v3602_v2 = vunpack.c.l.b16 %v3367_v16  ;;  %v3686_v26 = vunpack.c.l.b16 %v3371_v27  ;;  %v3346_v18 = vmul.f32 %v9170_v56, %v8409_v21 }
 0x911   :  { %v3644_v10 = vunpack.c.l.b16 %v3369_v44  ;;  %v3728_v31 = vunpack.c.l.b16 %v3373_v9  ;;  %v3665_v8 = vunpack.c.l.b16 %v3370_v34  ;;  %v3390_v52 = vpack.c.bf16 %v3374_v3, %v3374_v3 }
 0x912   :  { %v3624_v6 = vpack.c.b16 %v3623_v59, %v3623_v59  ;;  %v3603_v0 = vpack.c.b16 %v3602_v2, %v3602_v2  ;;  %v3687_v7 = vpack.c.b16 %v3686_v26, %v3686_v26  ;;  %v3391_v28 = vpack.c.bf16 %v3375_v11, %v3375_v11 }
 0x913   :  { %v3645_v24 = vpack.c.b16 %v3644_v10, %v3644_v10  ;;  %v3729_v29 = vpack.c.b16 %v3728_v31, %v3728_v31  ;;  %v3666_v40 = vpack.c.b16 %v3665_v8, %v3665_v8  ;;  %v3537_v5 = vpack.c.b16 %v3536_v13, %v3536_v13  ;;  %v10866_v10 = vld [vmem:[#allocation22_spill] sm:$0xff] }
 0x914   :  { %3625 = vrot.lane.b32.xlu2 %v3624_v6, %s7749_s22  ;;  %3604 = vrot.lane.b32.xlu1 %v3603_v0, %s7749_s22  ;;  %v3362_v46 = vpack.c.bf16 %v3346_v18, %v3346_v18  ;;  %v3941_v57 = vunpack.c.l.b16 %v3390_v52  ;;  %v3965_v16 = vunpack.c.l.b16 %v3391_v28  ;;  %v3377_v45 = vmul.f32 %v9170_v56, %v8528_v49 }
 0x915   :  { %3454 = vrot.lane.b32.xlu0 %v3453_v19, %s7749_s22  ;;  %v3380_v12 = vmul.f32 %v9170_v56, %v10865_v53  ;;  %v3349_v59 = vmul.f32 %v9170_v56, %v8411_v32  ;;  %v3378_v62 = vmul.f32 %v9170_v56, %v10866_v10  ;;  %v3382_v41 = vmul.f32 %v9180_v25, %v8501_v39 }
 0x916   :  { %v3494_v33 = vunpack.c.l.b16 %v3362_v46  ;;  %v3942_v2 = vpack.c.b16 %v3941_v57, %v3941_v57  ;;  %v3966_v6 = vpack.c.b16 %v3965_v16, %v3965_v16  ;;  %v3393_v0 = vpack.c.bf16 %v3377_v45, %v3377_v45  ;;  %v10867_v16 = vld [vmem:[#allocation18_spill] sm:$0xff] }
 0x917   :  { %v3396_v27 = vpack.c.bf16 %v3380_v12, %v3380_v12  ;;  %v3365_v19 = vpack.c.bf16 %v3349_v59, %v3349_v59  ;;  %v3350_v42 = vmul.f32 %v9180_v25, %v8384_v15  ;;  %v3394_v9 = vpack.c.bf16 %v3378_v62, %v3378_v62 }
 0x918   :  { %v3495_v44 = vpack.c.b16 %v3494_v33, %v3494_v33  ;;  %v4013_v55 = vunpack.c.l.b16 %v3393_v0  ;;  %v3398_v34 = vpack.c.bf16 %v3382_v41, %v3382_v41  ;;  %v3381_v3 = vmul.f32 %v9170_v56, %v8538_v14 }
 0x919   :  { %v4085_v26 = vunpack.c.l.b16 %v3396_v27  ;;  %v3557_v36 = vunpack.c.l.b16 %v3365_v19  ;;  %v3366_v23 = vpack.c.bf16 %v3350_v42, %v3350_v42  ;;  %v4037_v31 = vunpack.c.l.b16 %v3394_v9 }
 0x91a   :  { %v4133_v8 = vunpack.c.l.b16 %v3398_v34  ;;  %v3356_v13 = vmul.f32 %v9180_v25, %v8395_v43  ;;  %v3385_v46 = vmul.f32 %v9180_v25, %v8528_v49  ;;  %v3376_v45 = vmul.f32 %v9170_v56, %v10867_v16 }
 0x91b   :  { %v3578_v11 = vunpack.c.l.b16 %v3366_v23  ;;  %v4038_v18 = vpack.c.b16 %v4037_v31, %v4037_v31  ;;  %v3379_v27 = vmul.f32 %v9170_v56, %v8515_v22  ;;  %v3383_v62 = vmul.f32 %v9180_v25, %v8480_v63 }
 0x91c   :  { %3688 = vrot.lane.b32.xlu2 %v3687_v7, %s7749_s22  ;;  %3646 = vrot.lane.b32.xlu1 %v3645_v24, %s7749_s22  ;;  %v4014_v7 = vpack.c.b16 %v4013_v55, %v4013_v55  ;;  %v4086_v24 = vpack.c.b16 %v4085_v26, %v4085_v26  ;;  %v3372_v28 = vpack.c.bf16 %v3356_v13, %v3356_v13 }
 0x91d   :  { %3409 = vrot.lane.b32.xlu0 %v3408_v35, %s7749_s22  ;;  %v3558_v35 = vpack.c.b16 %v3557_v36, %v3557_v36  ;;  %v3579_v52 = vpack.c.b16 %v3578_v11, %v3578_v11  ;;  %v3401_v33 = vpack.c.bf16 %v3385_v46, %v3385_v46  ;;  %v3395_v55 = vpack.c.bf16 %v3379_v27, %v3379_v27 }
 0x91e   :  { %v3707_v57 = vunpack.c.l.b16 %v3372_v28  ;;  %v3399_v36 = vpack.c.bf16 %v3383_v62, %v3383_v62 }
 0x91f   :  { %v4061_v26 = vunpack.c.l.b16 %v3395_v55  ;;  %v3341_v55 = vpack.c.bf16 %v9180_v25, %v9180_v25 }
 0x920   :  { %v3708_v59 = vpack.c.b16 %v3707_v57, %v3707_v57  ;;  %v4157_v42 = vunpack.c.l.b16 %v3399_v36 }
 0x921   :  { %v4062_v41 = vpack.c.b16 %v4061_v26, %v4061_v26 }
 0x924   :  { %3730 = vrot.lane.b32.xlu2 %v3729_v29, %s7749_s22  ;;  %3667 = vrot.lane.b32.xlu1 %v3666_v40, %s7749_s22  ;;  %v4134_v29 = vpack.c.b16 %v4133_v8, %v4133_v8  ;;  %v3397_v40 = vpack.c.bf16 %v3381_v3, %v3381_v3 }
 0x925   :  { %3538 = vrot.lane.b32.xlu0 %v3537_v5, %s7749_s22 }
 0x926   :  { %v4109_v5 = vunpack.c.l.b16 %v3397_v40 }
 0x928   :  { %v4110_v12 = vpack.c.b16 %v4109_v5, %v4109_v5 }
 0x92c   :  { %3943 = vrot.lane.b32.xlu2 %v3942_v2, %s7734_s3  ;;  %3967 = vrot.lane.b32.xlu1 %v3966_v6, %s7734_s3  ;;  %v3392_v2 = vpack.c.bf16 %v3376_v45, %v3376_v45  ;;  %v4205_v6 = vunpack.c.l.b16 %v3401_v33 }
 0x92d   :  { %3496 = vrot.lane.b32.xlu0 %v3495_v44, %s7749_s22 }
 0x92e   :  { %v3989_v0 = vunpack.c.l.b16 %v3392_v2  ;;  %v4206_v44 = vpack.c.b16 %v4205_v6, %v4205_v6 }
 0x930   :  { %v3990_v19 = vpack.c.b16 %v3989_v0, %v3989_v0 }
 0x934   :  { %4015 = vrot.lane.b32.xlu2 %v4014_v7, %s7734_s3  ;;  %4087 = vrot.lane.b32.xlu1 %v4086_v24, %s7734_s3  ;;  %v3384_v7 = vmul.f32 %v9180_v25, %v10867_v16  ;;  %v4158_v24 = vpack.c.b16 %v4157_v42, %v4157_v42 }
 0x935   :  { %3559 = vrot.lane.b32.xlu0 %v3558_v35, %s7749_s22 }
 0x936   :  { %v3400_v9 = vpack.c.bf16 %v3384_v7, %v3384_v7 }
 0x938   :  { %v4181_v34 = vunpack.c.l.b16 %v3400_v9 }
 0x93a   :  { %v4182_v35 = vpack.c.b16 %v4181_v34, %v4181_v34 }
 0x93c   :  { %4039 = vrot.lane.b32.xlu2 %v4038_v18, %s7734_s3  ;;  %4135 = vrot.lane.b32.xlu1 %v4134_v29, %s7734_s3  ;;  %v3340_v18 = vpack.c.bf16 %v9170_v56, %v9170_v56 }
 0x93d   :  { %3580 = vrot.lane.b32.xlu0 %v3579_v52, %s7749_s22 }
 0x944   :  { %4111 = vrot.lane.b32.xlu2 %v4110_v12, %s7734_s3 }
 0x945   :  { %3709 = vrot.lane.b32.xlu0 %v3708_v59, %s7749_s22 }
 0x94c   :  { %4207 = vrot.lane.b32.xlu2 %v4206_v44, %s7734_s3 }
 0x94d   :  { %3991 = vrot.lane.b32.xlu0 %v3990_v19, %s7734_s3 }
 0x955   :  { %4063 = vrot.lane.b32.xlu0 %v4062_v41, %s7734_s3 }
 0x95d   :  { %4159 = vrot.lane.b32.xlu0 %v4158_v24, %s7734_s3 }
 0x965   :  { %4183 = vrot.lane.b32.xlu0 %v4182_v35, %s7734_s3 }
 0x966   :  { %v3518_v23 = vpop.permute.xlu2 %3517 }
 0x967   :  { %v3520_v13 = vsel %vm1530_vm2, %v3518_v23, 0 }
 0x96e   :  { %v3626_v5 = vpop.permute.xlu2 %3625 }
 0x96f   :  { %v3628_v2 = vsel %vm1530_vm2, %v3626_v5, 0 }
 0x976   :  { %v3689_v56 = vpop.permute.xlu2 %3688 }
 0x977   :  { %v3691_v33 = vsel %vm1530_vm2, %v3689_v56, 0 }
 0x97e   :  { %v3476_v31 = vpop.permute.xlu1 %3475  ;;  %v3731_v44 = vpop.permute.xlu2 %3730 }
 0x97f   :  { %v3478_v8 = vsel %vm1530_vm2, %v3476_v31, 0  ;;  %v3434_v3 = vpop.permute.xlu0 %3433  ;;  %v3733_v24 = vsel %vm1530_vm2, %v3731_v44, 0 }
 0x980   :  { %v3436_v11 = vsel %vm1530_vm2, %v3434_v3, 0  ;;  %3487 = vmatpush.bf16.xpose.msra.mxu0 %v3478_v8 }
 0x981   :  { %3445 = vmatpush.bf16.xpose.msrb.mxu2 %v3436_v11 }
 0x986   :  { %v3605_v29 = vpop.permute.xlu1 %3604  ;;  %v3944_v42 = vpop.permute.xlu2 %3943 }
 0x987   :  { %v3607_v40 = vsel %vm1530_vm2, %v3605_v29, 0  ;;  %v3455_v52 = vpop.permute.xlu0 %3454  ;;  %7132 = vmatmul.msk.bf16.vlgmr.msra.gmra.mxu0 %vm1530_vm2, %v3340_v18  ;;  %v3949_v23 = vsel %vm2221_vm4, %v3944_v42, 0 }
 0x988   :  { %v3457_v28 = vsel %vm1530_vm2, %v3455_v52, 0  ;;  %7130 = vmatmul.msk.bf16.vlgmr.msrb.gmra.mxu2 %vm1530_vm2, %v3340_v18 }
 0x989   :  { %3529 = vmatpush.bf16.xpose.msra.mxu2 %v3520_v13  ;;  %3466 = vmatpush.bf16.xpose.msrb.mxu3 %v3457_v28 }
 0x98e   :  { %v3647_v45 = vpop.permute.xlu1 %3646  ;;  %v4016_v8 = vpop.permute.xlu2 %4015 }
 0x98f   :  { %v3410_v46 = vpop.permute.xlu0 %3409  ;;  %v3649_v36 = vsel %vm1530_vm2, %v3647_v45, 0  ;;  %v4021_v13 = vsel %vm2221_vm4, %v4016_v8, 0 }
 0x990   :  { %v3415_v57 = vsel %vm1530_vm2, %v3410_v46, 0  ;;  %7131 = vmatmul.msk.bf16.vlgmr.msrb.gmra.mxu3 %vm1530_vm2, %v3340_v18 }
 0x991   :  { %3616 = vmatpush.bf16.xpose.msrb.mxu2 %v3607_v40  ;;  %3424 = vmatpush.bf16.xpose.msrb.mxu1 %v3415_v57 }
 0x996   :  { %v3668_v6 = vpop.permute.xlu1 %3667  ;;  %v4040_v40 = vpop.permute.xlu2 %4039 }
 0x997   :  { %v3539_v12 = vpop.permute.xlu0 %3538  ;;  %v3670_v34 = vsel %vm1530_vm2, %v3668_v6, 0  ;;  %v4045_v28 = vsel %vm2221_vm4, %v4040_v40, 0 }
 0x998   :  { %v3541_v59 = vsel %vm1530_vm2, %v3539_v12, 0  ;;  %7129 = vmatmul.msk.bf16.vlgmr.msrb.gmra.mxu1 %vm1530_vm2, %v3340_v18  ;;  %7134 = vmatmul.msk.bf16.vlgmr.msra.gmra.mxu2 %vm1530_vm2, %v3340_v18 }
 0x999   :  { %3700 = vmatpush.bf16.xpose.msra.mxu2 %v3691_v33  ;;  %3550 = vmatpush.bf16.xpose.msra.mxu3 %v3541_v59 }
 0x99e   :  { %v3968_v19 = vpop.permute.xlu1 %3967  ;;  %v4112_v46 = vpop.permute.xlu2 %4111 }
 0x99f   :  { %v3497_v0 = vpop.permute.xlu0 %3496  ;;  %v3973_v62 = vsel %vm2221_vm4, %v3968_v19, 0  ;;  %v4117_v57 = vsel %vm2221_vm4, %v4112_v46, 0 }
 0x9a0   :  { %v3499_v27 = vsel %vm1530_vm2, %v3497_v0, 0  ;;  %7135 = vmatmul.msk.bf16.vlgmr.msra.gmra.mxu3 %vm1530_vm2, %v3340_v18 }
 0x9a1   :  { %3637 = vmatpush.bf16.xpose.msrb.mxu3 %v3628_v2  ;;  %3508 = vmatpush.bf16.xpose.msra.mxu1 %v3499_v27 }
 0x9a6   :  { %v4088_v3 = vpop.permute.xlu1 %4087 }
 0x9a7   :  { %v3560_v26 = vpop.permute.xlu0 %3559  ;;  %v4093_v29 = vsel %vm2221_vm4, %v4088_v3, 0 }
 0x9a8   :  { %v3562_v41 = vsel %vm1530_vm2, %v3560_v26, 0  ;;  %7133 = vmatmul.msk.bf16.vlgmr.msra.gmra.mxu1 %vm1530_vm2, %v3340_v18  ;;  %7138 = vmatmul.msk.bf16.vlgmr.msrb.gmra.mxu2 %vm1530_vm2, %v3341_v55 }
 0x9a9   :  { %3982 = vmatpush.bf16.msrb.mxu2 %v3973_v62  ;;  %3571 = vmatpush.bf16.xpose.msrb.mxu0 %v3562_v41 }
 0x9af   :  { %v3581_v7 = vpop.permute.xlu0 %3580 }
 0x9b0   :  { %v3586_v9 = vsel %vm1530_vm2, %v3581_v7, 0  ;;  %7136 = vmatmul.msk.bf16.vlgmr.msrb.gmra.mxu0 %vm1530_vm2, %v3340_v18  ;;  %7139 = vmatmul.msk.bf16.vlgmr.msrb.gmra.mxu3 %vm1530_vm2, %v3341_v55 }
 0x9b1   :  { %3658 = vmatpush.bf16.xpose.msra.mxu0 %v3649_v36  ;;  %3595 = vmatpush.bf16.xpose.msrb.mxu1 %v3586_v9 }
 0x9b7   :  { %v3710_v35 = vpop.permute.xlu0 %3709 }
 0x9b8   :  { %v3712_v31 = vsel %vm1530_vm2, %v3710_v35, 0  ;;  %7137 = vmatmul.msk.bf16.vlgmr.msrb.gmra.mxu1 %vm1530_vm2, %v3341_v55  ;;  %7142 = vmatmul.msk.bf16.vlgmr.msra.gmra.mxu2 %vm1530_vm2, %v3341_v55 }
 0x9b9   :  { %3742 = vmatpush.bf16.xpose.msrb.mxu0 %v3733_v24  ;;  %3679 = vmatpush.bf16.xpose.msra.mxu1 %v3670_v34 }
 0x9ba   :  { %3721 = vmatpush.bf16.xpose.msra.mxu3 %v3712_v31 }
 0x9bf   :  { %v3992_v11 = vpop.permute.xlu0 %3991 }
 0x9c0   :  { %v3997_v18 = vsel %vm2221_vm4, %v3992_v11, 0  ;;  %7140 = vmatmul.msk.bf16.vlgmr.msra.gmra.mxu0 %vm1530_vm2, %v3341_v55 }
 0x9c1   :  { %3958 = vmatpush.bf16.msrb.mxu1 %v3949_v23  ;;  %7143 = vmatmul.msk.bf16.vlgmr.msra.gmra.mxu3 %vm1530_vm2, %v3341_v55 }
 0x9c2   :  { %4030 = vmatpush.bf16.msra.mxu0 %v4021_v13  ;;  %4006 = vmatpush.bf16.msrb.mxu3 %v3997_v18 }
 0x9c6   :  { %4102 = vmatpush.bf16.msra.mxu3 %v4093_v29 }
 0x9c7   :  { %v4064_v52 = vpop.permute.xlu0 %4063 }
 0x9c8   :  { %v4069_v5 = vsel %vm2221_vm4, %v4064_v52, 0  ;;  %7141 = vmatmul.msk.bf16.vlgmr.msra.gmra.mxu1 %vm1530_vm2, %v3341_v55 }
 0x9c9   :  { %4054 = vmatpush.bf16.msra.mxu1 %v4045_v28  ;;  %4078 = vmatpush.bf16.msra.mxu2 %v4069_v5 }
 0x9d0   :  { %7144 = vmatmul.msk.bf16.vlgmr.msrb.gmra.mxu0 %vm1530_vm2, %v3341_v55 }
 0x9d1   :  { %4126 = vmatpush.bf16.msrb.mxu0 %v4117_v57 }
 0xa04   :  { %v9302_v45 = vpop.f32.mrf.mxu0 }
 0xa05   :  { %v3757_v56 = vsel %vm2020_vm3, %v9302_v45, -inf }
 0xa06   :  { %3758 = vmax.xlane.f32.xlu0 %v3757_v56 }
 0xa0b   :  { %v9306_v12 = vpop.f32.mrf.mxu2 }
 0xa0c   :  { %v3491_v33 = vpop.f32.mrf.mxu0  ;;  %v3751_v59 = vsel %vm2020_vm3, %v9306_v12, -inf }
 0xa0e   :  { %3752 = vmax.xlane.f32.xlu0 %v3751_v59 }
 0xa13   :  { %v3449_v2 = vpop.f32.mrf.mxu2  ;;  %v9310_v6 = vpop.f32.mrf.mxu3 }
 0xa14   :  { %v3754_v0 = vsel %vm2020_vm3, %v9310_v6, -inf }
 0xa15   :  { %3755 = vmax.xlane.f32.xlu1 %v3754_v0  ;;  %v9314_v27 = vpop.f32.mrf.mxu1 }
 0xa16   :  { %v3748_v44 = vsel %vm2020_vm3, %v9314_v27, -inf }
 0xa17   :  { %3749 = vmax.xlane.f32.xlu2 %v3748_v44 }
 0xa1b   :  { %v3470_v19 = vpop.f32.mrf.mxu3  ;;  %v9318_v55 = vpop.f32.mrf.mxu2 }
 0xa1c   :  { %v3763_v18 = vsel %vm2020_vm3, %v9318_v55, -inf }
 0xa1d   :  { %v3428_v26 = vpop.f32.mrf.mxu1 }
 0xa23   :  { %v3533_v62 = vpop.f32.mrf.mxu2  ;;  %v9320_v41 = vpop.f32.mrf.mxu3 }
 0xa24   :  { %v3766_v36 = vsel %vm2020_vm3, %v9320_v41, -inf }
 0xa25   :  { %3767 = vmax.xlane.f32.xlu2 %v3766_v36  ;;  %v9324_v42 = vpop.f32.mrf.mxu1 }
 0xa26   :  { %v3760_v7 = vsel %vm2020_vm3, %v9324_v42, -inf }
 0xa27   :  { %3761 = vmax.xlane.f32.xlu0 %v3760_v7 }
 0xa2b   :  { %v3554_v24 = vpop.f32.mrf.mxu3  ;;  %v9328_v9 = vpop.f32.mrf.mxu2 }
 0xa2c   :  { %v3775_v2 = vsel %vm2020_vm3, %v9328_v9, -inf }
 0xa2d   :  { %v3512_v34 = vpop.f32.mrf.mxu1  ;;  %v9330_v35 = vpop.f32.mrf.mxu0 }
 0xa2e   :  { %v3769_v23 = vsel %vm2020_vm3, %v9330_v35, -inf  ;;  %v9366_v34 = vpop.permute.xlu0 %4159 }
 0xa2f   :  { %3770 = vmax.xlane.f32.xlu1 %v3769_v23 }
 0xa33   :  { %v3620_v31 = vpop.f32.mrf.mxu2  ;;  %v9334_v8 = vpop.f32.mrf.mxu3 }
 0xa34   :  { %v3778_v3 = vsel %vm2020_vm3, %v9334_v8, -inf }
 0xa35   :  { %v3575_v11 = vpop.f32.mrf.mxu0  ;;  %3779 = vmax.xlane.f32.xlu0 %v3778_v3  ;;  %v9338_v13 = vpop.f32.mrf.mxu1 }
 0xa36   :  { %v3772_v46 = vsel %vm2020_vm3, %v9338_v13, -inf  ;;  %v9368_v23 = vpop.permute.xlu0 %4183  ;;  %v9370_v3 = vpop.permute.xlu1 %4135 }
 0xa37   :  { %3764 = vmax.xlane.f32.xlu1 %v3763_v18  ;;  %v9372_v18 = vpop.permute.xlu2 %4207 }
 0xa3b   :  { %v3641_v29 = vpop.f32.mrf.mxu3  ;;  %v9342_v40 = vpop.f32.mrf.mxu2 }
 0xa3c   :  { %v3787_v24 = vsel %vm2020_vm3, %v9342_v40, -inf }
 0xa3d   :  { %v3599_v52 = vpop.f32.mrf.mxu1  ;;  %v9344_v28 = vpop.f32.mrf.mxu0 }
 0xa3e   :  { %v3781_v5 = vsel %vm2020_vm3, %v9344_v28, -inf }
 0xa3f   :  { %3782 = vmax.xlane.f32.xlu2 %v3781_v5  ;;  %3773 = vmax.xlane.f32.xlu1 %v3772_v46 }
 0xa43   :  { %v3704_v57 = vpop.f32.mrf.mxu2 }
 0xa44   :  { %v9350_v56 = vpop.f32.mrf.mxu3 }
 0xa45   :  { %v3662_v33 = vpop.f32.mrf.mxu0  ;;  %v9352_v59 = vpop.f32.mrf.mxu1  ;;  %v3790_v0 = vsel %vm2020_vm3, %v9350_v56, -inf }
 0xa46   :  { %v3784_v36 = vsel %vm2020_vm3, %v9352_v59, -inf }
 0xa47   :  { %3776 = vmax.xlane.f32.xlu2 %v3775_v2  ;;  %3791 = vmax.xlane.f32.xlu1 %v3790_v0 }
 0xa4c   :  { %v3725_v44 = vpop.f32.mrf.mxu3 }
 0xa4d   :  { %v3683_v19 = vpop.f32.mrf.mxu1  ;;  %v9358_v26 = vpop.f32.mrf.mxu0 }
 0xa4e   :  { %v3793_v62 = vsel %vm2020_vm3, %v9358_v26, -inf }
 0xa4f   :  { %3794 = vmax.xlane.f32.xlu0 %v3793_v62  ;;  %3785 = vmax.xlane.f32.xlu2 %v3784_v36 }
 0xa55   :  { %v3746_v7 = vpop.f32.mrf.mxu0 }
 0xa57   :  { %3788 = vmax.xlane.f32.xlu0 %v3787_v24 }
 0xa79   :  { %v3759_v31 = vpop.xlane.xlu0 %3758 }
 0xa7a   :  { %v3799_v44 = vsub.f32 %v9302_v45, %v3759_v31 }
 0xa81   :  { %v3753_v11 = vpop.xlane.xlu0 %3752 }
 0xa82   :  { %v3797_v29 = vsub.f32 %v9306_v12, %v3753_v11  ;;  %v3818_v12 = vmul.f32 1.442695, %v3799_v44 }
 0xa84   :  { %v3814_v52 = vmul.f32 1.442695, %v3797_v29 }
 0xa86   :  { %7465 = vpow2.f32 %v3814_v52 }
 0xa88   :  { %v3756_v5 = vpop.xlane.xlu1 %3755 }
 0xa89   :  { %v3798_v46 = vsub.f32 %v9310_v6, %v3756_v5 }
 0xa8a   :  { %v3750_v57 = vpop.xlane.xlu2 %3749 }
 0xa8b   :  { %v3816_v33 = vmul.f32 1.442695, %v3798_v46  ;;  %v3796_v2 = vsub.f32 %v9314_v27, %v3750_v57 }
 0xa8c   :  { %v9377_v0 = vpop.eup %7465 }
 0xa8d   :  { %7467 = vpow2.f32 %v3816_v33  ;;  %v3812_v19 = vmul.f32 1.442695, %v3796_v2  ;;  %v3847_v62 = vsel %vm2020_vm3, %v9377_v0, 0.0 }
 0xa8e   :  { %3848 = vadd.xlane.f32.xlu0 %v3847_v62 }
 0xa8f   :  { %7469 = vpow2.f32 %v3812_v19 }
 0xa90   :  { %7471 = vpow2.f32 %v3818_v12 }
 0xa93   :  { %v9382_v36 = vpop.eup %7467 }
 0xa94   :  { %v3850_v6 = vsel %vm2020_vm3, %v9382_v36, 0.0 }
 0xa95   :  { %v9386_v7 = vpop.eup %7469  ;;  %3851 = vadd.xlane.f32.xlu1 %v3850_v6 }
 0xa96   :  { %v3844_v45 = vsel %vm2020_vm3, %v9386_v7, 0.0  ;;  %v9390_v24 = vpop.eup %7471 }
 0xa97   :  { %3845 = vadd.xlane.f32.xlu2 %v3844_v45  ;;  %v3853_v29 = vsel %vm2020_vm3, %v9390_v24, 0.0 }
 0xa98   :  { %v3768_v52 = vpop.xlane.xlu2 %3767 }
 0xa99   :  { %v3802_v33 = vsub.f32 %v9320_v41, %v3768_v52 }
 0xa9a   :  { %v3762_v27 = vpop.xlane.xlu0 %3761 }
 0xa9b   :  { %v3800_v31 = vsub.f32 %v9324_v42, %v3762_v27  ;;  %v3824_v42 = vmul.f32 1.442695, %v3802_v33 }
 0xa9d   :  { %v3820_v11 = vmul.f32 1.442695, %v3800_v31 }
 0xa9f   :  { %7473 = vpow2.f32 %v3820_v11  ;;  %3854 = vadd.xlane.f32.xlu2 %v3853_v29 }
 0xaa2   :  { %v3771_v5 = vpop.xlane.xlu1 %3770 }
 0xaa3   :  { %v3803_v46 = vsub.f32 %v9330_v35, %v3771_v5 }
 0xaa5   :  { %v9396_v57 = vpop.eup %7473  ;;  %v3826_v2 = vmul.f32 1.442695, %v3803_v46 }
 0xaa6   :  { %v3856_v44 = vsel %vm2020_vm3, %v9396_v57, 0.0 }
 0xaa7   :  { %7475 = vpow2.f32 %v3826_v2  ;;  %3857 = vadd.xlane.f32.xlu2 %v3856_v44 }
 0xaa8   :  { %7477 = vpow2.f32 %v3824_v42  ;;  %v3780_v41 = vpop.xlane.xlu0 %3779 }
 0xaaa   :  { %v3765_v19 = vpop.xlane.xlu1 %3764 }
 0xaab   :  { %v3801_v62 = vsub.f32 %v9318_v55, %v3765_v19  ;;  %v3806_v55 = vsub.f32 %v9334_v8, %v3780_v41 }
 0xaad   :  { %v9402_v12 = vpop.eup %7475  ;;  %v3822_v6 = vmul.f32 1.442695, %v3801_v62  ;;  %v3832_v44 = vmul.f32 1.442695, %v3806_v55 }
 0xaae   :  { %v3865_v35 = vsel %vm2020_vm3, %v9402_v12, 0.0  ;;  %v9406_v31 = vpop.eup %7477 }
 0xaaf   :  { %7479 = vpow2.f32 %v3822_v6  ;;  %3866 = vadd.xlane.f32.xlu1 %v3865_v35  ;;  %v3862_v2 = vsel %vm2020_vm3, %v9406_v31, 0.0 }
 0xab2   :  { %v3783_v45 = vpop.xlane.xlu2 %3782  ;;  %v3774_v27 = vpop.xlane.xlu1 %3773 }
 0xab3   :  { %v3807_v11 = vsub.f32 %v9344_v28, %v3783_v45  ;;  %v3804_v29 = vsub.f32 %v9338_v13, %v3774_v27 }
 0xab5   :  { %v9410_v52 = vpop.eup %7479  ;;  %v3834_v5 = vmul.f32 1.442695, %v3807_v11  ;;  %v3828_v46 = vmul.f32 1.442695, %v3804_v29 }
 0xab6   :  { %v3859_v33 = vsel %vm2020_vm3, %v9410_v52, 0.0 }
 0xab7   :  { %7481 = vpow2.f32 %v3834_v5  ;;  %3860 = vadd.xlane.f32.xlu0 %v3859_v33  ;;  %3863 = vadd.xlane.f32.xlu1 %v3862_v2  ;;  %v3388_v2 = vmul.f32 %v9180_v25, %v10865_v53 }
 0xab8   :  { %7483 = vpow2.f32 %v3828_v46 }
 0xab9   :  { %7485 = vpow2.f32 %v3832_v44 }
 0xaba   :  { %v3777_v28 = vpop.xlane.xlu2 %3776 }
 0xabb   :  { %v3805_v13 = vsub.f32 %v9328_v9, %v3777_v28  ;;  %v3404_v28 = vpack.c.bf16 %v3388_v2, %v3388_v2 }
 0xabd   :  { %v9418_v42 = vpop.eup %7481  ;;  %v3830_v8 = vmul.f32 1.442695, %v3805_v13 }
 0xabe   :  { %v9420_v19 = vpop.eup %7483  ;;  %v3877_v62 = vsel %vm2020_vm3, %v9418_v42, 0.0 }
 0xabf   :  { %7487 = vpow2.f32 %v3830_v8  ;;  %3878 = vadd.xlane.f32.xlu1 %v3877_v62  ;;  %v3868_v6 = vsel %vm2020_vm3, %v9420_v19, 0.0  ;;  %v9426_v45 = vpop.eup %7485  ;;  %v4277_v8 = vunpack.c.l.b16 %v3404_v28 }
 0xac0   :  { %3869 = vadd.xlane.f32.xlu2 %v3868_v6  ;;  %v3874_v55 = vsel %vm2020_vm3, %v9426_v45, 0.0  ;;  %v3386_v6 = vmul.f32 %v9180_v25, %v10866_v10 }
 0xac2   :  { %v3795_v35 = vpop.xlane.xlu0 %3794  ;;  %v3786_v41 = vpop.xlane.xlu2 %3785 }
 0xac3   :  { %v3808_v9 = vsub.f32 %v9352_v59, %v3786_v41  ;;  %v3402_v41 = vpack.c.bf16 %v3386_v6, %v3386_v6 }
 0xac5   :  { %v9429_v27 = vpop.eup %7487  ;;  %v3836_v11 = vmul.f32 1.442695, %v3808_v9  ;;  %v3387_v9 = vmul.f32 %v9180_v25, %v8515_v22 }
 0xac6   :  { %v3871_v29 = vsel %vm2020_vm3, %v9429_v27, 0.0 }
 0xac7   :  { %3872 = vadd.xlane.f32.xlu0 %v3871_v29  ;;  %3875 = vadd.xlane.f32.xlu1 %v3874_v55  ;;  %7489 = vpow2.f32 %v3836_v11  ;;  %v4229_v11 = vunpack.c.l.b16 %v3402_v41  ;;  %v3403_v29 = vpack.c.bf16 %v3387_v9, %v3387_v9 }
 0xac9   :  { %v4230_v55 = vpack.c.b16 %v4229_v11, %v4229_v11 }
 0xaca   :  { %v3789_v5 = vpop.xlane.xlu0 %3788 }
 0xacb   :  { %v3809_v46 = vsub.f32 %v9342_v40, %v3789_v5  ;;  %v4278_v40 = vpack.c.b16 %v4277_v8, %v4277_v8  ;;  %v4253_v5 = vunpack.c.l.b16 %v3403_v29 }
 0xacd   :  { %v3838_v33 = vmul.f32 1.442695, %v3809_v46  ;;  %v9438_v59 = vpop.eup %7489  ;;  %v4254_v46 = vpack.c.b16 %v4253_v5, %v4253_v5  ;;  %v4165_v5 = vsel %vm2221_vm4, %v9366_v34, 0 }
 0xace   :  { %v3880_v44 = vsel %vm2020_vm3, %v9438_v59, 0.0 }
 0xacf   :  { %7491 = vpow2.f32 %v3838_v33  ;;  %3881 = vadd.xlane.f32.xlu1 %v3880_v44  ;;  %v3792_v33 = vpop.xlane.xlu1 %3791 }
 0xad0   :  { %v3810_v2 = vsub.f32 %v9350_v56, %v3792_v33 }
 0xad2   :  { %v3840_v44 = vmul.f32 1.442695, %v3810_v2 }
 0xad4   :  { %7493 = vpow2.f32 %v3840_v44 }
 0xad5   :  { %v9442_v13 = vpop.eup %7491 }
 0xad6   :  { %v3883_v62 = vsel %vm2020_vm3, %v9442_v13, 0.0 }
 0xad7   :  { %3884 = vadd.xlane.f32.xlu2 %v3883_v62 }
 0xada   :  { %v9454_v28 = vpop.eup %7493 }
 0xadb   :  { %4279 = vrot.lane.b32.xlu0 %v4278_v40, %s7734_s3  ;;  %v3886_v62 = vsel %vm2020_vm3, %v9454_v28, 0.0  ;;  %v3811_v40 = vsub.f32 %v9358_v26, %v3795_v35 }
 0xadd   :  { %v3842_v11 = vmul.f32 1.442695, %v3811_v40  ;;  %v4141_v40 = vsel %vm2221_vm4, %v9370_v3, 0 }
 0xae8   :  { %4231 = vrot.lane.b32.xlu1 %v4230_v55, %s7734_s3  ;;  %v3389_v55 = vmul.f32 %v9180_v25, %v8538_v14  ;;  %v4189_v25 = vsel %vm2221_vm4, %v9368_v23, 0 }
 0xaea   :  { %v3405_v35 = vpack.c.bf16 %v3389_v55, %v3389_v55 }
 0xaef   :  { %4255 = vrot.lane.b32.xlu2 %v4254_v46, %s7734_s3 }
 0xb01   :  { %v3849_v8 = vpop.xlane.xlu0 %3848 }
 0xb02   :  { %7495 = vrcp.f32 %v3849_v8  ;;  %v4301_v8 = vunpack.c.l.b16 %v3405_v35 }
 0xb05   :  { %3887 = vadd.xlane.f32.xlu0 %v3886_v62 }
 0xb08   :  { %v7496_v6 = vpop.eup %7495  ;;  %v3852_v41 = vpop.xlane.xlu1 %3851 }
 0xb09   :  { %v3909_v9 = vmul.f32 %v7496_v6, %v9377_v0  ;;  %7497 = vrcp.f32 %v3852_v41 }
 0xb0a   :  { %v3846_v29 = vpop.xlane.xlu2 %3845 }
 0xb0b   :  { %v3925_v56 = vpack.c.bf16 %v3909_v9, %v3909_v9  ;;  %7499 = vrcp.f32 %v3846_v29 }
 0xb0c   :  { %7501 = vpow2.f32 %v3842_v11  ;;  %v4213_v11 = vsel %vm2221_vm4, %v9372_v18, 0 }
 0xb0d   :  { %7146 = vmatmul.msk.bf16.vlgmr.msrb.gmra.mxu2 %vm2020_vm3, %v3925_v56 }
 0xb0e   :  { %4174 = vmatpush.bf16.msrb.mxu2 %v4165_v5 }
 0xb0f   :  { %v7498_v26 = vpop.eup %7497 }
 0xb10   :  { %v3910_v46 = vmul.f32 %v7498_v26, %v9382_v36 }
 0xb11   :  { %v7500_v0 = vpop.eup %7499 }
 0xb12   :  { %v3926_v33 = vpack.c.bf16 %v3910_v46, %v3910_v46  ;;  %v3908_v2 = vmul.f32 %v7500_v0, %v9386_v7  ;;  %v3855_v44 = vpop.xlane.xlu2 %3854  ;;  %v9467_v62 = vpop.eup %7501  ;;  %v4302_v7 = vpack.c.b16 %v4301_v8, %v4301_v8 }
 0xb13   :  { %7503 = vrcp.f32 %v3855_v44  ;;  %v3889_v36 = vsel %vm2020_vm3, %v9467_v62, 0.0 }
 0xb14   :  { %v3924_v34 = vpack.c.bf16 %v3908_v2, %v3908_v2  ;;  %7147 = vmatmul.msk.bf16.vlgmr.msrb.gmra.mxu3 %vm2020_vm3, %v3926_v33 }
 0xb15   :  { %4198 = vmatpush.bf16.msrb.mxu3 %v4189_v25 }
 0xb16   :  { %7145 = vmatmul.msk.bf16.vlgmr.msrb.gmra.mxu1 %vm2020_vm3, %v3924_v34 }
 0xb17   :  { %4150 = vmatpush.bf16.msrb.mxu1 %v4141_v40 }
 0xb18   :  { %3890 = vadd.xlane.f32.xlu2 %v3889_v36 }
 0xb19   :  { %v7504_v6 = vpop.eup %7503  ;;  %4303 = vrot.lane.b32.xlu0 %v4302_v7, %s7734_s3 }
 0xb1a   :  { %v3911_v23 = vmul.f32 %v7504_v6, %v9390_v24  ;;  %v3858_v41 = vpop.xlane.xlu2 %3857 }
 0xb1b   :  { %7505 = vrcp.f32 %v3858_v41 }
 0xb1c   :  { %v3927_v9 = vpack.c.bf16 %v3911_v23, %v3911_v23 }
 0xb1e   :  { %7148 = vmatmul.msk.bf16.vlgmr.msra.gmra.mxu0 %vm2020_vm3, %v3927_v9 }
 0xb1f   :  { %4222 = vmatpush.bf16.msra.mxu0 %v4213_v11 }
 0xb21   :  { %v7506_v3 = vpop.eup %7505 }
 0xb22   :  { %v3912_v29 = vmul.f32 %v7506_v3, %v9396_v57  ;;  %v3867_v56 = vpop.xlane.xlu1 %3866 }
 0xb23   :  { %7507 = vrcp.f32 %v3867_v56 }
 0xb24   :  { %v3928_v55 = vpack.c.bf16 %v3912_v29, %v3912_v29 }
 0xb26   :  { %7149 = vmatmul.msk.bf16.vlgmr.msra.gmra.mxu1 %vm2020_vm3, %v3928_v55 }
 0xb29   :  { %v7508_v5 = vpop.eup %7507 }
 0xb2a   :  { %v3915_v24 = vmul.f32 %v7508_v5, %v9402_v12  ;;  %v3861_v26 = vpop.xlane.xlu0 %3860  ;;  %v3864_v35 = vpop.xlane.xlu1 %3863 }
 0xb2b   :  { %7509 = vrcp.f32 %v3861_v26 }
 0xb2c   :  { %v3931_v46 = vpack.c.bf16 %v3915_v24, %v3915_v24  ;;  %7511 = vrcp.f32 %v3864_v35 }
 0xb2e   :  { %7152 = vmatmul.msk.bf16.vlgmr.msrb.gmra.mxu0 %vm2020_vm3, %v3931_v46 }
 0xb31   :  { %v7510_v18 = vpop.eup %7509 }
 0xb32   :  { %v7512_v0 = vpop.eup %7511  ;;  %v3913_v33 = vmul.f32 %v7510_v18, %v9410_v52  ;;  %v3879_v57 = vpop.xlane.xlu1 %3878 }
 0xb33   :  { %v3914_v2 = vmul.f32 %v7512_v0, %v9406_v31  ;;  %7513 = vrcp.f32 %v3879_v57  ;;  %v3870_v44 = vpop.xlane.xlu2 %3869 }
 0xb34   :  { %v3929_v8 = vpack.c.bf16 %v3913_v33, %v3913_v33  ;;  %7515 = vrcp.f32 %v3870_v44 }
 0xb35   :  { %v3930_v25 = vpack.c.bf16 %v3914_v2, %v3914_v2 }
 0xb36   :  { %7150 = vmatmul.msk.bf16.vlgmr.msra.gmra.mxu2 %vm2020_vm3, %v3929_v8 }
 0xb37   :  { %7151 = vmatmul.msk.bf16.vlgmr.msra.gmra.mxu3 %vm2020_vm3, %v3930_v25 }
 0xb39   :  { %v7514_v12 = vpop.eup %7513 }
 0xb3a   :  { %v7516_v34 = vpop.eup %7515  ;;  %v3919_v40 = vmul.f32 %v7514_v12, %v9418_v42  ;;  %v3873_v36 = vpop.xlane.xlu0 %3872 }
 0xb3b   :  { %v3876_v7 = vpop.xlane.xlu1 %3875  ;;  %v3916_v52 = vmul.f32 %v7516_v34, %v9420_v19  ;;  %7517 = vrcp.f32 %v3873_v36 }
 0xb3c   :  { %v3935_v6 = vpack.c.bf16 %v3919_v40, %v3919_v40  ;;  %7519 = vrcp.f32 %v3876_v7 }
 0xb3d   :  { %v3932_v31 = vpack.c.bf16 %v3916_v52, %v3916_v52 }
 0xb3e   :  { %7156 = vmatmul.msk.bf16.vlgmr.msra.gmra.mxu0 %vm2020_vm3, %v3935_v6 }
 0xb3f   :  { %7153 = vmatmul.msk.bf16.vlgmr.msrb.gmra.mxu1 %vm2020_vm3, %v3932_v31 }
 0xb41   :  { %v7518_v23 = vpop.eup %7517 }
 0xb42   :  { %v7520_v41 = vpop.eup %7519  ;;  %v3917_v9 = vmul.f32 %v7518_v23, %v9429_v27 }
 0xb43   :  { %v3918_v11 = vmul.f32 %v7520_v41, %v9426_v45  ;;  %v3882_v56 = vpop.xlane.xlu1 %3881 }
 0xb44   :  { %v3933_v3 = vpack.c.bf16 %v3917_v9, %v3917_v9 }
 0xb45   :  { %v3934_v42 = vpack.c.bf16 %v3918_v11, %v3918_v11 }
 0xb46   :  { %7154 = vmatmul.msk.bf16.vlgmr.msrb.gmra.mxu2 %vm2020_vm3, %v3933_v3 }
 0xb47   :  { %7155 = vmatmul.msk.bf16.vlgmr.msrb.gmra.mxu3 %vm2020_vm3, %v3934_v42 }
 0xb4a   :  { %v3885_v19 = vpop.xlane.xlu2 %3884 }
 0xb4b   :  { %7521 = vrcp.f32 %v3885_v19 }
 0xb4c   :  { %7523 = vrcp.f32 %v3882_v56 }
 0xb4d   :  { %v4280_v29 = vpop.permute.xlu0 %4279 }
 0xb4e   :  { %v4285_v55 = vsel %vm2221_vm4, %v4280_v29, 0 }
 0xb4f   :  { %4294 = vmatpush.bf16.msra.mxu3 %v4285_v55 }
 0xb51   :  { %v7522_v5 = vpop.eup %7521 }
 0xb52   :  { %v3921_v24 = vmul.f32 %v7522_v5, %v9442_v13  ;;  %v4256_v27 = vpop.permute.xlu2 %4255  ;;  %v7524_v35 = vpop.eup %7523 }
 0xb53   :  { %v4261_v45 = vsel %vm2221_vm4, %v4256_v27, 0  ;;  %v3920_v46 = vmul.f32 %v7524_v35, %v9438_v59 }
 0xb54   :  { %v3937_v26 = vpack.c.bf16 %v3921_v24, %v3921_v24  ;;  %4270 = vmatpush.bf16.msra.mxu2 %v4261_v45 }
 0xb55   :  { %v3936_v33 = vpack.c.bf16 %v3920_v46, %v3920_v46 }
 0xb57   :  { %7158 = vmatmul.msk.bf16.vlgmr.msra.gmra.mxu2 %vm2020_vm3, %v3937_v26 }
 0xb5a   :  { %v4232_v18 = vpop.permute.xlu1 %4231 }
 0xb5b   :  { %v4237_v0 = vsel %vm2221_vm4, %v4232_v18, 0 }
 0xb5c   :  { %4246 = vmatpush.bf16.msra.mxu1 %v4237_v0 }
 0xb5f   :  { %7157 = vmatmul.msk.bf16.vlgmr.msra.gmra.mxu1 %vm2020_vm3, %v3936_v33 }
 0xb78   :  { %v3888_v57 = vpop.xlane.xlu0 %3887 }
 0xb79   :  { %7525 = vrcp.f32 %v3888_v57 }
 0xb7f   :  { %v7526_v13 = vpop.eup %7525 }
 0xb80   :  { %v3922_v2 = vmul.f32 %v7526_v13, %v9454_v28 }
 0xb82   :  { %v3938_v44 = vpack.c.bf16 %v3922_v2, %v3922_v2 }
 0xb84   :  { %7159 = vmatmul.msk.bf16.vlgmr.msra.gmra.mxu3 %vm2020_vm3, %v3938_v44 }
 0xb8b   :  { %v4304_v8 = vpop.permute.xlu0 %4303  ;;  %v3891_v25 = vpop.xlane.xlu2 %3890 }
 0xb8c   :  { %v4309_v12 = vsel %vm2221_vm4, %v4304_v8, 0  ;;  %7527 = vrcp.f32 %v3891_v25 }
 0xb8d   :  { %4318 = vmatpush.bf16.msrb.mxu0 %v4309_v12 }
 0xb90   :  { %v3984_v59 = vpop.f32.mrf.mxu2 }
 0xb92   :  { %v7528_v34 = vpop.eup %7527 }
 0xb93   :  { %v3923_v40 = vmul.f32 %v7528_v34, %v9467_v62  ;;  %v3960_v36 = vpop.f32.mrf.mxu1 }
 0xb94   :  { %v4324_v7 = vadd.f32 %v3984_v59, %v3960_v36 }
 0xb95   :  { %v3939_v52 = vpack.c.bf16 %v3923_v40, %v3923_v40 }
 0xb97   :  { %v4008_v6 = vpop.f32.mrf.mxu3  ;;  %7160 = vmatmul.msk.bf16.vlgmr.msrb.gmra.mxu0 %vm2020_vm3, %v3939_v52  ;;  %v7331_v52 = vld [vmem:[%s10807_s11 + $0x10] sm:$0xff] }
 0xb98   :  { %v4326_v28 = vadd.f32 %v4324_v7, %v4008_v6  ;;  %v3986_v31 = vpop.f32.mrf.mxu2  ;;  %v7332_v7 = vld [vmem:[%s10807_s11 + $0x18] sm:$0xff] }
 0xb99   :  { %4370 = vmatpush.bf16.msrb.mxu1 %v7332_v7 }
 0xb9b   :  { %v3962_v23 = vpop.f32.mrf.mxu1  ;;  %v4032_v41 = vpop.f32.mrf.mxu0 }
 0xb9c   :  { %v4328_v9 = vadd.f32 %v4326_v28, %v4032_v41 }
 0xb9d   :  { %4371 = vmatpush.bf16.msrb.mxu1 %v7331_v52 }
 0xb9f   :  { %v4010_v11 = vpop.f32.mrf.mxu3 }
 0xba3   :  { %v4034_v3 = vpop.f32.mrf.mxu0  ;;  %v4056_v42 = vpop.f32.mrf.mxu1 }
 0xba4   :  { %v4330_v19 = vadd.f32 %v4328_v9, %v4056_v42 }
 0xbab   :  { %v4058_v29 = vpop.f32.mrf.mxu1  ;;  %v4128_v56 = vpop.f32.mrf.mxu0 }
 0xbb3   :  { %v4130_v55 = vpop.f32.mrf.mxu0 }
 0xbb9   :  { %v4080_v5 = vpop.f32.mrf.mxu2 }
 0xbba   :  { %v4332_v62 = vadd.f32 %v4330_v19, %v4080_v5  ;;  %v4104_v24 = vpop.f32.mrf.mxu3  ;;  %v7382_v19 = vld [vmem:[%s10808_s12 + $0x1] ss:$0 sm:$0xff] }
 0xbbb   :  { %v4224_v27 = vpop.f32.mrf.mxu0 }
 0xbbc   :  { %v4334_v45 = vadd.f32 %v4332_v62, %v4104_v24  ;;  %v4152_v26 = vpop.f32.mrf.mxu1 }
 0xbbe   :  { %v4336_v35 = vadd.f32 %v4334_v45, %v4128_v56 }
 0xbc1   :  { %v4082_v46 = vpop.f32.mrf.mxu2 }
 0xbc2   :  { %v4106_v18 = vpop.f32.mrf.mxu3 }
 0xbc3   :  { %v4226_v0 = vpop.f32.mrf.mxu0 }
 0xbc4   :  { %v4154_v33 = vpop.f32.mrf.mxu1 }
 0xbc9   :  { %v4176_v57 = vpop.f32.mrf.mxu2 }
 0xbca   :  { %v4325_v13 = vadd.f32 %v4176_v57, %v4152_v26  ;;  %v4200_v2 = vpop.f32.mrf.mxu3 }
 0xbcc   :  { %v4327_v44 = vadd.f32 %v4325_v13, %v4200_v2 }
 0xbce   :  { %v4329_v8 = vadd.f32 %v4327_v44, %v4224_v27 }
 0xbd1   :  { %v4178_v25 = vpop.f32.mrf.mxu2 }
 0xbd2   :  { %v4202_v12 = vpop.f32.mrf.mxu3 }
 0xbda   :  { %v4272_v59 = vpop.f32.mrf.mxu2 }
 0xbdc   :  { %v4248_v34 = vpop.f32.mrf.mxu1 }
 0xbdd   :  { %v4331_v28 = vadd.f32 %v4329_v8, %v4248_v34 }
 0xbdf   :  { %v4333_v23 = vadd.f32 %v4331_v28, %v4272_v59 }
 0xbe2   :  { %v4274_v40 = vpop.f32.mrf.mxu2 }
 0xbe4   :  { %v4250_v36 = vpop.f32.mrf.mxu1 }
 0xc07   :  { %v4296_v6 = vpop.f32.mrf.mxu3 }
 0xc08   :  { %v4335_v41 = vadd.f32 %v4333_v23, %v4296_v6 }
 0xc0f   :  { %v4298_v31 = vpop.f32.mrf.mxu3 }
 0xc14   :  { %v4320_v9 = vpop.f32.mrf.mxu0 }
 0xc15   :  { %v4337_v11 = vadd.f32 %v4335_v41, %v4320_v9 }
 0xc17   :  { %v4338_v3 = vpack.c.bf16 %v4337_v11, %v4336_v35 }
 0xc19   :  { %7174 = vmatmul.msk.bf16.vlgmr.msrb.gmra.mxu1 %vm1530_vm2, %v4338_v3 }
 0xc1c   :  { %v4322_v42 = vpop.f32.mrf.mxu0 }
 0xc1d   :  { %v10868_v42 = vld [vmem:[#allocation24_spill] sm:$0xff] }
 0xc96   :  { %v4373_v29 = vpop.f32.mrf.mxu1 }
 0xc97   :  { %v4374_v56 = vadd.f32 %v7382_v19, %v4373_v29  ;;  %v10869_v29 = vld [vmem:[#allocation23_spill] sm:$0xff] }
 0xc99   :  { %v4380_v55 = vrot.slane %v4374_v56, 1  ;;  %v4381_v5 = vrot.slane %v4374_v56, 2  ;;  %v4382_v62 = vrot.slane %v4374_v56, 3  ;;  %v4383_v24 = vrot.slane %v4374_v56, 4 }
 0xc9a   :  { %v4384_v27 = vrot.slane %v4374_v56, 5  ;;  %v4385_v45 = vrot.slane %v4374_v56, 6  ;;  %v4386_v26 = vrot.slane %v4374_v56, 7  ;;  %v9536_v57 = vadd.f32 %v4374_v56, %v8922_v20 }
 0xc9b   :  { %v9521_v46 = vadd.f32 %v4380_v55, %v8910_v47  ;;  %v9524_v35 = vadd.f32 %v4381_v5, %v8912_v4  ;;  %v9527_v18 = vadd.f32 %v4382_v62, %v8914_v50  ;;  %v9530_v0 = vadd.f32 %v4383_v24, %v8916_v1  ;;  %v10870_v55 = vld [vmem:[#allocation25_spill] sm:$0xff] }
 0xc9c   :  { %v9533_v33 = vadd.f32 %v4384_v27, %v8918_v30  ;;  %v9541_v4 = vadd.f32 %v4385_v45, %v8920_v58  ;;  %v9544_v50 = vadd.f32 %v4386_v26, %v8924_v54  ;;  %v10872_v27 = vld [vmem:[#allocation27_spill] sm:$0xff] }
 0xc9d   :  { %v4446_v13 = vrot.slane %v9521_v46, 7  ;;  %v4448_v47 = vrot.slane %v9524_v35, 6  ;;  %v4450_v30 = vrot.slane %v9527_v18, 5  ;;  %v4452_v8 = vrot.slane %v9530_v0, 4 }
 0xc9e   :  { %v4375_v2 = vpop.f32.mrf.mxu1  ;;  %v4454_v25 = vrot.slane %v9533_v33, 3  ;;  %v4456_v54 = vrot.slane %v9541_v4, 2  ;;  %v4458_v6 = vrot.slane %v9544_v50, 1 }
 0xc9f   :  { %v4376_v44 = vadd.f32 %v7382_v19, %v4375_v2  ;;  %v4447_v1 = vsel %vm1346_vm11, %v4446_v13, %v9536_v57 }
 0xca0   :  { %v4449_v20 = vsel %vm1349_vm12, %v4448_v47, %v4447_v1 }
 0xca1   :  { %v4451_v12 = vsel %vm1352_vm13, %v4450_v30, %v4449_v20  ;;  %v4387_v59 = vrot.slane %v4376_v44, 1  ;;  %v4388_v58 = vrot.slane %v4376_v44, 2  ;;  %v4389_v34 = vrot.slane %v4376_v44, 3 }
 0xca2   :  { %v4453_v40 = vsel %vm1355_vm14, %v4452_v8, %v4451_v12  ;;  %v4390_v36 = vrot.slane %v4376_v44, 4  ;;  %v4391_v7 = vrot.slane %v4376_v44, 5  ;;  %v4392_v28 = vrot.slane %v4376_v44, 6 }
 0xca3   :  { %v4455_v52 = vsel %vm1358_vm15, %v4454_v25, %v4453_v40  ;;  %v9558_v31 = vadd.f32 %v4387_v59, %v8948_v38  ;;  %v4393_v41 = vrot.slane %v4376_v44, 7  ;;  %v9562_v9 = vadd.f32 %v4388_v58, %v8950_v60  ;;  %v10873_v40 = vld [vmem:[#allocation28_spill] sm:$0xff] }
 0xca4   :  { %v4457_v23 = vsel %vm1361_vm0, %v4456_v54, %v4455_v52  ;;  %v9565_v11 = vadd.f32 %v4389_v34, %v8953_v37  ;;  %v9569_v19 = vadd.f32 %v4376_v44, %v10868_v42  ;;  %v9572_v56 = vadd.f32 %v4390_v36, %v10869_v29  ;;  %v10871_v37 = vld [vmem:[#allocation26_spill] sm:$0xff] }
 0xca5   :  { %v4459_v3 = vsel %vm1364_vm1, %v4458_v6, %v4457_v23  ;;  %v9576_v5 = vadd.f32 %v4391_v7, %v10870_v55  ;;  %v4460_v62 = vrot.slane %v9558_v31, 7  ;;  %v4462_v60 = vrot.slane %v9562_v9, 6 }
 0xca6   :  { %v4476_v38 = vsel %vm1530_vm2, %v4459_v3, 0.0  ;;  %v9581_v24 = vadd.f32 %v4392_v28, %v10871_v37  ;;  %v9584_v45 = vadd.f32 %v4393_v41, %v10872_v27  ;;  %v4464_v13 = vrot.slane %v9565_v11, 5 }
 0xca7   :  { %4477 = vadd.xlane.f32.xlu0 %v4476_v38  ;;  %v4461_v26 = vsel %vm1346_vm11, %v4460_v62, %v9569_v19  ;;  %v4466_v2 = vrot.slane %v9572_v56, 4  ;;  %v4468_v1 = vrot.slane %v9576_v5, 3 }
 0xca8   :  { %v4463_v47 = vsel %vm1349_vm12, %v4462_v60, %v4461_v26  ;;  %v4470_v20 = vrot.slane %v9581_v24, 2  ;;  %v4472_v25 = vrot.slane %v9584_v45, 1 }
 0xca9   :  { %v4465_v44 = vsel %vm1352_vm13, %v4464_v13, %v4463_v47 }
 0xcaa   :  { %v4467_v30 = vsel %vm1355_vm14, %v4466_v2, %v4465_v44 }
 0xcab   :  { %v4469_v8 = vsel %vm1358_vm15, %v4468_v1, %v4467_v30 }
 0xcac   :  { %v4471_v12 = vsel %vm1361_vm0, %v4470_v20, %v4469_v8 }
 0xcad   :  { %v4473_v59 = vsel %vm1364_vm1, %v4472_v25, %v4471_v12 }
 0xcae   :  { %v4479_v58 = vsel %vm1530_vm2, %v4473_v59, 0.0 }
 0xcaf   :  { %4480 = vadd.xlane.f32.xlu2 %v4479_v58 }
 0xd1a   :  { %v4478_v34 = vpop.xlane.xlu0 %4477 }
 0xd1b   :  { %v4482_v54 = vmul.f32 %v4478_v34, %v10873_v40 }
 0xd1d   :  { %v4486_v36 = vrot.slane %v4482_v54, 1  ;;  %v4487_v7 = vrot.slane %v4482_v54, 2  ;;  %v4488_v52 = vrot.slane %v4482_v54, 3  ;;  %v4489_v6 = vrot.slane %v4482_v54, 4 }
 0xd1e   :  { %v4490_v28 = vrot.slane %v4482_v54, 5  ;;  %v4491_v23 = vrot.slane %v4482_v54, 6  ;;  %v4492_v41 = vrot.slane %v4482_v54, 7  ;;  %v9602_v3 = vsub.f32 %v9536_v57, %v4482_v54 }
 0xd1f   :  { %v9605_v42 = vsub.f32 %v9521_v46, %v4486_v36  ;;  %v9608_v29 = vsub.f32 %v9524_v35, %v4487_v7  ;;  %v9611_v38 = vsub.f32 %v9527_v18, %v4488_v52  ;;  %v9614_v55 = vsub.f32 %v9530_v0, %v4489_v6 }
 0xd20   :  { %v9617_v62 = vsub.f32 %v9533_v33, %v4490_v28  ;;  %v9620_v60 = vsub.f32 %v9541_v4, %v4491_v23  ;;  %v9623_v37 = vsub.f32 %v9544_v50, %v4492_v41  ;;  %v4532_v20 = vmul.f32 %v9602_v3, %v9602_v3 }
 0xd21   :  { %v4533_v27 = vmul.f32 %v9605_v42, %v9605_v42  ;;  %v4534_v26 = vmul.f32 %v9608_v29, %v9608_v29  ;;  %v4535_v13 = vmul.f32 %v9611_v38, %v9611_v38  ;;  %v4536_v47 = vmul.f32 %v9614_v55, %v9614_v55 }
 0xd22   :  { %v4537_v2 = vmul.f32 %v9617_v62, %v9617_v62  ;;  %v4538_v44 = vmul.f32 %v9620_v60, %v9620_v60  ;;  %v4539_v1 = vmul.f32 %v9623_v37, %v9623_v37  ;;  %v4481_v30 = vpop.xlane.xlu2 %4480 }
 0xd23   :  { %v4564_v8 = vrot.slane %v4533_v27, 7  ;;  %v4566_v25 = vrot.slane %v4534_v26, 6  ;;  %v4483_v12 = vmul.f32 %v4481_v30, %v10873_v40  ;;  %v4568_v59 = vrot.slane %v4535_v13, 5 }
 0xd24   :  { %v4570_v58 = vrot.slane %v4536_v47, 4  ;;  %v4572_v54 = vrot.slane %v4537_v2, 3  ;;  %v4574_v36 = vrot.slane %v4538_v44, 2  ;;  %v4576_v7 = vrot.slane %v4539_v1, 1 }
 0xd25   :  { %v4565_v34 = vsel %vm1346_vm11, %v4564_v8, %v4532_v20  ;;  %v4493_v6 = vrot.slane %v4483_v12, 1  ;;  %v4494_v28 = vrot.slane %v4483_v12, 2  ;;  %v4495_v23 = vrot.slane %v4483_v12, 3 }
 0xd26   :  { %v4567_v52 = vsel %vm1349_vm12, %v4566_v25, %v4565_v34  ;;  %v4496_v14 = vrot.slane %v4483_v12, 4  ;;  %v4497_v10 = vrot.slane %v4483_v12, 5  ;;  %v4498_v27 = vrot.slane %v4483_v12, 6 }
 0xd27   :  { %v4569_v41 = vsel %vm1352_vm13, %v4568_v59, %v4567_v52  ;;  %v4499_v30 = vrot.slane %v4483_v12, 7  ;;  %v9647_v13 = vsub.f32 %v9569_v19, %v4483_v12  ;;  %v9650_v47 = vsub.f32 %v9558_v31, %v4493_v6 }
 0xd28   :  { %v4571_v26 = vsel %vm1355_vm14, %v4570_v58, %v4569_v41  ;;  %v9654_v44 = vsub.f32 %v9562_v9, %v4494_v28  ;;  %v9657_v1 = vsub.f32 %v9565_v11, %v4495_v23  ;;  %v9660_v20 = vsub.f32 %v9572_v56, %v4496_v14 }
 0xd29   :  { %v4573_v2 = vsel %vm1358_vm15, %v4572_v54, %v4571_v26  ;;  %v9664_v25 = vsub.f32 %v9576_v5, %v4497_v10  ;;  %v9667_v12 = vsub.f32 %v9581_v24, %v4498_v27  ;;  %v9671_v58 = vsub.f32 %v9584_v45, %v4499_v30 }
 0xd2a   :  { %v4575_v8 = vsel %vm1361_vm0, %v4574_v36, %v4573_v2  ;;  %v4541_v34 = vmul.f32 %v9650_v47, %v9650_v47  ;;  %v4542_v14 = vmul.f32 %v9654_v44, %v9654_v44  ;;  %v4543_v10 = vmul.f32 %v9657_v1, %v9657_v1 }
 0xd2b   :  { %v4577_v59 = vsel %vm1364_vm1, %v4576_v7, %v4575_v8  ;;  %v4544_v36 = vmul.f32 %v9660_v20, %v9660_v20  ;;  %v4540_v7 = vmul.f32 %v9647_v13, %v9647_v13  ;;  %v4545_v52 = vmul.f32 %v9664_v25, %v9664_v25 }
 0xd2c   :  { %v4594_v54 = vsel %vm1530_vm2, %v4577_v59, 0.0  ;;  %v4578_v6 = vrot.slane %v4541_v34, 7  ;;  %v4580_v28 = vrot.slane %v4542_v14, 6  ;;  %v4546_v23 = vmul.f32 %v9667_v12, %v9667_v12 }
 0xd2d   :  { %4595 = vadd.xlane.f32.xlu1 %v4594_v54  ;;  %v4547_v41 = vmul.f32 %v9671_v58, %v9671_v58  ;;  %v4582_v26 = vrot.slane %v4543_v10, 5  ;;  %v4584_v2 = vrot.slane %v4544_v36, 4  ;;  %v4586_v59 = vrot.slane %v4545_v52, 3 }
 0xd2e   :  { %v4579_v27 = vsel %vm1346_vm11, %v4578_v6, %v4540_v7  ;;  %v4588_v49 = vrot.slane %v4546_v23, 2 }
 0xd2f   :  { %v4581_v30 = vsel %vm1349_vm12, %v4580_v28, %v4579_v27  ;;  %v4590_v14 = vrot.slane %v4547_v41, 1 }
 0xd30   :  { %v4583_v8 = vsel %vm1352_vm13, %v4582_v26, %v4581_v30 }
 0xd31   :  { %v4585_v54 = vsel %vm1355_vm14, %v4584_v2, %v4583_v8  ;;  %v9712_v2 = vld [vmem:[%s10809_s13 + $0x1] ss:$0 sm:$0xff] }
 0xd32   :  { %v4587_v34 = vsel %vm1358_vm15, %v4586_v59, %v4585_v54 }
 0xd33   :  { %v4589_v22 = vsel %vm1361_vm0, %v4588_v49, %v4587_v34 }
 0xd34   :  { %v4591_v39 = vsel %vm1364_vm1, %v4590_v14, %v4589_v22  ;;  %v7333_v22 = vld [vmem:[%s10811_s15 + $0x10] sm:$0xff] }
 0xd35   :  { %v4597_v63 = vsel %vm1530_vm2, %v4591_v39, 0.0 }
 0xd36   :  { %4598 = vadd.xlane.f32.xlu2 %v4597_v63  ;;  %v7334_v63 = vld [vmem:[%s10811_s15 + $0x18] sm:$0xff] }
 0xd37   :  { %4818 = vmatpush.bf16.msrb.mxu2 %v7334_v63 }
 0xd3b   :  { %4819 = vmatpush.bf16.msrb.mxu2 %v7333_v22 }
 0xda0   :  { %v4596_v10 = vpop.xlane.xlu1 %4595 }
 0xda1   :  { %v4600_v7 = vmul.f32 %v4596_v10, %v10873_v40 }
 0xda3   :  { %v4602_v36 = vadd.f32 1e-05, %v4600_v7  ;;  %v9715_v7 = vld [vmem:[#allocation8 + $0x1] ss:$0 sm:$0xff] }
 0xda5   :  { %7529 = vrsqrt.f32 %v4602_v36  ;;  %vm4610_vm9 = vweird.f32 %v4602_v36 }
 0xda9   :  { %v4599_v6 = vpop.xlane.xlu2 %4598 }
 0xdaa   :  { %v4601_v28 = vmul.f32 %v4599_v6, %v10873_v40 }
 0xdab   :  { %v7530_v52 = vpop.eup %7529 }
 0xdac   :  { %v4605_v23 = vmul.f32 %v7530_v52, %v4602_v36  ;;  %v9700_v27 = vadd.f32 1e-05, %v4601_v28  ;;  %vm4611_vm8 = vweird.f32 %v7530_v52 }
 0xdad   :  { %vm4612_vm10 = vmor %vm4610_vm9, %vm4611_vm8 }
 0xdae   :  { %v4606_v41 = vmul.f32 %v7530_v52, %v4605_v23  ;;  %7531 = vrsqrt.f32 %v9700_v27  ;;  %vm4620_vm7 = vweird.f32 %v9700_v27 }
 0xdb0   :  { %v4607_v49 = vmul.f32 0.5, %v4606_v41 }
 0xdb2   :  { %v4608_v39 = vsub.f32 1.5, %v4607_v49 }
 0xdb4   :  { %v4609_v26 = vmul.f32 %v7530_v52, %v4608_v39  ;;  %v7532_v30 = vpop.eup %7531 }
 0xdb5   :  { %v4615_v59 = vmul.f32 %v7532_v30, %v9700_v27  ;;  %vm4621_vm6 = vweird.f32 %v7532_v30 }
 0xdb6   :  { %v4613_v8 = vsel %vm4612_vm10, %v7530_v52, %v4609_v26  ;;  %vm4622_vm8 = vmor %vm4620_vm7, %vm4621_vm6 }
 0xdb7   :  { %v4626_v54 = vrot.slane %v4613_v8, 1  ;;  %v4627_v34 = vrot.slane %v4613_v8, 2  ;;  %v4628_v14 = vrot.slane %v4613_v8, 3  ;;  %v4629_v10 = vrot.slane %v4613_v8, 4 }
 0xdb8   :  { %v4630_v6 = vrot.slane %v4613_v8, 5  ;;  %v4631_v28 = vrot.slane %v4613_v8, 6  ;;  %v4632_v36 = vrot.slane %v4613_v8, 7  ;;  %v4656_v23 = vmul.f32 %v4613_v8, %v9602_v3 }
 0xdb9   :  { %v4657_v41 = vmul.f32 %v4626_v54, %v9605_v42  ;;  %v4658_v49 = vmul.f32 %v4627_v34, %v9608_v29  ;;  %v4659_v52 = vmul.f32 %v4628_v14, %v9611_v38  ;;  %v4660_v63 = vmul.f32 %v4629_v10, %v9614_v55 }
 0xdba   :  { %v4661_v39 = vmul.f32 %v4630_v6, %v9617_v62  ;;  %v4662_v26 = vmul.f32 %v4631_v28, %v9620_v60  ;;  %v4663_v22 = vmul.f32 %v4632_v36, %v9623_v37  ;;  %v4675_v53 = vmul.f32 %v9712_v2, %v4656_v23 }
 0xdbb   :  { %v4676_v16 = vmul.f32 %v9712_v2, %v4657_v41  ;;  %v4677_v3 = vmul.f32 %v9712_v2, %v4658_v49  ;;  %v4678_v42 = vmul.f32 %v9712_v2, %v4659_v52  ;;  %v4679_v29 = vmul.f32 %v9712_v2, %v4660_v63 }
 0xdbc   :  { %v4680_v38 = vmul.f32 %v9712_v2, %v4661_v39  ;;  %v4694_v55 = vadd.f32 %v9715_v7, %v4675_v53  ;;  %v4616_v8 = vmul.f32 %v7532_v30, %v4615_v59  ;;  %v4681_v62 = vmul.f32 %v9712_v2, %v4662_v26 }
 0xdbd   :  { %v4695_v60 = vadd.f32 %v9715_v7, %v4676_v16  ;;  %v4696_v37 = vadd.f32 %v9715_v7, %v4677_v3  ;;  %v4697_v54 = vadd.f32 %v9715_v7, %v4678_v42  ;;  %v4698_v34 = vadd.f32 %v9715_v7, %v4679_v29 }
 0xdbe   :  { %v4710_v14 = vpack.c.bf16 %v4694_v55, %v4694_v55  ;;  %v4617_v10 = vmul.f32 0.5, %v4616_v8  ;;  %v4682_v6 = vmul.f32 %v9712_v2, %v4663_v22  ;;  %v4699_v28 = vadd.f32 %v9715_v7, %v4680_v38 }
 0xdbf   :  { %v4711_v36 = vpack.c.bf16 %v4695_v60, %v4695_v60  ;;  %v4712_v23 = vpack.c.bf16 %v4696_v37, %v4696_v37  ;;  %v4713_v53 = vpack.c.bf16 %v4697_v54, %v4697_v54  ;;  %v4700_v59 = vadd.f32 %v9715_v7, %v4681_v62 }
 0xdc0   :  { %v4618_v41 = vsub.f32 1.5, %v4617_v10  ;;  %v9741_v16 = vadd.f32 %v9715_v7, %v4682_v6  ;;  %v4714_v49 = vpack.c.bf16 %v4698_v34, %v4698_v34  ;;  %v4715_v39 = vpack.c.bf16 %v4699_v28, %v4699_v28 }
 0xdc1   :  { %v9743_v52 = vunpack.c.l.b16 %v4711_v36  ;;  %v9745_v63 = vunpack.c.l.b16 %v4712_v23  ;;  %v4752_v26 = vunpack.c.l.b16 %v4710_v14  ;;  %v9748_v3 = vunpack.c.l.b16 %v4713_v53 }
 0xdc2   :  { %v4619_v22 = vmul.f32 %v7532_v30, %v4618_v41  ;;  %v4716_v42 = vpack.c.bf16 %v4700_v59, %v4700_v59  ;;  %v4717_v29 = vpack.c.bf16 %v9741_v16, %v9741_v16  ;;  %v9752_v38 = vunpack.c.l.b16 %v4714_v49 }
 0xdc3   :  { %v4768_v55 = vrot.slane %v9743_v52, 7  ;;  %v4770_v8 = vrot.slane %v9745_v63, 6  ;;  %v9756_v60 = vunpack.c.l.b16 %v4715_v39 }
 0xdc4   :  { %v4623_v62 = vsel %vm4622_vm8, %v7532_v30, %v4619_v22 }
 0xdc5   :  { %v4633_v37 = vrot.slane %v4623_v62, 1  ;;  %v4634_v54 = vrot.slane %v4623_v62, 2  ;;  %v4635_v34 = vrot.slane %v4623_v62, 3  ;;  %v4636_v27 = vrot.slane %v4623_v62, 4 }
 0xdc6   :  { %v4637_v14 = vrot.slane %v4623_v62, 5  ;;  %v4638_v10 = vrot.slane %v4623_v62, 6  ;;  %v4639_v6 = vrot.slane %v4623_v62, 7  ;;  %v4664_v28 = vmul.f32 %v4623_v62, %v9647_v13 }
 0xdc7   :  { %v4665_v36 = vmul.f32 %v4633_v37, %v9650_v47  ;;  %v4666_v23 = vmul.f32 %v4634_v54, %v9654_v44  ;;  %v4667_v53 = vmul.f32 %v4635_v34, %v9657_v1  ;;  %v4668_v59 = vmul.f32 %v4636_v27, %v9660_v20 }
 0xdc8   :  { %v4669_v30 = vmul.f32 %v4637_v14, %v9664_v25  ;;  %v4670_v41 = vmul.f32 %v4638_v10, %v9667_v12  ;;  %v4671_v16 = vmul.f32 %v4639_v6, %v9671_v58  ;;  %v4683_v49 = vmul.f32 %v9712_v2, %v4664_v28 }
 0xdc9   :  { %v4684_v52 = vmul.f32 %v9712_v2, %v4665_v36  ;;  %v4685_v13 = vmul.f32 %v9712_v2, %v4666_v23  ;;  %v4686_v47 = vmul.f32 %v9712_v2, %v4667_v53  ;;  %v4687_v44 = vmul.f32 %v9712_v2, %v4668_v59 }
 0xdca   :  { %v4688_v1 = vmul.f32 %v9712_v2, %v4669_v30  ;;  %v4702_v20 = vadd.f32 %v9715_v7, %v4683_v49  ;;  %v4689_v25 = vmul.f32 %v9712_v2, %v4670_v41  ;;  %v4690_v12 = vmul.f32 %v9712_v2, %v4671_v16 }
 0xdcb   :  { %v4703_v58 = vadd.f32 %v9715_v7, %v4684_v52  ;;  %v4704_v63 = vadd.f32 %v9715_v7, %v4685_v13  ;;  %v4705_v39 = vadd.f32 %v9715_v7, %v4686_v47  ;;  %v4706_v22 = vadd.f32 %v9715_v7, %v4687_v44 }
 0xdcc   :  { %v4718_v62 = vpack.c.bf16 %v4702_v20, %v4702_v20  ;;  %v4707_v37 = vadd.f32 %v9715_v7, %v4688_v1  ;;  %v4708_v54 = vadd.f32 %v9715_v7, %v4689_v25  ;;  %v4709_v34 = vadd.f32 %v9715_v7, %v4690_v12 }
 0xdcd   :  { %v4719_v27 = vpack.c.bf16 %v4703_v58, %v4703_v58  ;;  %v4720_v14 = vpack.c.bf16 %v4704_v63, %v4704_v63  ;;  %v4721_v10 = vpack.c.bf16 %v4705_v39, %v4705_v39  ;;  %v4722_v6 = vpack.c.bf16 %v4706_v22, %v4706_v22 }
 0xdce   :  { %v4723_v2 = vpack.c.bf16 %v4707_v37, %v4707_v37  ;;  %v4724_v28 = vpack.c.bf16 %v4708_v54, %v4708_v54  ;;  %v4758_v36 = vunpack.c.l.b16 %v4716_v42  ;;  %v4772_v23 = vrot.slane %v9748_v3, 5 }
 0xdcf   :  { %v4761_v53 = vunpack.c.l.b16 %v4719_v27  ;;  %v4762_v59 = vunpack.c.l.b16 %v4720_v14  ;;  %v4763_v30 = vunpack.c.l.b16 %v4721_v10  ;;  %v4725_v41 = vpack.c.bf16 %v4709_v34, %v4709_v34 }
 0xdd0   :  { %v4760_v16 = vunpack.c.l.b16 %v4718_v62  ;;  %v4764_v49 = vunpack.c.l.b16 %v4722_v6  ;;  %v4769_v52 = vsel %vm1346_vm11, %v4768_v55, %v4752_v26  ;;  %v4774_v13 = vrot.slane %v9752_v38, 4 }
 0xdd1   :  { %v4782_v7 = vrot.slane %v4761_v53, 7  ;;  %v4784_v47 = vrot.slane %v4762_v59, 6  ;;  %v4765_v44 = vunpack.c.l.b16 %v4723_v2  ;;  %v4771_v1 = vsel %vm1349_vm12, %v4770_v8, %v4769_v52  ;;  %v7335_v53 = vld [vmem:[%s10813_s17 + $0x20] sm:$0xff] }
 0xdd2   :  { %v4759_v20 = vunpack.c.l.b16 %v4717_v29  ;;  %v4766_v25 = vunpack.c.l.b16 %v4724_v28  ;;  %v4773_v42 = vsel %vm1352_vm13, %v4772_v23, %v4771_v1  ;;  %v4776_v3 = vrot.slane %v9756_v60, 3  ;;  %v7338_v28 = vld [vmem:[%s10813_s17 + $0x38] sm:$0xff]  ;;  %v7336_v23 = vld [vmem:[%s10813_s17 + $0x28] sm:$0xff] }
 0xdd3   :  { %v4767_v12 = vunpack.c.l.b16 %v4725_v41  ;;  %v4775_v58 = vsel %vm1355_vm14, %v4774_v13, %v4773_v42  ;;  %v4783_v63 = vsel %vm1346_vm11, %v4782_v7, %v4760_v16  ;;  %v4786_v39 = vrot.slane %v4763_v30, 5  ;;  %4869 = vmatpush.bf16.msrb.mxu3 %v7338_v28  ;;  %v7385_v30 = vld [vmem:[%s10812_s16 + $0x1] ss:$0 sm:$0xff] }
 0xdd4   :  { %v4777_v26 = vsel %vm1358_vm15, %v4776_v3, %v4775_v58  ;;  %v4778_v38 = vrot.slane %v4758_v36, 2  ;;  %v4785_v55 = vsel %vm1349_vm12, %v4784_v47, %v4783_v63  ;;  %v4788_v22 = vrot.slane %v4764_v49, 4  ;;  %v7337_v36 = vld [vmem:[%s10813_s17 + $0x30] sm:$0xff] }
 0xdd5   :  { %v4787_v8 = vsel %vm1352_vm13, %v4786_v39, %v4785_v55  ;;  %v4790_v29 = vrot.slane %v4765_v44, 3  ;;  %v4792_v60 = vrot.slane %v4766_v25, 2  ;;  %v4780_v54 = vrot.slane %v4759_v20, 1 }
 0xdd6   :  { %v4779_v62 = vsel %vm1361_vm0, %v4778_v38, %v4777_v26  ;;  %v4789_v37 = vsel %vm1355_vm14, %v4788_v22, %v4787_v8  ;;  %v4794_v27 = vrot.slane %v4767_v12, 1  ;;  %v7386_v38 = vld [vmem:[%s10814_s18 + $0x1] ss:$0 sm:$0xff] }
 0xdd7   :  { %v4791_v34 = vsel %vm1358_vm15, %v4790_v29, %v4789_v37  ;;  %v4781_v10 = vsel %vm1364_vm1, %v4780_v54, %v4779_v62  ;;  %4870 = vmatpush.bf16.msrb.mxu3 %v7337_v36 }
 0xdd8   :  { %v4793_v14 = vsel %vm1361_vm0, %v4792_v60, %v4791_v34 }
 0xdd9   :  { %v4795_v6 = vsel %vm1364_vm1, %v4794_v27, %v4793_v14 }
 0xdda   :  { %v4796_v2 = vpack.c.b16 %v4795_v6, %v4781_v10 }
 0xddb   :  { %4871 = vmatpush.bf16.msrb.mxu3 %v7336_v23 }
 0xddc   :  { %7189 = vmatmul.msk.bf16.vlgmr.msrb.gmra.mxu2 %vm1530_vm2, %v4796_v2 }
 0xddf   :  { %4872 = vmatpush.bf16.msrb.mxu3 %v7335_v53 }
 0xe5f   :  { %v4821_v59 = vpop.f32.mrf.mxu2 }
 0xe60   :  { %v4822_v41 = vadd.f32 %v7385_v30, %v4821_v59 }
 0xe62   :  { %v4826_v52 = vmax.f32 %v4822_v41, 0.0 }
 0xe67   :  { %v4823_v16 = vpop.f32.mrf.mxu2 }
 0xe68   :  { %v4824_v49 = vadd.f32 %v7385_v30, %v4823_v16 }
 0xe6a   :  { %v4827_v13 = vmax.f32 %v4824_v49, 0.0 }
 0xe6c   :  { %v4828_v7 = vpack.c.bf16 %v4827_v13, %v4826_v52 }
 0xe6e   :  { %7214 = vmatmul.msk.bf16.vlgmr.msrb.gmra.mxu3 %vm2847_vm5, %v4828_v7 }
 0xef1   :  { %v4874_v47 = vpop.f32.mrf.mxu3 }
 0xef2   :  { %v4881_v44 = vrot.slane %v4874_v47, 1  ;;  %v4882_v1 = vrot.slane %v4874_v47, 2  ;;  %v4883_v20 = vrot.slane %v4874_v47, 3  ;;  %v4884_v25 = vrot.slane %v4874_v47, 4 }
 0xef3   :  { %v4885_v42 = vrot.slane %v4874_v47, 5  ;;  %v4911_v3 = vadd.f32 %v4874_v47, %v9536_v57  ;;  %v4886_v12 = vrot.slane %v4874_v47, 6  ;;  %v4887_v58 = vrot.slane %v4874_v47, 7 }
 0xef4   :  { %v4912_v63 = vadd.f32 %v4881_v44, %v9521_v46  ;;  %v4913_v39 = vadd.f32 %v4882_v1, %v9524_v35  ;;  %v4914_v26 = vadd.f32 %v4883_v20, %v9527_v18  ;;  %v4915_v55 = vadd.f32 %v4884_v25, %v9530_v0 }
 0xef5   :  { %v4916_v22 = vadd.f32 %v4885_v42, %v9533_v33  ;;  %v4917_v8 = vadd.f32 %v4886_v12, %v9541_v4  ;;  %v4918_v57 = vadd.f32 %v4887_v58, %v9544_v50  ;;  %v9839_v60 = vadd.f32 %v7386_v38, %v4911_v3 }
 0xef6   :  { %v9827_v29 = vadd.f32 %v7386_v38, %v4912_v63  ;;  %v9829_v62 = vadd.f32 %v7386_v38, %v4913_v39  ;;  %v9831_v46 = vadd.f32 %v7386_v38, %v4914_v26  ;;  %v9833_v35 = vadd.f32 %v7386_v38, %v4915_v55 }
 0xef7   :  { %v9835_v18 = vadd.f32 %v7386_v38, %v4916_v22  ;;  %v9837_v37 = vadd.f32 %v7386_v38, %v4917_v8  ;;  %v9841_v0 = vadd.f32 %v7386_v38, %v4918_v57 }
 0xef8   :  { %v4968_v33 = vrot.slane %v9827_v29, 7  ;;  %v4970_v4 = vrot.slane %v9829_v62, 6  ;;  %v4972_v54 = vrot.slane %v9831_v46, 5  ;;  %v4974_v34 = vrot.slane %v9833_v35, 4 }
 0xef9   :  { %v4876_v50 = vpop.f32.mrf.mxu3  ;;  %v4976_v27 = vrot.slane %v9835_v18, 3  ;;  %v4978_v14 = vrot.slane %v9837_v37, 2  ;;  %v4980_v1 = vrot.slane %v9841_v0, 1 }
 0xefa   :  { %v4888_v10 = vrot.slane %v4876_v50, 1  ;;  %v4889_v6 = vrot.slane %v4876_v50, 2  ;;  %v4890_v2 = vrot.slane %v4876_v50, 3  ;;  %v4891_v28 = vrot.slane %v4876_v50, 4 }
 0xefb   :  { %v4892_v36 = vrot.slane %v4876_v50, 5  ;;  %v4919_v23 = vadd.f32 %v4876_v50, %v9569_v19  ;;  %v4969_v53 = vsel %vm1346_vm11, %v4968_v33, %v9839_v60  ;;  %v4893_v59 = vrot.slane %v4876_v50, 6 }
 0xefc   :  { %v4920_v30 = vadd.f32 %v4888_v10, %v9558_v31  ;;  %v4921_v41 = vadd.f32 %v4889_v6, %v9562_v9  ;;  %v4922_v16 = vadd.f32 %v4890_v2, %v9565_v11  ;;  %v4971_v49 = vsel %vm1349_vm12, %v4970_v4, %v4969_v53 }
 0xefd   :  { %v4973_v52 = vsel %vm1352_vm13, %v4972_v54, %v4971_v49  ;;  %v4894_v13 = vrot.slane %v4876_v50, 7  ;;  %v4923_v7 = vadd.f32 %v4891_v28, %v9572_v56  ;;  %v4924_v47 = vadd.f32 %v4892_v36, %v9576_v5 }
 0xefe   :  { %v9859_v19 = vadd.f32 %v7386_v38, %v4920_v30  ;;  %v4975_v44 = vsel %vm1355_vm14, %v4974_v34, %v4973_v52  ;;  %v4925_v31 = vadd.f32 %v4893_v59, %v9581_v24  ;;  %v9866_v20 = vadd.f32 %v7386_v38, %v4921_v41 }
 0xeff   :  { %v4977_v9 = vsel %vm1358_vm15, %v4976_v27, %v4975_v44  ;;  %v4926_v11 = vadd.f32 %v4894_v13, %v9584_v45  ;;  %v9868_v25 = vadd.f32 %v7386_v38, %v4922_v16  ;;  %v9871_v42 = vadd.f32 %v7386_v38, %v4919_v23 }
 0xf00   :  { %v4979_v56 = vsel %vm1361_vm0, %v4978_v14, %v4977_v9  ;;  %v9873_v5 = vadd.f32 %v7386_v38, %v4923_v7  ;;  %v9876_v12 = vadd.f32 %v7386_v38, %v4924_v47  ;;  %v4982_v24 = vrot.slane %v9859_v19, 7 }
 0xf01   :  { %v4981_v3 = vsel %vm1364_vm1, %v4980_v1, %v4979_v56  ;;  %v4984_v58 = vrot.slane %v9866_v20, 6  ;;  %v9881_v63 = vadd.f32 %v7386_v38, %v4925_v31  ;;  %v9883_v39 = vadd.f32 %v7386_v38, %v4926_v11 }
 0xf02   :  { %v4998_v45 = vsel %vm1530_vm2, %v4981_v3, 0.0  ;;  %v4983_v26 = vsel %vm1346_vm11, %v4982_v24, %v9871_v42  ;;  %v4986_v55 = vrot.slane %v9868_v25, 5  ;;  %v4988_v8 = vrot.slane %v9873_v5, 4 }
 0xf03   :  { %4999 = vadd.xlane.f32.xlu2 %v4998_v45  ;;  %v4985_v22 = vsel %vm1349_vm12, %v4984_v58, %v4983_v26  ;;  %v4990_v33 = vrot.slane %v9876_v12, 3  ;;  %v4992_v50 = vrot.slane %v9881_v63, 2  ;;  %v4994_v54 = vrot.slane %v9883_v39, 1 }
 0xf04   :  { %v4987_v57 = vsel %vm1352_vm13, %v4986_v55, %v4985_v22 }
 0xf05   :  { %v4989_v4 = vsel %vm1355_vm14, %v4988_v8, %v4987_v57 }
 0xf06   :  { %v4991_v38 = vsel %vm1358_vm15, %v4990_v33, %v4989_v4 }
 0xf07   :  { %v4993_v34 = vsel %vm1361_vm0, %v4992_v50, %v4991_v38 }
 0xf08   :  { %v4995_v27 = vsel %vm1364_vm1, %v4994_v54, %v4993_v34 }
 0xf09   :  { %v5001_v14 = vsel %vm1530_vm2, %v4995_v27, 0.0 }
 0xf0b   :  { %5002 = vadd.xlane.f32.xlu2 %v5001_v14 }
 0xf76   :  { %v5000_v10 = vpop.xlane.xlu2 %4999 }
 0xf77   :  { %v5004_v6 = vmul.f32 %v5000_v10, %v10873_v40 }
 0xf79   :  { %v5008_v2 = vrot.slane %v5004_v6, 1  ;;  %v5009_v28 = vrot.slane %v5004_v6, 2  ;;  %v5010_v36 = vrot.slane %v5004_v6, 3  ;;  %v5011_v23 = vrot.slane %v5004_v6, 4 }
 0xf7a   :  { %v5012_v53 = vrot.slane %v5004_v6, 5  ;;  %v5013_v59 = vrot.slane %v5004_v6, 6  ;;  %v5014_v30 = vrot.slane %v5004_v6, 7  ;;  %v9901_v41 = vsub.f32 %v9839_v60, %v5004_v6 }
 0xf7b   :  { %v9904_v16 = vsub.f32 %v9827_v29, %v5008_v2  ;;  %v9907_v49 = vsub.f32 %v9829_v62, %v5009_v28  ;;  %v9910_v52 = vsub.f32 %v9831_v46, %v5010_v36  ;;  %v9913_v13 = vsub.f32 %v9833_v35, %v5011_v23 }
 0xf7c   :  { %v9916_v7 = vsub.f32 %v9835_v18, %v5012_v53  ;;  %v9919_v47 = vsub.f32 %v9837_v37, %v5013_v59  ;;  %v9922_v44 = vsub.f32 %v9841_v0, %v5014_v30  ;;  %v5054_v3 = vmul.f32 %v9901_v41, %v9901_v41 }
 0xf7d   :  { %v5055_v1 = vmul.f32 %v9904_v16, %v9904_v16  ;;  %v5056_v31 = vmul.f32 %v9907_v49, %v9907_v49  ;;  %v5057_v9 = vmul.f32 %v9910_v52, %v9910_v52  ;;  %v5058_v11 = vmul.f32 %v9913_v13, %v9913_v13 }
 0xf7e   :  { %v5003_v56 = vpop.xlane.xlu2 %5002  ;;  %v5059_v24 = vmul.f32 %v9916_v7, %v9916_v7  ;;  %v5060_v58 = vmul.f32 %v9919_v47, %v9919_v47  ;;  %v5061_v26 = vmul.f32 %v9922_v44, %v9922_v44 }
 0xf7f   :  { %v5005_v45 = vmul.f32 %v5003_v56, %v10873_v40  ;;  %v5086_v55 = vrot.slane %v5055_v1, 7  ;;  %v5088_v22 = vrot.slane %v5056_v31, 6  ;;  %v5090_v8 = vrot.slane %v5057_v9, 5 }
 0xf80   :  { %v5092_v57 = vrot.slane %v5058_v11, 4  ;;  %v5094_v33 = vrot.slane %v5059_v24, 3  ;;  %v5096_v4 = vrot.slane %v5060_v58, 2  ;;  %v5098_v9 = vrot.slane %v5061_v26, 1 }
 0xf81   :  { %v5087_v50 = vsel %vm1346_vm11, %v5086_v55, %v5054_v3  ;;  %v5015_v38 = vrot.slane %v5005_v45, 1  ;;  %v5016_v54 = vrot.slane %v5005_v45, 2  ;;  %v5017_v34 = vrot.slane %v5005_v45, 3 }
 0xf82   :  { %v5089_v27 = vsel %vm1349_vm12, %v5088_v22, %v5087_v50  ;;  %v5018_v14 = vrot.slane %v5005_v45, 4  ;;  %v5019_v10 = vrot.slane %v5005_v45, 5  ;;  %v5020_v6 = vrot.slane %v5005_v45, 6 }
 0xf83   :  { %v5091_v2 = vsel %vm1352_vm13, %v5090_v8, %v5089_v27  ;;  %v5021_v28 = vrot.slane %v5005_v45, 7  ;;  %v9945_v36 = vsub.f32 %v9871_v42, %v5005_v45  ;;  %v9948_v23 = vsub.f32 %v9859_v19, %v5015_v38 }
 0xf84   :  { %v5093_v53 = vsel %vm1355_vm14, %v5092_v57, %v5091_v2  ;;  %v9952_v59 = vsub.f32 %v9866_v20, %v5016_v54  ;;  %v9955_v30 = vsub.f32 %v9868_v25, %v5017_v34  ;;  %v9958_v1 = vsub.f32 %v9873_v5, %v5018_v14 }
 0xf85   :  { %v5095_v31 = vsel %vm1358_vm15, %v5094_v33, %v5093_v53  ;;  %v9962_v11 = vsub.f32 %v9876_v12, %v5019_v10  ;;  %v9965_v56 = vsub.f32 %v9881_v63, %v5020_v6  ;;  %v9969_v24 = vsub.f32 %v9883_v39, %v5021_v28 }
 0xf86   :  { %v5097_v3 = vsel %vm1361_vm0, %v5096_v4, %v5095_v31  ;;  %v5063_v58 = vmul.f32 %v9948_v23, %v9948_v23  ;;  %v5064_v45 = vmul.f32 %v9952_v59, %v9952_v59  ;;  %v5065_v26 = vmul.f32 %v9955_v30, %v9955_v30 }
 0xf87   :  { %v5099_v55 = vsel %vm1364_vm1, %v5098_v9, %v5097_v3  ;;  %v5066_v22 = vmul.f32 %v9958_v1, %v9958_v1  ;;  %v5062_v57 = vmul.f32 %v9945_v36, %v9945_v36  ;;  %v5067_v33 = vmul.f32 %v9962_v11, %v9962_v11 }
 0xf88   :  { %v5116_v8 = vsel %vm1530_vm2, %v5099_v55, 0.0  ;;  %v5100_v4 = vrot.slane %v5063_v58, 7  ;;  %v5068_v50 = vmul.f32 %v9965_v56, %v9965_v56  ;;  %v5102_v38 = vrot.slane %v5064_v45, 6 }
 0xf89   :  { %5117 = vadd.xlane.f32.xlu2 %v5116_v8  ;;  %v5069_v54 = vmul.f32 %v9969_v24, %v9969_v24  ;;  %v5104_v27 = vrot.slane %v5065_v26, 5  ;;  %v5106_v10 = vrot.slane %v5066_v22, 4  ;;  %v5108_v2 = vrot.slane %v5067_v33, 3 }
 0xf8a   :  { %v5101_v34 = vsel %vm1346_vm11, %v5100_v4, %v5062_v57  ;;  %v5110_v53 = vrot.slane %v5068_v50, 2 }
 0xf8b   :  { %v5103_v14 = vsel %vm1349_vm12, %v5102_v38, %v5101_v34  ;;  %v5112_v9 = vrot.slane %v5069_v54, 1  ;;  %v7340_v34 = vld [vmem:[%s10805_s9 + $0x28] sm:$0xff] }
 0xf8c   :  { %v5105_v6 = vsel %vm1352_vm13, %v5104_v27, %v5103_v14  ;;  %5340 = vmatpush.bf16.msra.mxu0 %v7340_v34  ;;  %v7339_v14 = vld [vmem:[%s10805_s9 + $0x20] sm:$0xff] }
 0xf8d   :  { %v5107_v28 = vsel %vm1355_vm14, %v5106_v10, %v5105_v6 }
 0xf8e   :  { %v5109_v31 = vsel %vm1358_vm15, %v5108_v2, %v5107_v28  ;;  %v10013_v2 = vld [vmem:[%s10803_s7 + $0x2] ss:$0 sm:$0xff]  ;;  %s7010_s7 = sshll.u32 %s10882_s0, 4  ;;  %s7011_s7 = int_to_ptr.hbm [resolvable:$true] %s7010_s7 }
 0xf8f   :  { %v5111_v3 = vsel %vm1361_vm0, %v5110_v53, %v5109_v31 }
 0xf90   :  { %v5113_v58 = vsel %vm1364_vm1, %v5112_v9, %v5111_v3  ;;  %5341 = vmatpush.bf16.msra.mxu0 %v7339_v14 }
 0xf91   :  { %v5119_v45 = vsel %vm1530_vm2, %v5113_v58, 0.0 }
 0xf92   :  { %5120 = vadd.xlane.f32.xlu0 %v5119_v45  ;;  %v10020_v45 = vld [vmem:[%s10804_s8 + $0x2] ss:$0 sm:$0xff]  ;;  %s7752_s8 = smov 128  }
 0xffc   :  { %v5118_v55 = vpop.xlane.xlu2 %5117 }
 0xffd   :  { %v5122_v26 = vmul.f32 %v5118_v55, %v10873_v40 }
 0xfff   :  { %v5124_v22 = vadd.f32 1e-05, %v5122_v26 }
0x1001   :  { %7533 = vrsqrt.f32 %v5124_v22  ;;  %vm5132_vm10 = vweird.f32 %v5124_v22 }
0x1005   :  { %v5121_v8 = vpop.xlane.xlu0 %5120 }
0x1006   :  { %v5123_v57 = vmul.f32 %v5121_v8, %v10873_v40 }
0x1007   :  { %v7534_v33 = vpop.eup %7533 }
0x1008   :  { %v5127_v4 = vmul.f32 %v7534_v33, %v5124_v22  ;;  %v9999_v50 = vadd.f32 1e-05, %v5123_v57  ;;  %vm5133_vm9 = vweird.f32 %v7534_v33 }
0x1009   :  { %vm5134_vm6 = vmor %vm5132_vm10, %vm5133_vm9 }
0x100a   :  { %v5128_v38 = vmul.f32 %v7534_v33, %v5127_v4  ;;  %7535 = vrsqrt.f32 %v9999_v50  ;;  %vm5142_vm8 = vweird.f32 %v9999_v50 }
0x100c   :  { %v5129_v54 = vmul.f32 0.5, %v5128_v38 }
0x100e   :  { %v5130_v27 = vsub.f32 1.5, %v5129_v54 }
0x1010   :  { %v10008_v10 = vpop.eup %7535  ;;  %v5131_v6 = vmul.f32 %v7534_v33, %v5130_v27 }
0x1011   :  { %v5137_v53 = vmul.f32 %v10008_v10, %v9999_v50  ;;  %vm5143_vm7 = vweird.f32 %v10008_v10 }
0x1012   :  { %v5135_v28 = vsel %vm5134_vm6, %v7534_v33, %v5131_v6  ;;  %vm5144_vm9 = vmor %vm5142_vm8, %vm5143_vm7 }
0x1013   :  { %v5148_v31 = vrot.slane %v5135_v28, 1  ;;  %v5149_v9 = vrot.slane %v5135_v28, 2  ;;  %v5150_v3 = vrot.slane %v5135_v28, 3  ;;  %v5151_v58 = vrot.slane %v5135_v28, 4 }
0x1014   :  { %v5152_v55 = vrot.slane %v5135_v28, 5  ;;  %v5153_v26 = vrot.slane %v5135_v28, 6  ;;  %v5154_v22 = vrot.slane %v5135_v28, 7  ;;  %v5178_v8 = vmul.f32 %v5135_v28, %v9901_v41 }
0x1015   :  { %v5179_v57 = vmul.f32 %v5148_v31, %v9904_v16  ;;  %v5180_v33 = vmul.f32 %v5149_v9, %v9907_v49  ;;  %v5181_v4 = vmul.f32 %v5150_v3, %v9910_v52  ;;  %v5182_v38 = vmul.f32 %v5151_v58, %v9913_v13 }
0x1016   :  { %v5183_v54 = vmul.f32 %v5152_v55, %v9916_v7  ;;  %v5184_v34 = vmul.f32 %v5153_v26, %v9919_v47  ;;  %v5185_v27 = vmul.f32 %v5154_v22, %v9922_v44  ;;  %v5197_v14 = vmul.f32 %v10013_v2, %v5178_v8 }
0x1017   :  { %v5198_v6 = vmul.f32 %v10013_v2, %v5179_v57  ;;  %v5199_v41 = vmul.f32 %v10013_v2, %v5180_v33  ;;  %v5200_v16 = vmul.f32 %v10013_v2, %v5181_v4  ;;  %v5201_v49 = vmul.f32 %v10013_v2, %v5182_v38 }
0x1018   :  { %v5202_v52 = vmul.f32 %v10013_v2, %v5183_v54  ;;  %v5216_v13 = vadd.f32 %v10020_v45, %v5197_v14  ;;  %v5138_v7 = vmul.f32 %v10008_v10, %v5137_v53  ;;  %v5203_v47 = vmul.f32 %v10013_v2, %v5184_v34 }
0x1019   :  { %v5217_v44 = vadd.f32 %v10020_v45, %v5198_v6  ;;  %v5218_v28 = vadd.f32 %v10020_v45, %v5199_v41  ;;  %v5219_v31 = vadd.f32 %v10020_v45, %v5200_v16  ;;  %v5220_v9 = vadd.f32 %v10020_v45, %v5201_v49 }
0x101a   :  { %v5232_v3 = vpack.c.bf16 %v5216_v13, %v5216_v13  ;;  %v5139_v58 = vmul.f32 0.5, %v5138_v7  ;;  %v5204_v55 = vmul.f32 %v10013_v2, %v5185_v27  ;;  %v5221_v26 = vadd.f32 %v10020_v45, %v5202_v52 }
0x101b   :  { %v5233_v22 = vpack.c.bf16 %v5217_v44, %v5217_v44  ;;  %v5234_v8 = vpack.c.bf16 %v5218_v28, %v5218_v28  ;;  %v5235_v57 = vpack.c.bf16 %v5219_v31, %v5219_v31  ;;  %v5222_v53 = vadd.f32 %v10020_v45, %v5203_v47 }
0x101c   :  { %v5140_v33 = vsub.f32 1.5, %v5139_v58  ;;  %v10048_v4 = vadd.f32 %v10020_v45, %v5204_v55  ;;  %v5236_v38 = vpack.c.bf16 %v5220_v9, %v5220_v9  ;;  %v5237_v14 = vpack.c.bf16 %v5221_v26, %v5221_v26 }
0x101d   :  { %v10050_v54 = vunpack.c.l.b16 %v5233_v22  ;;  %v10052_v34 = vunpack.c.l.b16 %v5234_v8  ;;  %v5274_v27 = vunpack.c.l.b16 %v5232_v3  ;;  %v10056_v41 = vunpack.c.l.b16 %v5235_v57 }
0x101e   :  { %v5141_v6 = vmul.f32 %v10008_v10, %v5140_v33  ;;  %v5238_v16 = vpack.c.bf16 %v5222_v53, %v5222_v53  ;;  %v5239_v49 = vpack.c.bf16 %v10048_v4, %v10048_v4  ;;  %v10060_v52 = vunpack.c.l.b16 %v5236_v38 }
0x101f   :  { %v5290_v13 = vrot.slane %v10050_v54, 7  ;;  %v5292_v7 = vrot.slane %v10052_v34, 6  ;;  %v10065_v44 = vunpack.c.l.b16 %v5237_v14 }
0x1020   :  { %v5145_v47 = vsel %vm5144_vm9, %v10008_v10, %v5141_v6 }
0x1021   :  { %v5155_v28 = vrot.slane %v5145_v47, 1  ;;  %v5156_v31 = vrot.slane %v5145_v47, 2  ;;  %v5157_v50 = vrot.slane %v5145_v47, 3  ;;  %v5158_v9 = vrot.slane %v5145_v47, 4 }
0x1022   :  { %v5159_v3 = vrot.slane %v5145_v47, 5  ;;  %v5160_v58 = vrot.slane %v5145_v47, 6  ;;  %v5161_v55 = vrot.slane %v5145_v47, 7  ;;  %v5186_v26 = vmul.f32 %v5145_v47, %v9945_v36 }
0x1023   :  { %v5187_v22 = vmul.f32 %v5155_v28, %v9948_v23  ;;  %v5188_v8 = vmul.f32 %v5156_v31, %v9952_v59  ;;  %v5189_v57 = vmul.f32 %v5157_v50, %v9955_v30  ;;  %v5190_v53 = vmul.f32 %v5158_v9, %v9958_v1 }
0x1024   :  { %v5191_v10 = vmul.f32 %v5159_v3, %v9962_v11  ;;  %v5192_v33 = vmul.f32 %v5160_v58, %v9965_v56  ;;  %v5193_v4 = vmul.f32 %v5161_v55, %v9969_v24  ;;  %v5205_v38 = vmul.f32 %v10013_v2, %v5186_v26 }
0x1025   :  { %v5206_v54 = vmul.f32 %v10013_v2, %v5187_v22  ;;  %v5207_v36 = vmul.f32 %v10013_v2, %v5188_v8  ;;  %v5208_v23 = vmul.f32 %v10013_v2, %v5189_v57  ;;  %v5209_v59 = vmul.f32 %v10013_v2, %v5190_v53 }
0x1026   :  { %v5210_v30 = vmul.f32 %v10013_v2, %v5191_v10  ;;  %v5224_v1 = vadd.f32 %v10020_v45, %v5205_v38  ;;  %v5211_v11 = vmul.f32 %v10013_v2, %v5192_v33  ;;  %v5212_v56 = vmul.f32 %v10013_v2, %v5193_v4 }
0x1027   :  { %v5225_v24 = vadd.f32 %v10020_v45, %v5206_v54  ;;  %v5226_v34 = vadd.f32 %v10020_v45, %v5207_v36  ;;  %v5227_v14 = vadd.f32 %v10020_v45, %v5208_v23  ;;  %v5228_v6 = vadd.f32 %v10020_v45, %v5209_v59 }
0x1028   :  { %v5240_v47 = vpack.c.bf16 %v5224_v1, %v5224_v1  ;;  %v5229_v28 = vadd.f32 %v10020_v45, %v5210_v30  ;;  %v5230_v31 = vadd.f32 %v10020_v45, %v5211_v11  ;;  %v5231_v50 = vadd.f32 %v10020_v45, %v5212_v56 }
0x1029   :  { %v5241_v9 = vpack.c.bf16 %v5225_v24, %v5225_v24  ;;  %v5242_v3 = vpack.c.bf16 %v5226_v34, %v5226_v34  ;;  %v5243_v58 = vpack.c.bf16 %v5227_v14, %v5227_v14  ;;  %v5244_v55 = vpack.c.bf16 %v5228_v6, %v5228_v6 }
0x102a   :  { %v5245_v2 = vpack.c.bf16 %v5229_v28, %v5229_v28  ;;  %v5246_v26 = vpack.c.bf16 %v5230_v31, %v5230_v31  ;;  %v5280_v22 = vunpack.c.l.b16 %v5238_v16  ;;  %v5294_v8 = vrot.slane %v10056_v41, 5 }
0x102b   :  { %v5283_v57 = vunpack.c.l.b16 %v5241_v9  ;;  %v5284_v53 = vunpack.c.l.b16 %v5242_v3  ;;  %v5285_v10 = vunpack.c.l.b16 %v5243_v58  ;;  %v5247_v33 = vpack.c.bf16 %v5231_v50, %v5231_v50 }
0x102c   :  { %v5282_v4 = vunpack.c.l.b16 %v5240_v47  ;;  %v5286_v38 = vunpack.c.l.b16 %v5244_v55  ;;  %v5291_v54 = vsel %vm1346_vm11, %v5290_v13, %v5274_v27  ;;  %v5296_v36 = vrot.slane %v10060_v52, 4 }
0x102d   :  { %v5304_v45 = vrot.slane %v5283_v57, 7  ;;  %v5306_v23 = vrot.slane %v5284_v53, 6  ;;  %v5287_v59 = vunpack.c.l.b16 %v5245_v2  ;;  %v5293_v30 = vsel %vm1349_vm12, %v5292_v7, %v5291_v54 }
0x102e   :  { %v5281_v1 = vunpack.c.l.b16 %v5239_v49  ;;  %v5288_v11 = vunpack.c.l.b16 %v5246_v26  ;;  %v5295_v16 = vsel %vm1352_vm13, %v5294_v8, %v5293_v30  ;;  %v5298_v41 = vrot.slane %v10065_v44, 3  ;;  %v7389_v26 = vld [vmem:[%s10806_s10 + $0x2] ss:$0 sm:$0xff]  ;;  %s7753_s10 = smov 8  }
0x102f   :  { %v5289_v56 = vunpack.c.l.b16 %v5247_v33  ;;  %v5297_v24 = vsel %vm1355_vm14, %v5296_v36, %v5295_v16  ;;  %v5305_v34 = vsel %vm1346_vm11, %v5304_v45, %v5282_v4  ;;  %v5308_v14 = vrot.slane %v5285_v10, 5 }
0x1030   :  { %v5299_v27 = vsel %vm1358_vm15, %v5298_v41, %v5297_v24  ;;  %v5300_v52 = vrot.slane %v5280_v22, 2  ;;  %v5307_v13 = vsel %vm1349_vm12, %v5306_v23, %v5305_v34  ;;  %v5310_v6 = vrot.slane %v5286_v38, 4 }
0x1031   :  { %v5309_v7 = vsel %vm1352_vm13, %v5308_v14, %v5307_v13  ;;  %v5312_v49 = vrot.slane %v5287_v59, 3  ;;  %v5314_v44 = vrot.slane %v5288_v11, 2  ;;  %v5302_v31 = vrot.slane %v5281_v1, 1 }
0x1032   :  { %v5301_v47 = vsel %vm1361_vm0, %v5300_v52, %v5299_v27  ;;  %v5311_v28 = vsel %vm1355_vm14, %v5310_v6, %v5309_v7  ;;  %v5316_v9 = vrot.slane %v5289_v56, 1 }
0x1033   :  { %v5313_v50 = vsel %vm1358_vm15, %v5312_v49, %v5311_v28  ;;  %v5303_v58 = vsel %vm1364_vm1, %v5302_v31, %v5301_v47 }
0x1034   :  { %v5315_v3 = vsel %vm1361_vm0, %v5314_v44, %v5313_v50 }
0x1035   :  { %v5317_v55 = vsel %vm1364_vm1, %v5316_v9, %v5315_v3 }
0x1036   :  { %v5318_v2 = vpack.c.b16 %v5317_v55, %v5303_v58 }
0x1038   :  { %7231 = vmatmul.msk.bf16.vlgmr.msra.gmra.mxu0 %vm1530_vm2, %v5318_v2 }
0x10b5   :  { %v5343_v22 = vpop.f32.mrf.mxu0 }
0x10b6   :  { %v10112_v8 = vadd.f32 %v7389_v26, %v5343_v22 }
0x10b8   :  { %v5352_v57 = vmul.f32 %v10112_v8, %v8380_v61  ;;  %v5351_v53 = vmul.f32 %v10112_v8, %v8382_v48  ;;  %v5350_v10 = vmul.f32 %v10112_v8, %v8384_v15  ;;  %v5353_v33 = vmul.f32 %v10112_v8, %v8391_v17 }
0x10b9   :  { %v5355_v36 = vmul.f32 %v10112_v8, %v8389_v51  ;;  %v5357_v45 = vmul.f32 %v10112_v8, %v8411_v32  ;;  %v5356_v13 = vmul.f32 %v10112_v8, %v8395_v43  ;;  %v5354_v6 = vmul.f32 %v10112_v8, %v8409_v21 }
0x10ba   :  { %v5368_v4 = vpack.c.bf16 %v5352_v57, %v5352_v57  ;;  %v5367_v38 = vpack.c.bf16 %v5351_v53, %v5351_v53  ;;  %v5366_v54 = vpack.c.bf16 %v5350_v10, %v5350_v10  ;;  %v5369_v11 = vpack.c.bf16 %v5353_v33, %v5353_v33 }
0x10bb   :  { %v5371_v24 = vpack.c.bf16 %v5355_v36, %v5355_v36  ;;  %v5373_v14 = vpack.c.bf16 %v5357_v45, %v5357_v45  ;;  %v5372_v44 = vpack.c.bf16 %v5356_v13, %v5356_v13  ;;  %v5370_v31 = vpack.c.bf16 %v5354_v6, %v5354_v6  ;;  %v10874_v36 = vld [vmem:[#allocation18_spill] sm:$0xff] }
0x10bc   :  { %v5460_v23 = vunpack.c.l.b16 %v5368_v4  ;;  %v5439_v59 = vunpack.c.l.b16 %v5367_v38  ;;  %v5415_v30 = vunpack.c.l.b16 %v5366_v54  ;;  %v5481_v27 = vunpack.c.l.b16 %v5369_v11 }
0x10bd   :  { %v5345_v1 = vpop.f32.mrf.mxu0  ;;  %v5523_v52 = vunpack.c.l.b16 %v5371_v24  ;;  %v5565_v7 = vunpack.c.l.b16 %v5373_v14  ;;  %v5544_v3 = vunpack.c.l.b16 %v5372_v44  ;;  %v5502_v58 = vunpack.c.l.b16 %v5370_v31  ;;  %v10875_v14 = vld [vmem:[#allocation17_spill] sm:$0xff]  ;;  %v10876_v44 = vld [vmem:[#allocation15_spill] sm:$0xff]  ;;  %v10877_v31 = vld [vmem:[#allocation16_spill] sm:$0xff] }
0x10be   :  { %v5461_v16 = vpack.c.b16 %v5460_v23, %v5460_v23  ;;  %v5440_v41 = vpack.c.b16 %v5439_v59, %v5439_v59  ;;  %v5416_v56 = vpack.c.b16 %v5415_v30, %v5415_v30  ;;  %v10126_v34 = vadd.f32 %v7389_v26, %v5345_v1 }
0x10bf   :  { %v5482_v47 = vpack.c.b16 %v5481_v27, %v5481_v27  ;;  %v5524_v28 = vpack.c.b16 %v5523_v52, %v5523_v52  ;;  %v5566_v50 = vpack.c.b16 %v5565_v7, %v5565_v7  ;;  %v5545_v22 = vpack.c.b16 %v5544_v3, %v5544_v3 }
0x10c0   :  { %5462 = vrot.lane.b32.xlu0 %v5461_v16, %s7749_s22  ;;  %5441 = vrot.lane.b32.xlu2 %v5440_v41, %s7749_s22  ;;  %v5358_v49 = vmul.f32 %v10126_v34, %v8384_v15  ;;  %v5359_v55 = vmul.f32 %v10126_v34, %v8382_v48  ;;  %v5360_v15 = vmul.f32 %v10126_v34, %v8380_v61 }
0x10c1   :  { %5417 = vrot.lane.b32.xlu1 %v5416_v56, %s7749_s22  ;;  %v5364_v26 = vmul.f32 %v10126_v34, %v8395_v43  ;;  %v5503_v57 = vpack.c.b16 %v5502_v58, %v5502_v58  ;;  %v5361_v61 = vmul.f32 %v10126_v34, %v8391_v17  ;;  %v5363_v43 = vmul.f32 %v10126_v34, %v8389_v51 }
0x10c2   :  { %v5374_v9 = vpack.c.bf16 %v5358_v49, %v5358_v49  ;;  %v5375_v53 = vpack.c.bf16 %v5359_v55, %v5359_v55  ;;  %v5376_v10 = vpack.c.bf16 %v5360_v15, %v5360_v15  ;;  %v5384_v45 = vmul.f32 %v10112_v8, %v10874_v36 }
0x10c3   :  { %v5380_v4 = vpack.c.bf16 %v5364_v26, %v5364_v26  ;;  %v5377_v30 = vpack.c.bf16 %v5361_v61, %v5361_v61  ;;  %v5379_v1 = vpack.c.bf16 %v5363_v43, %v5363_v43  ;;  %v5362_v51 = vmul.f32 %v10126_v34, %v8409_v21 }
0x10c4   :  { %v5586_v2 = vunpack.c.l.b16 %v5374_v9  ;;  %v5610_v48 = vunpack.c.l.b16 %v5375_v53  ;;  %v5631_v38 = vunpack.c.l.b16 %v5376_v10  ;;  %v5400_v16 = vpack.c.bf16 %v5384_v45, %v5384_v45  ;;  %v10879_v10 = vld [vmem:[#allocation20_spill] sm:$0xff]  ;;  %v10880_v45 = vld [vmem:[#allocation22_spill] sm:$0xff] }
0x10c5   :  { %v5715_v54 = vunpack.c.l.b16 %v5380_v4  ;;  %v5652_v17 = vunpack.c.l.b16 %v5377_v30  ;;  %v5694_v41 = vunpack.c.l.b16 %v5379_v1  ;;  %v5365_v56 = vmul.f32 %v10126_v34, %v8411_v32 }
0x10c6   :  { %v5587_v33 = vpack.c.b16 %v5586_v2, %v5586_v2  ;;  %v5611_v23 = vpack.c.b16 %v5610_v48, %v5610_v48  ;;  %v5632_v59 = vpack.c.b16 %v5631_v38, %v5631_v38  ;;  %v5997_v24 = vunpack.c.l.b16 %v5400_v16 }
0x10c7   :  { %v5716_v11 = vpack.c.b16 %v5715_v54, %v5715_v54  ;;  %v5388_v27 = vmul.f32 %v10112_v8, %v10875_v14  ;;  %v5653_v52 = vpack.c.b16 %v5652_v17, %v5652_v17  ;;  %v5695_v13 = vpack.c.b16 %v5694_v41, %v5694_v41 }
0x10c8   :  { %5483 = vrot.lane.b32.xlu0 %v5482_v47, %s7749_s22  ;;  %5525 = vrot.lane.b32.xlu2 %v5524_v28, %s7749_s22  ;;  %v5378_v6 = vpack.c.bf16 %v5362_v51, %v5362_v51  ;;  %v5381_v7 = vpack.c.bf16 %v5365_v56, %v5365_v56  ;;  %v5998_v49 = vpack.c.b16 %v5997_v24, %v5997_v24 }
0x10c9   :  { %5567 = vrot.lane.b32.xlu1 %v5566_v50, %s7749_s22  ;;  %v5404_v47 = vpack.c.bf16 %v5388_v27, %v5388_v27  ;;  %v5383_v32 = vmul.f32 %v10112_v8, %v10876_v44  ;;  %v5382_v50 = vmul.f32 %v10112_v8, %v10877_v31  ;;  %v5391_v56 = vmul.f32 %v10126_v34, %v10876_v44 }
0x10ca   :  { %v5673_v21 = vunpack.c.l.b16 %v5378_v6  ;;  %v5736_v28 = vunpack.c.l.b16 %v5381_v7 }
0x10cb   :  { %v6093_v9 = vunpack.c.l.b16 %v5404_v47  ;;  %v5399_v55 = vpack.c.bf16 %v5383_v32, %v5383_v32  ;;  %v5398_v15 = vpack.c.bf16 %v5382_v50, %v5382_v50  ;;  %v5348_v47 = vpack.c.bf16 %v10112_v8, %v10112_v8 }
0x10cc   :  { %v5674_v3 = vpack.c.b16 %v5673_v21, %v5673_v21  ;;  %v5737_v58 = vpack.c.b16 %v5736_v28, %v5736_v28 }
0x10cd   :  { %v6094_v2 = vpack.c.b16 %v6093_v9, %v6093_v9  ;;  %v5973_v26 = vunpack.c.l.b16 %v5399_v55 }
0x10cf   :  { %v5974_v4 = vpack.c.b16 %v5973_v26, %v5973_v26 }
0x10d0   :  { %5546 = vrot.lane.b32.xlu0 %v5545_v22, %s7749_s22  ;;  %5504 = vrot.lane.b32.xlu2 %v5503_v57, %s7749_s22  ;;  %v5949_v22 = vunpack.c.l.b16 %v5398_v15  ;;  %v10878_v57 = vld [vmem:[#allocation19_spill] sm:$0xff] }
0x10d1   :  { %5588 = vrot.lane.b32.xlu1 %v5587_v33, %s7749_s22  ;;  %v5387_v53 = vmul.f32 %v10112_v8, %v10878_v57  ;;  %v5385_v33 = vmul.f32 %v10112_v8, %v10879_v10 }
0x10d2   :  { %v5950_v48 = vpack.c.b16 %v5949_v22, %v5949_v22 }
0x10d3   :  { %v5403_v38 = vpack.c.bf16 %v5387_v53, %v5387_v53  ;;  %v5401_v61 = vpack.c.bf16 %v5385_v33, %v5385_v33 }
0x10d5   :  { %v6069_v43 = vunpack.c.l.b16 %v5403_v38  ;;  %v6021_v54 = vunpack.c.l.b16 %v5401_v61 }
0x10d7   :  { %v6070_v1 = vpack.c.b16 %v6069_v43, %v6069_v43 }
0x10d8   :  { %5612 = vrot.lane.b32.xlu0 %v5611_v23, %s7749_s22  ;;  %5633 = vrot.lane.b32.xlu2 %v5632_v59, %s7749_s22  ;;  %v5386_v23 = vmul.f32 %v10112_v8, %v10880_v45  ;;  %v10881_v59 = vld [vmem:[#allocation21_spill] sm:$0xff] }
0x10d9   :  { %5717 = vrot.lane.b32.xlu1 %v5716_v11, %s7749_s22  ;;  %v5389_v30 = vmul.f32 %v10112_v8, %v10881_v59  ;;  %v6022_v11 = vpack.c.b16 %v6021_v54, %v6021_v54 }
0x10da   :  { %v5402_v16 = vpack.c.bf16 %v5386_v23, %v5386_v23 }
0x10db   :  { %v5405_v17 = vpack.c.bf16 %v5389_v30, %v5389_v30 }
0x10dc   :  { %v6045_v41 = vunpack.c.l.b16 %v5402_v16 }
0x10dd   :  { %v6117_v51 = vunpack.c.l.b16 %v5405_v17 }
0x10de   :  { %v6046_v24 = vpack.c.b16 %v6045_v41, %v6045_v41 }
0x10df   :  { %v6118_v27 = vpack.c.b16 %v6117_v51, %v6117_v51 }
0x10e0   :  { %5654 = vrot.lane.b32.xlu0 %v5653_v52, %s7749_s22  ;;  %5696 = vrot.lane.b32.xlu2 %v5695_v13, %s7749_s22  ;;  %v5407_v52 = vpack.c.bf16 %v5391_v56, %v5391_v56 }
0x10e1   :  { %5999 = vrot.lane.b32.xlu1 %v5998_v49, %s7734_s3 }
0x10e2   :  { %v6165_v13 = vunpack.c.l.b16 %v5407_v52 }
0x10e4   :  { %v6166_v6 = vpack.c.b16 %v6165_v13, %v6165_v13 }
0x10e8   :  { %5675 = vrot.lane.b32.xlu0 %v5674_v3, %s7749_s22  ;;  %5738 = vrot.lane.b32.xlu2 %v5737_v58, %s7749_s22 }
0x10e9   :  { %6095 = vrot.lane.b32.xlu1 %v6094_v2, %s7734_s3 }
0x10f0   :  { %5975 = vrot.lane.b32.xlu0 %v5974_v4, %s7734_s3  ;;  %5951 = vrot.lane.b32.xlu2 %v5950_v48, %s7734_s3 }
0x10f8   :  { %6071 = vrot.lane.b32.xlu0 %v6070_v1, %s7734_s3  ;;  %6023 = vrot.lane.b32.xlu2 %v6022_v11, %s7734_s3  ;;  %v5349_v11 = vpack.c.bf16 %v10126_v34, %v10126_v34 }
0x1100   :  { %6047 = vrot.lane.b32.xlu0 %v6046_v24, %s7734_s3  ;;  %6119 = vrot.lane.b32.xlu2 %v6118_v27, %s7734_s3 }
0x1108   :  { %6167 = vrot.lane.b32.xlu2 %v6166_v6, %s7734_s3 }
0x111a   :  { %v5442_v7 = vpop.permute.xlu2 %5441 }
0x111b   :  { %v5444_v49 = vsel %vm1530_vm2, %v5442_v7, 0 }
0x111c   :  { %5453 = vmatpush.bf16.xpose.msra.mxu2 %v5444_v49 }
0x1122   :  { %v5526_v21 = vpop.permute.xlu2 %5525 }
0x1123   :  { %v5528_v28 = vsel %vm1530_vm2, %v5526_v21, 0  ;;  %7233 = vmatmul.msk.bf16.vlgmr.msra.gmra.mxu2 %vm1530_vm2, %v5348_v47 }
0x1124   :  { %5537 = vmatpush.bf16.xpose.msrb.mxu2 %v5528_v28 }
0x112a   :  { %v5505_v44 = vpop.permute.xlu2 %5504 }
0x112b   :  { %v5507_v58 = vsel %vm1530_vm2, %v5505_v44, 0 }
0x1132   :  { %v5463_v32 = vpop.permute.xlu0 %5462  ;;  %v5634_v8 = vpop.permute.xlu2 %5633 }
0x1133   :  { %v5465_v50 = vsel %vm1530_vm2, %v5463_v32, 0  ;;  %v5418_v9 = vpop.permute.xlu1 %5417  ;;  %7237 = vmatmul.msk.bf16.vlgmr.msrb.gmra.mxu2 %vm1530_vm2, %v5348_v47  ;;  %v5636_v48 = vsel %vm1530_vm2, %v5634_v8, 0 }
0x1134   :  { %v5423_v3 = vsel %vm1530_vm2, %v5418_v9, 0  ;;  %5474 = vmatpush.bf16.xpose.msra.mxu3 %v5465_v50 }
0x1135   :  { %5432 = vmatpush.bf16.xpose.msra.mxu1 %v5423_v3 }
0x113a   :  { %v5484_v55 = vpop.permute.xlu0 %5483  ;;  %v5697_v22 = vpop.permute.xlu2 %5696 }
0x113b   :  { %v5486_v15 = vsel %vm1530_vm2, %v5484_v55, 0  ;;  %v5568_v2 = vpop.permute.xlu1 %5567  ;;  %7234 = vmatmul.msk.bf16.vlgmr.msra.gmra.mxu3 %vm1530_vm2, %v5348_v47  ;;  %v5699_v23 = vsel %vm1530_vm2, %v5697_v22, 0 }
0x113c   :  { %v5570_v26 = vsel %vm1530_vm2, %v5568_v2, 0  ;;  %7232 = vmatmul.msk.bf16.vlgmr.msra.gmra.mxu1 %vm1530_vm2, %v5348_v47  ;;  %5495 = vmatpush.bf16.xpose.msrb.mxu0 %v5486_v15 }
0x113d   :  { %5516 = vmatpush.bf16.xpose.msrb.mxu1 %v5507_v58 }
0x1142   :  { %v5547_v53 = vpop.permute.xlu0 %5546  ;;  %v5739_v30 = vpop.permute.xlu2 %5738 }
0x1143   :  { %v5549_v33 = vsel %vm1530_vm2, %v5547_v53, 0  ;;  %v5589_v4 = vpop.permute.xlu1 %5588  ;;  %7235 = vmatmul.msk.bf16.vlgmr.msrb.gmra.mxu0 %vm1530_vm2, %v5348_v47  ;;  %v5741_v41 = vsel %vm1530_vm2, %v5739_v30, 0 }
0x1144   :  { %5579 = vmatpush.bf16.xpose.msra.mxu0 %v5570_v26  ;;  %v5594_v38 = vsel %vm1530_vm2, %v5589_v4, 0  ;;  %5558 = vmatpush.bf16.xpose.msrb.mxu3 %v5549_v33 }
0x1145   :  { %5603 = vmatpush.bf16.xpose.msra.mxu1 %v5594_v38 }
0x114a   :  { %v5613_v61 = vpop.permute.xlu0 %5612  ;;  %v5952_v51 = vpop.permute.xlu2 %5951 }
0x114b   :  { %v5615_v43 = vsel %vm1530_vm2, %v5613_v61, 0  ;;  %v5718_v54 = vpop.permute.xlu1 %5717  ;;  %7238 = vmatmul.msk.bf16.vlgmr.msrb.gmra.mxu3 %vm1530_vm2, %v5348_v47  ;;  %v5957_v13 = vsel %vm2221_vm4, %v5952_v51, 0 }
0x114c   :  { %5645 = vmatpush.bf16.xpose.msra.mxu3 %v5636_v48  ;;  %v5720_v1 = vsel %vm1530_vm2, %v5718_v54, 0  ;;  %7236 = vmatmul.msk.bf16.vlgmr.msrb.gmra.mxu1 %vm1530_vm2, %v5348_v47 }
0x114d   :  { %5624 = vmatpush.bf16.xpose.msra.mxu2 %v5615_v43 }
0x1152   :  { %v5655_v16 = vpop.permute.xlu0 %5654  ;;  %v6024_v6 = vpop.permute.xlu2 %6023 }
0x1153   :  { %v5657_v17 = vsel %vm1530_vm2, %v5655_v16, 0  ;;  %7239 = vmatmul.msk.bf16.vlgmr.msra.gmra.mxu0 %vm1530_vm2, %v5348_v47  ;;  %v6000_v56 = vpop.permute.xlu1 %5999  ;;  %v6029_v49 = vsel %vm2221_vm4, %v6024_v6, 0 }
0x1154   :  { %5729 = vmatpush.bf16.xpose.msrb.mxu3 %v5720_v1  ;;  %7241 = vmatmul.msk.bf16.vlgmr.msra.gmra.mxu2 %vm1530_vm2, %v5349_v11  ;;  %v6005_v27 = vsel %vm2221_vm4, %v6000_v56, 0 }
0x1155   :  { %5708 = vmatpush.bf16.xpose.msrb.mxu2 %v5699_v23  ;;  %5666 = vmatpush.bf16.xpose.msrb.mxu0 %v5657_v17 }
0x115a   :  { %v5676_v24 = vpop.permute.xlu0 %5675  ;;  %v6120_v50 = vpop.permute.xlu2 %6119 }
0x115b   :  { %v5678_v52 = vsel %vm1530_vm2, %v5676_v24, 0  ;;  %7242 = vmatmul.msk.bf16.vlgmr.msra.gmra.mxu3 %vm1530_vm2, %v5349_v11  ;;  %v6096_v21 = vpop.permute.xlu1 %6095  ;;  %v6125_v3 = vsel %vm2221_vm4, %v6120_v50, 0 }
0x115c   :  { %7240 = vmatmul.msk.bf16.vlgmr.msra.gmra.mxu1 %vm1530_vm2, %v5349_v11  ;;  %6014 = vmatpush.bf16.msra.mxu3 %v6005_v27  ;;  %v6101_v44 = vsel %vm2221_vm4, %v6096_v21, 0 }
0x115d   :  { %5750 = vmatpush.bf16.xpose.msra.mxu0 %v5741_v41  ;;  %5687 = vmatpush.bf16.xpose.msrb.mxu1 %v5678_v52 }
0x1162   :  { %v5976_v7 = vpop.permute.xlu0 %5975 }
0x1163   :  { %v5981_v47 = vsel %vm2221_vm4, %v5976_v7, 0  ;;  %7243 = vmatmul.msk.bf16.vlgmr.msrb.gmra.mxu0 %vm1530_vm2, %v5349_v11 }
0x1164   :  { %7245 = vmatmul.msk.bf16.vlgmr.msrb.gmra.mxu2 %vm1530_vm2, %v5349_v11 }
0x1165   :  { %5966 = vmatpush.bf16.msra.mxu1 %v5957_v13  ;;  %6038 = vmatpush.bf16.msrb.mxu0 %v6029_v49  ;;  %v5390_v13 = vmul.f32 %v10126_v34, %v10877_v31 }
0x1166   :  { %5990 = vmatpush.bf16.msra.mxu2 %v5981_v47  ;;  %v5392_v47 = vmul.f32 %v10126_v34, %v10874_v36 }
0x116a   :  { %v6072_v28 = vpop.permute.xlu0 %6071 }
0x116b   :  { %v6077_v32 = vsel %vm2221_vm4, %v6072_v28, 0  ;;  %7246 = vmatmul.msk.bf16.vlgmr.msrb.gmra.mxu3 %vm1530_vm2, %v5349_v11 }
0x116c   :  { %7244 = vmatmul.msk.bf16.vlgmr.msrb.gmra.mxu1 %vm1530_vm2, %v5349_v11  ;;  %6110 = vmatpush.bf16.msrb.mxu3 %v6101_v44  ;;  %v5406_v44 = vpack.c.bf16 %v5390_v13, %v5390_v13 }
0x116d   :  { %6086 = vmatpush.bf16.msrb.mxu2 %v6077_v32  ;;  %v5408_v32 = vpack.c.bf16 %v5392_v47, %v5392_v47 }
0x116e   :  { %v6141_v50 = vunpack.c.l.b16 %v5406_v44 }
0x1172   :  { %v6048_v9 = vpop.permute.xlu0 %6047 }
0x1173   :  { %v6053_v58 = vsel %vm2221_vm4, %v6048_v9, 0  ;;  %7247 = vmatmul.msk.bf16.vlgmr.msra.gmra.mxu0 %vm1530_vm2, %v5349_v11  ;;  %v5393_v9 = vmul.f32 %v10126_v34, %v10879_v10  ;;  %v5395_v10 = vmul.f32 %v10126_v34, %v10878_v57 }
0x1174   :  { %6134 = vmatpush.bf16.msra.mxu0 %v6125_v3  ;;  %6062 = vmatpush.bf16.msrb.mxu1 %v6053_v58 }
0x11a6   :  { %v10235_v8 = vpop.f32.mrf.mxu2 }
0x11a7   :  { %v5759_v23 = vsel %vm2020_vm3, %v10235_v8, -inf }
0x11ae   :  { %v5457_v55 = vpop.f32.mrf.mxu2 }
0x11af   :  { %v6189_v55 = vunpack.c.l.b16 %v5408_v32 }
0x11b6   :  { %v10237_v15 = vpop.f32.mrf.mxu2 }
0x11b7   :  { %v5771_v52 = vsel %vm2020_vm3, %v10237_v15, -inf }
0x11b9   :  { %v10239_v2 = vpop.f32.mrf.mxu1 }
0x11ba   :  { %v5756_v26 = vsel %vm2020_vm3, %v10239_v2, -inf }
0x11bb   :  { %5757 = vmax.xlane.f32.xlu2 %v5756_v26 }
0x11be   :  { %v10243_v22 = vpop.f32.mrf.mxu3  ;;  %v5541_v53 = vpop.f32.mrf.mxu2 }
0x11bf   :  { %v5762_v33 = vsel %vm2020_vm3, %v10243_v22, -inf  ;;  %v6142_v53 = vpack.c.b16 %v6141_v50, %v6141_v50 }
0x11c0   :  { %v10247_v4 = vpop.f32.mrf.mxu0  ;;  %5763 = vmax.xlane.f32.xlu0 %v5762_v33  ;;  %v5409_v33 = vpack.c.bf16 %v5393_v9, %v5393_v9 }
0x11c1   :  { %v5436_v48 = vpop.f32.mrf.mxu1  ;;  %v5765_v38 = vsel %vm2020_vm3, %v10247_v4, -inf }
0x11c2   :  { %5766 = vmax.xlane.f32.xlu1 %v5765_v38  ;;  %v6190_v48 = vpack.c.b16 %v6189_v55, %v6189_v55  ;;  %v6213_v38 = vunpack.c.l.b16 %v5409_v33 }
0x11c6   :  { %v5478_v61 = vpop.f32.mrf.mxu3 }
0x11c8   :  { %v5499_v43 = vpop.f32.mrf.mxu0 }
0x11c9   :  { %v10251_v54 = vpop.f32.mrf.mxu1 }
0x11ca   :  { %5760 = vmax.xlane.f32.xlu1 %v5759_v23  ;;  %v5768_v41 = vsel %vm2020_vm3, %v10251_v54, -inf }
0x11ce   :  { %v10255_v30 = vpop.f32.mrf.mxu3 }
0x11cf   :  { %v5774_v1 = vsel %vm2020_vm3, %v10255_v30, -inf }
0x11d0   :  { %v10259_v11 = vpop.f32.mrf.mxu0  ;;  %5775 = vmax.xlane.f32.xlu2 %v5774_v1 }
0x11d1   :  { %v5520_v16 = vpop.f32.mrf.mxu1  ;;  %v5777_v17 = vsel %vm2020_vm3, %v10259_v11, -inf }
0x11d2   :  { %5778 = vmax.xlane.f32.xlu0 %v5777_v17  ;;  %5769 = vmax.xlane.f32.xlu1 %v5768_v41  ;;  %v6214_v17 = vpack.c.b16 %v6213_v38, %v6213_v38  ;;  %v5411_v41 = vpack.c.bf16 %v5395_v10, %v5395_v10 }
0x11d6   :  { %v5562_v51 = vpop.f32.mrf.mxu3 }
0x11d7   :  { %v10265_v56 = vpop.f32.mrf.mxu2  ;;  %v6261_v51 = vunpack.c.l.b16 %v5411_v41 }
0x11d8   :  { %v5583_v24 = vpop.f32.mrf.mxu0  ;;  %v5783_v36 = vsel %vm2020_vm3, %v10265_v56, -inf }
0x11d9   :  { %v10267_v27 = vpop.f32.mrf.mxu1  ;;  %v6262_v57 = vpack.c.b16 %v6261_v51, %v6261_v51 }
0x11da   :  { %5772 = vmax.xlane.f32.xlu0 %v5771_v52  ;;  %v5780_v13 = vsel %vm2020_vm3, %v10267_v27, -inf }
0x11de   :  { %v10273_v7 = vpop.f32.mrf.mxu3 }
0x11df   :  { %v5628_v6 = vpop.f32.mrf.mxu2  ;;  %v5786_v47 = vsel %vm2020_vm3, %v10273_v7, -inf }
0x11e0   :  { %v10275_v49 = vpop.f32.mrf.mxu0 }
0x11e1   :  { %v5607_v21 = vpop.f32.mrf.mxu1  ;;  %v5789_v28 = vsel %vm2020_vm3, %v10275_v49, -inf }
0x11e2   :  { %5790 = vmax.xlane.f32.xlu2 %v5789_v28  ;;  %v10307_v21 = vpop.permute.xlu2 %6167 }
0x11e6   :  { %v5649_v31 = vpop.f32.mrf.mxu3 }
0x11e7   :  { %v10283_v3 = vpop.f32.mrf.mxu2 }
0x11e8   :  { %v5670_v58 = vpop.f32.mrf.mxu0 }
0x11e9   :  { %v10285_v26 = vpop.f32.mrf.mxu1  ;;  %v5795_v58 = vsel %vm2020_vm3, %v10283_v3, -inf }
0x11ea   :  { %5784 = vmax.xlane.f32.xlu2 %v5783_v36  ;;  %v5792_v16 = vsel %vm2020_vm3, %v10285_v26, -inf }
0x11eb   :  { %6143 = vrot.lane.b32.xlu1 %v6142_v53, %s7734_s3 }
0x11ee   :  { %v10292_v61 = vpop.f32.mrf.mxu3  ;;  %6191 = vrot.lane.b32.xlu0 %v6190_v48, %s7734_s3 }
0x11ef   :  { %v5712_v43 = vpop.f32.mrf.mxu2  ;;  %v5798_v6 = vsel %vm2020_vm3, %v10292_v61, -inf }
0x11f0   :  { %v10295_v23 = vpop.f32.mrf.mxu0 }
0x11f1   :  { %v5691_v1 = vpop.f32.mrf.mxu1  ;;  %v5801_v28 = vsel %vm2020_vm3, %v10295_v23, -inf }
0x11f2   :  { %5793 = vmax.xlane.f32.xlu2 %v5792_v16 }
0x11f3   :  { %6215 = vrot.lane.b32.xlu1 %v6214_v17, %s7734_s3 }
0x11f6   :  { %v5733_v24 = vpop.f32.mrf.mxu3 }
0x11f8   :  { %v5754_v52 = vpop.f32.mrf.mxu0 }
0x11fb   :  { %6263 = vrot.lane.b32.xlu1 %v6262_v57, %s7734_s3 }
0x1218   :  { %5781 = vmax.xlane.f32.xlu0 %v5780_v13 }
0x1220   :  { %5799 = vmax.xlane.f32.xlu0 %v5798_v6 }
0x1225   :  { %5787 = vmax.xlane.f32.xlu1 %v5786_v47 }
0x122d   :  { %5802 = vmax.xlane.f32.xlu1 %v5801_v28 }
0x122e   :  { %v5758_v44 = vpop.xlane.xlu2 %5757 }
0x122f   :  { %v5804_v32 = vsub.f32 %v10239_v2, %v5758_v44 }
0x1231   :  { %v5820_v50 = vmul.f32 1.442695, %v5804_v32 }
0x1233   :  { %7537 = vpow2.f32 %v5820_v50  ;;  %v5764_v9 = vpop.xlane.xlu0 %5763 }
0x1234   :  { %v5806_v31 = vsub.f32 %v10243_v22, %v5764_v9 }
0x1235   :  { %v5767_v55 = vpop.xlane.xlu1 %5766  ;;  %5796 = vmax.xlane.f32.xlu1 %v5795_v58 }
0x1236   :  { %v5824_v36 = vmul.f32 1.442695, %v5806_v31  ;;  %v5807_v53 = vsub.f32 %v10247_v4, %v5767_v55 }
0x1238   :  { %7539 = vpow2.f32 %v5824_v36  ;;  %v5826_v33 = vmul.f32 1.442695, %v5807_v53 }
0x1239   :  { %v10316_v48 = vpop.eup %7537 }
0x123a   :  { %7541 = vpow2.f32 %v5826_v33  ;;  %v5852_v2 = vsel %vm2020_vm3, %v10316_v48, 0.0 }
0x123b   :  { %5853 = vadd.xlane.f32.xlu2 %v5852_v2 }
0x123d   :  { %v5761_v38 = vpop.xlane.xlu1 %5760 }
0x123e   :  { %v10320_v10 = vpop.eup %7539  ;;  %v5805_v22 = vsub.f32 %v10235_v8, %v5761_v38 }
0x123f   :  { %v5858_v43 = vsel %vm2020_vm3, %v10320_v10, 0.0 }
0x1240   :  { %v10325_v1 = vpop.eup %7541  ;;  %v5822_v4 = vmul.f32 1.442695, %v5805_v22  ;;  %5859 = vadd.xlane.f32.xlu0 %v5858_v43 }
0x1241   :  { %v5861_v16 = vsel %vm2020_vm3, %v10325_v1, 0.0 }
0x1242   :  { %7543 = vpow2.f32 %v5822_v4 }
0x1243   :  { %5862 = vadd.xlane.f32.xlu2 %v5861_v16  ;;  %v5776_v17 = vpop.xlane.xlu2 %5775 }
0x1244   :  { %v5810_v57 = vsub.f32 %v10255_v30, %v5776_v17 }
0x1245   :  { %v5779_v41 = vpop.xlane.xlu0 %5778  ;;  %v5770_v51 = vpop.xlane.xlu1 %5769 }
0x1246   :  { %v5811_v24 = vsub.f32 %v10259_v11, %v5779_v41  ;;  %v5808_v52 = vsub.f32 %v10251_v54, %v5770_v51  ;;  %v5832_v28 = vmul.f32 1.442695, %v5810_v57 }
0x1248   :  { %v10331_v8 = vpop.eup %7543  ;;  %v5834_v13 = vmul.f32 1.442695, %v5811_v24  ;;  %v5828_v6 = vmul.f32 1.442695, %v5808_v52 }
0x1249   :  { %v5855_v47 = vsel %vm2020_vm3, %v10331_v8, 0.0 }
0x124a   :  { %7545 = vpow2.f32 %v5834_v13  ;;  %5856 = vadd.xlane.f32.xlu1 %v5855_v47 }
0x124b   :  { %7547 = vpow2.f32 %v5828_v6 }
0x124c   :  { %7549 = vpow2.f32 %v5832_v28 }
0x124d   :  { %v5773_v44 = vpop.xlane.xlu0 %5772 }
0x124e   :  { %v5809_v32 = vsub.f32 %v10237_v15, %v5773_v44 }
0x1250   :  { %v10337_v50 = vpop.eup %7545  ;;  %v5830_v54 = vmul.f32 1.442695, %v5809_v32 }
0x1251   :  { %v10339_v11 = vpop.eup %7547  ;;  %v5873_v30 = vsel %vm2020_vm3, %v10337_v50, 0.0 }
0x1252   :  { %7551 = vpow2.f32 %v5830_v54  ;;  %5874 = vadd.xlane.f32.xlu1 %v5873_v30  ;;  %v5864_v9 = vsel %vm2020_vm3, %v10339_v11, 0.0  ;;  %v10345_v58 = vpop.eup %7549 }
0x1253   :  { %5865 = vadd.xlane.f32.xlu2 %v5864_v9  ;;  %v5870_v53 = vsel %vm2020_vm3, %v10345_v58, 0.0 }
0x1255   :  { %v5791_v31 = vpop.xlane.xlu2 %5790 }
0x1256   :  { %v5815_v15 = vsub.f32 %v10275_v49, %v5791_v31 }
0x1258   :  { %v10348_v55 = vpop.eup %7551  ;;  %v5842_v36 = vmul.f32 1.442695, %v5815_v15 }
0x1259   :  { %v5867_v33 = vsel %vm2020_vm3, %v10348_v55, 0.0 }
0x125a   :  { %7553 = vpow2.f32 %v5842_v36  ;;  %5871 = vadd.xlane.f32.xlu1 %v5870_v53  ;;  %5868 = vadd.xlane.f32.xlu0 %v5867_v33 }
0x125d   :  { %v5785_v2 = vpop.xlane.xlu2 %5784  ;;  %v6144_v52 = vpop.permute.xlu1 %6143 }
0x125e   :  { %v5813_v38 = vsub.f32 %v10265_v56, %v5785_v2  ;;  %v5396_v2 = vmul.f32 %v10126_v34, %v10875_v14 }
0x1260   :  { %v10355_v22 = vpop.eup %7553  ;;  %v5838_v43 = vmul.f32 1.442695, %v5813_v38  ;;  %v10368_v57 = vpop.permute.xlu0 %6191 }
0x1261   :  { %v5885_v49 = vsel %vm2020_vm3, %v10355_v22, 0.0 }
0x1262   :  { %7555 = vpow2.f32 %v5838_v43  ;;  %5886 = vadd.xlane.f32.xlu2 %v5885_v49  ;;  %v5412_v43 = vpack.c.bf16 %v5396_v2, %v5396_v2 }
0x1265   :  { %v5794_v4 = vpop.xlane.xlu2 %5793  ;;  %v10370_v13 = vpop.permute.xlu1 %6215 }
0x1266   :  { %v5816_v16 = vsub.f32 %v10285_v26, %v5794_v4 }
0x1268   :  { %v10360_v17 = vpop.eup %7555  ;;  %v5844_v41 = vmul.f32 1.442695, %v5816_v16 }
0x1269   :  { %v5879_v51 = vsel %vm2020_vm3, %v10360_v17, 0.0 }
0x126a   :  { %7557 = vpow2.f32 %v5844_v41  ;;  %5880 = vadd.xlane.f32.xlu2 %v5879_v51  ;;  %v6285_v41 = vunpack.c.l.b16 %v5412_v43  ;;  %v5394_v43 = vmul.f32 %v10126_v34, %v10880_v45  ;;  %v6173_v45 = vsel %vm2221_vm4, %v10307_v21, 0 }
0x126c   :  { %v6286_v51 = vpack.c.b16 %v6285_v41, %v6285_v41 }
0x126d   :  { %v10373_v28 = vpop.permute.xlu1 %6263 }
0x1270   :  { %v10364_v56 = vpop.eup %7557 }
0x1271   :  { %v5888_v24 = vsel %vm2020_vm3, %v10364_v56, 0.0 }
0x1272   :  { %5889 = vadd.xlane.f32.xlu2 %v5888_v24 }
0x128b   :  { %v5782_v26 = vpop.xlane.xlu0 %5781 }
0x128c   :  { %v5812_v6 = vsub.f32 %v10267_v27, %v5782_v26 }
0x128e   :  { %v5836_v47 = vmul.f32 1.442695, %v5812_v6 }
0x1290   :  { %7559 = vpow2.f32 %v5836_v47 }
0x1293   :  { %v5800_v31 = vpop.xlane.xlu0 %5799 }
0x1294   :  { %v5818_v53 = vsub.f32 %v10292_v61, %v5800_v31 }
0x1296   :  { %v10375_v44 = vpop.eup %7559 }
0x1297   :  { %v5876_v32 = vsel %vm2020_vm3, %v10375_v44, 0.0 }
0x1298   :  { %v5788_v54 = vpop.xlane.xlu1 %5787  ;;  %5877 = vadd.xlane.f32.xlu1 %v5876_v32 }
0x1299   :  { %v5814_v30 = vsub.f32 %v10273_v7, %v5788_v54  ;;  %v5848_v7 = vmul.f32 1.442695, %v5818_v53  ;;  %v5397_v53 = vmul.f32 %v10126_v34, %v10881_v59  ;;  %v6221_v59 = vsel %vm2221_vm4, %v10370_v13, 0 }
0x129b   :  { %v5840_v9 = vmul.f32 1.442695, %v5814_v30 }
0x129d   :  { %7561 = vpow2.f32 %v5840_v9 }
0x12a0   :  { %v5803_v15 = vpop.xlane.xlu1 %5802 }
0x12a1   :  { %v5819_v36 = vsub.f32 %v10295_v23, %v5803_v15  ;;  %v6149_v15 = vsel %vm2221_vm4, %v6144_v52, 0  ;;  %v5413_v52 = vpack.c.bf16 %v5397_v53, %v5397_v53 }
0x12a3   :  { %v10381_v27 = vpop.eup %7561  ;;  %v5850_v33 = vmul.f32 1.442695, %v5819_v36 }
0x12a4   :  { %v5882_v38 = vsel %vm2020_vm3, %v10381_v27, 0.0 }
0x12a5   :  { %7563 = vpow2.f32 %v5850_v33  ;;  %5883 = vadd.xlane.f32.xlu0 %v5882_v38 }
0x12a6   :  { %7565 = vpow2.f32 %v5848_v7 }
0x12a8   :  { %v5797_v49 = vpop.xlane.xlu1 %5796 }
0x12a9   :  { %v5817_v4 = vsub.f32 %v10283_v3, %v5797_v49  ;;  %v6309_v49 = vunpack.c.l.b16 %v5413_v52 }
0x12ab   :  { %v10389_v16 = vpop.eup %7563  ;;  %v5846_v23 = vmul.f32 1.442695, %v5817_v4 }
0x12ac   :  { %v5897_v61 = vsel %vm2020_vm3, %v10389_v16, 0.0  ;;  %v10393_v24 = vpop.eup %7565 }
0x12ad   :  { %7567 = vpow2.f32 %v5846_v23  ;;  %5898 = vadd.xlane.f32.xlu2 %v5897_v61  ;;  %v5894_v47 = vsel %vm2020_vm3, %v10393_v24, 0.0 }
0x12ae   :  { %v5854_v14 = vpop.xlane.xlu2 %5853 }
0x12af   :  { %7569 = vrcp.f32 %v5854_v14  ;;  %v6310_v14 = vpack.c.b16 %v6309_v49, %v6309_v49 }
0x12b1   :  { %6287 = vrot.lane.b32.xlu1 %v6286_v51, %s7734_s3 }
0x12b3   :  { %v10396_v26 = vpop.eup %7567  ;;  %v5860_v3 = vpop.xlane.xlu0 %5859 }
0x12b4   :  { %7571 = vrcp.f32 %v5860_v3  ;;  %v5891_v6 = vsel %vm2020_vm3, %v10396_v26, 0.0 }
0x12b5   :  { %v7570_v32 = vpop.eup %7569  ;;  %5892 = vadd.xlane.f32.xlu0 %v5891_v6  ;;  %5895 = vadd.xlane.f32.xlu2 %v5894_v47 }
0x12b6   :  { %v5916_v54 = vmul.f32 %v7570_v32, %v10316_v48  ;;  %v5863_v30 = vpop.xlane.xlu2 %5862  ;;  %v6197_v48 = vsel %vm2221_vm4, %v10368_v57, 0 }
0x12b7   :  { %7573 = vrcp.f32 %v5863_v30 }
0x12b8   :  { %v5932_v9 = vpack.c.bf16 %v5916_v54, %v5916_v54 }
0x12ba   :  { %v7572_v31 = vpop.eup %7571  ;;  %7248 = vmatmul.msk.bf16.vlgmr.msra.gmra.mxu1 %vm2020_vm3, %v5932_v9 }
0x12bb   :  { %v5918_v36 = vmul.f32 %v7572_v31, %v10320_v10  ;;  %6158 = vmatpush.bf16.msra.mxu1 %v6149_v15 }
0x12bd   :  { %v7574_v33 = vpop.eup %7573  ;;  %v5934_v2 = vpack.c.bf16 %v5918_v36, %v5918_v36  ;;  %v5857_v38 = vpop.xlane.xlu1 %5856 }
0x12be   :  { %v5919_v7 = vmul.f32 %v7574_v33, %v10325_v1  ;;  %7575 = vrcp.f32 %v5857_v38  ;;  %v5410_v1 = vpack.c.bf16 %v5394_v43, %v5394_v43 }
0x12bf   :  { %7250 = vmatmul.msk.bf16.vlgmr.msra.gmra.mxu3 %vm2020_vm3, %v5934_v2 }
0x12c0   :  { %v5935_v10 = vpack.c.bf16 %v5919_v7, %v5919_v7  ;;  %6206 = vmatpush.bf16.msra.mxu3 %v6197_v48  ;;  %v6237_v34 = vunpack.c.l.b16 %v5410_v1 }
0x12c2   :  { %7251 = vmatmul.msk.bf16.vlgmr.msrb.gmra.mxu0 %vm2020_vm3, %v5935_v10  ;;  %v6238_v13 = vpack.c.b16 %v6237_v34, %v6237_v34 }
0x12c3   :  { %6230 = vmatpush.bf16.msrb.mxu0 %v6221_v59 }
0x12c4   :  { %v7576_v4 = vpop.eup %7575 }
0x12c5   :  { %v5917_v23 = vmul.f32 %v7576_v4, %v10331_v8  ;;  %v5875_v57 = vpop.xlane.xlu1 %5874 }
0x12c6   :  { %7577 = vrcp.f32 %v5875_v57  ;;  %v5866_v41 = vpop.xlane.xlu2 %5865 }
0x12c7   :  { %v5933_v61 = vpack.c.bf16 %v5917_v23, %v5917_v23  ;;  %7579 = vrcp.f32 %v5866_v41 }
0x12c9   :  { %7249 = vmatmul.msk.bf16.vlgmr.msra.gmra.mxu2 %vm2020_vm3, %v5933_v61  ;;  %6311 = vrot.lane.b32.xlu0 %v6310_v14, %s7734_s3 }
0x12ca   :  { %6182 = vmatpush.bf16.msra.mxu2 %v6173_v45 }
0x12cc   :  { %v7578_v51 = vpop.eup %7577 }
0x12cd   :  { %v7580_v3 = vpop.eup %7579  ;;  %v5923_v8 = vmul.f32 %v7578_v51, %v10337_v50  ;;  %v5872_v6 = vpop.xlane.xlu1 %5871  ;;  %6239 = vrot.lane.b32.xlu2 %v6238_v13, %s7734_s3 }
0x12ce   :  { %v5869_v47 = vpop.xlane.xlu0 %5868  ;;  %v5920_v32 = vmul.f32 %v7580_v3, %v10339_v11  ;;  %7581 = vrcp.f32 %v5872_v6  ;;  %v6269_v11 = vsel %vm2221_vm4, %v10373_v28, 0 }
0x12cf   :  { %v5939_v54 = vpack.c.bf16 %v5923_v8, %v5923_v8  ;;  %7583 = vrcp.f32 %v5869_v47 }
0x12d0   :  { %v5936_v21 = vpack.c.bf16 %v5920_v32, %v5920_v32 }
0x12d2   :  { %7252 = vmatmul.msk.bf16.vlgmr.msrb.gmra.mxu1 %vm2020_vm3, %v5936_v21  ;;  %7255 = vmatmul.msk.bf16.vlgmr.msra.gmra.mxu0 %vm2020_vm3, %v5939_v54 }
0x12d4   :  { %v7582_v30 = vpop.eup %7581 }
0x12d5   :  { %v7584_v9 = vpop.eup %7583  ;;  %v5922_v31 = vmul.f32 %v7582_v30, %v10345_v58  ;;  %v5887_v15 = vpop.xlane.xlu2 %5886 }
0x12d6   :  { %v5921_v50 = vmul.f32 %v7584_v9, %v10348_v55  ;;  %7585 = vrcp.f32 %v5887_v15 }
0x12d7   :  { %v5938_v36 = vpack.c.bf16 %v5922_v31, %v5922_v31 }
0x12d8   :  { %v5937_v53 = vpack.c.bf16 %v5921_v50, %v5921_v50 }
0x12d9   :  { %7254 = vmatmul.msk.bf16.vlgmr.msrb.gmra.mxu3 %vm2020_vm3, %v5938_v36 }
0x12da   :  { %7253 = vmatmul.msk.bf16.vlgmr.msrb.gmra.mxu2 %vm2020_vm3, %v5937_v53 }
0x12db   :  { %6278 = vmatpush.bf16.msrb.mxu2 %v6269_v11 }
0x12dc   :  { %v7586_v33 = vpop.eup %7585 }
0x12dd   :  { %v5927_v2 = vmul.f32 %v7586_v33, %v10355_v22  ;;  %v5881_v38 = vpop.xlane.xlu2 %5880 }
0x12de   :  { %7587 = vrcp.f32 %v5881_v38 }
0x12df   :  { %v5943_v58 = vpack.c.bf16 %v5927_v2, %v5927_v2 }
0x12e2   :  { %7259 = vmatmul.msk.bf16.vlgmr.msrb.gmra.mxu0 %vm2020_vm3, %v5943_v58 }
0x12e4   :  { %v7588_v55 = vpop.eup %7587 }
0x12e5   :  { %v5925_v7 = vmul.f32 %v7588_v55, %v10360_v17  ;;  %v5890_v22 = vpop.xlane.xlu2 %5889 }
0x12e7   :  { %v5941_v48 = vpack.c.bf16 %v5925_v7, %v5925_v7 }
0x12ea   :  { %7257 = vmatmul.msk.bf16.vlgmr.msra.gmra.mxu2 %vm2020_vm3, %v5941_v48 }
0x130b   :  { %v5878_v52 = vpop.xlane.xlu1 %5877 }
0x130c   :  { %7589 = vrcp.f32 %v5878_v52 }
0x1312   :  { %v7590_v28 = vpop.eup %7589 }
0x1313   :  { %v5924_v43 = vmul.f32 %v7590_v28, %v10375_v44 }
0x1315   :  { %v5940_v10 = vpack.c.bf16 %v5924_v43, %v5924_v43 }
0x1317   :  { %7256 = vmatmul.msk.bf16.vlgmr.msra.gmra.mxu1 %vm2020_vm3, %v5940_v10 }
0x1318   :  { %v5884_v59 = vpop.xlane.xlu0 %5883 }
0x1319   :  { %7591 = vrcp.f32 %v5884_v59 }
0x131a   :  { %7593 = vrcp.f32 %v5890_v22 }
0x131f   :  { %v7592_v49 = vpop.eup %7591 }
0x1320   :  { %v5926_v1 = vmul.f32 %v7592_v49, %v10381_v27  ;;  %v5899_v4 = vpop.xlane.xlu2 %5898  ;;  %v7594_v61 = vpop.eup %7593 }
0x1321   :  { %v5928_v34 = vmul.f32 %v7594_v61, %v10364_v56 }
0x1322   :  { %v5942_v23 = vpack.c.bf16 %v5926_v1, %v5926_v1 }
0x1323   :  { %v6288_v17 = vpop.permute.xlu1 %6287  ;;  %v5944_v6 = vpack.c.bf16 %v5928_v34, %v5928_v34 }
0x1324   :  { %v6293_v57 = vsel %vm2221_vm4, %v6288_v17, 0  ;;  %7258 = vmatmul.msk.bf16.vlgmr.msra.gmra.mxu3 %vm2020_vm3, %v5942_v23 }
0x1325   :  { %6302 = vmatpush.bf16.msrb.mxu3 %v6293_v57  ;;  %v7342_v57 = vld [vmem:[%s10807_s11 + $0x28] sm:$0xff] }
0x1328   :  { %v5893_v41 = vpop.xlane.xlu0 %5892  ;;  %v5896_v44 = vpop.xlane.xlu2 %5895 }
0x1329   :  { %7595 = vrcp.f32 %v5893_v41 }
0x132a   :  { %7597 = vrcp.f32 %v5896_v44  ;;  %v7341_v44 = vld [vmem:[%s10807_s11 + $0x20] sm:$0xff] }
0x132b   :  { %7599 = vrcp.f32 %v5899_v4 }
0x132f   :  { %v7596_v14 = vpop.eup %7595 }
0x1330   :  { %v7598_v45 = vpop.eup %7597  ;;  %v5929_v27 = vmul.f32 %v7596_v14, %v10396_v26  ;;  %v6240_v13 = vpop.permute.xlu2 %6239 }
0x1331   :  { %v5930_v51 = vmul.f32 %v7598_v45, %v10393_v24  ;;  %v6245_v3 = vsel %vm2221_vm4, %v6240_v13, 0  ;;  %v7600_v56 = vpop.eup %7599 }
0x1332   :  { %v5945_v8 = vpack.c.bf16 %v5929_v27, %v5929_v27  ;;  %6254 = vmatpush.bf16.msrb.mxu1 %v6245_v3  ;;  %v5931_v26 = vmul.f32 %v7600_v56, %v10389_v16 }
0x1333   :  { %v5946_v47 = vpack.c.bf16 %v5930_v51, %v5930_v51 }
0x1334   :  { %7261 = vmatmul.msk.bf16.vlgmr.msrb.gmra.mxu2 %vm2020_vm3, %v5945_v8  ;;  %v5947_v24 = vpack.c.bf16 %v5931_v26, %v5931_v26 }
0x1335   :  { %7262 = vmatmul.msk.bf16.vlgmr.msrb.gmra.mxu3 %vm2020_vm3, %v5946_v47  ;;  %7260 = vmatmul.msk.bf16.vlgmr.msrb.gmra.mxu1 %vm2020_vm3, %v5944_v6 }
0x1336   :  { %6378 = vmatpush.bf16.msra.mxu1 %v7342_v57 }
0x1337   :  { %v5968_v32 = vpop.f32.mrf.mxu1 }
0x133a   :  { %6379 = vmatpush.bf16.msra.mxu1 %v7341_v44 }
0x133b   :  { %v6312_v54 = vpop.permute.xlu0 %6311 }
0x133c   :  { %v6317_v21 = vsel %vm2221_vm4, %v6312_v54, 0 }
0x133d   :  { %6326 = vmatpush.bf16.msra.mxu0 %v6317_v21 }
0x133f   :  { %v5970_v30 = vpop.f32.mrf.mxu1  ;;  %v6040_v9 = vpop.f32.mrf.mxu0 }
0x1340   :  { %7263 = vmatmul.msk.bf16.vlgmr.msra.gmra.mxu0 %vm2020_vm3, %v5947_v24 }
0x1342   :  { %v6016_v31 = vpop.f32.mrf.mxu3 }
0x1347   :  { %v6042_v15 = vpop.f32.mrf.mxu0 }
0x134a   :  { %v6018_v50 = vpop.f32.mrf.mxu3 }
0x134c   :  { %v5992_v36 = vpop.f32.mrf.mxu2 }
0x134d   :  { %v6332_v53 = vadd.f32 %v5992_v36, %v5968_v32 }
0x134f   :  { %v6334_v11 = vadd.f32 %v6332_v53, %v6016_v31  ;;  %v6064_v33 = vpop.f32.mrf.mxu1  ;;  %v6136_v2 = vpop.f32.mrf.mxu0 }
0x1351   :  { %v6336_v38 = vadd.f32 %v6334_v11, %v6040_v9  ;;  %v7390_v9 = vld [vmem:[%s10808_s12 + $0x2] ss:$0 sm:$0xff] }
0x1353   :  { %v6338_v58 = vadd.f32 %v6336_v38, %v6064_v33 }
0x1354   :  { %v5994_v16 = vpop.f32.mrf.mxu2 }
0x1357   :  { %v6066_v55 = vpop.f32.mrf.mxu1  ;;  %v6138_v7 = vpop.f32.mrf.mxu0 }
0x135c   :  { %v6112_v48 = vpop.f32.mrf.mxu3 }
0x135d   :  { %v6088_v52 = vpop.f32.mrf.mxu2 }
0x135e   :  { %v6340_v28 = vadd.f32 %v6338_v58, %v6088_v52 }
0x135f   :  { %v6232_v43 = vpop.f32.mrf.mxu0 }
0x1360   :  { %v6342_v10 = vadd.f32 %v6340_v28, %v6112_v48 }
0x1362   :  { %v6344_v22 = vadd.f32 %v6342_v10, %v6136_v2 }
0x1364   :  { %v6114_v59 = vpop.f32.mrf.mxu3 }
0x1365   :  { %v6090_v49 = vpop.f32.mrf.mxu2 }
0x1367   :  { %v6234_v1 = vpop.f32.mrf.mxu0 }
0x136d   :  { %v6184_v4 = vpop.f32.mrf.mxu2 }
0x1375   :  { %v6186_v23 = vpop.f32.mrf.mxu2 }
0x1394   :  { %v6160_v17 = vpop.f32.mrf.mxu1 }
0x1395   :  { %v6333_v14 = vadd.f32 %v6184_v4, %v6160_v17 }
0x139c   :  { %v6162_v41 = vpop.f32.mrf.mxu1 }
0x13a7   :  { %v6208_v61 = vpop.f32.mrf.mxu3 }
0x13a8   :  { %v6335_v45 = vadd.f32 %v6333_v14, %v6208_v61 }
0x13aa   :  { %v6337_v13 = vadd.f32 %v6335_v45, %v6232_v43 }
0x13af   :  { %v6210_v34 = vpop.f32.mrf.mxu3 }
0x13b2   :  { %v6256_v27 = vpop.f32.mrf.mxu1 }
0x13b3   :  { %v6339_v51 = vadd.f32 %v6337_v13, %v6256_v27 }
0x13b7   :  { %v6280_v3 = vpop.f32.mrf.mxu2 }
0x13b8   :  { %v6341_v8 = vadd.f32 %v6339_v51, %v6280_v3  ;;  %v6304_v6 = vpop.f32.mrf.mxu3 }
0x13ba   :  { %v6258_v47 = vpop.f32.mrf.mxu1  ;;  %v6343_v56 = vadd.f32 %v6341_v8, %v6304_v6 }
0x13bd   :  { %v6328_v32 = vpop.f32.mrf.mxu0 }
0x13be   :  { %v6345_v26 = vadd.f32 %v6343_v56, %v6328_v32 }
0x13bf   :  { %v6282_v54 = vpop.f32.mrf.mxu2 }
0x13c0   :  { %v6346_v21 = vpack.c.bf16 %v6345_v26, %v6344_v22  ;;  %v6306_v24 = vpop.f32.mrf.mxu3 }
0x13c2   :  { %7277 = vmatmul.msk.bf16.vlgmr.msra.gmra.mxu1 %vm1530_vm2, %v6346_v21 }
0x13c5   :  { %v6330_v30 = vpop.f32.mrf.mxu0 }
0x143f   :  { %v6381_v31 = vpop.f32.mrf.mxu1 }
0x1440   :  { %v6382_v15 = vadd.f32 %v7390_v9, %v6381_v31 }
0x1442   :  { %v6388_v50 = vrot.slane %v6382_v15, 1  ;;  %v6389_v36 = vrot.slane %v6382_v15, 2  ;;  %v6390_v53 = vrot.slane %v6382_v15, 3  ;;  %v6391_v11 = vrot.slane %v6382_v15, 4 }
0x1443   :  { %v6392_v33 = vrot.slane %v6382_v15, 5  ;;  %v6393_v2 = vrot.slane %v6382_v15, 6  ;;  %v6394_v38 = vrot.slane %v6382_v15, 7  ;;  %v10478_v52 = vadd.f32 %v6382_v15, %v9839_v60 }
0x1444   :  { %v10463_v58 = vadd.f32 %v6388_v50, %v9827_v29  ;;  %v10466_v16 = vadd.f32 %v6389_v36, %v9829_v62  ;;  %v10469_v55 = vadd.f32 %v6390_v53, %v9831_v46  ;;  %v10472_v7 = vadd.f32 %v6391_v11, %v9833_v35 }
0x1445   :  { %v10475_v48 = vadd.f32 %v6392_v33, %v9835_v18  ;;  %v10483_v62 = vadd.f32 %v6393_v2, %v9837_v37  ;;  %v10486_v46 = vadd.f32 %v6394_v38, %v9841_v0 }
0x1446   :  { %v6454_v28 = vrot.slane %v10463_v58, 7  ;;  %v6456_v29 = vrot.slane %v10466_v16, 6  ;;  %v6458_v18 = vrot.slane %v10469_v55, 5  ;;  %v6460_v22 = vrot.slane %v10472_v7, 4 }
0x1447   :  { %v6383_v43 = vpop.f32.mrf.mxu1  ;;  %v6462_v59 = vrot.slane %v10475_v48, 3  ;;  %v6464_v0 = vrot.slane %v10483_v62, 2  ;;  %v6466_v44 = vrot.slane %v10486_v46, 1 }
0x1448   :  { %v6384_v10 = vadd.f32 %v7390_v9, %v6383_v43  ;;  %v6455_v35 = vsel %vm1346_vm11, %v6454_v28, %v10478_v52 }
0x1449   :  { %v6457_v60 = vsel %vm1349_vm12, %v6456_v29, %v6455_v35 }
0x144a   :  { %v6459_v49 = vsel %vm1352_vm13, %v6458_v18, %v6457_v60  ;;  %v6395_v1 = vrot.slane %v6384_v10, 1  ;;  %v6396_v37 = vrot.slane %v6384_v10, 2  ;;  %v6397_v4 = vrot.slane %v6384_v10, 3 }
0x144b   :  { %v6461_v23 = vsel %vm1355_vm14, %v6460_v22, %v6459_v49  ;;  %v6398_v17 = vrot.slane %v6384_v10, 4  ;;  %v6399_v57 = vrot.slane %v6384_v10, 5  ;;  %v6400_v61 = vrot.slane %v6384_v10, 6 }
0x144c   :  { %v6463_v41 = vsel %vm1358_vm15, %v6462_v59, %v6461_v23  ;;  %v10500_v14 = vadd.f32 %v6395_v1, %v9859_v19  ;;  %v6401_v45 = vrot.slane %v6384_v10, 7  ;;  %v10504_v27 = vadd.f32 %v6396_v37, %v9866_v20 }
0x144d   :  { %v6465_v34 = vsel %vm1361_vm0, %v6464_v0, %v6463_v41  ;;  %v10507_v13 = vadd.f32 %v6397_v4, %v9868_v25  ;;  %v10511_v3 = vadd.f32 %v6384_v10, %v9871_v42  ;;  %v10514_v8 = vadd.f32 %v6398_v17, %v9873_v5 }
0x144e   :  { %v6467_v51 = vsel %vm1364_vm1, %v6466_v44, %v6465_v34  ;;  %v10518_v6 = vadd.f32 %v6399_v57, %v9876_v12  ;;  %v6468_v47 = vrot.slane %v10500_v14, 7  ;;  %v6470_v20 = vrot.slane %v10504_v27, 6 }
0x144f   :  { %v6484_v19 = vsel %vm1530_vm2, %v6467_v51, 0.0  ;;  %v10523_v25 = vadd.f32 %v6400_v61, %v9881_v63  ;;  %v10526_v56 = vadd.f32 %v6401_v45, %v9883_v39  ;;  %v6472_v5 = vrot.slane %v10507_v13, 5 }
0x1450   :  { %6485 = vadd.xlane.f32.xlu1 %v6484_v19  ;;  %v6469_v42 = vsel %vm1346_vm11, %v6468_v47, %v10511_v3  ;;  %v6474_v12 = vrot.slane %v10514_v8, 4  ;;  %v6476_v54 = vrot.slane %v10518_v6, 3 }
0x1451   :  { %v6471_v32 = vsel %vm1349_vm12, %v6470_v20, %v6469_v42  ;;  %v6478_v63 = vrot.slane %v10523_v25, 2  ;;  %v6480_v24 = vrot.slane %v10526_v56, 1 }
0x1452   :  { %v6473_v26 = vsel %vm1352_vm13, %v6472_v5, %v6471_v32 }
0x1453   :  { %v6475_v21 = vsel %vm1355_vm14, %v6474_v12, %v6473_v26 }
0x1454   :  { %v6477_v39 = vsel %vm1358_vm15, %v6476_v54, %v6475_v21 }
0x1455   :  { %v6479_v30 = vsel %vm1361_vm0, %v6478_v63, %v6477_v39 }
0x1456   :  { %v6481_v9 = vsel %vm1364_vm1, %v6480_v24, %v6479_v30 }
0x1457   :  { %v6487_v31 = vsel %vm1530_vm2, %v6481_v9, 0.0 }
0x1458   :  { %6488 = vadd.xlane.f32.xlu2 %v6487_v31 }
0x14c3   :  { %v6486_v15 = vpop.xlane.xlu1 %6485 }
0x14c4   :  { %v6490_v50 = vmul.f32 %v6486_v15, %v10873_v40 }
0x14c6   :  { %v6494_v36 = vrot.slane %v6490_v50, 1  ;;  %v6495_v53 = vrot.slane %v6490_v50, 2  ;;  %v6496_v11 = vrot.slane %v6490_v50, 3  ;;  %v6497_v33 = vrot.slane %v6490_v50, 4 }
0x14c7   :  { %v6498_v2 = vrot.slane %v6490_v50, 5  ;;  %v6499_v38 = vrot.slane %v6490_v50, 6  ;;  %v6500_v28 = vrot.slane %v6490_v50, 7  ;;  %v10544_v29 = vsub.f32 %v10478_v52, %v6490_v50 }
0x14c8   :  { %v10547_v43 = vsub.f32 %v10463_v58, %v6494_v36  ;;  %v10550_v10 = vsub.f32 %v10466_v16, %v6495_v53  ;;  %v10553_v35 = vsub.f32 %v10469_v55, %v6496_v11  ;;  %v10556_v18 = vsub.f32 %v10472_v7, %v6497_v33 }
0x14c9   :  { %v10559_v60 = vsub.f32 %v10475_v48, %v6498_v2  ;;  %v10562_v22 = vsub.f32 %v10483_v62, %v6499_v38  ;;  %v10565_v59 = vsub.f32 %v10486_v46, %v6500_v28  ;;  %v6540_v41 = vmul.f32 %v10544_v29, %v10544_v29 }
0x14ca   :  { %v6541_v49 = vmul.f32 %v10547_v43, %v10547_v43  ;;  %v6542_v1 = vmul.f32 %v10550_v10, %v10550_v10  ;;  %v6543_v37 = vmul.f32 %v10553_v35, %v10553_v35  ;;  %v6544_v4 = vmul.f32 %v10556_v18, %v10556_v18 }
0x14cb   :  { %v6545_v23 = vmul.f32 %v10559_v60, %v10559_v60  ;;  %v6546_v0 = vmul.f32 %v10562_v22, %v10562_v22  ;;  %v6547_v17 = vmul.f32 %v10565_v59, %v10565_v59  ;;  %v6489_v57 = vpop.xlane.xlu2 %6488 }
0x14cc   :  { %v6572_v44 = vrot.slane %v6541_v49, 7  ;;  %v6574_v61 = vrot.slane %v6542_v1, 6  ;;  %v6491_v34 = vmul.f32 %v6489_v57, %v10873_v40  ;;  %v6576_v45 = vrot.slane %v6543_v37, 5 }
0x14cd   :  { %v6578_v51 = vrot.slane %v6544_v4, 4  ;;  %v6580_v47 = vrot.slane %v6545_v23, 3  ;;  %v6582_v20 = vrot.slane %v6546_v0, 2  ;;  %v6584_v42 = vrot.slane %v6547_v17, 1 }
0x14ce   :  { %v6573_v19 = vsel %vm1346_vm11, %v6572_v44, %v6540_v41  ;;  %v6501_v32 = vrot.slane %v6491_v34, 1  ;;  %v6502_v12 = vrot.slane %v6491_v34, 2  ;;  %v6503_v26 = vrot.slane %v6491_v34, 3 }
0x14cf   :  { %v6575_v5 = vsel %vm1349_vm12, %v6574_v61, %v6573_v19  ;;  %v6504_v21 = vrot.slane %v6491_v34, 4  ;;  %v6505_v63 = vrot.slane %v6491_v34, 5  ;;  %v6506_v39 = vrot.slane %v6491_v34, 6 }
0x14d0   :  { %v6577_v54 = vsel %vm1352_vm13, %v6576_v45, %v6575_v5  ;;  %v6507_v30 = vrot.slane %v6491_v34, 7  ;;  %v10589_v9 = vsub.f32 %v10511_v3, %v6491_v34  ;;  %v10592_v31 = vsub.f32 %v10500_v14, %v6501_v32 }
0x14d1   :  { %v6579_v24 = vsel %vm1355_vm14, %v6578_v51, %v6577_v54  ;;  %v10596_v50 = vsub.f32 %v10504_v27, %v6502_v12  ;;  %v10599_v36 = vsub.f32 %v10507_v13, %v6503_v26  ;;  %v10602_v53 = vsub.f32 %v10514_v8, %v6504_v21 }
0x14d2   :  { %v6581_v15 = vsel %vm1358_vm15, %v6580_v47, %v6579_v24  ;;  %v10606_v33 = vsub.f32 %v10518_v6, %v6505_v63  ;;  %v10609_v2 = vsub.f32 %v10523_v25, %v6506_v39  ;;  %v10613_v28 = vsub.f32 %v10526_v56, %v6507_v30 }
0x14d3   :  { %v6583_v11 = vsel %vm1361_vm0, %v6582_v20, %v6581_v15  ;;  %v6549_v49 = vmul.f32 %v10592_v31, %v10592_v31  ;;  %v6550_v1 = vmul.f32 %v10596_v50, %v10596_v50  ;;  %v6551_v4 = vmul.f32 %v10599_v36, %v10599_v36 }
0x14d4   :  { %v6585_v38 = vsel %vm1364_vm1, %v6584_v42, %v6583_v11  ;;  %v6552_v23 = vmul.f32 %v10602_v53, %v10602_v53  ;;  %v6548_v0 = vmul.f32 %v10589_v9, %v10589_v9  ;;  %v6553_v17 = vmul.f32 %v10606_v33, %v10606_v33 }
0x14d5   :  { %v6602_v37 = vsel %vm1530_vm2, %v6585_v38, 0.0  ;;  %v6586_v57 = vrot.slane %v6549_v49, 7  ;;  %v6588_v41 = vrot.slane %v6550_v1, 6  ;;  %v6554_v44 = vmul.f32 %v10609_v2, %v10609_v2 }
0x14d6   :  { %6603 = vadd.xlane.f32.xlu0 %v6602_v37  ;;  %v6555_v61 = vmul.f32 %v10613_v28, %v10613_v28  ;;  %v6590_v45 = vrot.slane %v6551_v4, 5  ;;  %v6592_v19 = vrot.slane %v6552_v23, 4  ;;  %v6594_v20 = vrot.slane %v6553_v17, 3  ;;  %v7344_v4 = vld [vmem:[%s10811_s15 + $0x28] sm:$0xff] }
0x14d7   :  { %v6587_v34 = vsel %vm1346_vm11, %v6586_v57, %v6548_v0  ;;  %v6596_v5 = vrot.slane %v6554_v44, 2  ;;  %6826 = vmatpush.bf16.msra.mxu2 %v7344_v4  ;;  %v7343_v0 = vld [vmem:[%s10811_s15 + $0x20] sm:$0xff] }
0x14d8   :  { %v6589_v51 = vsel %vm1349_vm12, %v6588_v41, %v6587_v34  ;;  %v6598_v12 = vrot.slane %v6555_v61, 1  ;;  %v10654_v57 = vld [vmem:[%s10809_s13 + $0x2] ss:$0 sm:$0xff] }
0x14d9   :  { %v6591_v47 = vsel %vm1352_vm13, %v6590_v45, %v6589_v51 }
0x14da   :  { %v6593_v42 = vsel %vm1355_vm14, %v6592_v19, %v6591_v47  ;;  %v10657_v19 = vld [vmem:[#allocation8 + $0x2] ss:$0 sm:$0xff] }
0x14db   :  { %v6595_v32 = vsel %vm1358_vm15, %v6594_v20, %v6593_v42  ;;  %6827 = vmatpush.bf16.msra.mxu2 %v7343_v0 }
0x14dc   :  { %v6597_v26 = vsel %vm1361_vm0, %v6596_v5, %v6595_v32 }
0x14dd   :  { %v6599_v54 = vsel %vm1364_vm1, %v6598_v12, %v6597_v26 }
0x14de   :  { %v6605_v21 = vsel %vm1530_vm2, %v6599_v54, 0.0 }
0x14df   :  { %6606 = vadd.xlane.f32.xlu1 %v6605_v21 }
0x1549   :  { %v6604_v63 = vpop.xlane.xlu0 %6603 }
0x154a   :  { %v6608_v39 = vmul.f32 %v6604_v63, %v10873_v40 }
0x154c   :  { %v6610_v24 = vadd.f32 1e-05, %v6608_v39 }
0x154e   :  { %7601 = vrsqrt.f32 %v6610_v24  ;;  %vm6618_vm4 = vweird.f32 %v6610_v24 }
0x1552   :  { %v6607_v30 = vpop.xlane.xlu1 %6606 }
0x1553   :  { %v6609_v11 = vmul.f32 %v6607_v30, %v10873_v40 }
0x1554   :  { %v7602_v15 = vpop.eup %7601 }
0x1555   :  { %v6613_v38 = vmul.f32 %v7602_v15, %v6610_v24  ;;  %v10642_v49 = vadd.f32 1e-05, %v6609_v11  ;;  %vm6619_vm3 = vweird.f32 %v7602_v15 }
0x1556   :  { %vm6620_vm10 = vmor %vm6618_vm4, %vm6619_vm3 }
0x1557   :  { %v6614_v1 = vmul.f32 %v7602_v15, %v6613_v38  ;;  %7603 = vrsqrt.f32 %v10642_v49  ;;  %vm6628_vm7 = vweird.f32 %v10642_v49 }
0x1559   :  { %v6615_v37 = vmul.f32 0.5, %v6614_v1 }
0x155b   :  { %v6616_v23 = vsub.f32 1.5, %v6615_v37 }
0x155d   :  { %v6617_v17 = vmul.f32 %v7602_v15, %v6616_v23  ;;  %v7604_v40 = vpop.eup %7603 }
0x155e   :  { %v6623_v44 = vmul.f32 %v7604_v40, %v10642_v49  ;;  %vm6629_vm6 = vweird.f32 %v7604_v40 }
0x155f   :  { %v6621_v41 = vsel %vm6620_vm10, %v7602_v15, %v6617_v17  ;;  %vm6630_vm8 = vmor %vm6628_vm7, %vm6629_vm6 }
0x1560   :  { %v6634_v61 = vrot.slane %v6621_v41, 1  ;;  %v6635_v34 = vrot.slane %v6621_v41, 2  ;;  %v6636_v45 = vrot.slane %v6621_v41, 3  ;;  %v6637_v51 = vrot.slane %v6621_v41, 4 }
0x1561   :  { %v6638_v47 = vrot.slane %v6621_v41, 5  ;;  %v6639_v20 = vrot.slane %v6621_v41, 6  ;;  %v6640_v42 = vrot.slane %v6621_v41, 7  ;;  %v6664_v5 = vmul.f32 %v6621_v41, %v10544_v29 }
0x1562   :  { %v6665_v32 = vmul.f32 %v6634_v61, %v10547_v43  ;;  %v6666_v12 = vmul.f32 %v6635_v34, %v10550_v10  ;;  %v6667_v26 = vmul.f32 %v6636_v45, %v10553_v35  ;;  %v6668_v54 = vmul.f32 %v6637_v51, %v10556_v18 }
0x1563   :  { %v6669_v21 = vmul.f32 %v6638_v47, %v10559_v60  ;;  %v6670_v63 = vmul.f32 %v6639_v20, %v10562_v22  ;;  %v6671_v39 = vmul.f32 %v6640_v42, %v10565_v59  ;;  %v6683_v24 = vmul.f32 %v10654_v57, %v6664_v5 }
0x1564   :  { %v6684_v30 = vmul.f32 %v10654_v57, %v6665_v32  ;;  %v6685_v29 = vmul.f32 %v10654_v57, %v6666_v12  ;;  %v6686_v43 = vmul.f32 %v10654_v57, %v6667_v26  ;;  %v6687_v10 = vmul.f32 %v10654_v57, %v6668_v54 }
0x1565   :  { %v6688_v35 = vmul.f32 %v10654_v57, %v6669_v21  ;;  %v6702_v18 = vadd.f32 %v10657_v19, %v6683_v24  ;;  %v6624_v15 = vmul.f32 %v7604_v40, %v6623_v44  ;;  %v6689_v60 = vmul.f32 %v10654_v57, %v6670_v63 }
0x1566   :  { %v6703_v22 = vadd.f32 %v10657_v19, %v6684_v30  ;;  %v6704_v59 = vadd.f32 %v10657_v19, %v6685_v29  ;;  %v6705_v11 = vadd.f32 %v10657_v19, %v6686_v43  ;;  %v6706_v38 = vadd.f32 %v10657_v19, %v6687_v10 }
0x1567   :  { %v6718_v1 = vpack.c.bf16 %v6702_v18, %v6702_v18  ;;  %v6625_v37 = vmul.f32 0.5, %v6624_v15  ;;  %v6690_v4 = vmul.f32 %v10654_v57, %v6671_v39  ;;  %v6707_v23 = vadd.f32 %v10657_v19, %v6688_v35 }
0x1568   :  { %v6719_v0 = vpack.c.bf16 %v6703_v22, %v6703_v22  ;;  %v6720_v17 = vpack.c.bf16 %v6704_v59, %v6704_v59  ;;  %v6721_v41 = vpack.c.bf16 %v6705_v11, %v6705_v11  ;;  %v6708_v44 = vadd.f32 %v10657_v19, %v6689_v60 }
0x1569   :  { %v6626_v61 = vsub.f32 1.5, %v6625_v37  ;;  %v10683_v34 = vadd.f32 %v10657_v19, %v6690_v4  ;;  %v6722_v45 = vpack.c.bf16 %v6706_v38, %v6706_v38  ;;  %v6723_v20 = vpack.c.bf16 %v6707_v23, %v6707_v23 }
0x156a   :  { %v10685_v51 = vunpack.c.l.b16 %v6719_v0  ;;  %v10687_v47 = vunpack.c.l.b16 %v6720_v17  ;;  %v6760_v42 = vunpack.c.l.b16 %v6718_v1  ;;  %v10690_v32 = vunpack.c.l.b16 %v6721_v41 }
0x156b   :  { %v6627_v5 = vmul.f32 %v7604_v40, %v6626_v61  ;;  %v6724_v12 = vpack.c.bf16 %v6708_v44, %v6708_v44  ;;  %v6725_v26 = vpack.c.bf16 %v10683_v34, %v10683_v34  ;;  %v10694_v54 = vunpack.c.l.b16 %v6722_v45 }
0x156c   :  { %v6776_v21 = vrot.slane %v10685_v51, 7  ;;  %v6778_v63 = vrot.slane %v10687_v47, 6  ;;  %v10698_v24 = vunpack.c.l.b16 %v6723_v20 }
0x156d   :  { %v6631_v39 = vsel %vm6630_vm8, %v7604_v40, %v6627_v5 }
0x156e   :  { %v6641_v30 = vrot.slane %v6631_v39, 1  ;;  %v6642_v29 = vrot.slane %v6631_v39, 2  ;;  %v6643_v43 = vrot.slane %v6631_v39, 3  ;;  %v6644_v49 = vrot.slane %v6631_v39, 4 }
0x156f   :  { %v6645_v10 = vrot.slane %v6631_v39, 5  ;;  %v6646_v35 = vrot.slane %v6631_v39, 6  ;;  %v6647_v18 = vrot.slane %v6631_v39, 7  ;;  %v6672_v15 = vmul.f32 %v6631_v39, %v10589_v9 }
0x1570   :  { %v6673_v60 = vmul.f32 %v6641_v30, %v10592_v31  ;;  %v6674_v22 = vmul.f32 %v6642_v29, %v10596_v50  ;;  %v6675_v59 = vmul.f32 %v6643_v43, %v10599_v36  ;;  %v6676_v11 = vmul.f32 %v6644_v49, %v10602_v53 }
0x1571   :  { %v6677_v40 = vmul.f32 %v6645_v10, %v10606_v33  ;;  %v6678_v38 = vmul.f32 %v6646_v35, %v10609_v2  ;;  %v6679_v1 = vmul.f32 %v6647_v18, %v10613_v28  ;;  %v6691_v37 = vmul.f32 %v10654_v57, %v6672_v15 }
0x1572   :  { %v6692_v4 = vmul.f32 %v10654_v57, %v6673_v60  ;;  %v6693_v9 = vmul.f32 %v10654_v57, %v6674_v22  ;;  %v6694_v31 = vmul.f32 %v10654_v57, %v6675_v59  ;;  %v6695_v50 = vmul.f32 %v10654_v57, %v6676_v11 }
0x1573   :  { %v6696_v36 = vmul.f32 %v10654_v57, %v6677_v40  ;;  %v6710_v53 = vadd.f32 %v10657_v19, %v6691_v37  ;;  %v6697_v33 = vmul.f32 %v10654_v57, %v6678_v38  ;;  %v6698_v2 = vmul.f32 %v10654_v57, %v6679_v1 }
0x1574   :  { %v6711_v28 = vadd.f32 %v10657_v19, %v6692_v4  ;;  %v6712_v23 = vadd.f32 %v10657_v19, %v6693_v9  ;;  %v6713_v0 = vadd.f32 %v10657_v19, %v6694_v31  ;;  %v6714_v17 = vadd.f32 %v10657_v19, %v6695_v50 }
0x1575   :  { %v6726_v41 = vpack.c.bf16 %v6710_v53, %v6710_v53  ;;  %v6715_v44 = vadd.f32 %v10657_v19, %v6696_v36  ;;  %v6716_v61 = vadd.f32 %v10657_v19, %v6697_v33  ;;  %v6717_v34 = vadd.f32 %v10657_v19, %v6698_v2 }
0x1576   :  { %v6727_v45 = vpack.c.bf16 %v6711_v28, %v6711_v28  ;;  %v6728_v51 = vpack.c.bf16 %v6712_v23, %v6712_v23  ;;  %v6729_v47 = vpack.c.bf16 %v6713_v0, %v6713_v0  ;;  %v6730_v20 = vpack.c.bf16 %v6714_v17, %v6714_v17 }
0x1577   :  { %v6731_v57 = vpack.c.bf16 %v6715_v44, %v6715_v44  ;;  %v6732_v5 = vpack.c.bf16 %v6716_v61, %v6716_v61  ;;  %v6766_v39 = vunpack.c.l.b16 %v6724_v12  ;;  %v6780_v30 = vrot.slane %v10690_v32, 5  ;;  %v7347_v44 = vld [vmem:[%s10813_s17 + $0x50] sm:$0xff]  ;;  %v7346_v61 = vld [vmem:[%s10813_s17 + $0x48] sm:$0xff] }
0x1578   :  { %v6769_v29 = vunpack.c.l.b16 %v6727_v45  ;;  %v6770_v43 = vunpack.c.l.b16 %v6728_v51  ;;  %v6771_v49 = vunpack.c.l.b16 %v6729_v47  ;;  %v6733_v10 = vpack.c.bf16 %v6717_v34, %v6717_v34  ;;  %v7345_v34 = vld [vmem:[%s10813_s17 + $0x40] sm:$0xff] }
0x1579   :  { %v6768_v35 = vunpack.c.l.b16 %v6726_v41  ;;  %v6772_v18 = vunpack.c.l.b16 %v6730_v20  ;;  %v6777_v15 = vsel %vm1346_vm11, %v6776_v21, %v6760_v42  ;;  %v6782_v60 = vrot.slane %v10694_v54, 4  ;;  %v7348_v41 = vld [vmem:[%s10813_s17 + $0x58] sm:$0xff]  ;;  %v7393_v51 = vld [vmem:[%s10812_s16 + $0x2] ss:$0 sm:$0xff] }
0x157a   :  { %v6790_v19 = vrot.slane %v6769_v29, 7  ;;  %v6792_v22 = vrot.slane %v6770_v43, 6  ;;  %v6773_v59 = vunpack.c.l.b16 %v6731_v57  ;;  %v6779_v11 = vsel %vm1349_vm12, %v6778_v63, %v6777_v15  ;;  %6877 = vmatpush.bf16.msra.mxu3 %v7348_v41 }
0x157b   :  { %v6767_v40 = vunpack.c.l.b16 %v6725_v26  ;;  %v6774_v38 = vunpack.c.l.b16 %v6732_v5  ;;  %v6781_v12 = vsel %vm1352_vm13, %v6780_v30, %v6779_v11  ;;  %v6784_v32 = vrot.slane %v10698_v24, 3 }
0x157c   :  { %v6775_v1 = vunpack.c.l.b16 %v6733_v10  ;;  %v6783_v37 = vsel %vm1355_vm14, %v6782_v60, %v6781_v12  ;;  %v6791_v4 = vsel %vm1346_vm11, %v6790_v19, %v6768_v35  ;;  %v6794_v9 = vrot.slane %v6771_v49, 5 }
0x157d   :  { %v6785_v42 = vsel %vm1358_vm15, %v6784_v32, %v6783_v37  ;;  %v6786_v54 = vrot.slane %v6766_v39, 2  ;;  %v6793_v21 = vsel %vm1349_vm12, %v6792_v22, %v6791_v4  ;;  %v6796_v31 = vrot.slane %v6772_v18, 4 }
0x157e   :  { %v6795_v63 = vsel %vm1352_vm13, %v6794_v9, %v6793_v21  ;;  %v6798_v26 = vrot.slane %v6773_v59, 3  ;;  %v6800_v24 = vrot.slane %v6774_v38, 2  ;;  %v6788_v53 = vrot.slane %v6767_v40, 1  ;;  %6878 = vmatpush.bf16.msra.mxu3 %v7347_v44  ;;  %v7394_v38 = vld [vmem:[%s10814_s18 + $0x2] ss:$0 sm:$0xff]  ;;  %s7751_s18 = smov [#allocation10]  }
0x157f   :  { %v6787_v50 = vsel %vm1361_vm0, %v6786_v54, %v6785_v42  ;;  %v6797_v36 = vsel %vm1355_vm14, %v6796_v31, %v6795_v63  ;;  %v6802_v2 = vrot.slane %v6775_v1, 1  ;;  %s7008_s28 = sshll.u32 %s7751_s18, 4  ;;  %s7009_s28 = int_to_ptr.vmem [resolvable:$true] %s7008_s28 }
0x1580   :  { %v6799_v33 = vsel %vm1358_vm15, %v6798_v26, %v6797_v36  ;;  %v6789_v23 = vsel %vm1364_vm1, %v6788_v53, %v6787_v50 }
0x1581   :  { %v6801_v28 = vsel %vm1361_vm0, %v6800_v24, %v6799_v33 }
0x1582   :  { %v6803_v0 = vsel %vm1364_vm1, %v6802_v2, %v6801_v28  ;;  %6879 = vmatpush.bf16.msra.mxu3 %v7346_v61 }
0x1583   :  { %v6804_v17 = vpack.c.b16 %v6803_v0, %v6789_v23 }
0x1585   :  { %7292 = vmatmul.msk.bf16.vlgmr.msra.gmra.mxu2 %vm1530_vm2, %v6804_v17 }
0x1586   :  { %6880 = vmatpush.bf16.msra.mxu3 %v7345_v34 }
0x1608   :  { %v6829_v45 = vpop.f32.mrf.mxu2 }
0x1609   :  { %v6830_v47 = vadd.f32 %v7393_v51, %v6829_v45 }
0x160b   :  { %v6834_v5 = vmax.f32 %v6830_v47, 0.0 }
0x1610   :  { %v6831_v20 = vpop.f32.mrf.mxu2 }
0x1611   :  { %v6832_v57 = vadd.f32 %v7393_v51, %v6831_v20 }
0x1613   :  { %v6835_v39 = vmax.f32 %v6832_v57, 0.0 }
0x1615   :  { %v6836_v30 = vpack.c.bf16 %v6835_v39, %v6834_v5 }
0x1617   :  { %7317 = vmatmul.msk.bf16.vlgmr.msra.gmra.mxu3 %vm2847_vm5, %v6836_v30 }
0x169a   :  { %v6882_v29 = vpop.f32.mrf.mxu3 }
0x169b   :  { %v6889_v43 = vrot.slane %v6882_v29, 1  ;;  %v6890_v49 = vrot.slane %v6882_v29, 2  ;;  %v6891_v10 = vrot.slane %v6882_v29, 3  ;;  %v6892_v35 = vrot.slane %v6882_v29, 4 }
0x169c   :  { %v6893_v18 = vrot.slane %v6882_v29, 5  ;;  %v6894_v15 = vrot.slane %v6882_v29, 6  ;;  %v6895_v60 = vrot.slane %v6882_v29, 7  ;;  %v6919_v19 = vadd.f32 %v6882_v29, %v10478_v52 }
0x169d   :  { %v6920_v22 = vadd.f32 %v6889_v43, %v10463_v58  ;;  %v6921_v59 = vadd.f32 %v6890_v49, %v10466_v16  ;;  %v6922_v11 = vadd.f32 %v6891_v10, %v10469_v55  ;;  %v6923_v40 = vadd.f32 %v6892_v35, %v10472_v7 }
0x169e   :  { %v6924_v12 = vadd.f32 %v6893_v18, %v10475_v48  ;;  %v6925_v32 = vadd.f32 %v6894_v15, %v10483_v62  ;;  %v6926_v1 = vadd.f32 %v6895_v60, %v10486_v46  ;;  %v6940_v4 = vadd.f32 %v7394_v38, %v6919_v19 }
0x169f   :  { %v6941_v37 = vadd.f32 %v7394_v38, %v6920_v22  ;;  %v6942_v52 = vadd.f32 %v7394_v38, %v6921_v59  ;;  %v6943_v58 = vadd.f32 %v7394_v38, %v6922_v11  ;;  %v6944_v9 = vadd.f32 %v7394_v38, %v6923_v40 }
0x16a0   :  { %v6945_v55 = vadd.f32 %v7394_v38, %v6924_v12  ;;  %v6946_v54 = vadd.f32 %v7394_v38, %v6925_v32  ;;  %v6947_v7 = vadd.f32 %v7394_v38, %v6926_v1 }
0x16a1   :  { %v6972_v16 = vrot.slane %v6941_v37, 7  ;;  %v6974_v21 = vrot.slane %v6942_v52, 6  ;;  %v6978_v34 = vrot.slane %v6944_v9, 4 }
0x16a2   :  { %v6884_v42 = vpop.f32.mrf.mxu3  ;;  %v6982_v57 = vrot.slane %v6946_v54, 2  ;;  %v6984_v49 = vrot.slane %v6947_v7, 1 }
0x16a3   :  { %v6896_v31 = vrot.slane %v6884_v42, 1  ;;  %v6897_v63 = vrot.slane %v6884_v42, 2  ;;  %v6898_v26 = vrot.slane %v6884_v42, 3  ;;  %v6899_v50 = vrot.slane %v6884_v42, 4 }
0x16a4   :  { %v6900_v48 = vrot.slane %v6884_v42, 5  ;;  %v6901_v36 = vrot.slane %v6884_v42, 6  ;;  %v6902_v62 = vrot.slane %v6884_v42, 7  ;;  %v6927_v46 = vadd.f32 %v6884_v42, %v10511_v3 }
0x16a5   :  { %v6928_v24 = vadd.f32 %v6896_v31, %v10500_v14  ;;  %v6929_v53 = vadd.f32 %v6897_v63, %v10504_v27  ;;  %v6930_v33 = vadd.f32 %v6898_v26, %v10507_v13  ;;  %v6973_v2 = vsel %vm1346_vm11, %v6972_v16, %v6940_v4 }
0x16a6   :  { %v6931_v28 = vadd.f32 %v6899_v50, %v10514_v8  ;;  %v6932_v23 = vadd.f32 %v6900_v48, %v10518_v6  ;;  %v6933_v0 = vadd.f32 %v6901_v36, %v10523_v25  ;;  %v6934_v17 = vadd.f32 %v6902_v62, %v10526_v56 }
0x16a7   :  { %v6949_v41 = vadd.f32 %v7394_v38, %v6928_v24  ;;  %v6950_v44 = vadd.f32 %v7394_v38, %v6929_v53  ;;  %v6951_v61 = vadd.f32 %v7394_v38, %v6930_v33  ;;  %v6976_v3 = vrot.slane %v6943_v58, 5 }
0x16a8   :  { %v6948_v14 = vadd.f32 %v7394_v38, %v6927_v46  ;;  %v6952_v45 = vadd.f32 %v7394_v38, %v6931_v28  ;;  %v6953_v27 = vadd.f32 %v7394_v38, %v6932_v23  ;;  %v6975_v47 = vsel %vm1349_vm12, %v6974_v21, %v6973_v2 }
0x16a9   :  { %v6986_v51 = vrot.slane %v6949_v41, 7  ;;  %v6988_v13 = vrot.slane %v6950_v44, 6  ;;  %v6954_v20 = vadd.f32 %v7394_v38, %v6933_v0  ;;  %v6977_v8 = vsel %vm1352_vm13, %v6976_v3, %v6975_v47 }
0x16aa   :  { %v6980_v6 = vrot.slane %v6945_v55, 3  ;;  %v6990_v56 = vrot.slane %v6951_v61, 5  ;;  %v6955_v5 = vadd.f32 %v7394_v38, %v6934_v17  ;;  %v6979_v39 = vsel %vm1355_vm14, %v6978_v34, %v6977_v8 }
0x16ab   :  { %v6987_v25 = vsel %vm1346_vm11, %v6986_v51, %v6948_v14  ;;  %v6992_v29 = vrot.slane %v6952_v45, 4  ;;  %v6994_v10 = vrot.slane %v6953_v27, 3  ;;  %v6996_v15 = vrot.slane %v6954_v20, 2 }
0x16ac   :  { %v6989_v30 = vsel %vm1349_vm12, %v6988_v13, %v6987_v25  ;;  %v6981_v43 = vsel %vm1358_vm15, %v6980_v6, %v6979_v39  ;;  %v6998_v59 = vrot.slane %v6955_v5, 1 }
0x16ad   :  { %v6983_v35 = vsel %vm1361_vm0, %v6982_v57, %v6981_v43  ;;  %v6991_v18 = vsel %vm1352_vm13, %v6990_v56, %v6989_v30 }
0x16ae   :  { %v6985_v60 = vsel %vm1364_vm1, %v6984_v49, %v6983_v35  ;;  %v6993_v19 = vsel %vm1355_vm14, %v6992_v29, %v6991_v18 }
0x16af   :  { %v6995_v22 = vsel %vm1358_vm15, %v6994_v10, %v6993_v19  ;;  %7002 = vst.msk [vmem:[#allocation10] sm:$0xff] %vm1530_vm2, %v6985_v60 }
0x16b0   :  { %v6997_v11 = vsel %vm1361_vm0, %v6996_v15, %v6995_v22 }
0x16b1   :  { %v6999_v40 = vsel %vm1364_vm1, %v6998_v59, %v6997_v11 }
0x16b2   :  { %7003 = vst.msk [vmem:[#allocation10 + $0x8] sm:$0xff] %vm1530_vm2, %v6999_v40 }
0x16b3   :  { %7016 = dma.vmem_to_hbm [thread:$0]  %s7009_s28, 256, %s7011_s7, [#allocation4], %s7752_s8, %s7752_s8, %s7753_s10  }
0x16b4   :  { %7731 = dma.done.wait [#allocation4], 256  }
0x16b5   :  { %7732 = vsyncadd [#allocation4], 4294967040 }
0x16b6   :  { %7021 = vsyncpa [#allocation3], 1 }
0x16b7   :  { %7022 = vsyncpa [#allocation6], 1 }
0x16b8   :  { %7023 = vsyncpa [#allocation9], 1 }
0x16b9   :  { %7024 = vsyncpa [#allocation4], 1 }

</bundles_post_ra>
